<compile_context>
chip_gen: v6e
topology: v6e:2x2x1
jax: 0.10.0
libtpu: 0.0.40
codegen_flags: <defaults>
</compile_context>

<pallas_src>
import functools
import math

import jax
import jax.numpy as jnp
from jax.experimental import pallas as pl
from jax.experimental.pallas import tpu as pltpu

LANES = 128  # lane-dense channel padding


# ------------------------- fused content-loss kernel ----------------------- #
def _content_loss_kernel(sr_ref, gt_ref, mean_ref, istd_ref,
                         w1_ref, b1_ref, w2_ref, b2_ref,
                         out_ref, pad_ref,
                         *, H, W, inv_count):
    """One grid step == one (sr, gt) image pair.

    All intermediates (normalized inputs, feature maps) live only in the shared
    lane-dense halo buffer `pad_ref` / registers; a single per-image partial
    loss scalar goes back to HBM.
    """
    C = LANES
    HW = H * W
    M = 2 * HW  # sr rows [0:HW), gt rows [HW:2HW)

    # ---- zero only the 1-pixel halo border (interior is overwritten below) ----
    zrow = jnp.zeros((2, 1, W + 2, C), jnp.float32)
    zcol = jnp.zeros((2, H + 2, 1, C), jnp.float32)
    pad_ref[:, 0:1, :, :] = zrow
    pad_ref[:, H + 1:H + 2, :, :] = zrow
    pad_ref[:, :, 0:1, :] = zcol
    pad_ref[:, :, W + 1:W + 2, :] = zcol

    # ---- normalize (f32 VPU) straight into the halo-buffer interior ----------
    mean = mean_ref[...]   # (1, C)
    istd = istd_ref[...]   # (1, C)
    pad_ref[0:1, 1:H + 1, 1:W + 1, :] = (sr_ref[...] - mean) * istd
    pad_ref[1:2, 1:H + 1, 1:W + 1, :] = (gt_ref[...] - mean) * istd

    def conv3x3_relu(w_ref, b_ref):
        # im2col: 9 shifted lane-dense views concatenated along K (each piece
        # is exactly 128 lanes -> lane-aligned concat), one bf16 MXU matmul
        # with f32 accumulation.  Bias add / ReLU stay f32.
        patches = jnp.concatenate(
            [pad_ref[:, dy:dy + H, dx:dx + W, :]
                 .reshape(M, C).astype(jnp.bfloat16)
             for dy in range(3) for dx in range(3)],
            axis=1)                                            # (M, 9*C)
        acc = jnp.dot(patches, w_ref[...],
                      preferred_element_type=jnp.float32)      # (M, C)
        return jnp.maximum(acc + b_ref[...], 0.0)

    f1 = conv3x3_relu(w1_ref, b1_ref)
    # Reuse the same halo buffer for layer 2's input; border is still zero.
    pad_ref[:, 1:H + 1, 1:W + 1, :] = f1.reshape(2, H, W, C)
    f2 = conv3x3_relu(w2_ref, b2_ref)

    d = f2[:HW, :] - f2[HW:, :]                    # padded channels are 0
    out_ref[...] = (jnp.sum(d * d) * inv_count).reshape(1, 1, 1)


# ------------------------------ wrapper ------------------------------------ #
def content_loss(sr_nhwc, gt_nhwc, mean, std, w1, b1, w2, b2):
    N, H, W, Cin = sr_nhwc.shape
    Cfeat = w1.shape[-1]
    C = LANES

    def pad_lanes(x, axis):
        pad = [(0, 0)] * x.ndim
        pad[axis] = (0, C - x.shape[axis])
        return jnp.pad(x.astype(jnp.float32), pad)

    # Lane-dense operands (zero-padded channels stay inert end-to-end).
    sr_p = pad_lanes(sr_nhwc, axis=3)                                # (N,H,W,128)
    gt_p = pad_lanes(gt_nhwc, axis=3)
    mean_p = pad_lanes(mean.reshape(1, Cin), axis=1)                 # (1,128)
    istd_p = pad_lanes((1.0 / std).reshape(1, Cin), axis=1)          # (1,128)

    def pack_w(w):  # (3,3,ci,co) -> (9*128, 128) bf16, im2col row order
        w_full = jnp.zeros((3, 3, C, C), jnp.float32)
        w_full = w_full.at[:, :, :w.shape[2], :w.shape[3]].set(w)
        return w_full.reshape(9 * C, C).astype(jnp.bfloat16)

    w1_p, w2_p = pack_w(w1), pack_w(w2)
    b1_p = pad_lanes(b1.reshape(1, Cfeat), axis=1)
    b2_p = pad_lanes(b2.reshape(1, Cfeat), axis=1)

    inv_count = 1.0 / float(N * H * W * Cfeat)
    kernel = functools.partial(_content_loss_kernel, H=H, W=W,
                               inv_count=inv_count)

    partials = pl.pallas_call(
        kernel,
        out_shape=jax.ShapeDtypeStruct((N, 1, 1), jnp.float32),
        grid=(N,),
        in_specs=[
            pl.BlockSpec((1, H, W, C), lambda n: (n, 0, 0, 0)),   # sr (lane-dense)
            pl.BlockSpec((1, H, W, C), lambda n: (n, 0, 0, 0)),   # gt
            pl.BlockSpec((1, C), lambda n: (0, 0)),               # mean
            pl.BlockSpec((1, C), lambda n: (0, 0)),               # 1/std
            pl.BlockSpec((9 * C, C), lambda n: (0, 0)),           # w1 im2col, bf16
            pl.BlockSpec((1, C), lambda n: (0, 0)),               # b1
            pl.BlockSpec((9 * C, C), lambda n: (0, 0)),           # w2 im2col, bf16
            pl.BlockSpec((1, C), lambda n: (0, 0)),               # b2
        ],
        out_specs=pl.BlockSpec((1, 1, 1), lambda n: (n, 0, 0)),
        scratch_shapes=[
            # single shared halo buffer (sr|gt stacked), reused by both convs
            pltpu.VMEM((2, H + 2, W + 2, C), jnp.float32),
        ],
        compiler_params=pltpu.CompilerParams(
            dimension_semantics=("parallel",),
            vmem_limit_bytes=32 * 1024 * 1024),
    )(sr_p, gt_p, mean_p, istd_p, w1_p, b1_p, w2_p, b2_p)

    # Final reduction over N per-image partials (N elements, negligible).
    return jnp.sum(partials)


# ----------------------------- ContentLoss module -------------------------- #
class ContentLossPallas:
    """Synthetic, scaled-down equivalent of `_ContentLoss.forward`."""

    def __init__(self, key, in_ch=3, feat_ch=8,
                 mean=(0.485, 0.456, 0.406), std=(0.229, 0.224, 0.225)):
        self.mean = jnp.asarray(mean, jnp.float32)
        self.std = jnp.asarray(std, jnp.float32)
        k1, k2, k3, k4 = jax.random.split(key, 4)
        self.w1 = jax.random.normal(k1, (3, 3, in_ch, feat_ch), jnp.float32) \
            * (1.0 / math.sqrt(3 * 3 * in_ch))
        self.b1 = jax.random.normal(k2, (feat_ch,), jnp.float32) * 0.01
        self.w2 = jax.random.normal(k3, (3, 3, feat_ch, feat_ch), jnp.float32) \
            * (1.0 / math.sqrt(3 * 3 * feat_ch))
        self.b2 = jax.random.normal(k4, (feat_ch,), jnp.float32) * 0.01

    def __call__(self, sr_nchw, gt_nchw):
        sr = jnp.transpose(sr_nchw, (0, 2, 3, 1))   # NCHW -> NHWC (layout plumbing)
        gt = jnp.transpose(gt_nchw, (0, 2, 3, 1))
        return content_loss(sr, gt, self.mean, self.std,
                            self.w1, self.b1, self.w2, self.b2)


# ----------------------------- main ---------------------------------------- #
if __name__ == "__main__":
    key = jax.random.PRNGKey(0)
    k_in1, k_in2, k_mod = jax.random.split(key, 3)

    N, C, H, W = 2, 3, 16, 16
    sr = jax.random.uniform(k_in1, (N, C, H, W), jnp.float32)  # images in [0, 1]
    gt = jax.random.uniform(k_in2, (N, C, H, W), jnp.float32)

    model = ContentLossPallas(k_mod)
    loss = jax.jit(model.__call__)(sr, gt)
    loss = jax.block_until_ready(loss)

    # pure-JAX f32 reference for the same synthetic network
    def ref_features(x_nchw):
        x = jnp.transpose(x_nchw, (0, 2, 3, 1))
        x = (x - model.mean.reshape(1, 1, 1, -1)) / model.std.reshape(1, 1, 1, -1)
        x = jax.lax.conv_general_dilated(x, model.w1, (1, 1), "SAME",
                                         dimension_numbers=("NHWC", "HWIO", "NHWC"))
        x = jnp.maximum(x + model.b1, 0.0)
        x = jax.lax.conv_general_dilated(x, model.w2, (1, 1), "SAME",
                                         dimension_numbers=("NHWC", "HWIO", "NHWC"))
        x = jnp.maximum(x + model.b2, 0.0)
        return x

    ref = jnp.mean((ref_features(sr) - ref_features(gt)) ** 2)
    # bf16 MXU operands vs f32 reference -> slightly relaxed tolerance.
    assert jnp.allclose(loss, ref, rtol=3e-2, atol=1e-3), (loss, ref)

    print("KERNEL_OK")
</pallas_src>

<mosaic_0001>
module attributes {stable_mosaic.version = 11 : i64} {
  func.func @_content_loss_kernel(%arg0: i32, %arg1: memref<1x16x16x128xf32, #tpu.memory_space<vmem>>, %arg2: memref<1x16x16x128xf32, #tpu.memory_space<vmem>>, %arg3: memref<1x128xf32, #tpu.memory_space<vmem>>, %arg4: memref<1x128xf32, #tpu.memory_space<vmem>>, %arg5: memref<1152x128xbf16, #tpu.memory_space<vmem>>, %arg6: memref<1x128xf32, #tpu.memory_space<vmem>>, %arg7: memref<1152x128xbf16, #tpu.memory_space<vmem>>, %arg8: memref<1x128xf32, #tpu.memory_space<vmem>>, %arg9: memref<1x1x1xf32, #tpu.memory_space<vmem>>, %arg10: memref<2x18x18x128xf32, #tpu.memory_space<vmem>>) attributes {dimension_semantics = [#tpu.dimension_semantics<parallel>], iteration_bounds = array<i64: 2>, scalar_prefetch = 0 : i64, scratch_operands = 1 : i64, tpu.core_type = #tpu.core_type<tc>, window_params = [{transform_indices = @transform_0, window_bounds = array<i64: 1, 16, 16, 128>}, {transform_indices = @transform_1, window_bounds = array<i64: 1, 16, 16, 128>}, {pipeline_mode = #tpu.pipeline_mode<synchronous>, transform_indices = @transform_2, window_bounds = array<i64: 1, 128>}, {pipeline_mode = #tpu.pipeline_mode<synchronous>, transform_indices = @transform_3, window_bounds = array<i64: 1, 128>}, {pipeline_mode = #tpu.pipeline_mode<synchronous>, transform_indices = @transform_4, window_bounds = array<i64: 1152, 128>}, {pipeline_mode = #tpu.pipeline_mode<synchronous>, transform_indices = @transform_5, window_bounds = array<i64: 1, 128>}, {pipeline_mode = #tpu.pipeline_mode<synchronous>, transform_indices = @transform_6, window_bounds = array<i64: 1152, 128>}, {pipeline_mode = #tpu.pipeline_mode<synchronous>, transform_indices = @transform_7, window_bounds = array<i64: 1, 128>}, {transform_indices = @transform_8, window_bounds = array<i64: 1, 1, 1>}]} {
    %cst = arith.constant 0.000000e+00 : f32
    %0 = vector.broadcast %cst : f32 to vector<2x1x18x128xf32>
    %cst_0 = arith.constant 0.000000e+00 : f32
    %1 = vector.broadcast %cst_0 : f32 to vector<2x18x1x128xf32>
    %c0 = arith.constant 0 : index
    %c0_1 = arith.constant 0 : index
    %c0_2 = arith.constant 0 : index
    %c0_3 = arith.constant 0 : index
    %2 = vector.load %arg10[%c0, %c0_1, %c0_2, %c0_3] : memref<2x18x18x128xf32, #tpu.memory_space<vmem>>, vector<2x1x18x128xf32>
    tpu.vector_store %arg10[%c0, %c0_1, %c0_2, %c0_3], %0 {strides = array<i32>} : memref<2x18x18x128xf32, #tpu.memory_space<vmem>>, vector<2x1x18x128xf32>,
    %c0_4 = arith.constant 0 : index
    %c17 = arith.constant 17 : index
    %c0_5 = arith.constant 0 : index
    %c0_6 = arith.constant 0 : index
    %3 = vector.load %arg10[%c0_4, %c17, %c0_5, %c0_6] : memref<2x18x18x128xf32, #tpu.memory_space<vmem>>, vector<2x1x18x128xf32>
    tpu.vector_store %arg10[%c0_4, %c17, %c0_5, %c0_6], %0 {strides = array<i32>} : memref<2x18x18x128xf32, #tpu.memory_space<vmem>>, vector<2x1x18x128xf32>,
    %c0_7 = arith.constant 0 : index
    %c0_8 = arith.constant 0 : index
    %c0_9 = arith.constant 0 : index
    %c0_10 = arith.constant 0 : index
    %4 = vector.load %arg10[%c0_7, %c0_8, %c0_9, %c0_10] : memref<2x18x18x128xf32, #tpu.memory_space<vmem>>, vector<2x18x1x128xf32>
    tpu.vector_store %arg10[%c0_7, %c0_8, %c0_9, %c0_10], %1 {strides = array<i32>} : memref<2x18x18x128xf32, #tpu.memory_space<vmem>>, vector<2x18x1x128xf32>,
    %c0_11 = arith.constant 0 : index
    %c0_12 = arith.constant 0 : index
    %c17_13 = arith.constant 17 : index
    %c0_14 = arith.constant 0 : index
    %5 = vector.load %arg10[%c0_11, %c0_12, %c17_13, %c0_14] : memref<2x18x18x128xf32, #tpu.memory_space<vmem>>, vector<2x18x1x128xf32>
    tpu.vector_store %arg10[%c0_11, %c0_12, %c17_13, %c0_14], %1 {strides = array<i32>} : memref<2x18x18x128xf32, #tpu.memory_space<vmem>>, vector<2x18x1x128xf32>,
    %c0_15 = arith.constant 0 : index
    %c0_16 = arith.constant 0 : index
    %6 = vector.load %arg3[%c0_15, %c0_16] : memref<1x128xf32, #tpu.memory_space<vmem>>, vector<1x128xf32>
    %c0_17 = arith.constant 0 : index
    %c0_18 = arith.constant 0 : index
    %7 = vector.load %arg4[%c0_17, %c0_18] : memref<1x128xf32, #tpu.memory_space<vmem>>, vector<1x128xf32>
    %c0_19 = arith.constant 0 : index
    %c0_20 = arith.constant 0 : index
    %c0_21 = arith.constant 0 : index
    %c0_22 = arith.constant 0 : index
    %8 = vector.load %arg1[%c0_19, %c0_20, %c0_21, %c0_22] : memref<1x16x16x128xf32, #tpu.memory_space<vmem>>, vector<1x16x16x128xf32>
    %9 = vector.shape_cast %6 : vector<1x128xf32> to vector<1x1x1x128xf32>
    %10 = vector.broadcast %9 : vector<1x1x1x128xf32> to vector<1x16x16x128xf32>
    %11 = arith.subf %8, %10 : vector<1x16x16x128xf32>
    %12 = vector.shape_cast %7 : vector<1x128xf32> to vector<1x1x1x128xf32>
    %13 = vector.broadcast %12 : vector<1x1x1x128xf32> to vector<1x16x16x128xf32>
    %14 = arith.mulf %11, %13 : vector<1x16x16x128xf32>
    %c0_23 = arith.constant 0 : index
    %c1 = arith.constant 1 : index
    %c1_24 = arith.constant 1 : index
    %c0_25 = arith.constant 0 : index
    %15 = vector.load %arg10[%c0_23, %c1, %c1_24, %c0_25] : memref<2x18x18x128xf32, #tpu.memory_space<vmem>>, vector<1x16x16x128xf32>
    tpu.vector_store %arg10[%c0_23, %c1, %c1_24, %c0_25], %14 {strides = array<i32>} : memref<2x18x18x128xf32, #tpu.memory_space<vmem>>, vector<1x16x16x128xf32>,
    %c0_26 = arith.constant 0 : index
    %c0_27 = arith.constant 0 : index
    %c0_28 = arith.constant 0 : index
    %c0_29 = arith.constant 0 : index
    %16 = vector.load %arg2[%c0_26, %c0_27, %c0_28, %c0_29] : memref<1x16x16x128xf32, #tpu.memory_space<vmem>>, vector<1x16x16x128xf32>
    %17 = vector.shape_cast %6 : vector<1x128xf32> to vector<1x1x1x128xf32>
    %18 = vector.broadcast %17 : vector<1x1x1x128xf32> to vector<1x16x16x128xf32>
    %19 = arith.subf %16, %18 : vector<1x16x16x128xf32>
    %20 = vector.shape_cast %7 : vector<1x128xf32> to vector<1x1x1x128xf32>
    %21 = vector.broadcast %20 : vector<1x1x1x128xf32> to vector<1x16x16x128xf32>
    %22 = arith.mulf %19, %21 : vector<1x16x16x128xf32>
    %c1_30 = arith.constant 1 : index
    %c1_31 = arith.constant 1 : index
    %c1_32 = arith.constant 1 : index
    %c0_33 = arith.constant 0 : index
    %23 = vector.load %arg10[%c1_30, %c1_31, %c1_32, %c0_33] : memref<2x18x18x128xf32, #tpu.memory_space<vmem>>, vector<1x16x16x128xf32>
    tpu.vector_store %arg10[%c1_30, %c1_31, %c1_32, %c0_33], %22 {strides = array<i32>} : memref<2x18x18x128xf32, #tpu.memory_space<vmem>>, vector<1x16x16x128xf32>,
    %c0_34 = arith.constant 0 : index
    %c0_35 = arith.constant 0 : index
    %c0_36 = arith.constant 0 : index
    %c0_37 = arith.constant 0 : index
    %24 = vector.load %arg10[%c0_34, %c0_35, %c0_36, %c0_37] : memref<2x18x18x128xf32, #tpu.memory_space<vmem>>, vector<2x16x16x128xf32>
    %25 = vector.shape_cast %24 : vector<2x16x16x128xf32> to vector<512x128xf32>
    %26 = arith.truncf %25 : vector<512x128xf32> to vector<512x128xbf16>
    %c0_38 = arith.constant 0 : index
    %c0_39 = arith.constant 0 : index
    %c1_40 = arith.constant 1 : index
    %c0_41 = arith.constant 0 : index
    %27 = vector.load %arg10[%c0_38, %c0_39, %c1_40, %c0_41] : memref<2x18x18x128xf32, #tpu.memory_space<vmem>>, vector<2x16x16x128xf32>
    %28 = vector.shape_cast %27 : vector<2x16x16x128xf32> to vector<512x128xf32>
    %29 = arith.truncf %28 : vector<512x128xf32> to vector<512x128xbf16>
    %c0_42 = arith.constant 0 : index
    %c0_43 = arith.constant 0 : index
    %c2 = arith.constant 2 : index
    %c0_44 = arith.constant 0 : index
    %30 = vector.load %arg10[%c0_42, %c0_43, %c2, %c0_44] : memref<2x18x18x128xf32, #tpu.memory_space<vmem>>, vector<2x16x16x128xf32>
    %31 = vector.shape_cast %30 : vector<2x16x16x128xf32> to vector<512x128xf32>
    %32 = arith.truncf %31 : vector<512x128xf32> to vector<512x128xbf16>
    %c0_45 = arith.constant 0 : index
    %c1_46 = arith.constant 1 : index
    %c0_47 = arith.constant 0 : index
    %c0_48 = arith.constant 0 : index
    %33 = vector.load %arg10[%c0_45, %c1_46, %c0_47, %c0_48] : memref<2x18x18x128xf32, #tpu.memory_space<vmem>>, vector<2x16x16x128xf32>
    %34 = vector.shape_cast %33 : vector<2x16x16x128xf32> to vector<512x128xf32>
    %35 = arith.truncf %34 : vector<512x128xf32> to vector<512x128xbf16>
    %c0_49 = arith.constant 0 : index
    %c1_50 = arith.constant 1 : index
    %c1_51 = arith.constant 1 : index
    %c0_52 = arith.constant 0 : index
    %36 = vector.load %arg10[%c0_49, %c1_50, %c1_51, %c0_52] : memref<2x18x18x128xf32, #tpu.memory_space<vmem>>, vector<2x16x16x128xf32>
    %37 = vector.shape_cast %36 : vector<2x16x16x128xf32> to vector<512x128xf32>
    %38 = arith.truncf %37 : vector<512x128xf32> to vector<512x128xbf16>
    %c0_53 = arith.constant 0 : index
    %c1_54 = arith.constant 1 : index
    %c2_55 = arith.constant 2 : index
    %c0_56 = arith.constant 0 : index
    %39 = vector.load %arg10[%c0_53, %c1_54, %c2_55, %c0_56] : memref<2x18x18x128xf32, #tpu.memory_space<vmem>>, vector<2x16x16x128xf32>
    %40 = vector.shape_cast %39 : vector<2x16x16x128xf32> to vector<512x128xf32>
    %41 = arith.truncf %40 : vector<512x128xf32> to vector<512x128xbf16>
    %c0_57 = arith.constant 0 : index
    %c2_58 = arith.constant 2 : index
    %c0_59 = arith.constant 0 : index
    %c0_60 = arith.constant 0 : index
    %42 = vector.load %arg10[%c0_57, %c2_58, %c0_59, %c0_60] : memref<2x18x18x128xf32, #tpu.memory_space<vmem>>, vector<2x16x16x128xf32>
    %43 = vector.shape_cast %42 : vector<2x16x16x128xf32> to vector<512x128xf32>
    %44 = arith.truncf %43 : vector<512x128xf32> to vector<512x128xbf16>
    %c0_61 = arith.constant 0 : index
    %c2_62 = arith.constant 2 : index
    %c1_63 = arith.constant 1 : index
    %c0_64 = arith.constant 0 : index
    %45 = vector.load %arg10[%c0_61, %c2_62, %c1_63, %c0_64] : memref<2x18x18x128xf32, #tpu.memory_space<vmem>>, vector<2x16x16x128xf32>
    %46 = vector.shape_cast %45 : vector<2x16x16x128xf32> to vector<512x128xf32>
    %47 = arith.truncf %46 : vector<512x128xf32> to vector<512x128xbf16>
    %c0_65 = arith.constant 0 : index
    %c2_66 = arith.constant 2 : index
    %c2_67 = arith.constant 2 : index
    %c0_68 = arith.constant 0 : index
    %48 = vector.load %arg10[%c0_65, %c2_66, %c2_67, %c0_68] : memref<2x18x18x128xf32, #tpu.memory_space<vmem>>, vector<2x16x16x128xf32>
    %49 = vector.shape_cast %48 : vector<2x16x16x128xf32> to vector<512x128xf32>
    %50 = arith.truncf %49 : vector<512x128xf32> to vector<512x128xbf16>
    %51 = tpu.concatenate %26, %29, %32, %35, %38, %41, %44, %47, %50 in 1 : vector<512x128xbf16>, vector<512x128xbf16>, vector<512x128xbf16>, vector<512x128xbf16>, vector<512x128xbf16>, vector<512x128xbf16>, vector<512x128xbf16>, vector<512x128xbf16>, vector<512x128xbf16> -> vector<512x1152xbf16>
    %c0_69 = arith.constant 0 : index
    %c0_70 = arith.constant 0 : index
    %52 = vector.load %arg5[%c0_69, %c0_70] : memref<1152x128xbf16, #tpu.memory_space<vmem>>, vector<1152x128xbf16>
    %cst_71 = arith.constant dense<0.000000e+00> : vector<512x128xf32>
    %53 = tpu.matmul %51, %52, %cst_71 {dimension_numbers = #tpu.dot_dimension_numbers<[1], [0], [0], [1], [0, 0, 1, 1], [], []>} : vector<512x1152xbf16>, vector<1152x128xbf16>, vector<512x128xf32> -> vector<512x128xf32>
    %c0_72 = arith.constant 0 : index
    %c0_73 = arith.constant 0 : index
    %54 = vector.load %arg6[%c0_72, %c0_73] : memref<1x128xf32, #tpu.memory_space<vmem>>, vector<1x128xf32>
    %55 = vector.broadcast %54 : vector<1x128xf32> to vector<512x128xf32>
    %56 = arith.addf %53, %55 : vector<512x128xf32>
    %cst_74 = arith.constant 0.000000e+00 : f32
    %57 = vector.broadcast %cst_74 : f32 to vector<512x128xf32>
    %58 = arith.maximumf %56, %57 : vector<512x128xf32>
    %59 = vector.shape_cast %58 : vector<512x128xf32> to vector<2x16x16x128xf32>
    %c0_75 = arith.constant 0 : index
    %c1_76 = arith.constant 1 : index
    %c1_77 = arith.constant 1 : index
    %c0_78 = arith.constant 0 : index
    %60 = vector.load %arg10[%c0_75, %c1_76, %c1_77, %c0_78] : memref<2x18x18x128xf32, #tpu.memory_space<vmem>>, vector<2x16x16x128xf32>
    tpu.vector_store %arg10[%c0_75, %c1_76, %c1_77, %c0_78], %59 {strides = array<i32>} : memref<2x18x18x128xf32, #tpu.memory_space<vmem>>, vector<2x16x16x128xf32>,
    %c0_79 = arith.constant 0 : index
    %c0_80 = arith.constant 0 : index
    %c0_81 = arith.constant 0 : index
    %c0_82 = arith.constant 0 : index
    %61 = vector.load %arg10[%c0_79, %c0_80, %c0_81, %c0_82] : memref<2x18x18x128xf32, #tpu.memory_space<vmem>>, vector<2x16x16x128xf32>
    %62 = vector.shape_cast %61 : vector<2x16x16x128xf32> to vector<512x128xf32>
    %63 = arith.truncf %62 : vector<512x128xf32> to vector<512x128xbf16>
    %c0_83 = arith.constant 0 : index
    %c0_84 = arith.constant 0 : index
    %c1_85 = arith.constant 1 : index
    %c0_86 = arith.constant 0 : index
    %64 = vector.load %arg10[%c0_83, %c0_84, %c1_85, %c0_86] : memref<2x18x18x128xf32, #tpu.memory_space<vmem>>, vector<2x16x16x128xf32>
    %65 = vector.shape_cast %64 : vector<2x16x16x128xf32> to vector<512x128xf32>
    %66 = arith.truncf %65 : vector<512x128xf32> to vector<512x128xbf16>
    %c0_87 = arith.constant 0 : index
    %c0_88 = arith.constant 0 : index
    %c2_89 = arith.constant 2 : index
    %c0_90 = arith.constant 0 : index
    %67 = vector.load %arg10[%c0_87, %c0_88, %c2_89, %c0_90] : memref<2x18x18x128xf32, #tpu.memory_space<vmem>>, vector<2x16x16x128xf32>
    %68 = vector.shape_cast %67 : vector<2x16x16x128xf32> to vector<512x128xf32>
    %69 = arith.truncf %68 : vector<512x128xf32> to vector<512x128xbf16>
    %c0_91 = arith.constant 0 : index
    %c1_92 = arith.constant 1 : index
    %c0_93 = arith.constant 0 : index
    %c0_94 = arith.constant 0 : index
    %70 = vector.load %arg10[%c0_91, %c1_92, %c0_93, %c0_94] : memref<2x18x18x128xf32, #tpu.memory_space<vmem>>, vector<2x16x16x128xf32>
    %71 = vector.shape_cast %70 : vector<2x16x16x128xf32> to vector<512x128xf32>
    %72 = arith.truncf %71 : vector<512x128xf32> to vector<512x128xbf16>
    %c0_95 = arith.constant 0 : index
    %c1_96 = arith.constant 1 : index
    %c1_97 = arith.constant 1 : index
    %c0_98 = arith.constant 0 : index
    %73 = vector.load %arg10[%c0_95, %c1_96, %c1_97, %c0_98] : memref<2x18x18x128xf32, #tpu.memory_space<vmem>>, vector<2x16x16x128xf32>
    %74 = vector.shape_cast %73 : vector<2x16x16x128xf32> to vector<512x128xf32>
    %75 = arith.truncf %74 : vector<512x128xf32> to vector<512x128xbf16>
    %c0_99 = arith.constant 0 : index
    %c1_100 = arith.constant 1 : index
    %c2_101 = arith.constant 2 : index
    %c0_102 = arith.constant 0 : index
    %76 = vector.load %arg10[%c0_99, %c1_100, %c2_101, %c0_102] : memref<2x18x18x128xf32, #tpu.memory_space<vmem>>, vector<2x16x16x128xf32>
    %77 = vector.shape_cast %76 : vector<2x16x16x128xf32> to vector<512x128xf32>
    %78 = arith.truncf %77 : vector<512x128xf32> to vector<512x128xbf16>
    %c0_103 = arith.constant 0 : index
    %c2_104 = arith.constant 2 : index
    %c0_105 = arith.constant 0 : index
    %c0_106 = arith.constant 0 : index
    %79 = vector.load %arg10[%c0_103, %c2_104, %c0_105, %c0_106] : memref<2x18x18x128xf32, #tpu.memory_space<vmem>>, vector<2x16x16x128xf32>
    %80 = vector.shape_cast %79 : vector<2x16x16x128xf32> to vector<512x128xf32>
    %81 = arith.truncf %80 : vector<512x128xf32> to vector<512x128xbf16>
    %c0_107 = arith.constant 0 : index
    %c2_108 = arith.constant 2 : index
    %c1_109 = arith.constant 1 : index
    %c0_110 = arith.constant 0 : index
    %82 = vector.load %arg10[%c0_107, %c2_108, %c1_109, %c0_110] : memref<2x18x18x128xf32, #tpu.memory_space<vmem>>, vector<2x16x16x128xf32>
    %83 = vector.shape_cast %82 : vector<2x16x16x128xf32> to vector<512x128xf32>
    %84 = arith.truncf %83 : vector<512x128xf32> to vector<512x128xbf16>
    %c0_111 = arith.constant 0 : index
    %c2_112 = arith.constant 2 : index
    %c2_113 = arith.constant 2 : index
    %c0_114 = arith.constant 0 : index
    %85 = vector.load %arg10[%c0_111, %c2_112, %c2_113, %c0_114] : memref<2x18x18x128xf32, #tpu.memory_space<vmem>>, vector<2x16x16x128xf32>
    %86 = vector.shape_cast %85 : vector<2x16x16x128xf32> to vector<512x128xf32>
    %87 = arith.truncf %86 : vector<512x128xf32> to vector<512x128xbf16>
    %88 = tpu.concatenate %63, %66, %69, %72, %75, %78, %81, %84, %87 in 1 : vector<512x128xbf16>, vector<512x128xbf16>, vector<512x128xbf16>, vector<512x128xbf16>, vector<512x128xbf16>, vector<512x128xbf16>, vector<512x128xbf16>, vector<512x128xbf16>, vector<512x128xbf16> -> vector<512x1152xbf16>
    %c0_115 = arith.constant 0 : index
    %c0_116 = arith.constant 0 : index
    %89 = vector.load %arg7[%c0_115, %c0_116] : memref<1152x128xbf16, #tpu.memory_space<vmem>>, vector<1152x128xbf16>
    %cst_117 = arith.constant dense<0.000000e+00> : vector<512x128xf32>
    %90 = tpu.matmul %88, %89, %cst_117 {dimension_numbers = #tpu.dot_dimension_numbers<[1], [0], [0], [1], [0, 0, 1, 1], [], []>} : vector<512x1152xbf16>, vector<1152x128xbf16>, vector<512x128xf32> -> vector<512x128xf32>
    %c0_118 = arith.constant 0 : index
    %c0_119 = arith.constant 0 : index
    %91 = vector.load %arg8[%c0_118, %c0_119] : memref<1x128xf32, #tpu.memory_space<vmem>>, vector<1x128xf32>
    %92 = vector.broadcast %91 : vector<1x128xf32> to vector<512x128xf32>
    %93 = arith.addf %90, %92 : vector<512x128xf32>
    %cst_120 = arith.constant 0.000000e+00 : f32
    %94 = vector.broadcast %cst_120 : f32 to vector<512x128xf32>
    %95 = arith.maximumf %93, %94 : vector<512x128xf32>
    %96 = vector.extract_strided_slice %95 {offsets = [0, 0], sizes = [256, 128], strides = [1, 1]} : vector<512x128xf32> to vector<256x128xf32>
    %97 = vector.extract_strided_slice %95 {offsets = [256, 0], sizes = [256, 128], strides = [1, 1]} : vector<512x128xf32> to vector<256x128xf32>
    %98 = arith.subf %96, %97 : vector<256x128xf32>
    %99 = arith.mulf %98, %98 : vector<256x128xf32>
    %100 = vector.shape_cast %99 : vector<256x128xf32> to vector<1x256x128xf32>
    %cst_121 = arith.constant dense<0.000000e+00> : vector<1xf32>
    %101 = vector.multi_reduction <add>, %100, %cst_121 [1, 2] : vector<1x256x128xf32> to vector<1xf32>
    %102 = vector.shape_cast %101 : vector<1xf32> to vector<1x1x1xf32>
    %103 = vector.extract %102[0, 0, 0] : f32 from vector<1x1x1xf32>
    %cst_122 = arith.constant 2.44140625E-4 : f32
    %104 = arith.mulf %103, %cst_122 : f32
    %105 = vector.broadcast %104 : f32 to vector<1x1x1xf32>
    %c0_123 = arith.constant 0 : index
    %c0_124 = arith.constant 0 : index
    %c0_125 = arith.constant 0 : index
    %106 = vector.load %arg9[%c0_123, %c0_124, %c0_125] : memref<1x1x1xf32, #tpu.memory_space<vmem>>, vector<1x1x1xf32>
    tpu.vector_store %arg9[%c0_123, %c0_124, %c0_125], %105 {strides = array<i32>} : memref<1x1x1xf32, #tpu.memory_space<vmem>>, vector<1x1x1xf32>,
    return
  }
  func.func @transform_0(%arg0: i32) -> (i32, i32, i32, i32) {
    %c0_i32 = arith.constant 0 : i32
    %c0_i32_0 = arith.constant 0 : i32
    %c0_i32_1 = arith.constant 0 : i32
    %c0_i32_2 = arith.constant 0 : i32
    return %arg0, %c0_i32, %c0_i32_0, %c0_i32_1 : i32, i32, i32, i32
  }
  func.func @transform_1(%arg0: i32) -> (i32, i32, i32, i32) {
    %c0_i32 = arith.constant 0 : i32
    %c0_i32_0 = arith.constant 0 : i32
    %c0_i32_1 = arith.constant 0 : i32
    %c0_i32_2 = arith.constant 0 : i32
    return %arg0, %c0_i32, %c0_i32_0, %c0_i32_1 : i32, i32, i32, i32
  }
  func.func @transform_2(%arg0: i32) -> (i32, i32) {
    %c0_i32 = arith.constant 0 : i32
    %c0_i32_0 = arith.constant 0 : i32
    %c0_i32_1 = arith.constant 0 : i32
    return %c0_i32, %c0_i32_0 : i32, i32
  }
  func.func @transform_3(%arg0: i32) -> (i32, i32) {
    %c0_i32 = arith.constant 0 : i32
    %c0_i32_0 = arith.constant 0 : i32
    %c0_i32_1 = arith.constant 0 : i32
    return %c0_i32, %c0_i32_0 : i32, i32
  }
  func.func @transform_4(%arg0: i32) -> (i32, i32) {
    %c0_i32 = arith.constant 0 : i32
    %c0_i32_0 = arith.constant 0 : i32
    %c0_i32_1 = arith.constant 0 : i32
    return %c0_i32, %c0_i32_0 : i32, i32
  }
  func.func @transform_5(%arg0: i32) -> (i32, i32) {
    %c0_i32 = arith.constant 0 : i32
    %c0_i32_0 = arith.constant 0 : i32
    %c0_i32_1 = arith.constant 0 : i32
    return %c0_i32, %c0_i32_0 : i32, i32
  }
  func.func @transform_6(%arg0: i32) -> (i32, i32) {
    %c0_i32 = arith.constant 0 : i32
    %c0_i32_0 = arith.constant 0 : i32
    %c0_i32_1 = arith.constant 0 : i32
    return %c0_i32, %c0_i32_0 : i32, i32
  }
  func.func @transform_7(%arg0: i32) -> (i32, i32) {
    %c0_i32 = arith.constant 0 : i32
    %c0_i32_0 = arith.constant 0 : i32
    %c0_i32_1 = arith.constant 0 : i32
    return %c0_i32, %c0_i32_0 : i32, i32
  }
  func.func @transform_8(%arg0: i32) -> (i32, i32, i32) {
    %c0_i32 = arith.constant 0 : i32
    %c0_i32_0 = arith.constant 0 : i32
    %c0_i32_1 = arith.constant 0 : i32
    return %arg0, %c0_i32, %c0_i32_0 : i32, i32, i32
  }
}

</mosaic_0001>

<bundles_post_ra>
// kernel: a_call__.1
= control target key start
LH: loop header
LB: loop body
LE: loop exit
PB: predicated region body
PF: predicated region fallthrough
CT: control target
= control target key end

     0   :  { %s7445_s27 = smov 0   ;;  %s9862_s0 = inlined_call_operand.vmem [shape: f32[2,16,16,128], index: 0, kind: input, shape index: {}]   ;;  %s9863_s1 = inlined_call_operand.vmem [shape: f32[2,16,16,128], index: 1, kind: input, shape index: {}]   ;;  %s9864_s2 = inlined_call_operand.vmem [shape: f32[1,128], index: 2, kind: input, shape index: {}]   ;;  %s9865_s3 = inlined_call_operand.vmem [shape: f32[1,128], index: 3, kind: input, shape index: {}]   ;;  %s9866_s4 = inlined_call_operand.vmem [shape: bf16[1152,128], index: 4, kind: input, shape index: {}]   ;;  %s9867_s5 = inlined_call_operand.vmem [shape: f32[1,128], index: 5, kind: input, shape index: {}]   ;;  %s9868_s6 = inlined_call_operand.vmem [shape: bf16[1152,128], index: 6, kind: input, shape index: {}]   ;;  %s9869_s7 = inlined_call_operand.vmem [shape: f32[1,128], index: 7, kind: input, shape index: {}]   ;;  %s9870_s8 = inlined_call_operand.vmem [shape: f32[2,1,1], index: 8, kind: output, shape index: {}]  }
   0x1 LB: > { %s6824_s28 = sadd.s32 4294967295, %s7396_s27   ;;  %p6828_p0 = scmp.ge.s32.totalorder %s7396_s27, 1  ;;  %s7396_s27 = sphi %s7445_s27, %s18_s27  }
   0x2   : > { %p272_p1 = scmp.lt.s32.totalorder %s7396_s27, 3 }
   0x4   : > { %p273_p2 = pnand %p6828_p0, %p272_p1 }
   0x6   : > { %276 = sbr.rel (%p273_p2) target bundleno = 1843 (0x733), region = 52 }
   0xb   : > { %v7237_v0 = vld [vmem:[%s9866_s4 + $0x38] sm:$0xff]   ;;  %v9871_v1 = vmov 0   ;;  %v7466_v3 = vld [vmem:[%s9866_s4 + $0x30] sm:$0xff]   ;;  %v7399_v4 = vmov 0.0   ;;  %v7241_v6 = vld [vmem:[%s9866_s4 + $0x28] sm:$0xff]   ;;  %p309_p3 = scmp.lt.s32.totalorder %s6824_s28, 1 }
   0xc   : > { %2128 = vmatprep.subr.bf16.mxu0 %v9871_v1  ;;  %2417 = vmatprep.subr.bf16.mxu1 %v9871_v1  ;;  %v7461_v2 = vld [vmem:[%s9866_s4 + $0xb8] sm:$0xff]   ;;  %323 = vst [vmem:[#allocation2] sm:$0xff] %v7399_v4  ;;  %324 = vst [vmem:[#allocation2 + $0x8] sm:$0xff] %v7399_v4  ;;  %v7240_v5 = vld [vmem:[%s9866_s4 + $0xb0] sm:$0xff]   ;;  %vm6763_vm0 = vcmask 0  }
   0xd   : > { %2129 = vmatpush1.bf16.msra.mxu0 %v7237_v0  ;;  %325 = vst [vmem:[#allocation2 + $0x10] sm:$0x3] %v7399_v4  ;;  %326 = vst [vmem:[#allocation2 + $0x1b0] sm:$0xff] %v7399_v4  ;;  %2418 = vmatpush1.bf16.msra.mxu1 %v7461_v2  ;;  %v7242_v7 = vld [vmem:[%s9866_s4 + $0xa8] sm:$0xff]   ;;  %v7243_v8 = vld [vmem:[%s9866_s4 + $0x20] sm:$0xff]   ;;  %s10059_s28 = smov (!%p309_p3, %s6824_s28), 1 }
   0xe   : > { %327 = vst [vmem:[#allocation2 + $0x1b8] sm:$0xff] %v7399_v4  ;;  %328 = vst [vmem:[#allocation2 + $0x1c0] sm:$0x3] %v7399_v4  ;;  %2130 = vmatprep.subr.bf16.mxu0 %v9871_v1  ;;  %2419 = vmatprep.subr.bf16.mxu1 %v9871_v1  ;;  %v7244_v9 = vld [vmem:[%s9866_s4 + $0xa0] sm:$0xff]   ;;  %v7245_v10 = vld [vmem:[%s9866_s4 + $0x18] sm:$0xff]   ;;  %s6983_s19 = sshll.u32 %s10059_s28, 8  ;;  %s321_s25 = scalar_lea.vmem %s9870_s8, %s10059_s28 }
   0xf   : > { %330 = vst [vmem:[#allocation2 + $0x198] sm:$0xff] %v7399_v4  ;;  %331 = vst [vmem:[#allocation2 + $0x1a0] sm:$0xff] %v7399_v4  ;;  %v7246_v11 = vld [vmem:[%s9866_s4 + $0x98] sm:$0xff]   ;;  %v7247_v12 = vld [vmem:[%s9866_s4 + $0x10] sm:$0xff]   ;;  %s7625_s26 = scalar_lea.vmem %s9862_s0, %s6983_s19  ;;  %s7876_s9 = scalar_lea.vmem %s9863_s1, %s6983_s19 }
  0x10   : > { %332 = vst [vmem:[#allocation2 + $0x1a8] sm:$0x3] %v7399_v4  ;;  %333 = vst [vmem:[#allocation2 + $0x348] sm:$0xff] %v7399_v4  ;;  %v7248_v13 = vld [vmem:[%s9866_s4 + $0x90] sm:$0xff]   ;;  %v7249_v14 = vld [vmem:[%s9866_s4 + $0x8] sm:$0xff]  }
  0x11   : > { %334 = vst [vmem:[#allocation2 + $0x350] sm:$0xff] %v7399_v4  ;;  %335 = vst [vmem:[#allocation2 + $0x358] sm:$0x3] %v7399_v4  ;;  %2131 = vmatpush1.bf16.msra.mxu0 %v7466_v3  ;;  %2420 = vmatpush1.bf16.msra.mxu1 %v7240_v5  ;;  %v7250_v15 = vld [vmem:[%s9866_s4 + $0x88] sm:$0xff]   ;;  %v7251_v16 = vld [vmem:[%s9866_s4] sm:$0xff]  }
  0x12   : > { %337 = vst [vmem:[#allocation2 + $0x18] sm:$0x1] %v7399_v4  ;;  %338 = vst [vmem:[#allocation2 + $0x30] sm:$0x1] %v7399_v4  ;;  %2132 = vmatprep.subr.bf16.mxu0 %v9871_v1  ;;  %2421 = vmatprep.subr.bf16.mxu1 %v9871_v1  ;;  %v7252_v17 = vld [vmem:[%s9866_s4 + $0x80] sm:$0xff]   ;;  %v7253_v18 = vld [vmem:[%s9866_s4 + $0x78] sm:$0xff]  }
  0x13   : > { %339 = vst [vmem:[#allocation2 + $0x48] sm:$0x1] %v7399_v4  ;;  %340 = vst [vmem:[#allocation2 + $0x60] sm:$0x1] %v7399_v4  ;;  %v7254_v19 = vld [vmem:[%s9866_s4 + $0xf8] sm:$0xff]   ;;  %v776_v20 = vld [vmem:[#allocation2 + $0x1] sm:$0xff] }
  0x14   : > { %341 = vst [vmem:[#allocation2 + $0x78] sm:$0x1] %v7399_v4  ;;  %342 = vst [vmem:[#allocation2 + $0x90] sm:$0x1] %v7399_v4  ;;  %v777_v21 = vld [vmem:[#allocation2 + $0x9] sm:$0xff]  ;;  %v410_v26 = vld [vmem:[%s7625_s26] sm:$0xff] }
  0x15   : > { %343 = vst [vmem:[#allocation2 + $0xa8] sm:$0x1] %v7399_v4  ;;  %344 = vst [vmem:[#allocation2 + $0xc0] sm:$0x1] %v7399_v4  ;;  %2133 = vmatpush1.bf16.msra.mxu0 %v7241_v6  ;;  %2422 = vmatpush1.bf16.msra.mxu1 %v7242_v7  ;;  %v7255_v22 = vld [vmem:[%s9866_s4 + $0x70] sm:$0xff]   ;;  %v840_v23 = vpack.c.bf16 %v777_v21, %v776_v20  ;;  %v411_v27 = vld [vmem:[%s7625_s26 + $0x8] sm:$0xff] }
  0x16   : > { %345 = vst [vmem:[#allocation2 + $0xd8] sm:$0x1] %v7399_v4  ;;  %346 = vst [vmem:[#allocation2 + $0xf0] sm:$0x1] %v7399_v4  ;;  %2134 = vmatprep.subr.bf16.mxu0 %v9871_v1  ;;  %2423 = vmatprep.subr.bf16.mxu1 %v9871_v1  ;;  %v7635_v24 = vld [vmem:[%s9864_s2] ss:$0 sm:$0xff] }
  0x17   : > { %347 = vst [vmem:[#allocation2 + $0x108] sm:$0x1] %v7399_v4  ;;  %348 = vst [vmem:[#allocation2 + $0x120] sm:$0x1] %v7399_v4  ;;  %v7640_v25 = vld [vmem:[%s9865_s3] ss:$0 sm:$0xff]  ;;  %2160 = vmatprep.mubr.bf16.mxu0 %v840_v23  ;;  %v448_v28 = vsub.f32 %v410_v26, %v7635_v24  ;;  %v449_v30 = vsub.f32 %v411_v27, %v7635_v24 }
  0x18   : > { %349 = vst [vmem:[#allocation2 + $0x138] sm:$0x1] %v7399_v4  ;;  %350 = vst [vmem:[#allocation2 + $0x150] sm:$0x1] %v7399_v4  ;;  %v7256_v29 = vld [vmem:[%s9866_s4 + $0xf0] sm:$0xff]   ;;  %v7257_v31 = vld [vmem:[%s9866_s4 + $0x68] sm:$0xff]  }
  0x19   : > { %351 = vst [vmem:[#allocation2 + $0x168] sm:$0x1] %v7399_v4  ;;  %352 = vst [vmem:[#allocation2 + $0x180] sm:$0x1] %v7399_v4  ;;  %2135 = vmatpush1.bf16.msra.mxu0 %v7243_v8  ;;  %2424 = vmatpush1.bf16.msra.mxu1 %v7244_v9  ;;  %v7655_v32 = vmul.f32 %v7640_v25, %v448_v28  ;;  %v412_v33 = vld [vmem:[%s7625_s26 + $0x10] sm:$0xff]  ;;  %v413_v34 = vld [vmem:[%s7625_s26 + $0x18] sm:$0xff]  ;;  %v7661_v36 = vmul.f32 %v7640_v25, %v449_v30 }
  0x1a   : > { %355 = vst [vmem:[#allocation2 + $0x1c8] sm:$0x1] %v7399_v4  ;;  %356 = vst [vmem:[#allocation2 + $0x1e0] sm:$0x1] %v7399_v4  ;;  %2136 = vmatprep.subr.bf16.mxu0 %v9871_v1  ;;  %2425 = vmatprep.subr.bf16.mxu1 %v9871_v1  ;;  %v414_v35 = vld [vmem:[%s7625_s26 + $0x20] sm:$0xff]  ;;  %v450_v37 = vsub.f32 %v412_v33, %v7635_v24  ;;  %v451_v38 = vsub.f32 %v413_v34, %v7635_v24  ;;  %v415_v39 = vld [vmem:[%s7625_s26 + $0x28] sm:$0xff] }
  0x1b   : > { %357 = vst [vmem:[#allocation2 + $0x1f8] sm:$0x1] %v7399_v4  ;;  %358 = vst [vmem:[#allocation2 + $0x210] sm:$0x1] %v7399_v4  ;;  %v452_v40 = vsub.f32 %v414_v35, %v7635_v24  ;;  %v7258_v41 = vld [vmem:[%s9866_s4 + $0xe8] sm:$0xff]   ;;  %v453_v42 = vsub.f32 %v415_v39, %v7635_v24  ;;  %v416_v43 = vld [vmem:[%s7625_s26 + $0x30] sm:$0xff] }
  0x1c   : > { %359 = vst [vmem:[#allocation2 + $0x228] sm:$0x1] %v7399_v4  ;;  %360 = vst [vmem:[#allocation2 + $0x240] sm:$0x1] %v7399_v4  ;;  %v417_v44 = vld [vmem:[%s7625_s26 + $0x38] sm:$0xff]  ;;  %v7677_v45 = vmul.f32 %v7640_v25, %v450_v37  ;;  %v7680_v46 = vmul.f32 %v7640_v25, %v451_v38  ;;  %v418_v47 = vld [vmem:[%s7625_s26 + $0x40] sm:$0xff]  ;;  %v454_v52 = vsub.f32 %v416_v43, %v7635_v24 }
  0x1d   : > { %361 = vst [vmem:[#allocation2 + $0x258] sm:$0x1] %v7399_v4  ;;  %362 = vst [vmem:[#allocation2 + $0x270] sm:$0x1] %v7399_v4  ;;  %2137 = vmatpush1.bf16.msra.mxu0 %v7245_v10  ;;  %2426 = vmatpush1.bf16.msra.mxu1 %v7246_v11  ;;  %v419_v48 = vld [vmem:[%s7625_s26 + $0x48] sm:$0xff]  ;;  %v7259_v49 = vld [vmem:[%s9866_s4 + $0x60] sm:$0xff]   ;;  %v7689_v50 = vmul.f32 %v7640_v25, %v452_v40  ;;  %v7692_v51 = vmul.f32 %v7640_v25, %v453_v42 }
  0x1e   : > { %363 = vst [vmem:[#allocation2 + $0x288] sm:$0x1] %v7399_v4  ;;  %364 = vst [vmem:[#allocation2 + $0x2a0] sm:$0x1] %v7399_v4  ;;  %2138 = vmatprep.subr.bf16.mxu0 %v9871_v1  ;;  %2427 = vmatprep.subr.bf16.mxu1 %v9871_v1  ;;  %v455_v53 = vsub.f32 %v417_v44, %v7635_v24  ;;  %v420_v54 = vld [vmem:[%s7625_s26 + $0x50] sm:$0xff]  ;;  %v456_v55 = vsub.f32 %v418_v47, %v7635_v24  ;;  %v421_v57 = vld [vmem:[%s7625_s26 + $0x58] sm:$0xff] }
  0x1f   : > { %365 = vst [vmem:[#allocation2 + $0x2b8] sm:$0x1] %v7399_v4  ;;  %366 = vst [vmem:[#allocation2 + $0x2d0] sm:$0x1] %v7399_v4  ;;  %v457_v56 = vsub.f32 %v419_v48, %v7635_v24  ;;  %v458_v58 = vsub.f32 %v420_v54, %v7635_v24  ;;  %v422_v59 = vld [vmem:[%s7625_s26 + $0x60] sm:$0xff]  ;;  %v423_v60 = vld [vmem:[%s7625_s26 + $0x68] sm:$0xff]  ;;  %v7711_v62 = vmul.f32 %v7640_v25, %v454_v52 }
  0x20   : > { %367 = vst [vmem:[#allocation2 + $0x2e8] sm:$0x1] %v7399_v4  ;;  %368 = vst [vmem:[#allocation2 + $0x300] sm:$0x1] %v7399_v4  ;;  %v7260_v61 = vld [vmem:[%s9866_s4 + $0xe0] sm:$0xff]   ;;  %v7714_v63 = vmul.f32 %v7640_v25, %v455_v53  ;;  %v459_v0 = vsub.f32 %v421_v57, %v7635_v24  ;;  %v7719_v2 = vmul.f32 %v7640_v25, %v456_v55  ;;  %v424_v6 = vld [vmem:[%s7625_s26 + $0x70] sm:$0xff] }
  0x21   : > { %369 = vst [vmem:[#allocation2 + $0x318] sm:$0x1] %v7399_v4  ;;  %370 = vst [vmem:[#allocation2 + $0x330] sm:$0x1] %v7399_v4  ;;  %2139 = vmatpush1.bf16.msra.mxu0 %v7247_v12  ;;  %2428 = vmatpush1.bf16.msra.mxu1 %v7248_v13  ;;  %v7722_v3 = vmul.f32 %v7640_v25, %v457_v56  ;;  %v7725_v5 = vmul.f32 %v7640_v25, %v458_v58  ;;  %v425_v7 = vld [vmem:[%s7625_s26 + $0x78] sm:$0xff]  ;;  %v426_v8 = vld [vmem:[%s7625_s26 + $0x80] sm:$0xff] }
  0x22   : > { %373 = vst [vmem:[#allocation2 + $0x29] sm:$0x1] %v7399_v4  ;;  %374 = vst [vmem:[#allocation2 + $0x41] sm:$0x1] %v7399_v4  ;;  %2140 = vmatprep.subr.bf16.mxu0 %v9871_v1  ;;  %2429 = vmatprep.subr.bf16.mxu1 %v9871_v1  ;;  %v7734_v9 = vmul.f32 %v7640_v25, %v459_v0  ;;  %v460_v10 = vsub.f32 %v422_v59, %v7635_v24  ;;  %v427_v12 = vld [vmem:[%s7625_s26 + $0x88] sm:$0xff]  ;;  %v7262_v23 = vld [vmem:[%s9866_s4 + $0xd8] sm:$0xff]  }
  0x23   : > { %375 = vst [vmem:[#allocation2 + $0x59] sm:$0x1] %v7399_v4  ;;  %376 = vst [vmem:[#allocation2 + $0x71] sm:$0x1] %v7399_v4  ;;  %v461_v11 = vsub.f32 %v423_v60, %v7635_v24  ;;  %v465_v21 = vsub.f32 %v427_v12, %v7635_v24  ;;  %v429_v28 = vld [vmem:[%s7625_s26 + $0x98] sm:$0xff]  ;;  %v431_v38 = vld [vmem:[%s7625_s26 + $0xa8] sm:$0xff] }
  0x24   : > { %377 = vst [vmem:[#allocation2 + $0x89] sm:$0x1] %v7399_v4  ;;  %378 = vst [vmem:[#allocation2 + $0xa1] sm:$0x1] %v7399_v4  ;;  %v467_v37 = vsub.f32 %v429_v28, %v7635_v24  ;;  %v7263_v40 = vld [vmem:[%s9866_s4 + $0x50] sm:$0xff]   ;;  %v469_v48 = vsub.f32 %v431_v38, %v7635_v24  ;;  %v7265_v53 = vld [vmem:[%s9866_s4 + $0x48] sm:$0xff]  }
  0x25   : > { %379 = vst [vmem:[#allocation2 + $0xb9] sm:$0x1] %v7399_v4  ;;  %380 = vst [vmem:[#allocation2 + $0xd1] sm:$0x1] %v7399_v4  ;;  %2141 = vmatpush1.bf16.msra.mxu0 %v7249_v14  ;;  %2430 = vmatpush1.bf16.msra.mxu1 %v7250_v15  ;;  %v462_v14 = vsub.f32 %v424_v6, %v7635_v24  ;;  %v463_v15 = vsub.f32 %v425_v7, %v7635_v24  ;;  %v7264_v43 = vld [vmem:[%s9866_s4 + $0xd0] sm:$0xff]   ;;  %v7266_v55 = vld [vmem:[%s9866_s4 + $0xc8] sm:$0xff]  }
  0x26   : > { %381 = vst [vmem:[#allocation2 + $0xe9] sm:$0x1] %v7399_v4  ;;  %382 = vst [vmem:[#allocation2 + $0x101] sm:$0x1] %v7399_v4  ;;  %2142 = vmatprep.subr.bf16.mxu0 %v9871_v1  ;;  %2431 = vmatprep.subr.bf16.mxu1 %v9871_v1  ;;  %v7753_v20 = vmul.f32 %v7640_v25, %v461_v11  ;;  %v7780_v34 = vmul.f32 %v7640_v25, %v465_v21  ;;  %v7267_v57 = vld [vmem:[%s9866_s4 + $0x40] sm:$0xff]   ;;  %v432_v0 = vld [vmem:[%s7625_s26 + $0xb0] sm:$0xff] }
  0x27   : > { %383 = vst [vmem:[#allocation2 + $0x119] sm:$0x1] %v7399_v4  ;;  %384 = vst [vmem:[#allocation2 + $0x131] sm:$0x1] %v7399_v4  ;;  %v7764_v27 = vmul.f32 %v7640_v25, %v462_v14  ;;  %v7806_v47 = vmul.f32 %v7640_v25, %v467_v37  ;;  %v7821_v54 = vmul.f32 %v7640_v25, %v469_v48  ;;  %v7268_v58 = vld [vmem:[%s9866_s4 + $0xc0] sm:$0xff]   ;;  %v7269_v11 = vld [vmem:[%s9866_s4 + $0x138] sm:$0xff]  }
  0x28   : > { %385 = vst [vmem:[#allocation2 + $0x149] sm:$0x1] %v7399_v4  ;;  %386 = vst [vmem:[#allocation2 + $0x161] sm:$0x1] %v7399_v4  ;;  %v872_v60 = vld [vmem:[#allocation2 + $0x2] sm:$0xff]  ;;  %v433_v12 = vld [vmem:[%s7625_s26 + $0xb8] sm:$0xff]  ;;  %v841_v14 = vpack.c.bf16 %v7661_v36, %v7655_v32 }
  0x29   : > { %387 = vst [vmem:[#allocation2 + $0x179] sm:$0x1] %v7399_v4  ;;  %388 = vst [vmem:[#allocation2 + $0x191] sm:$0x1] %v7399_v4  ;;  %2143 = vmatpush1.bf16.msra.mxu0 %v7251_v16  ;;  %2432 = vmatpush1.bf16.msra.mxu1 %v7252_v17  ;;  %v464_v16 = vsub.f32 %v426_v8, %v7635_v24  ;;  %v7261_v17 = vld [vmem:[%s9866_s4 + $0x58] sm:$0xff]   ;;  %v470_v8 = vsub.f32 %v432_v0, %v7635_v24  ;;  %v436_v28 = vld [vmem:[%s7625_s26 + $0xd0] sm:$0xff] }
  0x2a   : > { %391 = vst [vmem:[#allocation2 + $0x1d9] sm:$0x1] %v7399_v4  ;;  %392 = vst [vmem:[#allocation2 + $0x1f1] sm:$0x1] %v7399_v4  ;;  %2144 = vmatprep.subr.bf16.mxu0 %v9871_v1  ;;  %2433 = vmatprep.subr.bf16.mxu1 %v9871_v1  ;;  %v437_v37 = vld [vmem:[%s7625_s26 + $0xd8] sm:$0xff]  ;;  %v474_v38 = vsub.f32 %v436_v28, %v7635_v24 }
  0x2b   : > { %393 = vst [vmem:[#allocation2 + $0x209] sm:$0x1] %v7399_v4  ;;  %394 = vst [vmem:[#allocation2 + $0x221] sm:$0x1] %v7399_v4  ;;  %v7777_v33 = vmul.f32 %v7640_v25, %v464_v16  ;;  %v7851_v16 = vmul.f32 %v7640_v25, %v470_v8 }
  0x2c   : > { %395 = vst [vmem:[#allocation2 + $0x239] sm:$0x1] %v7399_v4  ;;  %396 = vst [vmem:[#allocation2 + $0x251] sm:$0x1] %v7399_v4 }
  0x2d   : > { %397 = vst [vmem:[#allocation2 + $0x269] sm:$0x1] %v7399_v4  ;;  %398 = vst [vmem:[#allocation2 + $0x281] sm:$0x1] %v7399_v4  ;;  %2145 = vmatpush2.bf16.msra.mxu0 %v7253_v18  ;;  %2434 = vmatpush2.bf16.msra.mxu1 %v7254_v19  ;;  %v7750_v19 = vmul.f32 %v7640_v25, %v460_v10  ;;  %v849_v42 = vpack.c.bf16 %v7780_v34, %v7777_v33 }
  0x2e   : > { %399 = vst [vmem:[#allocation2 + $0x299] sm:$0x1] %v7399_v4  ;;  %400 = vst [vmem:[#allocation2 + $0x2b1] sm:$0x1] %v7399_v4  ;;  %2146 = vmatprep.subr.bf16.mxu0 %v9871_v1  ;;  %2435 = vmatprep.subr.bf16.mxu1 %v9871_v1 }
  0x2f   : > { %401 = vst [vmem:[#allocation2 + $0x2c9] sm:$0x1] %v7399_v4  ;;  %402 = vst [vmem:[#allocation2 + $0x2e1] sm:$0x1] %v7399_v4  ;;  %v847_v30 = vpack.c.bf16 %v7753_v20, %v7750_v19 }
  0x30   : > { %403 = vst [vmem:[#allocation2 + $0x2f9] sm:$0x1] %v7399_v4  ;;  %404 = vst [vmem:[#allocation2 + $0x311] sm:$0x1] %v7399_v4 }
  0x31   : > { %405 = vst [vmem:[#allocation2 + $0x329] sm:$0x1] %v7399_v4  ;;  %406 = vst [vmem:[#allocation2 + $0x341] sm:$0x1] %v7399_v4  ;;  %2147 = vmatpush2.bf16.msra.mxu0 %v7255_v22  ;;  %2436 = vmatpush2.bf16.msra.mxu1 %v7256_v29  ;;  %v428_v22 = vld [vmem:[%s7625_s26 + $0x90] sm:$0xff]  ;;  %v430_v29 = vld [vmem:[%s7625_s26 + $0xa0] sm:$0xff] }
  0x32   : > { %336 = vst [vmem:[#allocation2] sm:$0x1] %v7399_v4  ;;  %372 = vst [vmem:[#allocation2 + $0x11] sm:$0x1] %v7399_v4  ;;  %2148 = vmatprep.subr.bf16.mxu0 %v9871_v1  ;;  %2437 = vmatprep.subr.bf16.mxu1 %v9871_v1  ;;  %v466_v35 = vsub.f32 %v428_v22, %v7635_v24  ;;  %v468_v39 = vsub.f32 %v430_v29, %v7635_v24  ;;  %v7270_v22 = vld [vmem:[%s9866_s4 + $0x130] sm:$0xff]  }
  0x33   : > { %353 = vst [vmem:[#allocation2 + $0x198] sm:$0x1] %v7399_v4  ;;  %354 = vst [vmem:[#allocation2 + $0x1b0] sm:$0x1] %v7399_v4 }
  0x34   : > { %371 = vst [vmem:[#allocation2 + $0x348] sm:$0x1] %v7399_v4  ;;  %389 = vst [vmem:[#allocation2 + $0x1a9] sm:$0x1] %v7399_v4  ;;  %v7803_v44 = vmul.f32 %v7640_v25, %v466_v35 }
  0x35   : > { %390 = vst [vmem:[#allocation2 + $0x1c1] sm:$0x1] %v7399_v4  ;;  %407 = vst [vmem:[#allocation2 + $0x359] sm:$0x1] %v7399_v4  ;;  %2149 = vmatpush2.bf16.msra.mxu0 %v7257_v31  ;;  %2438 = vmatpush2.bf16.msra.mxu1 %v7258_v41  ;;  %v7774_v31 = vmul.f32 %v7640_v25, %v463_v15  ;;  %v471_v15 = vsub.f32 %v433_v12, %v7635_v24  ;;  %v551_v12 = vld [vmem:[%s7876_s9] sm:$0xff] }
  0x36   : > { %519 = vst [vmem:[#allocation2 + $0x19] sm:$0xff] %v7655_v32  ;;  %520 = vst [vmem:[#allocation2 + $0x21] sm:$0xff] %v7661_v36  ;;  %2150 = vmatprep.subr.bf16.mxu0 %v9871_v1  ;;  %2439 = vmatprep.subr.bf16.mxu1 %v9871_v1  ;;  %v850_v52 = vpack.c.bf16 %v7806_v47, %v7803_v44 }
  0x37   : > { %521 = vst [vmem:[#allocation2 + $0x31] sm:$0xff] %v7677_v45  ;;  %522 = vst [vmem:[#allocation2 + $0x39] sm:$0xff] %v7680_v46  ;;  %v848_v41 = vpack.c.bf16 %v7774_v31, %v7764_v27 }
  0x38   : > { %523 = vst [vmem:[#allocation2 + $0x49] sm:$0xff] %v7689_v50  ;;  %524 = vst [vmem:[#allocation2 + $0x51] sm:$0xff] %v7692_v51 }
  0x39   : > { %525 = vst [vmem:[#allocation2 + $0x61] sm:$0xff] %v7711_v62  ;;  %526 = vst [vmem:[#allocation2 + $0x69] sm:$0xff] %v7714_v63  ;;  %2151 = vmatpush2.bf16.msra.mxu0 %v7259_v49  ;;  %2440 = vmatpush2.bf16.msra.mxu1 %v7260_v61  ;;  %v7811_v49 = vmul.f32 %v7640_v25, %v468_v39  ;;  %v680_v59 = vld [vmem:[#allocation2] sm:$0xff]  ;;  %v873_v61 = vld [vmem:[#allocation2 + $0xa] sm:$0xff] }
  0x3a   : > { %527 = vst [vmem:[#allocation2 + $0x79] sm:$0xff] %v7719_v2  ;;  %528 = vst [vmem:[#allocation2 + $0x81] sm:$0xff] %v7722_v3  ;;  %2152 = vmatprep.subr.bf16.mxu0 %v9871_v1  ;;  %2441 = vmatprep.subr.bf16.mxu1 %v9871_v1  ;;  %v744_v10 = vpack.c.bf16 %v7399_v4, %v680_v59  ;;  %v438_v39 = vld [vmem:[%s7625_s26 + $0xe0] sm:$0xff] }
  0x3b   : > { %529 = vst [vmem:[#allocation2 + $0x91] sm:$0xff] %v7725_v5  ;;  %530 = vst [vmem:[#allocation2 + $0x99] sm:$0xff] %v7734_v9  ;;  %v851_v56 = vpack.c.bf16 %v7821_v54, %v7811_v49 }
  0x3c   : > { %531 = vst [vmem:[#allocation2 + $0xa9] sm:$0xff] %v7750_v19  ;;  %532 = vst [vmem:[#allocation2 + $0xb1] sm:$0xff] %v7753_v20 }
  0x3d   : > { %v968_v13 = vld [vmem:[#allocation2 + $0x18] sm:$0xff]  ;;  %v969_v18 = vld [vmem:[#allocation2 + $0x20] sm:$0xff]  ;;  %533 = vst [vmem:[#allocation2 + $0xc1] sm:$0xff] %v7764_v27  ;;  %2153 = vmatpush2.bf16.msra.mxu0 %v7261_v17  ;;  %534 = vst [vmem:[#allocation2 + $0xc9] sm:$0xff] %v7774_v31  ;;  %2442 = vmatpush2.bf16.msra.mxu1 %v7262_v23  ;;  %v7866_v23 = vmul.f32 %v7640_v25, %v471_v15 }
  0x3e   : > { %v7761_v26 = vpack.c.bf16 %v969_v18, %v968_v13  ;;  %535 = vst [vmem:[#allocation2 + $0xd9] sm:$0xff] %v7777_v33  ;;  %536 = vst [vmem:[#allocation2 + $0xe1] sm:$0xff] %v7780_v34  ;;  %2154 = vmatprep.subr.bf16.mxu0 %v9871_v1  ;;  %2443 = vmatprep.subr.bf16.mxu1 %v9871_v1  ;;  %v970_v6 = vld [vmem:[#allocation2 + $0x30] sm:$0xff]  ;;  %v971_v7 = vld [vmem:[#allocation2 + $0x38] sm:$0xff]  ;;  %v936_v13 = vpack.c.bf16 %v873_v61, %v872_v60 }
  0x3f   : > { %537 = vst [vmem:[#allocation2 + $0xf1] sm:$0xff] %v7803_v44  ;;  %538 = vst [vmem:[#allocation2 + $0xf9] sm:$0xff] %v7806_v47  ;;  %v434_v17 = vld [vmem:[%s7625_s26 + $0xc0] sm:$0xff]  ;;  %v435_v18 = vld [vmem:[%s7625_s26 + $0xc8] sm:$0xff]  ;;  %v7856_v4 = vpack.c.bf16 %v971_v7, %v970_v6  ;;  %v852_v48 = vpack.c.bf16 %v7866_v23, %v7851_v16 }
  0x40   : > { %2449 = vmatprep.mubr.bf16.mxu1 %v7761_v26  ;;  %539 = vst [vmem:[#allocation2 + $0x109] sm:$0xff] %v7811_v49  ;;  %540 = vst [vmem:[#allocation2 + $0x111] sm:$0xff] %v7821_v54  ;;  %v472_v21 = vsub.f32 %v434_v17, %v7635_v24  ;;  %v473_v32 = vsub.f32 %v435_v18, %v7635_v24  ;;  %v7860_v36 = vld [vmem:[#allocation2 + $0x1a] sm:$0xff]  ;;  %v440_v60 = vld [vmem:[%s7625_s26 + $0xf0] sm:$0xff]  ;;  %v583_v18 = vsub.f32 %v551_v12, %v7635_v24 }
  0x41   : > { %2155 = vmatpush2.bf16.msra.mxu0 %v7263_v40  ;;  %2444 = vmatpush2.bf16.msra.mxu1 %v7264_v43  ;;  %541 = vst [vmem:[#allocation2 + $0x121] sm:$0xff] %v7851_v16  ;;  %v439_v40 = vld [vmem:[%s7625_s26 + $0xe8] sm:$0xff]  ;;  %542 = vst [vmem:[#allocation2 + $0x129] sm:$0xff] %v7866_v23  ;;  %v441_v61 = vld [vmem:[%s7625_s26 + $0xf8] sm:$0xff] }
  0x42   : > { %2156 = vmatprep.subr.bf16.mxu0 %v9871_v1  ;;  %2445 = vmatprep.subr.bf16.mxu1 %v9871_v1  ;;  %v7879_v29 = vmul.f32 %v7640_v25, %v472_v21  ;;  %v7882_v35 = vmul.f32 %v7640_v25, %v473_v32  ;;  %v875_v43 = vld [vmem:[#allocation2 + $0x22] sm:$0xff]  ;;  %v477_v59 = vsub.f32 %v439_v40, %v7635_v24  ;;  %v973_v6 = vld [vmem:[#allocation2 + $0x50] sm:$0xff]  ;;  %v8145_v33 = vld [vmem:[%s9864_s2] ss:$0 sm:$0xff] }
  0x43   : > { %v972_v0 = vld [vmem:[#allocation2 + $0x48] sm:$0xff]  ;;  %v7285_v47 = vld [vmem:[%s9866_s4 + $0x1a0] sm:$0xff]  }
  0x44   : > { %543 = vst [vmem:[#allocation2 + $0x139] sm:$0xff] %v7879_v29  ;;  %544 = vst [vmem:[#allocation2 + $0x141] sm:$0xff] %v7882_v35  ;;  %v7919_v15 = vmul.f32 %v7640_v25, %v477_v59  ;;  %v552_v17 = vld [vmem:[%s7876_s9 + $0x8] sm:$0xff]  ;;  %v7290_v23 = vld [vmem:[%s9866_s4 + $0x180] sm:$0xff]  }
  0x45   : > { %2157 = vmatpush2.bf16.msra.mxu0 %v7265_v53  ;;  %2446 = vmatpush2.bf16.msra.mxu1 %v7266_v55  ;;  %v475_v53 = vsub.f32 %v437_v37, %v7635_v24  ;;  %v476_v55 = vsub.f32 %v438_v39, %v7635_v24  ;;  %v584_v32 = vsub.f32 %v552_v17, %v7635_v24  ;;  %v554_v39 = vld [vmem:[%s7876_s9 + $0x18] sm:$0xff]  ;;  %v556_v59 = vld [vmem:[%s7876_s9 + $0x28] sm:$0xff] }
  0x46   : > { %2158 = vmatprep.subr.bf16.mxu0 %v9871_v1  ;;  %2447 = vmatprep.subr.bf16.mxu1 %v9871_v1  ;;  %548 = vst [vmem:[#allocation2 + $0x171] sm:$0xff] %v7919_v15  ;;  %v7940_v37 = vmul.f32 %v7640_v25, %v583_v18  ;;  %v975_v17 = vld [vmem:[#allocation2 + $0x68] sm:$0xff] }
  0x47   : > { %v7906_v7 = vmul.f32 %v7640_v25, %v475_v53  ;;  %v7909_v8 = vmul.f32 %v7640_v25, %v476_v55  ;;  %v7945_v40 = vmul.f32 %v7640_v25, %v584_v32  ;;  %v586_v53 = vsub.f32 %v554_v39, %v7635_v24  ;;  %v555_v55 = vld [vmem:[%s7876_s9 + $0x20] sm:$0xff] }
  0x48   : > { %648 = vst [vmem:[#allocation2 + $0x1c9] sm:$0xff] %v7940_v37 }
  0x49   : > { %2159 = vmatpush2.bf16.msra.mxu0 %v7267_v57  ;;  %2448 = vmatpush2.bf16.msra.mxu1 %v7268_v58  ;;  %v853_v57 = vpack.c.bf16 %v7882_v35, %v7879_v29  ;;  %v7899_v58 = vmul.f32 %v7640_v25, %v474_v38  ;;  %546 = vst [vmem:[#allocation2 + $0x159] sm:$0xff] %v7906_v7  ;;  %547 = vst [vmem:[#allocation2 + $0x169] sm:$0xff] %v7909_v8  ;;  %v553_v38 = vld [vmem:[%s7876_s9 + $0x10] sm:$0xff] }
  0x4a   : > { %2706 = vmatprep.subr.bf16.mxu0 %v9871_v1  ;;  %2995 = vmatprep.subr.bf16.mxu1 %v9871_v1  ;;  %v855_v28 = vpack.c.bf16 %v7919_v15, %v7909_v8  ;;  %649 = vst [vmem:[#allocation2 + $0x1d1] sm:$0xff] %v7945_v40  ;;  %v7298_v15 = vld [vmem:[%s9866_s4 + $0x1d0] sm:$0xff]  }
  0x4b   : > { %545 = vst [vmem:[#allocation2 + $0x151] sm:$0xff] %v7899_v58  ;;  %v854_v21 = vpack.c.bf16 %v7906_v7, %v7899_v58  ;;  %v7295_v7 = vld [vmem:[%s9866_s4 + $0x1e0] sm:$0xff]  }
  0x4c   : > { %2161 = vmatmul.mubr.bf16.vlgmr.msra.gmra.mxu0 %v744_v10  ;;  %2450 = vmatmul.mubr.bf16.vlgmr.msra.gmra.mxu1 %v936_v13  ;;  %v478_v10 = vsub.f32 %v440_v60, %v7635_v24  ;;  %v937_v13 = vpack.c.bf16 %v875_v43, %v7860_v36  ;;  %v7930_v36 = vpack.c.bf16 %v973_v6, %v972_v0  ;;  %v876_v0 = vld [vmem:[#allocation2 + $0x32] sm:$0xff]  ;;  %v877_v6 = vld [vmem:[#allocation2 + $0x3a] sm:$0xff] }
  0x4d   : > { %2707 = vmatpush1.bf16.msra.mxu0 %v7269_v11  ;;  %2168 = vmatprep.mubr.bf16.mxu0 %v841_v14  ;;  %v479_v11 = vsub.f32 %v441_v61, %v7635_v24  ;;  %v842_v14 = vpack.c.bf16 %v7680_v46, %v7677_v45  ;;  %v585_v43 = vsub.f32 %v553_v38, %v7635_v24 }
  0x4e   : > { %2457 = vmatprep.mubr.bf16.mxu1 %v7856_v4  ;;  %2708 = vmatprep.subr.bf16.mxu0 %v9871_v1  ;;  %v516_v45 = vmul.f32 %v7640_v25, %v478_v10  ;;  %v587_v60 = vsub.f32 %v555_v55, %v7635_v24  ;;  %v588_v61 = vsub.f32 %v556_v59, %v7635_v24  ;;  %v7272_v10 = vld [vmem:[%s9866_s4 + $0x120] sm:$0xff]   ;;  %v7273_v59 = vld [vmem:[%s9866_s4 + $0x118] sm:$0xff]  }
  0x4f   : > { %v517_v46 = vmul.f32 %v7640_v25, %v479_v11  ;;  %v974_v11 = vld [vmem:[#allocation2 + $0x60] sm:$0xff]  ;;  %v7963_v12 = vmul.f32 %v7640_v25, %v585_v43  ;;  %v938_v39 = vpack.c.bf16 %v877_v6, %v876_v0  ;;  %v843_v43 = vpack.c.bf16 %v7692_v51, %v7689_v50  ;;  %v878_v50 = vld [vmem:[#allocation2 + $0x4a] sm:$0xff]  ;;  %v879_v51 = vld [vmem:[#allocation2 + $0x52] sm:$0xff] }
  0x50   : > { %549 = vst [vmem:[#allocation2 + $0x181] sm:$0xff] %v516_v45  ;;  %v7971_v18 = vmul.f32 %v7640_v25, %v587_v60  ;;  %v7974_v45 = vmul.f32 %v7640_v25, %v588_v61  ;;  %v1035_v55 = vpack.c.bf16 %v975_v17, %v974_v11  ;;  %v7274_v61 = vld [vmem:[%s9866_s4 + $0x110] sm:$0xff]   ;;  %v559_v6 = vld [vmem:[%s7876_s9 + $0x40] sm:$0xff]  ;;  %v976_v11 = vld [vmem:[#allocation2 + $0x78] sm:$0xff] }
  0x51   : > { %2709 = vmatpush1.bf16.msra.mxu0 %v7270_v22  ;;  %v7271_v22 = vld [vmem:[%s9866_s4 + $0x128] sm:$0xff]   ;;  %550 = vst [vmem:[#allocation2 + $0x189] sm:$0xff] %v517_v46  ;;  %v558_v46 = vld [vmem:[%s7876_s9 + $0x38] sm:$0xff]  ;;  %650 = vst [vmem:[#allocation2 + $0x1e1] sm:$0xff] %v7963_v12 }
  0x52   : > { %2710 = vmatprep.subr.bf16.mxu0 %v9871_v1  ;;  %v590_v38 = vsub.f32 %v558_v46, %v7635_v24  ;;  %652 = vst [vmem:[#allocation2 + $0x1f9] sm:$0xff] %v7971_v18  ;;  %653 = vst [vmem:[#allocation2 + $0x201] sm:$0xff] %v7974_v45  ;;  %v859_v0 = vpack.c.bf16 %v7974_v45, %v7971_v18  ;;  %v939_v46 = vpack.c.bf16 %v879_v51, %v878_v50  ;;  %v7276_v50 = vld [vmem:[%s9866_s4 + $0x100] sm:$0xff]   ;;  %v978_v51 = vld [vmem:[#allocation2 + $0x90] sm:$0xff] }
  0x54   : > { %2169 = vmatmul.mubr.bf16.gmra.mxu0 %v7761_v26  ;;  %2458 = vmatmul.mubr.bf16.gmra.mxu1 %v937_v13  ;;  %v857_v26 = vpack.c.bf16 %v7945_v40, %v7940_v37  ;;  %v7966_v13 = vmul.f32 %v7640_v25, %v586_v53  ;;  %v7994_v60 = vmul.f32 %v7640_v25, %v590_v38 }
  0x55   : > { %2176 = vmatprep.mubr.bf16.mxu0 %v842_v14  ;;  %2465 = vmatprep.mubr.bf16.mxu1 %v7930_v36  ;;  %v557_v14 = vld [vmem:[%s7876_s9 + $0x30] sm:$0xff] }
  0x56   : > { %2711 = vmatpush1.bf16.msra.mxu0 %v7271_v22  ;;  %v589_v32 = vsub.f32 %v557_v14, %v7635_v24  ;;  %651 = vst [vmem:[#allocation2 + $0x1e9] sm:$0xff] %v7966_v13  ;;  %v858_v22 = vpack.c.bf16 %v7966_v13, %v7963_v12  ;;  %655 = vst [vmem:[#allocation2 + $0x219] sm:$0xff] %v7994_v60  ;;  %v977_v14 = vld [vmem:[#allocation2 + $0x80] sm:$0xff] }
  0x57   : > { %2712 = vmatprep.subr.bf16.mxu0 %v9871_v1 }
  0x58   : > { %v7988_v53 = vmul.f32 %v7640_v25, %v589_v32  ;;  %v844_v32 = vpack.c.bf16 %v7714_v63, %v7711_v62  ;;  %v880_v62 = vld [vmem:[#allocation2 + $0x62] sm:$0xff]  ;;  %v881_v63 = vld [vmem:[#allocation2 + $0x6a] sm:$0xff] }
  0x5a   : > { %2713 = vmatpush1.bf16.msra.mxu0 %v7272_v10  ;;  %654 = vst [vmem:[#allocation2 + $0x211] sm:$0xff] %v7988_v53  ;;  %v560_v10 = vld [vmem:[%s7876_s9 + $0x48] sm:$0xff] }
  0x5b   : > { %2714 = vmatprep.subr.bf16.mxu0 %v9871_v1  ;;  %v592_v17 = vsub.f32 %v560_v10, %v7635_v24  ;;  %v561_v10 = vld [vmem:[%s7876_s9 + $0x50] sm:$0xff] }
  0x5c   : > { %2177 = vmatmul.mubr.bf16.gmra.mxu0 %v7856_v4  ;;  %2466 = vmatmul.mubr.bf16.gmra.mxu1 %v938_v39  ;;  %v591_v4 = vsub.f32 %v559_v6, %v7635_v24 }
  0x5d   : > { %2184 = vmatprep.mubr.bf16.mxu0 %v843_v43  ;;  %2473 = vmatprep.mubr.bf16.mxu1 %v1035_v55  ;;  %v8016_v39 = vmul.f32 %v7640_v25, %v592_v17  ;;  %v1036_v43 = vpack.c.bf16 %v977_v14, %v976_v11  ;;  %v562_v11 = vld [vmem:[%s7876_s9 + $0x58] sm:$0xff]  ;;  %v845_v17 = vpack.c.bf16 %v7722_v3, %v7719_v2  ;;  %v883_v3 = vld [vmem:[#allocation2 + $0x82] sm:$0xff]  ;;  %v909_v40 = vld [vmem:[#allocation2 + $0x1ea] sm:$0xff] }
  0x5e   : > { %2715 = vmatpush1.bf16.msra.mxu0 %v7273_v59  ;;  %v8013_v38 = vmul.f32 %v7640_v25, %v591_v4  ;;  %v7275_v59 = vld [vmem:[%s9866_s4 + $0x108] sm:$0xff]   ;;  %v594_v14 = vsub.f32 %v562_v11, %v7635_v24  ;;  %v940_v4 = vpack.c.bf16 %v881_v63, %v880_v62  ;;  %v882_v2 = vld [vmem:[#allocation2 + $0x7a] sm:$0xff]  ;;  %v7278_v62 = vld [vmem:[%s9866_s4 + $0x170] sm:$0xff]  }
  0x5f   : > { %2716 = vmatprep.subr.bf16.mxu0 %v9871_v1  ;;  %657 = vst [vmem:[#allocation2 + $0x231] sm:$0xff] %v8016_v39  ;;  %v980_v63 = vld [vmem:[#allocation2 + $0xa8] sm:$0xff] }
  0x60   : > { %656 = vst [vmem:[#allocation2 + $0x229] sm:$0xff] %v8013_v38  ;;  %v908_v37 = vld [vmem:[#allocation2 + $0x1e2] sm:$0xff] }
  0x62   : > { %2717 = vmatpush1.bf16.msra.mxu0 %v7274_v61  ;;  %v979_v61 = vld [vmem:[#allocation2 + $0x98] sm:$0xff] }
  0x63   : > { %2718 = vmatprep.subr.bf16.mxu0 %v9871_v1  ;;  %v1037_v6 = vpack.c.bf16 %v979_v61, %v978_v51  ;;  %v563_v61 = vld [vmem:[%s7876_s9 + $0x60] sm:$0xff] }
  0x64   : > { %2185 = vmatmul.mubr.bf16.gmra.mxu0 %v7930_v36  ;;  %2474 = vmatmul.mubr.bf16.gmra.mxu1 %v939_v46  ;;  %v593_v36 = vsub.f32 %v561_v10, %v7635_v24  ;;  %v564_v10 = vld [vmem:[%s7876_s9 + $0x68] sm:$0xff] }
  0x65   : > { %2192 = vmatprep.mubr.bf16.mxu0 %v844_v32  ;;  %2481 = vmatprep.mubr.bf16.mxu1 %v1036_v43  ;;  %v8041_v32 = vmul.f32 %v7640_v25, %v594_v14  ;;  %v596_v11 = vsub.f32 %v564_v10, %v7635_v24  ;;  %v846_v14 = vpack.c.bf16 %v7734_v9, %v7725_v5  ;;  %v884_v5 = vld [vmem:[#allocation2 + $0x92] sm:$0xff]  ;;  %v885_v9 = vld [vmem:[#allocation2 + $0x9a] sm:$0xff] }
  0x66   : > { %2719 = vmatpush1.bf16.msra.mxu0 %v7275_v59  ;;  %v8038_v46 = vmul.f32 %v7640_v25, %v593_v36  ;;  %v7277_v59 = vld [vmem:[%s9866_s4 + $0x178] sm:$0xff]   ;;  %v941_v36 = vpack.c.bf16 %v883_v3, %v882_v2  ;;  %v982_v2 = vld [vmem:[#allocation2 + $0xc0] sm:$0xff]  ;;  %v983_v3 = vld [vmem:[#allocation2 + $0xc8] sm:$0xff] }
  0x67   : > { %2720 = vmatprep.subr.bf16.mxu0 %v9871_v1  ;;  %659 = vst [vmem:[#allocation2 + $0x249] sm:$0xff] %v8041_v32 }
  0x68   : > { %658 = vst [vmem:[#allocation2 + $0x241] sm:$0xff] %v8038_v46 }
  0x6a   : > { %2721 = vmatpush1.bf16.msra.mxu0 %v7276_v50  ;;  %v981_v50 = vld [vmem:[#allocation2 + $0xb0] sm:$0xff] }
  0x6b   : > { %2722 = vmatprep.subr.bf16.mxu0 %v9871_v1  ;;  %v1038_v51 = vpack.c.bf16 %v981_v50, %v980_v63  ;;  %v565_v63 = vld [vmem:[%s7876_s9 + $0x70] sm:$0xff]  ;;  %v566_v50 = vld [vmem:[%s7876_s9 + $0x78] sm:$0xff] }
  0x6c   : > { %2193 = vmatmul.mubr.bf16.gmra.mxu0 %v1035_v55  ;;  %2482 = vmatmul.mubr.bf16.gmra.mxu1 %v940_v4  ;;  %v595_v55 = vsub.f32 %v563_v61, %v7635_v24  ;;  %v597_v61 = vsub.f32 %v565_v63, %v7635_v24  ;;  %v598_v10 = vsub.f32 %v566_v50, %v7635_v24  ;;  %v985_v63 = vld [vmem:[#allocation2 + $0xe0] sm:$0xff] }
  0x6d   : > { %2200 = vmatprep.mubr.bf16.mxu0 %v845_v17  ;;  %2489 = vmatprep.mubr.bf16.mxu1 %v1037_v6  ;;  %v8065_v17 = vmul.f32 %v7640_v25, %v596_v11 }
  0x6e   : > { %2723 = vmatpush2.bf16.msra.mxu0 %v7277_v59  ;;  %v8062_v4 = vmul.f32 %v7640_v25, %v595_v55  ;;  %v7279_v59 = vld [vmem:[%s9866_s4 + $0x168] sm:$0xff]   ;;  %v8081_v55 = vmul.f32 %v7640_v25, %v597_v61  ;;  %v8084_v11 = vmul.f32 %v7640_v25, %v598_v10 }
  0x6f   : > { %2724 = vmatprep.subr.bf16.mxu0 %v9871_v1  ;;  %661 = vst [vmem:[#allocation2 + $0x261] sm:$0xff] %v8065_v17 }
  0x70   : > { %660 = vst [vmem:[#allocation2 + $0x259] sm:$0xff] %v8062_v4  ;;  %662 = vst [vmem:[#allocation2 + $0x271] sm:$0xff] %v8081_v55 }
  0x71   : > { %663 = vst [vmem:[#allocation2 + $0x279] sm:$0xff] %v8084_v11 }
  0x72   : > { %2725 = vmatpush2.bf16.msra.mxu0 %v7278_v62  ;;  %v862_v62 = vpack.c.bf16 %v8041_v32, %v8038_v46 }
  0x73   : > { %2726 = vmatprep.subr.bf16.mxu0 %v9871_v1 }
  0x74   : > { %2201 = vmatmul.mubr.bf16.gmra.mxu0 %v1036_v43  ;;  %2490 = vmatmul.mubr.bf16.gmra.mxu1 %v941_v36  ;;  %v942_v43 = vpack.c.bf16 %v885_v9, %v884_v5  ;;  %v1039_v36 = vpack.c.bf16 %v983_v3, %v982_v2  ;;  %v7280_v5 = vld [vmem:[%s9866_s4 + $0x160] sm:$0xff]   ;;  %v984_v9 = vld [vmem:[#allocation2 + $0xd8] sm:$0xff]  ;;  %v863_v2 = vpack.c.bf16 %v8065_v17, %v8062_v4 }
  0x75   : > { %2208 = vmatprep.mubr.bf16.mxu0 %v846_v14  ;;  %2497 = vmatprep.mubr.bf16.mxu1 %v1038_v51  ;;  %v886_v14 = vld [vmem:[#allocation2 + $0xaa] sm:$0xff]  ;;  %v567_v3 = vld [vmem:[%s7876_s9 + $0x80] sm:$0xff] }
  0x76   : > { %2727 = vmatpush2.bf16.msra.mxu0 %v7279_v59  ;;  %v887_v59 = vld [vmem:[#allocation2 + $0xb2] sm:$0xff]  ;;  %v599_v50 = vsub.f32 %v567_v3, %v7635_v24  ;;  %v864_v3 = vpack.c.bf16 %v8084_v11, %v8081_v55  ;;  %v8349_v17 = vld [vmem:[%s9867_s5] ss:$0 sm:$0xff] }
  0x77   : > { %2728 = vmatprep.subr.bf16.mxu0 %v9871_v1  ;;  %v943_v10 = vpack.c.bf16 %v887_v59, %v886_v14  ;;  %v986_v14 = vld [vmem:[#allocation2 + $0xf0] sm:$0xff]  ;;  %v987_v59 = vld [vmem:[#allocation2 + $0xf8] sm:$0xff] }
  0x78   : > { %v8102_v19 = vmul.f32 %v7640_v25, %v599_v50  ;;  %v8121_v50 = vld [vmem:[%s9865_s3] ss:$0 sm:$0xff] }
  0x7a   : > { %2729 = vmatpush2.bf16.msra.mxu0 %v7280_v5  ;;  %664 = vst [vmem:[#allocation2 + $0x289] sm:$0xff] %v8102_v19  ;;  %v889_v5 = vld [vmem:[#allocation2 + $0xca] sm:$0xff] }
  0x7b   : > { %2730 = vmatprep.subr.bf16.mxu0 %v9871_v1 }
  0x7c   : > { %2209 = vmatmul.mubr.bf16.gmra.mxu0 %v1037_v6  ;;  %2498 = vmatmul.mubr.bf16.gmra.mxu1 %v942_v43  ;;  %v568_v6 = vld [vmem:[%s7876_s9 + $0x88] sm:$0xff] }
  0x7d   : > { %2216 = vmatprep.mubr.bf16.mxu0 %v847_v30  ;;  %2505 = vmatprep.mubr.bf16.mxu1 %v1039_v36  ;;  %v600_v61 = vsub.f32 %v568_v6, %v7635_v24  ;;  %v1040_v30 = vpack.c.bf16 %v985_v63, %v984_v9  ;;  %v888_v43 = vld [vmem:[#allocation2 + $0xc2] sm:$0xff]  ;;  %v570_v9 = vld [vmem:[%s7876_s9 + $0x98] sm:$0xff] }
  0x7e   : > { %v602_v6 = vsub.f32 %v570_v9, %v7635_v24 }
  0x7f   : > { %v8105_v20 = vmul.f32 %v7640_v25, %v600_v61  ;;  %v569_v25 = vld [vmem:[%s7876_s9 + $0x90] sm:$0xff]  ;;  %v891_v61 = vld [vmem:[#allocation2 + $0xe2] sm:$0xff] }
  0x80   : > { %v601_v63 = vsub.f32 %v569_v25, %v7635_v24  ;;  %v8127_v31 = vmul.f32 %v8121_v50, %v602_v6  ;;  %v890_v24 = vld [vmem:[#allocation2 + $0xda] sm:$0xff] }
  0x81   : > { %665 = vst [vmem:[#allocation2 + $0x291] sm:$0xff] %v8105_v20  ;;  %v945_v25 = vpack.c.bf16 %v891_v61, %v890_v24  ;;  %v865_v9 = vpack.c.bf16 %v8105_v20, %v8102_v19  ;;  %v892_v24 = vld [vmem:[#allocation2 + $0xf2] sm:$0xff]  ;;  %v893_v61 = vld [vmem:[#allocation2 + $0xfa] sm:$0xff] }
  0x82   : > { %v8124_v27 = vmul.f32 %v8121_v50, %v601_v63  ;;  %667 = vst [vmem:[#allocation2 + $0x2a9] sm:$0xff] %v8127_v31  ;;  %v7283_v63 = vld [vmem:[%s9866_s4 + $0x1b0] sm:$0xff]  }
  0x84   : > { %2217 = vmatmul.mubr.bf16.gmra.mxu0 %v1038_v51  ;;  %2506 = vmatmul.mubr.bf16.gmra.mxu1 %v943_v10  ;;  %v944_v51 = vpack.c.bf16 %v889_v5, %v888_v43  ;;  %666 = vst [vmem:[#allocation2 + $0x2a1] sm:$0xff] %v8124_v27  ;;  %v988_v10 = vld [vmem:[#allocation2 + $0x108] sm:$0xff]  ;;  %v989_v43 = vld [vmem:[#allocation2 + $0x110] sm:$0xff]  ;;  %v7281_v5 = vld [vmem:[%s9866_s4 + $0x158] sm:$0xff]   ;;  %v866_v44 = vpack.c.bf16 %v8127_v31, %v8124_v27 }
  0x85   : > { %2224 = vmatprep.mubr.bf16.mxu0 %v848_v41  ;;  %2513 = vmatprep.mubr.bf16.mxu1 %v1040_v30  ;;  %v1041_v41 = vpack.c.bf16 %v987_v59, %v986_v14  ;;  %v7282_v14 = vld [vmem:[%s9866_s4 + $0x1b8] sm:$0xff]   ;;  %v571_v59 = vld [vmem:[%s7876_s9 + $0xa0] sm:$0xff] }
  0x86   : > { %2731 = vmatpush2.bf16.msra.mxu0 %v7281_v5  ;;  %2996 = vmatpush1.bf16.msra.mxu1 %v7282_v14  ;;  %v603_v34 = vsub.f32 %v571_v59, %v8145_v33  ;;  %v1042_v5 = vpack.c.bf16 %v989_v43, %v988_v10  ;;  %v990_v14 = vld [vmem:[#allocation2 + $0x120] sm:$0xff]  ;;  %v991_v59 = vld [vmem:[#allocation2 + $0x128] sm:$0xff]  ;;  %v573_v43 = vld [vmem:[%s7876_s9 + $0xb0] sm:$0xff] }
  0x87   : > { %2997 = vmatprep.subr.bf16.mxu1 %v9871_v1  ;;  %2732 = vmatprep.subr.bf16.mxu0 %v9871_v1  ;;  %v7284_v10 = vld [vmem:[%s9866_s4 + $0x1a8] sm:$0xff]  }
  0x88   : > { %v8157_v6 = vmul.f32 %v8121_v50, %v603_v34  ;;  %v922_v11 = vld [vmem:[#allocation2 + $0x28a] sm:$0xff] }
  0x8a   : > { %2998 = vmatpush1.bf16.msra.mxu1 %v7283_v63  ;;  %668 = vst [vmem:[#allocation2 + $0x2b9] sm:$0xff] %v8157_v6  ;;  %v1043_v63 = vpack.c.bf16 %v991_v59, %v990_v14  ;;  %v7286_v14 = vld [vmem:[%s9866_s4 + $0x150] sm:$0xff]   ;;  %v7287_v59 = vld [vmem:[%s9866_s4 + $0x198] sm:$0xff]  }
  0x8b   : > { %2999 = vmatprep.subr.bf16.mxu1 %v9871_v1  ;;  %2733 = vmatpush2.bf16.msra.mxu0 %v7286_v14 }
  0x8c   : > { %2225 = vmatmul.mubr.bf16.gmra.mxu0 %v1039_v36  ;;  %2514 = vmatmul.mubr.bf16.gmra.mxu1 %v944_v51  ;;  %v572_v36 = vld [vmem:[%s7876_s9 + $0xa8] sm:$0xff] }
  0x8d   : > { %2232 = vmatprep.mubr.bf16.mxu0 %v849_v42  ;;  %2521 = vmatprep.mubr.bf16.mxu1 %v1041_v41  ;;  %v604_v42 = vsub.f32 %v572_v36, %v8145_v33  ;;  %v574_v36 = vld [vmem:[%s7876_s9 + $0xb8] sm:$0xff] }
  0x8e   : > { %3000 = vmatpush1.bf16.msra.mxu1 %v7284_v10  ;;  %v606_v34 = vsub.f32 %v574_v36, %v8145_v33  ;;  %v992_v10 = vld [vmem:[#allocation2 + $0x138] sm:$0xff]  ;;  %v576_v36 = vld [vmem:[%s7876_s9 + $0xc8] sm:$0xff]  ;;  %2734 = vmatprep.subr.bf16.mxu0 %v9871_v1 }
  0x8f   : > { %v8160_v51 = vmul.f32 %v8121_v50, %v604_v42  ;;  %3001 = vmatprep.subr.bf16.mxu1 %v9871_v1  ;;  %v946_v42 = vpack.c.bf16 %v893_v61, %v892_v24  ;;  %v894_v24 = vld [vmem:[#allocation2 + $0x10a] sm:$0xff]  ;;  %v895_v61 = vld [vmem:[#allocation2 + $0x112] sm:$0xff]  ;;  %v608_v49 = vsub.f32 %v576_v36, %v8145_v33 }
  0x90   : > { %v947_v54 = vpack.c.bf16 %v895_v61, %v894_v24  ;;  %v896_v24 = vld [vmem:[#allocation2 + $0x122] sm:$0xff]  ;;  %v897_v61 = vld [vmem:[#allocation2 + $0x12a] sm:$0xff]  ;;  %v578_v36 = vld [vmem:[%s7876_s9 + $0xd8] sm:$0xff] }
  0x91   : > { %669 = vst [vmem:[#allocation2 + $0x2c1] sm:$0xff] %v8160_v51 }
  0x92   : > { %3002 = vmatpush1.bf16.msra.mxu1 %v7285_v47  ;;  %v8214_v47 = vmul.f32 %v8121_v50, %v608_v49  ;;  %v948_v49 = vpack.c.bf16 %v897_v61, %v896_v24  ;;  %v898_v24 = vld [vmem:[#allocation2 + $0x13a] sm:$0xff]  ;;  %v899_v61 = vld [vmem:[#allocation2 + $0x142] sm:$0xff] }
  0x93   : > { %3003 = vmatprep.subr.bf16.mxu1 %v9871_v1  ;;  %v949_v35 = vpack.c.bf16 %v899_v61, %v898_v24  ;;  %v900_v24 = vld [vmem:[#allocation2 + $0x152] sm:$0xff]  ;;  %v901_v61 = vld [vmem:[#allocation2 + $0x15a] sm:$0xff] }
  0x94   : > { %2233 = vmatmul.mubr.bf16.gmra.mxu0 %v1040_v30  ;;  %2522 = vmatmul.mubr.bf16.gmra.mxu1 %v945_v25  ;;  %v605_v30 = vsub.f32 %v573_v43, %v8145_v33  ;;  %v8185_v25 = vmul.f32 %v8121_v50, %v606_v34  ;;  %v993_v43 = vld [vmem:[#allocation2 + $0x140] sm:$0xff]  ;;  %v7288_v34 = vld [vmem:[%s9866_s4 + $0x190] sm:$0xff]   ;;  %673 = vst [vmem:[#allocation2 + $0x2f1] sm:$0xff] %v8214_v47 }
  0x95   : > { %2240 = vmatprep.mubr.bf16.mxu0 %v850_v52  ;;  %2529 = vmatprep.mubr.bf16.mxu1 %v1042_v5  ;;  %v1044_v14 = vpack.c.bf16 %v993_v43, %v992_v10  ;;  %v7289_v10 = vld [vmem:[%s9866_s4 + $0x188] sm:$0xff]   ;;  %v577_v43 = vld [vmem:[%s7876_s9 + $0xd0] sm:$0xff] }
  0x96   : > { %v8182_v52 = vmul.f32 %v8121_v50, %v605_v30  ;;  %671 = vst [vmem:[#allocation2 + $0x2d9] sm:$0xff] %v8185_v25  ;;  %3004 = vmatpush1.bf16.msra.mxu1 %v7287_v59  ;;  %v994_v59 = vld [vmem:[#allocation2 + $0x150] sm:$0xff] }
  0x97   : > { %3005 = vmatprep.subr.bf16.mxu1 %v9871_v1 }
  0x98   : > { %670 = vst [vmem:[#allocation2 + $0x2d1] sm:$0xff] %v8182_v52  ;;  %v868_v16 = vpack.c.bf16 %v8185_v25, %v8182_v52 }
  0x9a   : > { %3006 = vmatpush1.bf16.msra.mxu1 %v7288_v34 }
  0x9b   : > { %3007 = vmatprep.subr.bf16.mxu1 %v9871_v1 }
  0x9c   : > { %2241 = vmatmul.mubr.bf16.gmra.mxu0 %v1041_v41  ;;  %2530 = vmatmul.mubr.bf16.gmra.mxu1 %v946_v42  ;;  %v575_v41 = vld [vmem:[%s7876_s9 + $0xc0] sm:$0xff] }
  0x9d   : > { %2248 = vmatprep.mubr.bf16.mxu0 %v851_v56  ;;  %2537 = vmatprep.mubr.bf16.mxu1 %v1043_v63  ;;  %v607_v30 = vsub.f32 %v575_v41, %v8145_v33  ;;  %v867_v56 = vpack.c.bf16 %v8160_v51, %v8157_v6  ;;  %v995_v41 = vld [vmem:[#allocation2 + $0x158] sm:$0xff] }
  0x9e   : > { %3008 = vmatpush1.bf16.msra.mxu1 %v7289_v10  ;;  %v1045_v34 = vpack.c.bf16 %v995_v41, %v994_v59  ;;  %v996_v10 = vld [vmem:[#allocation2 + $0x168] sm:$0xff]  ;;  %v7292_v41 = vld [vmem:[%s9866_s4 + $0x1f8] sm:$0xff]  }
  0x9f   : > { %v8211_v42 = vmul.f32 %v8121_v50, %v607_v30  ;;  %v610_v30 = vsub.f32 %v578_v36, %v8145_v33  ;;  %3009 = vmatprep.subr.bf16.mxu1 %v9871_v1  ;;  %v7291_v59 = vld [vmem:[%s9866_s4 + $0x148] sm:$0xff]  }
  0xa0   : > { %v580_v36 = vld [vmem:[%s7876_s9 + $0xe8] sm:$0xff]  ;;  %2735 = vmatpush2.bf16.msra.mxu0 %v7291_v59 }
  0xa1   : > { %672 = vst [vmem:[#allocation2 + $0x2e9] sm:$0xff] %v8211_v42  ;;  %v612_v29 = vsub.f32 %v580_v36, %v8145_v33  ;;  %2736 = vmatprep.subr.bf16.mxu0 %v9871_v1  ;;  %v582_v36 = vld [vmem:[%s7876_s9 + $0xf8] sm:$0xff] }
  0xa2   : > { %3010 = vmatpush1.bf16.msra.mxu1 %v7290_v23 }
  0xa3   : > { %3011 = vmatprep.subr.bf16.mxu1 %v9871_v1  ;;  %v8268_v23 = vmul.f32 %v8121_v50, %v612_v29  ;;  %v950_v29 = vpack.c.bf16 %v901_v61, %v900_v24  ;;  %v809_v24 = vld [vmem:[#allocation2 + $0x1b9] sm:$0xff]  ;;  %v1000_v61 = vld [vmem:[#allocation2 + $0x1c8] sm:$0xff] }
  0xa4   : > { %2249 = vmatmul.mubr.bf16.gmra.mxu0 %v1042_v5  ;;  %2538 = vmatmul.mubr.bf16.gmra.mxu1 %v947_v54  ;;  %v609_v5 = vsub.f32 %v577_v43, %v8145_v33  ;;  %v8239_v54 = vmul.f32 %v8121_v50, %v610_v30  ;;  %v997_v43 = vld [vmem:[#allocation2 + $0x170] sm:$0xff] }
  0xa5   : > { %2256 = vmatprep.mubr.bf16.mxu0 %v852_v48  ;;  %2545 = vmatprep.mubr.bf16.mxu1 %v1044_v14  ;;  %v7293_v30 = vld [vmem:[%s9866_s4 + $0x1f0] sm:$0xff]   ;;  %v1046_v59 = vpack.c.bf16 %v997_v43, %v996_v10  ;;  %677 = vst [vmem:[#allocation2 + $0x321] sm:$0xff] %v8268_v23  ;;  %v7294_v10 = vld [vmem:[%s9866_s4 + $0x1e8] sm:$0xff]  }
  0xa6   : > { %v8236_v48 = vmul.f32 %v8121_v50, %v609_v5  ;;  %675 = vst [vmem:[#allocation2 + $0x309] sm:$0xff] %v8239_v54  ;;  %3012 = vmatpush2.bf16.msra.mxu1 %v7292_v41  ;;  %v998_v41 = vld [vmem:[#allocation2 + $0x180] sm:$0xff]  ;;  %v581_v43 = vld [vmem:[%s7876_s9 + $0xf0] sm:$0xff] }
  0xa7   : > { %3013 = vmatprep.subr.bf16.mxu1 %v9871_v1 }
  0xa8   : > { %674 = vst [vmem:[#allocation2 + $0x301] sm:$0xff] %v8236_v48  ;;  %v870_v58 = vpack.c.bf16 %v8239_v54, %v8236_v48 }
  0xaa   : > { %3014 = vmatpush2.bf16.msra.mxu1 %v7293_v30 }
  0xab   : > { %3015 = vmatprep.subr.bf16.mxu1 %v9871_v1 }
  0xac   : > { %2257 = vmatmul.mubr.bf16.gmra.mxu0 %v1043_v63  ;;  %2546 = vmatmul.mubr.bf16.gmra.mxu1 %v948_v49  ;;  %v579_v63 = vld [vmem:[%s7876_s9 + $0xe0] sm:$0xff] }
  0xad   : > { %2264 = vmatprep.mubr.bf16.mxu0 %v853_v57  ;;  %2553 = vmatprep.mubr.bf16.mxu1 %v1045_v34  ;;  %v611_v5 = vsub.f32 %v579_v63, %v8145_v33  ;;  %v869_v57 = vpack.c.bf16 %v8214_v47, %v8211_v42  ;;  %v999_v63 = vld [vmem:[#allocation2 + $0x188] sm:$0xff] }
  0xae   : > { %3016 = vmatpush2.bf16.msra.mxu1 %v7294_v10  ;;  %v1047_v30 = vpack.c.bf16 %v999_v63, %v998_v41  ;;  %v903_v10 = vld [vmem:[#allocation2 + $0x172] sm:$0xff] }
  0xaf   : > { %v8265_v49 = vmul.f32 %v8121_v50, %v611_v5  ;;  %v614_v5 = vsub.f32 %v582_v36, %v8145_v33  ;;  %3017 = vmatprep.subr.bf16.mxu1 %v9871_v1  ;;  %v1001_v36 = vld [vmem:[#allocation2 + $0x1d0] sm:$0xff] }
  0xb1   : > { %676 = vst [vmem:[#allocation2 + $0x319] sm:$0xff] %v8265_v49  ;;  %v871_v8 = vpack.c.bf16 %v8268_v23, %v8265_v49 }
  0xb2   : > { %3018 = vmatpush2.bf16.msra.mxu1 %v7295_v7  ;;  %v905_v7 = vld [vmem:[#allocation2 + $0x1ba] sm:$0xff] }
  0xb3   : > { %3019 = vmatprep.subr.bf16.mxu1 %v9871_v1 }
  0xb4   : > { %2265 = vmatmul.mubr.bf16.gmra.mxu0 %v1044_v14  ;;  %2554 = vmatmul.mubr.bf16.gmra.mxu1 %v949_v35  ;;  %v613_v14 = vsub.f32 %v581_v43, %v8145_v33  ;;  %v646_v35 = vmul.f32 %v8121_v50, %v614_v5  ;;  %v902_v33 = vld [vmem:[#allocation2 + $0x16a] sm:$0xff] }
  0xb5   : > { %2272 = vmatprep.mubr.bf16.mxu0 %v854_v21  ;;  %2561 = vmatprep.mubr.bf16.mxu1 %v1046_v59  ;;  %v808_v43 = vld [vmem:[#allocation2 + $0x1b1] sm:$0xff]  ;;  %v951_v41 = vpack.c.bf16 %v903_v10, %v902_v33  ;;  %v7299_v5 = vld [vmem:[%s9866_s4 + $0x1c8] sm:$0xff]   ;;  %v7300_v10 = vld [vmem:[%s9866_s4 + $0x1c0] sm:$0xff]  }
  0xb6   : > { %v645_v21 = vmul.f32 %v8121_v50, %v613_v14  ;;  %679 = vst [vmem:[#allocation2 + $0x339] sm:$0xff] %v646_v35  ;;  %v7296_v50 = vld [vmem:[%s9866_s4 + $0x140] sm:$0xff]   ;;  %v856_v63 = vpack.c.bf16 %v809_v24, %v808_v43  ;;  %v712_v14 = vld [vmem:[#allocation2 + $0x1b0] sm:$0xff]  ;;  %v1003_v35 = vld [vmem:[#allocation2 + $0x1e8] sm:$0xff] }
  0xb7   : > { %2737 = vmatpush2.bf16.msra.mxu0 %v7296_v50  ;;  %v8322_v24 = vld [vmem:[%s9866_s4 + $0x238] sm:$0xff]  }
  0xb8   : > { %678 = vst [vmem:[#allocation2 + $0x331] sm:$0xff] %v645_v21  ;;  %v1002_v21 = vld [vmem:[#allocation2 + $0x1e0] sm:$0xff]  ;;  %v1004_v50 = vld [vmem:[#allocation2 + $0x1f8] sm:$0xff]  ;;  %7065 = vmatprep.subr.bf16.mxu0 %v8322_v24 }
  0xb9   : > { %v1049_v43 = vpack.c.bf16 %v1003_v35, %v1002_v21  ;;  %v1009_v21 = vld [vmem:[#allocation2 + $0x230] sm:$0xff] }
  0xba   : > { %v912_v35 = vld [vmem:[#allocation2 + $0x212] sm:$0xff] }
  0xbc   : > { %2273 = vmatmul.mubr.bf16.gmra.mxu0 %v1045_v34  ;;  %2562 = vmatmul.mubr.bf16.gmra.mxu1 %v950_v29  ;;  %v7297_v34 = vld [vmem:[%s9866_s4 + $0x1d8] sm:$0xff]  }
  0xbd   : > { %2280 = vmatprep.mubr.bf16.mxu0 %v855_v28  ;;  %2569 = vmatprep.mubr.bf16.mxu1 %v1047_v30  ;;  %v1048_v28 = vpack.c.bf16 %v1001_v36, %v1000_v61  ;;  %v904_v29 = vld [vmem:[#allocation2 + $0x1b2] sm:$0xff]  ;;  %v7383_v30 = vld [vmem:[#allocation2 + $0x8] sm:$0xff] }
  0xbe   : > { %3020 = vmatpush2.bf16.msra.mxu1 %v7297_v34  ;;  %v760_v33 = vpack.c.bf16 %v7383_v30, %v712_v14  ;;  %v906_v61 = vld [vmem:[#allocation2 + $0x1ca] sm:$0xff]  ;;  %v907_v36 = vld [vmem:[#allocation2 + $0x1d2] sm:$0xff]  ;;  %v1005_v34 = vld [vmem:[#allocation2 + $0x200] sm:$0xff]  ;;  %v954_v14 = vpack.c.bf16 %v909_v40, %v908_v37 }
  0xbf   : > { %3021 = vmatprep.subr.bf16.mxu1 %v9871_v1  ;;  %v913_v30 = vld [vmem:[#allocation2 + $0x21a] sm:$0xff]  ;;  %v919_v40 = vld [vmem:[#allocation2 + $0x262] sm:$0xff] }
  0xc0   : > { %v956_v18 = vpack.c.bf16 %v913_v30, %v912_v35  ;;  %v918_v37 = vld [vmem:[#allocation2 + $0x25a] sm:$0xff] }
  0xc1   : > { %v959_v46 = vpack.c.bf16 %v919_v40, %v918_v37  ;;  %v1021_v35 = vld [vmem:[#allocation2 + $0x2c0] sm:$0xff] }
  0xc2   : > { %3022 = vmatpush2.bf16.msra.mxu1 %v7298_v15  ;;  %v1007_v15 = vld [vmem:[#allocation2 + $0x218] sm:$0xff] }
  0xc3   : > { %3023 = vmatprep.subr.bf16.mxu1 %v9871_v1 }
  0xc4   : > { %2281 = vmatmul.mubr.bf16.gmra.mxu0 %v1046_v59  ;;  %2570 = vmatmul.mubr.bf16.gmra.mxu1 %v951_v41  ;;  %v952_v59 = vpack.c.bf16 %v905_v7, %v904_v29  ;;  %v953_v41 = vpack.c.bf16 %v907_v36, %v906_v61  ;;  %v911_v29 = vld [vmem:[#allocation2 + $0x202] sm:$0xff]  ;;  %v1012_v61 = vld [vmem:[#allocation2 + $0x258] sm:$0xff] }
  0xc5   : > { %2288 = vmatprep.mubr.bf16.mxu0 %v856_v63  ;;  %2577 = vmatprep.mubr.bf16.mxu1 %v1048_v28  ;;  %v1050_v63 = vpack.c.bf16 %v1005_v34, %v1004_v50  ;;  %v1008_v7 = vld [vmem:[#allocation2 + $0x228] sm:$0xff]  ;;  %v1013_v36 = vld [vmem:[#allocation2 + $0x260] sm:$0xff] }
  0xc6   : > { %3024 = vmatpush2.bf16.msra.mxu1 %v7299_v5  ;;  %v1052_v13 = vpack.c.bf16 %v1009_v21, %v1008_v7  ;;  %v916_v50 = vld [vmem:[#allocation2 + $0x242] sm:$0xff]  ;;  %v917_v34 = vld [vmem:[#allocation2 + $0x24a] sm:$0xff] }
  0xc7   : > { %3025 = vmatprep.subr.bf16.mxu1 %v9871_v1 }
  0xca   : > { %3026 = vmatpush2.bf16.msra.mxu1 %v7300_v10  ;;  %v914_v10 = vld [vmem:[#allocation2 + $0x22a] sm:$0xff] }
  0xcb   : > { %5148 = vmatprep.subr.bf16.mxu1 %v9871_v1 }
  0xcc   : > { %2289 = vmatmul.mubr.bf16.gmra.mxu0 %v760_v33  ;;  %2578 = vmatmul.mubr.bf16.gmra.mxu1 %v952_v59  ;;  %v1010_v33 = vld [vmem:[#allocation2 + $0x240] sm:$0xff]  ;;  %v1011_v59 = vld [vmem:[#allocation2 + $0x248] sm:$0xff] }
  0xcd   : > { %2296 = vmatprep.mubr.bf16.mxu0 %v857_v26  ;;  %2585 = vmatprep.mubr.bf16.mxu1 %v1049_v43  ;;  %v1006_v26 = vld [vmem:[#allocation2 + $0x210] sm:$0xff]  ;;  %v1053_v45 = vpack.c.bf16 %v1011_v59, %v1010_v33 }
  0xce   : > { %v1051_v5 = vpack.c.bf16 %v1007_v15, %v1006_v26  ;;  %v1016_v26 = vld [vmem:[#allocation2 + $0x288] sm:$0xff]  ;;  %v1017_v15 = vld [vmem:[#allocation2 + $0x290] sm:$0xff] }
  0xcf   : > { %v1056_v32 = vpack.c.bf16 %v1017_v15, %v1016_v26 }
  0xd4   : > { %2297 = vmatmul.mubr.bf16.gmra.mxu0 %v1048_v28  ;;  %2586 = vmatmul.mubr.bf16.gmra.mxu1 %v953_v41  ;;  %v910_v28 = vld [vmem:[#allocation2 + $0x1fa] sm:$0xff]  ;;  %v1014_v41 = vld [vmem:[#allocation2 + $0x270] sm:$0xff] }
  0xd5   : > { %2304 = vmatprep.mubr.bf16.mxu0 %v858_v22  ;;  %2593 = vmatprep.mubr.bf16.mxu1 %v1050_v63  ;;  %v955_v12 = vpack.c.bf16 %v911_v29, %v910_v28  ;;  %v9873_v22 = vpack.c.bf16 %v7994_v60, %v7988_v53  ;;  %v1054_v60 = vpack.c.bf16 %v1013_v36, %v1012_v61  ;;  %v1019_v28 = vld [vmem:[#allocation2 + $0x2a8] sm:$0xff] }
  0xd6   : > { %v924_v36 = vld [vmem:[#allocation2 + $0x2a2] sm:$0xff] }
  0xdc   : > { %2305 = vmatmul.mubr.bf16.gmra.mxu0 %v1049_v43  ;;  %2594 = vmatmul.mubr.bf16.gmra.mxu1 %v954_v14  ;;  %v915_v43 = vld [vmem:[#allocation2 + $0x232] sm:$0xff]  ;;  %v921_v14 = vld [vmem:[#allocation2 + $0x27a] sm:$0xff] }
  0xdd   : > { %2312 = vmatprep.mubr.bf16.mxu0 %v859_v0  ;;  %2601 = vmatprep.mubr.bf16.mxu1 %v1051_v5  ;;  %v9874_v0 = vpack.c.bf16 %v8016_v39, %v8013_v38  ;;  %v957_v53 = vpack.c.bf16 %v915_v43, %v914_v10  ;;  %v958_v38 = vpack.c.bf16 %v917_v34, %v916_v50  ;;  %v1022_v34 = vld [vmem:[#allocation2 + $0x2d0] sm:$0xff] }
  0xe4   : > { %2313 = vmatmul.mubr.bf16.gmra.mxu0 %v1050_v63  ;;  %2602 = vmatmul.mubr.bf16.gmra.mxu1 %v955_v12  ;;  %v1015_v63 = vld [vmem:[#allocation2 + $0x278] sm:$0xff] }
  0xe5   : > { %2320 = vmatprep.mubr.bf16.mxu0 %v9873_v22  ;;  %2609 = vmatprep.mubr.bf16.mxu1 %v1052_v13  ;;  %v1055_v39 = vpack.c.bf16 %v1015_v63, %v1014_v41  ;;  %v1020_v22 = vld [vmem:[#allocation2 + $0x2b8] sm:$0xff] }
  0xe6   : > { %v1023_v41 = vld [vmem:[#allocation2 + $0x2d8] sm:$0xff] }
  0xe7   : > { %v1059_v26 = vpack.c.bf16 %v1023_v41, %v1022_v34  ;;  %v930_v41 = vld [vmem:[#allocation2 + $0x2ea] sm:$0xff] }
  0xec   : > { %2321 = vmatmul.mubr.bf16.gmra.mxu0 %v1051_v5  ;;  %2610 = vmatmul.mubr.bf16.gmra.mxu1 %v956_v18  ;;  %v1018_v5 = vld [vmem:[#allocation2 + $0x2a0] sm:$0xff] }
  0xed   : > { %2328 = vmatprep.mubr.bf16.mxu0 %v9874_v0  ;;  %2617 = vmatprep.mubr.bf16.mxu1 %v1053_v45  ;;  %v1058_v0 = vpack.c.bf16 %v1021_v35, %v1020_v22 }
  0xf4   : > { %2329 = vmatmul.mubr.bf16.gmra.mxu0 %v1052_v13  ;;  %2618 = vmatmul.mubr.bf16.gmra.mxu1 %v957_v53  ;;  %v925_v53 = vld [vmem:[#allocation2 + $0x2aa] sm:$0xff] }
  0xf5   : > { %2336 = vmatprep.mubr.bf16.mxu0 %v862_v62  ;;  %2625 = vmatprep.mubr.bf16.mxu1 %v1054_v60  ;;  %v920_v62 = vld [vmem:[#allocation2 + $0x272] sm:$0xff]  ;;  %v962_v37 = vpack.c.bf16 %v925_v53, %v924_v36 }
  0xf6   : > { %v960_v4 = vpack.c.bf16 %v921_v14, %v920_v62  ;;  %v926_v62 = vld [vmem:[#allocation2 + $0x2ba] sm:$0xff]  ;;  %v927_v14 = vld [vmem:[#allocation2 + $0x2c2] sm:$0xff] }
  0xfc   : > { %2337 = vmatmul.mubr.bf16.gmra.mxu0 %v1053_v45  ;;  %2626 = vmatmul.mubr.bf16.gmra.mxu1 %v958_v38 }
  0xfd   : > { %2344 = vmatprep.mubr.bf16.mxu0 %v863_v2  ;;  %2633 = vmatprep.mubr.bf16.mxu1 %v1055_v39  ;;  %v1057_v2 = vpack.c.bf16 %v1019_v28, %v1018_v5 }
 0x104   : > { %2345 = vmatmul.mubr.bf16.gmra.mxu0 %v1054_v60  ;;  %2634 = vmatmul.mubr.bf16.gmra.mxu1 %v959_v46 }
 0x105   : > { %2352 = vmatprep.mubr.bf16.mxu0 %v864_v3  ;;  %2641 = vmatprep.mubr.bf16.mxu1 %v1056_v32  ;;  %v923_v3 = vld [vmem:[#allocation2 + $0x292] sm:$0xff] }
 0x106   : > { %v961_v18 = vpack.c.bf16 %v923_v3, %v922_v11 }
 0x10c   : > { %v2162_v29 = vpop.f32.mrf.mxu0  ;;  %2353 = vmatmul.mubr.bf16.gmra.mxu0 %v1055_v39  ;;  %v2451_v21 = vpop.f32.mrf.mxu1  ;;  %2642 = vmatmul.mubr.bf16.gmra.mxu1 %v960_v4  ;;  %v1024_v4 = vld [vmem:[#allocation2 + $0x2e8] sm:$0xff] }
 0x10d   : > { %v2163_v7 = vadd.f32 %v8349_v17, %v2162_v29  ;;  %2360 = vmatprep.mubr.bf16.mxu0 %v865_v9  ;;  %2649 = vmatprep.mubr.bf16.mxu1 %v1057_v2  ;;  %v1025_v29 = vld [vmem:[#allocation2 + $0x2f0] sm:$0xff] }
 0x10e   : > { %v2164_v55 = vpop.f32.mrf.mxu0  ;;  %v2453_v13 = vpop.f32.mrf.mxu1  ;;  %v1060_v3 = vpack.c.bf16 %v1025_v29, %v1024_v4  ;;  %v932_v4 = vld [vmem:[#allocation2 + $0x302] sm:$0xff]  ;;  %v933_v29 = vld [vmem:[#allocation2 + $0x30a] sm:$0xff] }
 0x10f   : > { %v8355_v12 = vadd.f32 %v2451_v21, %v2163_v7  ;;  %v963_v55 = vpack.c.bf16 %v927_v14, %v926_v62 }
 0x110   : > { %v2165_v30 = vpop.f32.mrf.mxu0  ;;  %v2454_v59 = vpop.f32.mrf.mxu1 }
 0x111   : > { %v2166_v33 = vadd.f32 %v8349_v17, %v2165_v30  ;;  %v928_v30 = vld [vmem:[#allocation2 + $0x2d2] sm:$0xff] }
 0x112   : > { %v2167_v45 = vpop.f32.mrf.mxu0  ;;  %v2456_v19 = vpop.f32.mrf.mxu1 }
 0x113   : > { %v8358_v10 = vadd.f32 %v2454_v59, %v2166_v33  ;;  %v929_v33 = vld [vmem:[#allocation2 + $0x2da] sm:$0xff]  ;;  %v1027_v19 = vld [vmem:[#allocation2 + $0x308] sm:$0xff] }
 0x114   : > { %v2170_v20 = vpop.f32.mrf.mxu0  ;;  %2361 = vmatmul.mubr.bf16.gmra.mxu0 %v1056_v32  ;;  %v2459_v43 = vpop.f32.mrf.mxu1  ;;  %2650 = vmatmul.mubr.bf16.gmra.mxu1 %v961_v18  ;;  %v1026_v45 = vld [vmem:[#allocation2 + $0x300] sm:$0xff] }
 0x115   : > { %v2171_v9 = vadd.f32 %v8349_v17, %v2170_v20  ;;  %2368 = vmatprep.mubr.bf16.mxu0 %v866_v44  ;;  %2657 = vmatprep.mubr.bf16.mxu1 %v1058_v0  ;;  %v1061_v36 = vpack.c.bf16 %v1027_v19, %v1026_v45  ;;  %v935_v45 = vld [vmem:[#allocation2 + $0x322] sm:$0xff]  ;;  %v1160_v19 = vld [vmem:[#allocation2 + $0x1a] sm:$0xff] }
 0x116   : > { %v2172_v61 = vpop.f32.mrf.mxu0  ;;  %v2461_v50 = vpop.f32.mrf.mxu1 }
 0x117   : > { %v8364_v60 = vadd.f32 %v2459_v43, %v2171_v9  ;;  %v964_v43 = vpack.c.bf16 %v929_v33, %v928_v30  ;;  %v934_v33 = vld [vmem:[#allocation2 + $0x31a] sm:$0xff] }
 0x118   : > { %v2173_v63 = vpop.f32.mrf.mxu0  ;;  %v2462_v39 = vpop.f32.mrf.mxu1 }
 0x119   : > { %v2174_v38 = vadd.f32 %v8349_v17, %v2173_v63  ;;  %v931_v63 = vld [vmem:[#allocation2 + $0x2f2] sm:$0xff] }
 0x11a   : > { %v2175_v40 = vpop.f32.mrf.mxu0  ;;  %v2464_v27 = vpop.f32.mrf.mxu1 }
 0x11b   : > { %v8367_v15 = vadd.f32 %v2462_v39, %v2174_v38  ;;  %v1029_v40 = vld [vmem:[#allocation2 + $0x320] sm:$0xff] }
 0x11c   : > { %v2178_v31 = vpop.f32.mrf.mxu0  ;;  %2369 = vmatmul.mubr.bf16.gmra.mxu0 %v1057_v2  ;;  %v2467_v46 = vpop.f32.mrf.mxu1  ;;  %2658 = vmatmul.mubr.bf16.gmra.mxu1 %v962_v37  ;;  %v1028_v37 = vld [vmem:[#allocation2 + $0x318] sm:$0xff] }
 0x11d   : > { %v2179_v44 = vadd.f32 %v8349_v17, %v2178_v31  ;;  %2376 = vmatprep.mubr.bf16.mxu0 %v867_v56  ;;  %2665 = vmatprep.mubr.bf16.mxu1 %v1059_v26 }
 0x11e   : > { %v2180_v32 = vpop.f32.mrf.mxu0  ;;  %v2469_v28 = vpop.f32.mrf.mxu1 }
 0x11f   : > { %v8373_v5 = vadd.f32 %v2467_v46, %v2179_v44  ;;  %v965_v44 = vpack.c.bf16 %v931_v63, %v930_v41  ;;  %v1062_v32 = vpack.c.bf16 %v1029_v40, %v1028_v37  ;;  %v1064_v37 = vld [vmem:[#allocation2 + $0x19] sm:$0xff]  ;;  %v1065_v40 = vld [vmem:[#allocation2 + $0x21] sm:$0xff] }
 0x120   : > { %v2181_v7 = vpop.f32.mrf.mxu0  ;;  %v2470_v21 = vpop.f32.mrf.mxu1 }
 0x121   : > { %v2182_v2 = vadd.f32 %v8349_v17, %v2181_v7 }
 0x122   : > { %v2183_v11 = vpop.f32.mrf.mxu0  ;;  %v2472_v6 = vpop.f32.mrf.mxu1 }
 0x123   : > { %v8376_v13 = vadd.f32 %v2470_v21, %v2182_v2  ;;  %v1030_v21 = vld [vmem:[#allocation2 + $0x330] sm:$0xff] }
 0x124   : > { %v2186_v51 = vpop.f32.mrf.mxu0  ;;  %2377 = vmatmul.mubr.bf16.gmra.mxu0 %v1058_v0  ;;  %v2475_v22 = vpop.f32.mrf.mxu1  ;;  %2666 = vmatmul.mubr.bf16.gmra.mxu1 %v963_v55  ;;  %v1031_v55 = vld [vmem:[#allocation2 + $0x338] sm:$0xff] }
 0x125   : > { %v2187_v56 = vadd.f32 %v8349_v17, %v2186_v51  ;;  %2384 = vmatprep.mubr.bf16.mxu0 %v868_v16  ;;  %2673 = vmatprep.mubr.bf16.mxu1 %v1060_v3  ;;  %v966_v51 = vpack.c.bf16 %v933_v29, %v932_v4 }
 0x126   : > { %v2188_v35 = vpop.f32.mrf.mxu0  ;;  %v2477_v18 = vpop.f32.mrf.mxu1 }
 0x127   : > { %v8382_v59 = vadd.f32 %v2475_v22, %v2187_v56  ;;  %v1063_v22 = vpack.c.bf16 %v1031_v55, %v1030_v21 }
 0x128   : > { %v2189_v20 = vpop.f32.mrf.mxu0  ;;  %v2478_v9 = vpop.f32.mrf.mxu1 }
 0x129   : > { %v2190_v0 = vadd.f32 %v8349_v17, %v2189_v20  ;;  %v1161_v20 = vld [vmem:[#allocation2 + $0x22] sm:$0xff] }
 0x12a   : > { %v2191_v61 = vpop.f32.mrf.mxu0  ;;  %v2480_v52 = vpop.f32.mrf.mxu1 }
 0x12b   : > { %v8385_v53 = vadd.f32 %v2478_v9, %v2190_v0  ;;  %v1354_v61 = vld [vmem:[#allocation2 + $0x39] sm:$0xff] }
 0x12c   : > { %v2194_v25 = vpop.f32.mrf.mxu0  ;;  %2385 = vmatmul.mubr.bf16.gmra.mxu0 %v1059_v26  ;;  %v2483_v50 = vpop.f32.mrf.mxu1  ;;  %2674 = vmatmul.mubr.bf16.gmra.mxu1 %v964_v43  ;;  %v1353_v43 = vld [vmem:[#allocation2 + $0x31] sm:$0xff] }
 0x12d   : > { %v2195_v16 = vadd.f32 %v8349_v17, %v2194_v25  ;;  %2392 = vmatprep.mubr.bf16.mxu0 %v869_v57  ;;  %2681 = vmatprep.mubr.bf16.mxu1 %v1061_v36  ;;  %v8412_v49 = vpack.c.bf16 %v1354_v61, %v1353_v43  ;;  %v1358_v43 = vld [vmem:[#allocation2 + $0x69] sm:$0xff] }
 0x12e   : > { %v2196_v34 = vpop.f32.mrf.mxu0  ;;  %v2485_v39 = vpop.f32.mrf.mxu1 }
 0x12f   : > { %v8391_v38 = vadd.f32 %v2483_v50, %v2195_v16  ;;  %v967_v16 = vpack.c.bf16 %v935_v45, %v934_v33  ;;  %v1224_v50 = vpack.c.bf16 %v1161_v20, %v1160_v19  ;;  %v1164_v33 = vld [vmem:[#allocation2 + $0x4a] sm:$0xff] }
 0x130   : > { %v2197_v27 = vpop.f32.mrf.mxu0  ;;  %v2486_v31 = vpop.f32.mrf.mxu1  ;;  %v7303_v45 = vld [vmem:[%s9866_s4 + $0x228] sm:$0xff]  }
 0x131   : > { %v2198_v26 = vadd.f32 %v8349_v17, %v2197_v27 }
 0x132   : > { %v2199_v46 = vpop.f32.mrf.mxu0  ;;  %v2488_v42 = vpop.f32.mrf.mxu1 }
 0x133   : > { %v8394_v62 = vadd.f32 %v2486_v31, %v2198_v26  ;;  %v1257_v26 = vld [vmem:[#allocation2 + $0x30] sm:$0xff]  ;;  %v1258_v31 = vld [vmem:[#allocation2 + $0x38] sm:$0xff] }
 0x134   : > { %v2202_v47 = vpop.f32.mrf.mxu0  ;;  %2393 = vmatmul.mubr.bf16.gmra.mxu0 %v1060_v3  ;;  %v2491_v14 = vpop.f32.mrf.mxu1  ;;  %2682 = vmatmul.mubr.bf16.gmra.mxu1 %v965_v44  ;;  %v1162_v44 = vld [vmem:[#allocation2 + $0x32] sm:$0xff] }
 0x135   : > { %v2203_v57 = vadd.f32 %v8349_v17, %v2202_v47  ;;  %2400 = vmatprep.mubr.bf16.mxu0 %v870_v58  ;;  %2689 = vmatprep.mubr.bf16.mxu1 %v1062_v32  ;;  %v1163_v47 = vld [vmem:[#allocation2 + $0x3a] sm:$0xff] }
 0x136   : > { %v2204_v28 = vpop.f32.mrf.mxu0  ;;  %v2493_v2 = vpop.f32.mrf.mxu1  ;;  %v1225_v55 = vpack.c.bf16 %v1163_v47, %v1162_v44  ;;  %v1167_v44 = vld [vmem:[#allocation2 + $0x6a] sm:$0xff] }
 0x137   : > { %v8400_v7 = vadd.f32 %v2491_v14, %v2203_v57  ;;  %v1355_v57 = vld [vmem:[#allocation2 + $0x49] sm:$0xff]  ;;  %v1356_v14 = vld [vmem:[#allocation2 + $0x51] sm:$0xff]  ;;  %v1128_v28 = vpack.c.bf16 %v1065_v40, %v1064_v37  ;;  %v1321_v2 = vpack.c.bf16 %v1258_v31, %v1257_v26  ;;  %v1261_v40 = vld [vmem:[#allocation2 + $0x60] sm:$0xff] }
 0x138   : > { %v2205_v11 = vpop.f32.mrf.mxu0  ;;  %v2494_v6 = vpop.f32.mrf.mxu1  ;;  %v1262_v26 = vld [vmem:[#allocation2 + $0x68] sm:$0xff] }
 0x139   : > { %v2206_v3 = vadd.f32 %v8349_v17, %v2205_v11  ;;  %v8421_v11 = vpack.c.bf16 %v1356_v14, %v1355_v57  ;;  %v1166_v31 = vld [vmem:[#allocation2 + $0x62] sm:$0xff]  ;;  %v1359_v57 = vld [vmem:[#allocation2 + $0x79] sm:$0xff] }
 0x13a   : > { %v2207_v56 = vpop.f32.mrf.mxu0  ;;  %v2496_v48 = vpop.f32.mrf.mxu1  ;;  %v1360_v14 = vld [vmem:[#allocation2 + $0x81] sm:$0xff] }
 0x13b   : > { %v8403_v35 = vadd.f32 %v2494_v6, %v2206_v3 }
 0x13c   : > { %v2210_v54 = vpop.f32.mrf.mxu0  ;;  %2401 = vmatmul.mubr.bf16.gmra.mxu0 %v1061_v36  ;;  %v2499_v30 = vpop.f32.mrf.mxu1  ;;  %2690 = vmatmul.mubr.bf16.gmra.mxu1 %v966_v51  ;;  %v7302_v51 = vld [vmem:[%s9866_s4 + $0x230] sm:$0xff]  }
 0x13d   : > { %v2211_v58 = vadd.f32 %v8349_v17, %v2210_v54  ;;  %2408 = vmatprep.mubr.bf16.mxu0 %v871_v8  ;;  %2697 = vmatprep.mubr.bf16.mxu1 %v1063_v22  ;;  %v1259_v54 = vld [vmem:[#allocation2 + $0x48] sm:$0xff] }
 0x13e   : > { %v2212_v18 = vpop.f32.mrf.mxu0  ;;  %v2501_v9 = vpop.f32.mrf.mxu1 }
 0x13f   : > { %v8409_v0 = vadd.f32 %v2499_v30, %v2211_v58  ;;  %v1260_v58 = vld [vmem:[#allocation2 + $0x50] sm:$0xff]  ;;  %v1357_v9 = vld [vmem:[#allocation2 + $0x61] sm:$0xff] }
 0x140   : > { %v2213_v36 = vpop.f32.mrf.mxu0  ;;  %v2502_v25 = vpop.f32.mrf.mxu1  ;;  %v1165_v18 = vld [vmem:[#allocation2 + $0x52] sm:$0xff] }
 0x141   : > { %v2214_v52 = vadd.f32 %v8349_v17, %v2213_v36 }
 0x142   : > { %v2215_v34 = vpop.f32.mrf.mxu0  ;;  %v2504_v8 = vpop.f32.mrf.mxu1 }
 0x143   : > { %v8414_v23 = vadd.f32 %v2502_v25, %v2214_v52  ;;  %v1322_v52 = vpack.c.bf16 %v1260_v58, %v1259_v54  ;;  %v1226_v25 = vpack.c.bf16 %v1165_v18, %v1164_v33  ;;  %v1263_v54 = vld [vmem:[#allocation2 + $0x78] sm:$0xff]  ;;  %v1169_v18 = vld [vmem:[#allocation2 + $0x82] sm:$0xff] }
 0x144   : > { %v2218_v41 = vpop.f32.mrf.mxu0  ;;  %2409 = vmatmul.mubr.bf16.gmra.mxu0 %v1062_v32  ;;  %v2507_v39 = vpop.f32.mrf.mxu1  ;;  %2698 = vmatmul.mubr.bf16.gmra.mxu1 %v967_v16  ;;  %v1168_v33 = vld [vmem:[#allocation2 + $0x7a] sm:$0xff] }
 0x145   : > { %v2219_v63 = vadd.f32 %v8349_v17, %v2218_v41  ;;  %2738 = vmatprep.mubr.bf16.mxu0 %v1224_v50  ;;  %3027 = vmatprep.mubr.bf16.mxu1 %v8412_v49  ;;  %v1419_v50 = vpack.c.bf16 %v1358_v43, %v1357_v9  ;;  %v7304_v41 = vld [vmem:[%s9866_s4 + $0x220] sm:$0xff]   ;;  %v1361_v9 = vld [vmem:[#allocation2 + $0x91] sm:$0xff] }
 0x146   : > { %v2220_v27 = vpop.f32.mrf.mxu0  ;;  %v2509_v42 = vpop.f32.mrf.mxu1  ;;  %v1362_v43 = vld [vmem:[#allocation2 + $0x99] sm:$0xff] }
 0x147   : > { %v8418_v46 = vadd.f32 %v2507_v39, %v2219_v63 }
 0x148   : > { %v2221_v32 = vpop.f32.mrf.mxu0  ;;  %v2510_v29 = vpop.f32.mrf.mxu1 }
 0x149   : > { %v2222_v4 = vadd.f32 %v8349_v17, %v2221_v32 }
 0x14a   : > { %v2223_v21 = vpop.f32.mrf.mxu0  ;;  %v2512_v6 = vpop.f32.mrf.mxu1 }
 0x14b   : > { %v8423_v3 = vadd.f32 %v2510_v29, %v2222_v4  ;;  %v1323_v29 = vpack.c.bf16 %v1262_v26, %v1261_v40  ;;  %v1265_v40 = vld [vmem:[#allocation2 + $0x90] sm:$0xff]  ;;  %v1266_v26 = vld [vmem:[#allocation2 + $0x98] sm:$0xff] }
 0x14c   : > { %v2226_v56 = vpop.f32.mrf.mxu0  ;;  %2739 = vmatmul.mubr.bf16.vlgmr.msra.gmra.mxu0 %v1128_v28  ;;  %v2515_v48 = vpop.f32.mrf.mxu1  ;;  %3028 = vmatmul.mubr.bf16.vlgmr.msra.gmra.mxu1 %v1321_v2  ;;  %v1227_v2 = vpack.c.bf16 %v1167_v44, %v1166_v31  ;;  %v1170_v31 = vld [vmem:[#allocation2 + $0x92] sm:$0xff]  ;;  %v1171_v44 = vld [vmem:[#allocation2 + $0x9a] sm:$0xff] }
 0x14d   : > { %v2227_v22 = vadd.f32 %v8349_v17, %v2226_v56  ;;  %7066 = vmatpush3.bf16.msra.mxu0 %v8322_v24  ;;  %2746 = vmatprep.mubr.bf16.mxu0 %v1225_v55  ;;  %v1420_v55 = vpack.c.bf16 %v1360_v14, %v1359_v57  ;;  %v1363_v14 = vld [vmem:[#allocation2 + $0xa9] sm:$0xff] }
 0x14e   : > { %v2228_v30 = vpop.f32.mrf.mxu0  ;;  %3035 = vmatprep.mubr.bf16.mxu1 %v8421_v11  ;;  %v2517_v20 = vpop.f32.mrf.mxu1  ;;  %7067 = vmatprep.subr.bf16.mxu0 %v7302_v51 }
 0x14f   : > { %v8434_v19 = vadd.f32 %v2515_v48, %v2227_v22  ;;  %v1264_v30 = vld [vmem:[#allocation2 + $0x80] sm:$0xff] }
 0x150   : > { %v2229_v24 = vpop.f32.mrf.mxu0  ;;  %v2518_v36 = vpop.f32.mrf.mxu1 }
 0x151   : > { %v2230_v61 = vadd.f32 %v8349_v17, %v2229_v24  ;;  %7068 = vmatpush3.bf16.msra.mxu0 %v7302_v51 }
 0x152   : > { %v2231_v16 = vpop.f32.mrf.mxu0  ;;  %7069 = vmatprep.subr.bf16.mxu0 %v7303_v45  ;;  %v2520_v8 = vpop.f32.mrf.mxu1 }
 0x153   : > { %v8437_v34 = vadd.f32 %v2518_v36, %v2230_v61  ;;  %v1324_v36 = vpack.c.bf16 %v1264_v30, %v1263_v54  ;;  %v1421_v16 = vpack.c.bf16 %v1362_v43, %v1361_v9  ;;  %v7306_v30 = vld [vmem:[%s9866_s4 + $0x210] sm:$0xff]  }
 0x154   : > { %v2234_v63 = vpop.f32.mrf.mxu0  ;;  %2747 = vmatmul.mubr.bf16.gmra.mxu0 %v8412_v49  ;;  %v2523_v37 = vpop.f32.mrf.mxu1  ;;  %3036 = vmatmul.mubr.bf16.gmra.mxu1 %v1322_v52  ;;  %v7305_v49 = vld [vmem:[%s9866_s4 + $0x218] sm:$0xff]   ;;  %v1228_v52 = vpack.c.bf16 %v1169_v18, %v1168_v33  ;;  %v1268_v18 = vld [vmem:[#allocation2 + $0xb0] sm:$0xff] }
 0x155   : > { %v2235_v39 = vadd.f32 %v8349_v17, %v2234_v63  ;;  %2754 = vmatprep.mubr.bf16.mxu0 %v1226_v25  ;;  %3043 = vmatprep.mubr.bf16.mxu1 %v1419_v50  ;;  %v1173_v9 = vld [vmem:[#allocation2 + $0xb2] sm:$0xff] }
 0x156   : > { %v2236_v27 = vpop.f32.mrf.mxu0  ;;  %7070 = vmatpush3.bf16.msra.mxu0 %v7303_v45  ;;  %v2525_v47 = vpop.f32.mrf.mxu1 }
 0x157   : > { %v8444_v42 = vadd.f32 %v2523_v37, %v2235_v39  ;;  %7071 = vmatprep.subr.bf16.mxu0 %v7304_v41 }
 0x158   : > { %v2237_v32 = vpop.f32.mrf.mxu0  ;;  %v2526_v4 = vpop.f32.mrf.mxu1 }
 0x159   : > { %v2238_v28 = vadd.f32 %v8349_v17, %v2237_v32 }
 0x15a   : > { %v2239_v21 = vpop.f32.mrf.mxu0  ;;  %7072 = vmatpush3.bf16.msra.mxu0 %v7304_v41  ;;  %v2528_v51 = vpop.f32.mrf.mxu1 }
 0x15b   : > { %v8450_v6 = vadd.f32 %v2526_v4, %v2238_v28  ;;  %7073 = vmatprep.subr.bf16.mxu0 %v7305_v49  ;;  %v1325_v4 = vpack.c.bf16 %v1266_v26, %v1265_v40 }
 0x15c   : > { %v2242_v56 = vpop.f32.mrf.mxu0  ;;  %2755 = vmatmul.mubr.bf16.gmra.mxu0 %v8421_v11  ;;  %v2531_v48 = vpop.f32.mrf.mxu1  ;;  %3044 = vmatmul.mubr.bf16.gmra.mxu1 %v1323_v29  ;;  %v1229_v29 = vpack.c.bf16 %v1171_v44, %v1170_v31  ;;  %v1269_v44 = vld [vmem:[#allocation2 + $0xc0] sm:$0xff] }
 0x15d   : > { %v2243_v22 = vadd.f32 %v8349_v17, %v2242_v56  ;;  %2762 = vmatprep.mubr.bf16.mxu0 %v1227_v2  ;;  %3051 = vmatprep.mubr.bf16.mxu1 %v1420_v55 }
 0x15e   : > { %v2244_v58 = vpop.f32.mrf.mxu0  ;;  %7074 = vmatpush3.bf16.msra.mxu0 %v7305_v49  ;;  %v2533_v20 = vpop.f32.mrf.mxu1  ;;  %v1364_v49 = vld [vmem:[#allocation2 + $0xb1] sm:$0xff] }
 0x15f   : > { %v8454_v45 = vadd.f32 %v2531_v48, %v2243_v22  ;;  %v1422_v21 = vpack.c.bf16 %v1364_v49, %v1363_v14  ;;  %v1267_v58 = vld [vmem:[#allocation2 + $0xa8] sm:$0xff]  ;;  %7075 = vmatprep.subr.bf16.mxu0 %v7306_v30 }
 0x160   : > { %v2245_v24 = vpop.f32.mrf.mxu0  ;;  %v2534_v61 = vpop.f32.mrf.mxu1  ;;  %v1172_v20 = vld [vmem:[#allocation2 + $0xaa] sm:$0xff]  ;;  %v1174_v49 = vld [vmem:[#allocation2 + $0xc2] sm:$0xff] }
 0x161   : > { %v2246_v11 = vadd.f32 %v8349_v17, %v2245_v24  ;;  %v1270_v14 = vld [vmem:[#allocation2 + $0xc8] sm:$0xff] }
 0x162   : > { %v2247_v25 = vpop.f32.mrf.mxu0  ;;  %v2536_v41 = vpop.f32.mrf.mxu1  ;;  %7076 = vmatpush3.bf16.msra.mxu0 %v7306_v30 }
 0x163   : > { %v8457_v8 = vadd.f32 %v2534_v61, %v2246_v11  ;;  %v1365_v11 = vld [vmem:[#allocation2 + $0xc1] sm:$0xff]  ;;  %v1326_v25 = vpack.c.bf16 %v1268_v18, %v1267_v58  ;;  %v1230_v41 = vpack.c.bf16 %v1173_v9, %v1172_v20 }
 0x164   : > { %v2250_v63 = vpop.f32.mrf.mxu0  ;;  %2763 = vmatmul.mubr.bf16.gmra.mxu0 %v1419_v50  ;;  %v2539_v37 = vpop.f32.mrf.mxu1  ;;  %3052 = vmatmul.mubr.bf16.gmra.mxu1 %v1324_v36 }
 0x165   : > { %v2251_v39 = vadd.f32 %v8349_v17, %v2250_v63  ;;  %2770 = vmatprep.mubr.bf16.mxu0 %v1228_v52  ;;  %3059 = vmatprep.mubr.bf16.mxu1 %v1421_v16 }
 0x166   : > { %v2252_v27 = vpop.f32.mrf.mxu0  ;;  %v2541_v57 = vpop.f32.mrf.mxu1 }
 0x167   : > { %v8460_v47 = vadd.f32 %v2539_v37, %v2251_v39 }
 0x168   : > { %v2253_v32 = vpop.f32.mrf.mxu0  ;;  %v2542_v50 = vpop.f32.mrf.mxu1 }
 0x169   : > { %v2254_v28 = vadd.f32 %v8349_v17, %v2253_v32  ;;  %v1175_v32 = vld [vmem:[#allocation2 + $0xca] sm:$0xff] }
 0x16a   : > { %v2255_v2 = vpop.f32.mrf.mxu0  ;;  %v2544_v56 = vpop.f32.mrf.mxu1 }
 0x16b   : > { %v8463_v51 = vadd.f32 %v2542_v50, %v2254_v28 }
 0x16c   : > { %v2258_v22 = vpop.f32.mrf.mxu0  ;;  %2771 = vmatmul.mubr.bf16.gmra.mxu0 %v1420_v55  ;;  %v2547_v54 = vpop.f32.mrf.mxu1  ;;  %3060 = vmatmul.mubr.bf16.gmra.mxu1 %v1325_v4  ;;  %v1366_v55 = vld [vmem:[#allocation2 + $0xc9] sm:$0xff]  ;;  %v1367_v4 = vld [vmem:[#allocation2 + $0xd9] sm:$0xff] }
 0x16d   : > { %v2259_v48 = vadd.f32 %v8349_v17, %v2258_v22  ;;  %2778 = vmatprep.mubr.bf16.mxu0 %v1229_v29  ;;  %3067 = vmatprep.mubr.bf16.mxu1 %v1422_v21  ;;  %v1423_v39 = vpack.c.bf16 %v1366_v55, %v1365_v11  ;;  %v1368_v29 = vld [vmem:[#allocation2 + $0xe1] sm:$0xff]  ;;  %v1327_v22 = vpack.c.bf16 %v1270_v14, %v1269_v44 }
 0x16e   : > { %v2260_v33 = vpop.f32.mrf.mxu0  ;;  %v2549_v24 = vpop.f32.mrf.mxu1  ;;  %v1424_v58 = vpack.c.bf16 %v1368_v29, %v1367_v4  ;;  %v1272_v55 = vld [vmem:[#allocation2 + $0xe0] sm:$0xff]  ;;  %v1273_v29 = vld [vmem:[#allocation2 + $0xf0] sm:$0xff] }
 0x16f   : > { %v8469_v43 = vadd.f32 %v2547_v54, %v2259_v48  ;;  %v1231_v48 = vpack.c.bf16 %v1175_v32, %v1174_v49  ;;  %v1271_v24 = vld [vmem:[#allocation2 + $0xd8] sm:$0xff] }
 0x170   : > { %v2261_v61 = vpop.f32.mrf.mxu0  ;;  %v2550_v52 = vpop.f32.mrf.mxu1 }
 0x171   : > { %v2262_v36 = vadd.f32 %v8349_v17, %v2261_v61  ;;  %v1176_v61 = vld [vmem:[#allocation2 + $0xda] sm:$0xff] }
 0x172   : > { %v2263_v63 = vpop.f32.mrf.mxu0  ;;  %v2552_v40 = vpop.f32.mrf.mxu1 }
 0x173   : > { %v8472_v37 = vadd.f32 %v2550_v52, %v2262_v36  ;;  %v1177_v36 = vld [vmem:[#allocation2 + $0xe2] sm:$0xff]  ;;  %v1370_v63 = vld [vmem:[#allocation2 + $0xf9] sm:$0xff] }
 0x174   : > { %v2266_v27 = vpop.f32.mrf.mxu0  ;;  %2779 = vmatmul.mubr.bf16.gmra.mxu0 %v1421_v16  ;;  %v2555_v31 = vpop.f32.mrf.mxu1  ;;  %3068 = vmatmul.mubr.bf16.gmra.mxu1 %v1326_v25 }
 0x175   : > { %v2267_v26 = vadd.f32 %v8349_v17, %v2266_v27  ;;  %2786 = vmatprep.mubr.bf16.mxu0 %v1230_v41  ;;  %3075 = vmatprep.mubr.bf16.mxu1 %v1423_v39  ;;  %v1369_v41 = vld [vmem:[#allocation2 + $0xf1] sm:$0xff] }
 0x176   : > { %v2268_v57 = vpop.f32.mrf.mxu0  ;;  %v2557_v50 = vpop.f32.mrf.mxu1 }
 0x177   : > { %v8475_v28 = vadd.f32 %v2555_v31, %v2267_v26  ;;  %v1328_v26 = vpack.c.bf16 %v1272_v55, %v1271_v24  ;;  %v1232_v31 = vpack.c.bf16 %v1177_v36, %v1176_v61  ;;  %v1425_v57 = vpack.c.bf16 %v1370_v63, %v1369_v41 }
 0x178   : > { %v2269_v2 = vpop.f32.mrf.mxu0  ;;  %v2558_v16 = vpop.f32.mrf.mxu1 }
 0x179   : > { %v2270_v56 = vadd.f32 %v8349_v17, %v2269_v2 }
 0x17a   : > { %v2271_v54 = vpop.f32.mrf.mxu0  ;;  %v2560_v33 = vpop.f32.mrf.mxu1 }
 0x17b   : > { %v8478_v30 = vadd.f32 %v2558_v16, %v2270_v56  ;;  %v1274_v56 = vld [vmem:[#allocation2 + $0xf8] sm:$0xff]  ;;  %v1371_v33 = vld [vmem:[#allocation2 + $0x109] sm:$0xff] }
 0x17c   : > { %v2274_v18 = vpop.f32.mrf.mxu0  ;;  %2787 = vmatmul.mubr.bf16.gmra.mxu0 %v1422_v21  ;;  %v2563_v9 = vpop.f32.mrf.mxu1  ;;  %3076 = vmatmul.mubr.bf16.gmra.mxu1 %v1327_v22  ;;  %v1178_v16 = vld [vmem:[#allocation2 + $0xf2] sm:$0xff]  ;;  %v1179_v22 = vld [vmem:[#allocation2 + $0xfa] sm:$0xff]  ;;  %v1329_v24 = vpack.c.bf16 %v1274_v56, %v1273_v29 }
 0x17d   : > { %v2275_v20 = vadd.f32 %v8349_v17, %v2274_v18  ;;  %2794 = vmatprep.mubr.bf16.mxu0 %v1231_v48  ;;  %3083 = vmatprep.mubr.bf16.mxu1 %v1424_v58  ;;  %v1372_v18 = vld [vmem:[#allocation2 + $0x111] sm:$0xff] }
 0x17e   : > { %v2276_v11 = vpop.f32.mrf.mxu0  ;;  %v2565_v25 = vpop.f32.mrf.mxu1  ;;  %v1426_v61 = vpack.c.bf16 %v1372_v18, %v1371_v33 }
 0x17f   : > { %v8481_v52 = vadd.f32 %v2563_v9, %v2275_v20  ;;  %v1233_v11 = vpack.c.bf16 %v1179_v22, %v1178_v16 }
 0x180   : > { %v2277_v40 = vpop.f32.mrf.mxu0  ;;  %v2566_v21 = vpop.f32.mrf.mxu1 }
 0x181   : > { %v2278_v27 = vadd.f32 %v8349_v17, %v2277_v40 }
 0x182   : > { %v2279_v44 = vpop.f32.mrf.mxu0  ;;  %v2568_v49 = vpop.f32.mrf.mxu1 }
 0x183   : > { %v8484_v14 = vadd.f32 %v2566_v21, %v2278_v27  ;;  %v1275_v27 = vld [vmem:[#allocation2 + $0x108] sm:$0xff]  ;;  %v1181_v49 = vld [vmem:[#allocation2 + $0x112] sm:$0xff] }
 0x184   : > { %v2282_v32 = vpop.f32.mrf.mxu0  ;;  %2795 = vmatmul.mubr.bf16.gmra.mxu0 %v1423_v39  ;;  %v2571_v4 = vpop.f32.mrf.mxu1  ;;  %3084 = vmatmul.mubr.bf16.gmra.mxu1 %v1328_v26  ;;  %v7307_v21 = vld [vmem:[%s9866_s4 + $0x208] sm:$0xff]  }
 0x185   : > { %v2283_v50 = vadd.f32 %v8349_v17, %v2282_v32  ;;  %2802 = vmatprep.mubr.bf16.mxu0 %v1232_v31  ;;  %3091 = vmatprep.mubr.bf16.mxu1 %v1425_v57  ;;  %v1276_v31 = vld [vmem:[#allocation2 + $0x110] sm:$0xff] }
 0x186   : > { %v2284_v2 = vpop.f32.mrf.mxu0  ;;  %v2573_v54 = vpop.f32.mrf.mxu1  ;;  %v1180_v44 = vld [vmem:[#allocation2 + $0x10a] sm:$0xff]  ;;  %7077 = vmatprep.subr.bf16.mxu0 %v7307_v21  ;;  %v1330_v16 = vpack.c.bf16 %v1276_v31, %v1275_v27 }
 0x187   : > { %v8487_v48 = vadd.f32 %v2571_v4, %v2283_v50  ;;  %v1373_v4 = vld [vmem:[#allocation2 + $0x121] sm:$0xff]  ;;  %7078 = vmatpush3.bf16.msra.mxu0 %v7307_v21  ;;  %v1234_v22 = vpack.c.bf16 %v1181_v49, %v1180_v44  ;;  %v1375_v21 = vld [vmem:[#allocation2 + $0x139] sm:$0xff] }
 0x188   : > { %v2285_v20 = vpop.f32.mrf.mxu0  ;;  %v2574_v39 = vpop.f32.mrf.mxu1 }
 0x189   : > { %v2286_v9 = vadd.f32 %v8349_v17, %v2285_v20 }
 0x18a   : > { %v2287_v55 = vpop.f32.mrf.mxu0  ;;  %v2576_v25 = vpop.f32.mrf.mxu1 }
 0x18b   : > { %v8490_v36 = vadd.f32 %v2574_v39, %v2286_v9  ;;  %v1278_v25 = vld [vmem:[#allocation2 + $0x128] sm:$0xff] }
 0x18c   : > { %v2290_v41 = vpop.f32.mrf.mxu0  ;;  %2803 = vmatmul.mubr.bf16.gmra.mxu0 %v1424_v58  ;;  %v2579_v40 = vpop.f32.mrf.mxu1  ;;  %3092 = vmatmul.mubr.bf16.gmra.mxu1 %v1329_v24  ;;  %v1374_v58 = vld [vmem:[#allocation2 + $0x129] sm:$0xff] }
 0x18d   : > { %v2291_v63 = vadd.f32 %v8349_v17, %v2290_v41  ;;  %2810 = vmatprep.mubr.bf16.mxu0 %v1233_v11  ;;  %3099 = vmatprep.mubr.bf16.mxu1 %v1426_v61  ;;  %v1427_v33 = vpack.c.bf16 %v1374_v58, %v1373_v4  ;;  %v1277_v11 = vld [vmem:[#allocation2 + $0x120] sm:$0xff] }
 0x18e   : > { %v2292_v26 = vpop.f32.mrf.mxu0  ;;  %v2581_v50 = vpop.f32.mrf.mxu1  ;;  %v1182_v41 = vld [vmem:[#allocation2 + $0x122] sm:$0xff]  ;;  %v1331_v49 = vpack.c.bf16 %v1278_v25, %v1277_v11 }
 0x18f   : > { %v8496_v32 = vadd.f32 %v2579_v40, %v2291_v63  ;;  %v1183_v63 = vld [vmem:[#allocation2 + $0x12a] sm:$0xff]  ;;  %v1376_v26 = vld [vmem:[#allocation2 + $0x141] sm:$0xff] }
 0x190   : > { %v2293_v29 = vpop.f32.mrf.mxu0  ;;  %v2582_v56 = vpop.f32.mrf.mxu1  ;;  %v1235_v50 = vpack.c.bf16 %v1183_v63, %v1182_v41  ;;  %v1428_v58 = vpack.c.bf16 %v1376_v26, %v1375_v21  ;;  %v1185_v11 = vld [vmem:[#allocation2 + $0x142] sm:$0xff]  ;;  %v1377_v41 = vld [vmem:[#allocation2 + $0x151] sm:$0xff]  ;;  %v1378_v63 = vld [vmem:[#allocation2 + $0x159] sm:$0xff] }
 0x191   : > { %v2294_v2 = vadd.f32 %v8349_v17, %v2293_v29 }
 0x192   : > { %v2295_v54 = vpop.f32.mrf.mxu0  ;;  %v2584_v20 = vpop.f32.mrf.mxu1 }
 0x193   : > { %v8499_v18 = vadd.f32 %v2582_v56, %v2294_v2  ;;  %v7308_v56 = vld [vmem:[%s9868_s6 + $0x38] sm:$0xff]  }
 0x194   : > { %v2298_v9 = vpop.f32.mrf.mxu0  ;;  %2811 = vmatmul.mubr.bf16.gmra.mxu0 %v1425_v57  ;;  %v2587_v24 = vpop.f32.mrf.mxu1  ;;  %3100 = vmatmul.mubr.bf16.gmra.mxu1 %v1330_v16  ;;  %v1279_v20 = vld [vmem:[#allocation2 + $0x138] sm:$0xff] }
 0x195   : > { %v2299_v39 = vadd.f32 %v8349_v17, %v2298_v9  ;;  %2818 = vmatprep.mubr.bf16.mxu0 %v1234_v22  ;;  %3107 = vmatprep.mubr.bf16.mxu1 %v1427_v33 }
 0x196   : > { %v2300_v55 = vpop.f32.mrf.mxu0  ;;  %v2589_v27 = vpop.f32.mrf.mxu1  ;;  %5149 = vmatpush1.bf16.msra.mxu1 %v7308_v56 }
 0x197   : > { %v8502_v40 = vadd.f32 %v2587_v24, %v2299_v39  ;;  %v1280_v39 = vld [vmem:[#allocation2 + $0x140] sm:$0xff]  ;;  %5150 = vmatprep.subr.bf16.mxu1 %v9871_v1 }
 0x198   : > { %v2301_v31 = vpop.f32.mrf.mxu0  ;;  %v2590_v57 = vpop.f32.mrf.mxu1  ;;  %v1184_v24 = vld [vmem:[#allocation2 + $0x13a] sm:$0xff]  ;;  %v1332_v26 = vpack.c.bf16 %v1280_v39, %v1279_v20 }
 0x199   : > { %v2302_v44 = vadd.f32 %v8349_v17, %v2301_v31  ;;  %v1236_v31 = vpack.c.bf16 %v1185_v11, %v1184_v24  ;;  %v1379_v24 = vld [vmem:[#allocation2 + $0x169] sm:$0xff]  ;;  %v1380_v11 = vld [vmem:[#allocation2 + $0x171] sm:$0xff] }
 0x19a   : > { %v2303_v4 = vpop.f32.mrf.mxu0  ;;  %v2592_v2 = vpop.f32.mrf.mxu1 }
 0x19b   : > { %v8505_v29 = vadd.f32 %v2590_v57, %v2302_v44  ;;  %v1429_v57 = vpack.c.bf16 %v1378_v63, %v1377_v41 }
 0x19c   : > { %v2306_v16 = vpop.f32.mrf.mxu0  ;;  %2819 = vmatmul.mubr.bf16.gmra.mxu0 %v1426_v61  ;;  %v2595_v54 = vpop.f32.mrf.mxu1  ;;  %3108 = vmatmul.mubr.bf16.gmra.mxu1 %v1331_v49 }
 0x19d   : > { %v2307_v22 = vadd.f32 %v8349_v17, %v2306_v16  ;;  %2826 = vmatprep.mubr.bf16.mxu0 %v1235_v50  ;;  %3115 = vmatprep.mubr.bf16.mxu1 %v1428_v58  ;;  %v1281_v16 = vld [vmem:[#allocation2 + $0x150] sm:$0xff] }
 0x19e   : > { %v2308_v9 = vpop.f32.mrf.mxu0  ;;  %v2597_v25 = vpop.f32.mrf.mxu1 }
 0x19f   : > { %v8511_v55 = vadd.f32 %v2595_v54, %v2307_v22  ;;  %v1282_v54 = vld [vmem:[#allocation2 + $0x158] sm:$0xff] }
 0x1a0   : > { %v2309_v61 = vpop.f32.mrf.mxu0  ;;  %v2598_v21 = vpop.f32.mrf.mxu1  ;;  %v1186_v9 = vld [vmem:[#allocation2 + $0x152] sm:$0xff]  ;;  %v1187_v25 = vld [vmem:[#allocation2 + $0x15a] sm:$0xff] }
 0x1a1   : > { %v2310_v27 = vadd.f32 %v8349_v17, %v2309_v61  ;;  %v1333_v61 = vpack.c.bf16 %v1282_v54, %v1281_v16  ;;  %v1283_v16 = vld [vmem:[#allocation2 + $0x168] sm:$0xff] }
 0x1a2   : > { %v2311_v44 = vpop.f32.mrf.mxu0  ;;  %v2600_v50 = vpop.f32.mrf.mxu1 }
 0x1a3   : > { %v8515_v49 = vadd.f32 %v2598_v21, %v2310_v27  ;;  %v1237_v27 = vpack.c.bf16 %v1187_v25, %v1186_v9  ;;  %v7309_v50 = vld [vmem:[%s9868_s6 + $0x30] sm:$0xff]  }
 0x1a4   : > { %v2314_v4 = vpop.f32.mrf.mxu0  ;;  %2827 = vmatmul.mubr.bf16.gmra.mxu0 %v1427_v33  ;;  %v2603_v56 = vpop.f32.mrf.mxu1  ;;  %3116 = vmatmul.mubr.bf16.gmra.mxu1 %v1332_v26  ;;  %v1430_v26 = vpack.c.bf16 %v1380_v11, %v1379_v24  ;;  %v1284_v9 = vld [vmem:[#allocation2 + $0x170] sm:$0xff]  ;;  %v1381_v11 = vld [vmem:[#allocation2 + $0x181] sm:$0xff] }
 0x1a5   : > { %9875 = vst [vmem:[#allocation3_spill] sm:$0xff] %v8515_v49  ;;  %v2315_v2 = vadd.f32 %v8349_v17, %v2314_v4  ;;  %2834 = vmatprep.mubr.bf16.mxu0 %v1236_v31  ;;  %3123 = vmatprep.mubr.bf16.mxu1 %v1429_v57  ;;  %v1188_v25 = vld [vmem:[#allocation2 + $0x16a] sm:$0xff]  ;;  %v1199_v49 = vld [vmem:[#allocation2 + $0x21a] sm:$0xff] }
 0x1a6   : > { %v2316_v22 = vpop.f32.mrf.mxu0  ;;  %v2605_v39 = vpop.f32.mrf.mxu1  ;;  %5151 = vmatpush1.bf16.msra.mxu1 %v7309_v50 }
 0x1a7   : > { %v8518_v20 = vadd.f32 %v2603_v56, %v2315_v2  ;;  %v8529_v2 = vld [vmem:[%s9867_s5] ss:$0 sm:$0xff]  ;;  %5152 = vmatprep.subr.bf16.mxu1 %v9871_v1 }
 0x1a8   : > { %v2317_v41 = vpop.f32.mrf.mxu0  ;;  %v2606_v33 = vpop.f32.mrf.mxu1  ;;  %v7310_v22 = vld [vmem:[%s9866_s4 + $0x200] sm:$0xff]  }
 0x1a9   : > { %9876 = vst [vmem:[#allocation4_spill] sm:$0xff] %v8518_v20  ;;  %v2318_v63 = vadd.f32 %v8349_v17, %v2317_v41  ;;  %v1382_v41 = vld [vmem:[#allocation2 + $0x189] sm:$0xff]  ;;  %7079 = vmatprep.subr.bf16.mxu0 %v7310_v22 }
 0x1aa   : > { %v2319_v21 = vpop.f32.mrf.mxu0  ;;  %v2608_v44 = vpop.f32.mrf.mxu1  ;;  %7080 = vmatpush3.bf16.msra.mxu0 %v7310_v22  ;;  %v1285_v22 = vld [vmem:[#allocation2 + $0x180] sm:$0xff] }
 0x1ab   : > { %v8521_v31 = vadd.f32 %v2606_v33, %v2318_v63  ;;  %5437 = vmatprep.subr.bf16.mxu0 %v9871_v1  ;;  %v7311_v1 = vld [vmem:[%s9868_s6 + $0x28] sm:$0xff]  }
 0x1ac   : > { %v2322_v4 = vpop.f32.mrf.mxu0  ;;  %2835 = vmatmul.mubr.bf16.gmra.mxu0 %v1428_v58  ;;  %v2611_v56 = vpop.f32.mrf.mxu1  ;;  %3124 = vmatmul.mubr.bf16.gmra.mxu1 %v1333_v61  ;;  %v1189_v58 = vld [vmem:[#allocation2 + $0x172] sm:$0xff] }
 0x1ad   : > { %9877 = vst [vmem:[#allocation5_spill] sm:$0xff] %v8521_v31  ;;  %v2323_v17 = vadd.f32 %v8529_v2, %v2322_v4  ;;  %2842 = vmatprep.mubr.bf16.mxu0 %v1237_v27  ;;  %3131 = vmatprep.mubr.bf16.mxu1 %v1430_v26  ;;  %v1334_v27 = vpack.c.bf16 %v1284_v9, %v1283_v16  ;;  %v1190_v16 = vld [vmem:[#allocation2 + $0x182] sm:$0xff]  ;;  %v1191_v9 = vld [vmem:[#allocation2 + $0x18a] sm:$0xff] }
 0x1ae   : > { %v2324_v54 = vpop.f32.mrf.mxu0  ;;  %v2613_v24 = vpop.f32.mrf.mxu1  ;;  %v1238_v21 = vpack.c.bf16 %v1189_v58, %v1188_v25  ;;  %v1431_v4 = vpack.c.bf16 %v1382_v41, %v1381_v11  ;;  %v1383_v11 = vld [vmem:[#allocation2 + $0x199] sm:$0xff]  ;;  %v1384_v41 = vld [vmem:[#allocation2 + $0x1a1] sm:$0xff]  ;;  %5153 = vmatpush1.bf16.msra.mxu1 %v7311_v1 }
 0x1af   : > { %v8535_v39 = vadd.f32 %v2611_v56, %v2323_v17  ;;  %v1290_v31 = vld [vmem:[#allocation2 + $0x1e8] sm:$0xff] }
 0x1b0   : > { %v2325_v63 = vpop.f32.mrf.mxu0  ;;  %v2614_v61 = vpop.f32.mrf.mxu1 }
 0x1b1   : > { %9878 = vst [vmem:[#allocation6_spill] sm:$0xff] %v8535_v39  ;;  %v2326_v33 = vadd.f32 %v8529_v2, %v2325_v63  ;;  %v1286_v63 = vld [vmem:[#allocation2 + $0x188] sm:$0xff] }
 0x1b2   : > { %v2327_v44 = vpop.f32.mrf.mxu0  ;;  %v2616_v17 = vpop.f32.mrf.mxu1 }
 0x1b3   : > { %v8540_v50 = vadd.f32 %v2614_v61, %v2326_v33  ;;  %v1335_v44 = vpack.c.bf16 %v1286_v63, %v1285_v22  ;;  %v1239_v17 = vpack.c.bf16 %v1191_v9, %v1190_v16  ;;  %v1287_v22 = vld [vmem:[#allocation2 + $0x198] sm:$0xff]  ;;  %v1192_v63 = vld [vmem:[#allocation2 + $0x1ca] sm:$0xff] }
 0x1b4   : > { %v2330_v56 = vpop.f32.mrf.mxu0  ;;  %2843 = vmatmul.mubr.bf16.gmra.mxu0 %v1429_v57  ;;  %v2619_v24 = vpop.f32.mrf.mxu1  ;;  %3132 = vmatmul.mubr.bf16.gmra.mxu1 %v1334_v27  ;;  %v1432_v27 = vpack.c.bf16 %v1384_v41, %v1383_v11  ;;  %v1193_v16 = vld [vmem:[#allocation2 + $0x1d2] sm:$0xff]  ;;  %v1385_v41 = vld [vmem:[#allocation2 + $0x1e1] sm:$0xff] }
 0x1b5   : > { %9879 = vst [vmem:[#allocation7_spill] sm:$0xff] %v8540_v50  ;;  %v2331_v54 = vadd.f32 %v8529_v2, %v2330_v56  ;;  %2850 = vmatprep.mubr.bf16.mxu0 %v1238_v21  ;;  %3139 = vmatprep.mubr.bf16.mxu1 %v1431_v4 }
 0x1b6   : > { %v2332_v39 = vpop.f32.mrf.mxu0  ;;  %v2621_v58 = vpop.f32.mrf.mxu1 }
 0x1b7   : > { %v8543_v25 = vadd.f32 %v2619_v24, %v2331_v54 }
 0x1b8   : > { %v2333_v33 = vpop.f32.mrf.mxu0  ;;  %v2622_v57 = vpop.f32.mrf.mxu1 }
 0x1b9   : > { %9880 = vst [vmem:[#allocation8_spill] sm:$0xff] %v8543_v25  ;;  %v2334_v61 = vadd.f32 %v8529_v2, %v2333_v33  ;;  %v1289_v25 = vld [vmem:[#allocation2 + $0x1e0] sm:$0xff] }
 0x1ba   : > { %v2335_v56 = vpop.f32.mrf.mxu0  ;;  %v2624_v39 = vpop.f32.mrf.mxu1 }
 0x1bb   : > { %v8546_v21 = vadd.f32 %v2622_v57, %v2334_v61  ;;  %v1386_v61 = vld [vmem:[#allocation2 + $0x1e9] sm:$0xff]  ;;  %v9883_v57 = vmov 0  }
 0x1bc   : > { %v2338_v54 = vpop.f32.mrf.mxu0  ;;  %2851 = vmatmul.mubr.bf16.gmra.mxu0 %v1430_v26  ;;  %v2627_v58 = vpop.f32.mrf.mxu1  ;;  %3140 = vmatmul.mubr.bf16.gmra.mxu1 %v1335_v44 }
 0x1bd   : > { %9881 = vst [vmem:[#allocation9_spill] sm:$0xff] %v8546_v21  ;;  %v2339_v24 = vadd.f32 %v8529_v2, %v2338_v54  ;;  %2858 = vmatprep.mubr.bf16.mxu0 %v1239_v17  ;;  %3147 = vmatprep.mubr.bf16.mxu1 %v1432_v27  ;;  %v8556_v54 = vld [vmem:[#allocation2 + $0x8] sm:$0xff]  ;;  %v1240_v17 = vpack.c.bf16 %v1193_v16, %v1192_v63 }
 0x1be   : > { %v2340_v33 = vpop.f32.mrf.mxu0  ;;  %v2629_v11 = vpop.f32.mrf.mxu1  ;;  %5154 = vmatprep.subr.bf16.mxu1 %v9883_v57  ;;  %v1336_v44 = vpack.c.bf16 %v8556_v54, %v1287_v22  ;;  %v1194_v22 = vld [vmem:[#allocation2 + $0x1e2] sm:$0xff]  ;;  %v1195_v63 = vld [vmem:[#allocation2 + $0x1ea] sm:$0xff] }
 0x1bf   : > { %v8552_v9 = vadd.f32 %v2627_v58, %v2339_v24  ;;  %v1433_v33 = vpack.c.bf16 %v1386_v61, %v1385_v41  ;;  %v1387_v61 = vld [vmem:[#allocation2 + $0x1f9] sm:$0xff] }
 0x1c0   : > { %v2341_v56 = vpop.f32.mrf.mxu0  ;;  %v2630_v39 = vpop.f32.mrf.mxu1 }
 0x1c1   : > { %9882 = vst [vmem:[#allocation10_spill] sm:$0xff] %v8552_v9  ;;  %v2342_v26 = vadd.f32 %v8529_v2, %v2341_v56  ;;  %v1096_v9 = vld [vmem:[#allocation2 + $0x1c9] sm:$0xff]  ;;  %v1097_v56 = vld [vmem:[#allocation2 + $0x1d1] sm:$0xff] }
 0x1c2   : > { %v2343_v27 = vpop.f32.mrf.mxu0  ;;  %v2632_v1 = vpop.f32.mrf.mxu1 }
 0x1c3   : > { %v8559_v21 = vadd.f32 %v2630_v39, %v2342_v26  ;;  %v1388_v26 = vld [vmem:[#allocation2 + $0x201] sm:$0xff] }
 0x1c4   : > { %v2346_v24 = vpop.f32.mrf.mxu0  ;;  %2859 = vmatmul.mubr.bf16.gmra.mxu0 %v1431_v4  ;;  %v2635_v11 = vpop.f32.mrf.mxu1  ;;  %3148 = vmatmul.mubr.bf16.gmra.mxu1 %v1336_v44  ;;  %v1144_v4 = vpack.c.bf16 %v1097_v56, %v1096_v9  ;;  %v1337_v44 = vpack.c.bf16 %v1290_v31, %v1289_v25  ;;  %v1291_v9 = vld [vmem:[#allocation2 + $0x1f8] sm:$0xff]  ;;  %v1292_v31 = vld [vmem:[#allocation2 + $0x200] sm:$0xff] }
 0x1c5   : > { %9884 = vst [vmem:[#allocation11_spill] sm:$0xff] %v8559_v21  ;;  %v2347_v58 = vadd.f32 %v8529_v2, %v2346_v24  ;;  %2866 = vmatprep.mubr.bf16.mxu0 %v1240_v17  ;;  %3155 = vmatprep.mubr.bf16.mxu1 %v1433_v33  ;;  %v1241_v17 = vpack.c.bf16 %v1195_v63, %v1194_v22  ;;  %v1196_v25 = vld [vmem:[#allocation2 + $0x1fa] sm:$0xff]  ;;  %v1197_v22 = vld [vmem:[#allocation2 + $0x202] sm:$0xff] }
 0x1c6   : > { %v2348_v50 = vpop.f32.mrf.mxu0  ;;  %v2637_v41 = vpop.f32.mrf.mxu1  ;;  %v1434_v21 = vpack.c.bf16 %v1388_v26, %v1387_v61  ;;  %v1389_v26 = vld [vmem:[#allocation2 + $0x211] sm:$0xff] }
 0x1c7   : > { %v8562_v16 = vadd.f32 %v2635_v11, %v2347_v58  ;;  %v7312_v58 = vld [vmem:[%s9868_s6 + $0x20] sm:$0xff]  }
 0x1c8   : > { %v2349_v39 = vpop.f32.mrf.mxu0  ;;  %v2638_v1 = vpop.f32.mrf.mxu1  ;;  %5155 = vmatpush1.bf16.msra.mxu1 %v7312_v58 }
 0x1c9   : > { %9885 = vst [vmem:[#allocation12_spill] sm:$0xff] %v8562_v16  ;;  %v2350_v27 = vadd.f32 %v8529_v2, %v2349_v39  ;;  %v1390_v39 = vld [vmem:[#allocation2 + $0x219] sm:$0xff]  ;;  %5156 = vmatprep.subr.bf16.mxu1 %v9883_v57 }
 0x1ca   : > { %v2351_v24 = vpop.f32.mrf.mxu0  ;;  %v2640_v50 = vpop.f32.mrf.mxu1 }
 0x1cb   : > { %v8565_v20 = vadd.f32 %v2638_v1, %v2350_v27  ;;  %v1435_v50 = vpack.c.bf16 %v1390_v39, %v1389_v26 }
 0x1cc   : > { %v2354_v11 = vpop.f32.mrf.mxu0  ;;  %2867 = vmatmul.mubr.bf16.gmra.mxu0 %v1144_v4  ;;  %v2643_v16 = vpop.f32.mrf.mxu1  ;;  %3156 = vmatmul.mubr.bf16.gmra.mxu1 %v1337_v44  ;;  %v1338_v44 = vpack.c.bf16 %v1292_v31, %v1291_v9 }
 0x1cd   : > { %9886 = vst [vmem:[#allocation13_spill] sm:$0xff] %v8565_v20  ;;  %v2355_v41 = vadd.f32 %v8529_v2, %v2354_v11  ;;  %2874 = vmatprep.mubr.bf16.mxu0 %v1241_v17  ;;  %3163 = vmatprep.mubr.bf16.mxu1 %v1434_v21  ;;  %v1242_v17 = vpack.c.bf16 %v1197_v22, %v1196_v25  ;;  %v1391_v25 = vld [vmem:[#allocation2 + $0x229] sm:$0xff]  ;;  %v1392_v22 = vld [vmem:[#allocation2 + $0x231] sm:$0xff] }
 0x1ce   : > { %v2356_v56 = vpop.f32.mrf.mxu0  ;;  %v2645_v61 = vpop.f32.mrf.mxu1 }
 0x1cf   : > { %v8571_v63 = vadd.f32 %v2643_v16, %v2355_v41  ;;  %v1293_v41 = vld [vmem:[#allocation2 + $0x210] sm:$0xff] }
 0x1d0   : > { %v2357_v4 = vpop.f32.mrf.mxu0  ;;  %v2646_v1 = vpop.f32.mrf.mxu1 }
 0x1d1   : > { %9887 = vst [vmem:[#allocation14_spill] sm:$0xff] %v8571_v63  ;;  %v2358_v27 = vadd.f32 %v8529_v2, %v2357_v4  ;;  %v1294_v63 = vld [vmem:[#allocation2 + $0x218] sm:$0xff] }
 0x1d2   : > { %v2359_v24 = vpop.f32.mrf.mxu0  ;;  %v2648_v56 = vpop.f32.mrf.mxu1  ;;  %v1198_v4 = vld [vmem:[#allocation2 + $0x212] sm:$0xff] }
 0x1d3   : > { %v8575_v11 = vadd.f32 %v2646_v1, %v2358_v27  ;;  %v1339_v27 = vpack.c.bf16 %v1294_v63, %v1293_v41  ;;  %v7313_v56 = vld [vmem:[%s9868_s6 + $0x18] sm:$0xff]   ;;  %v1200_v63 = vld [vmem:[#allocation2 + $0x22a] sm:$0xff] }
 0x1d4   : > { %v2362_v20 = vpop.f32.mrf.mxu0  ;;  %2875 = vmatmul.mubr.bf16.gmra.mxu0 %v1433_v33  ;;  %v2651_v58 = vpop.f32.mrf.mxu1  ;;  %3164 = vmatmul.mubr.bf16.gmra.mxu1 %v1338_v44  ;;  %v1436_v44 = vpack.c.bf16 %v1392_v22, %v1391_v25  ;;  %v1201_v41 = vld [vmem:[#allocation2 + $0x232] sm:$0xff]  ;;  %v1393_v22 = vld [vmem:[#allocation2 + $0x241] sm:$0xff] }
 0x1d5   : > { %9888 = vst [vmem:[#allocation15_spill] sm:$0xff] %v8575_v11  ;;  %v2363_v16 = vadd.f32 %v8529_v2, %v2362_v20  ;;  %2882 = vmatprep.mubr.bf16.mxu0 %v1242_v17  ;;  %3171 = vmatprep.mubr.bf16.mxu1 %v1435_v50  ;;  %v1243_v20 = vpack.c.bf16 %v1199_v49, %v1198_v4  ;;  %v1296_v49 = vld [vmem:[#allocation2 + $0x230] sm:$0xff] }
 0x1d6   : > { %v2364_v61 = vpop.f32.mrf.mxu0  ;;  %v2653_v31 = vpop.f32.mrf.mxu1  ;;  %5157 = vmatpush1.bf16.msra.mxu1 %v7313_v56  ;;  %v1203_v11 = vld [vmem:[#allocation2 + $0x24a] sm:$0xff] }
 0x1d7   : > { %v8578_v9 = vadd.f32 %v2651_v58, %v2363_v16  ;;  %v1295_v31 = vld [vmem:[#allocation2 + $0x228] sm:$0xff]  ;;  %5158 = vmatprep.subr.bf16.mxu1 %v9883_v57 }
 0x1d8   : > { %v2365_v26 = vpop.f32.mrf.mxu0  ;;  %v2654_v33 = vpop.f32.mrf.mxu1 }
 0x1d9   : > { %9889 = vst [vmem:[#allocation16_spill] sm:$0xff] %v8578_v9  ;;  %v2366_v39 = vadd.f32 %v8529_v2, %v2365_v26 }
 0x1da   : > { %v2367_v1 = vpop.f32.mrf.mxu0  ;;  %v2656_v24 = vpop.f32.mrf.mxu1 }
 0x1db   : > { %v8581_v17 = vadd.f32 %v2654_v33, %v2366_v39  ;;  %v1394_v39 = vld [vmem:[#allocation2 + $0x249] sm:$0xff] }
 0x1dc   : > { %v2370_v16 = vpop.f32.mrf.mxu0  ;;  %2883 = vmatmul.mubr.bf16.gmra.mxu0 %v1434_v21  ;;  %v2659_v61 = vpop.f32.mrf.mxu1  ;;  %3172 = vmatmul.mubr.bf16.gmra.mxu1 %v1339_v27  ;;  %v1340_v27 = vpack.c.bf16 %v1296_v49, %v1295_v31 }
 0x1dd   : > { %9890 = vst [vmem:[#allocation17_spill] sm:$0xff] %v8581_v17  ;;  %v2371_v58 = vadd.f32 %v8529_v2, %v2370_v16  ;;  %2890 = vmatprep.mubr.bf16.mxu0 %v1243_v20  ;;  %3179 = vmatprep.mubr.bf16.mxu1 %v1436_v44  ;;  %v1244_v20 = vpack.c.bf16 %v1201_v41, %v1200_v63  ;;  %v1395_v63 = vld [vmem:[#allocation2 + $0x259] sm:$0xff]  ;;  %v1396_v41 = vld [vmem:[#allocation2 + $0x261] sm:$0xff] }
 0x1de   : > { %v2372_v26 = vpop.f32.mrf.mxu0  ;;  %v2661_v25 = vpop.f32.mrf.mxu1  ;;  %v1437_v16 = vpack.c.bf16 %v1394_v39, %v1393_v22 }
 0x1df   : > { %v8587_v4 = vadd.f32 %v2659_v61, %v2371_v58  ;;  %v1297_v61 = vld [vmem:[#allocation2 + $0x240] sm:$0xff] }
 0x1e0   : > { %v2373_v21 = vpop.f32.mrf.mxu0  ;;  %v2662_v1 = vpop.f32.mrf.mxu1 }
 0x1e1   : > { %9891 = vst [vmem:[#allocation18_spill] sm:$0xff] %v8587_v4  ;;  %v2374_v33 = vadd.f32 %v8529_v2, %v2373_v21  ;;  %v1298_v4 = vld [vmem:[#allocation2 + $0x248] sm:$0xff] }
 0x1e2   : > { %v2375_v24 = vpop.f32.mrf.mxu0  ;;  %v2664_v17 = vpop.f32.mrf.mxu1  ;;  %v1202_v21 = vld [vmem:[#allocation2 + $0x242] sm:$0xff]  ;;  %v1341_v39 = vpack.c.bf16 %v1298_v4, %v1297_v61  ;;  %v1204_v4 = vld [vmem:[#allocation2 + $0x25a] sm:$0xff] }
 0x1e3   : > { %v8591_v26 = vadd.f32 %v2662_v1, %v2374_v33  ;;  %v1438_v1 = vpack.c.bf16 %v1396_v41, %v1395_v63  ;;  %v7314_v24 = vld [vmem:[%s9868_s6 + $0x10] sm:$0xff]   ;;  %v1205_v61 = vld [vmem:[#allocation2 + $0x262] sm:$0xff] }
 0x1e4   : > { %v2378_v9 = vpop.f32.mrf.mxu0  ;;  %2891 = vmatmul.mubr.bf16.gmra.mxu0 %v1435_v50  ;;  %v2667_v58 = vpop.f32.mrf.mxu1  ;;  %3180 = vmatmul.mubr.bf16.gmra.mxu1 %v1340_v27  ;;  %v1397_v41 = vld [vmem:[#allocation2 + $0x271] sm:$0xff] }
 0x1e5   : > { %9892 = vst [vmem:[#allocation19_spill] sm:$0xff] %v8591_v26  ;;  %v2379_v56 = vadd.f32 %v8529_v2, %v2378_v9  ;;  %2898 = vmatprep.mubr.bf16.mxu0 %v1244_v20  ;;  %3187 = vmatprep.mubr.bf16.mxu1 %v1437_v16  ;;  %v1245_v9 = vpack.c.bf16 %v1203_v11, %v1202_v21  ;;  %v1300_v11 = vld [vmem:[#allocation2 + $0x260] sm:$0xff] }
 0x1e6   : > { %v2380_v25 = vpop.f32.mrf.mxu0  ;;  %v2669_v49 = vpop.f32.mrf.mxu1  ;;  %5159 = vmatpush1.bf16.msra.mxu1 %v7314_v24  ;;  %v1207_v26 = vld [vmem:[#allocation2 + $0x27a] sm:$0xff] }
 0x1e7   : > { %v8594_v31 = vadd.f32 %v2667_v58, %v2379_v56  ;;  %v1299_v49 = vld [vmem:[#allocation2 + $0x258] sm:$0xff]  ;;  %5160 = vmatprep.subr.bf16.mxu1 %v9883_v57 }
 0x1e8   : > { %v2381_v22 = vpop.f32.mrf.mxu0  ;;  %v2670_v50 = vpop.f32.mrf.mxu1 }
 0x1e9   : > { %9893 = vst [vmem:[#allocation20_spill] sm:$0xff] %v8594_v31  ;;  %v2382_v17 = vadd.f32 %v8529_v2, %v2381_v22 }
 0x1ea   : > { %v2383_v33 = vpop.f32.mrf.mxu0  ;;  %v2672_v20 = vpop.f32.mrf.mxu1 }
 0x1eb   : > { %v8597_v27 = vadd.f32 %v2670_v50, %v2382_v17  ;;  %v1398_v17 = vld [vmem:[#allocation2 + $0x279] sm:$0xff] }
 0x1ec   : > { %v2386_v56 = vpop.f32.mrf.mxu0  ;;  %2899 = vmatmul.mubr.bf16.gmra.mxu0 %v1436_v44  ;;  %v2675_v25 = vpop.f32.mrf.mxu1  ;;  %3188 = vmatmul.mubr.bf16.gmra.mxu1 %v1341_v39  ;;  %v1342_v39 = vpack.c.bf16 %v1300_v11, %v1299_v49 }
 0x1ed   : > { %9894 = vst [vmem:[#allocation21_spill] sm:$0xff] %v8597_v27  ;;  %v2387_v58 = vadd.f32 %v8529_v2, %v2386_v56  ;;  %2906 = vmatprep.mubr.bf16.mxu0 %v1245_v9  ;;  %3195 = vmatprep.mubr.bf16.mxu1 %v1438_v1  ;;  %v1246_v9 = vpack.c.bf16 %v1205_v61, %v1204_v4  ;;  %v1399_v4 = vld [vmem:[#allocation2 + $0x289] sm:$0xff]  ;;  %v1400_v61 = vld [vmem:[#allocation2 + $0x291] sm:$0xff] }
 0x1ee   : > { %v2388_v22 = vpop.f32.mrf.mxu0  ;;  %v2677_v63 = vpop.f32.mrf.mxu1  ;;  %v1439_v56 = vpack.c.bf16 %v1398_v17, %v1397_v41 }
 0x1ef   : > { %v8603_v21 = vadd.f32 %v2675_v25, %v2387_v58  ;;  %v1301_v25 = vld [vmem:[#allocation2 + $0x270] sm:$0xff] }
 0x1f0   : > { %v2389_v44 = vpop.f32.mrf.mxu0  ;;  %v2678_v33 = vpop.f32.mrf.mxu1 }
 0x1f1   : > { %9895 = vst [vmem:[#allocation22_spill] sm:$0xff] %v8603_v21  ;;  %v2390_v50 = vadd.f32 %v8529_v2, %v2389_v44  ;;  %v1302_v21 = vld [vmem:[#allocation2 + $0x278] sm:$0xff] }
 0x1f2   : > { %v2391_v20 = vpop.f32.mrf.mxu0  ;;  %v2680_v27 = vpop.f32.mrf.mxu1  ;;  %v1206_v44 = vld [vmem:[#allocation2 + $0x272] sm:$0xff]  ;;  %v1343_v17 = vpack.c.bf16 %v1302_v21, %v1301_v25  ;;  %v1208_v21 = vld [vmem:[#allocation2 + $0x28a] sm:$0xff] }
 0x1f3   : > { %v8607_v22 = vadd.f32 %v2678_v33, %v2390_v50  ;;  %v1440_v33 = vpack.c.bf16 %v1400_v61, %v1399_v4  ;;  %v7315_v20 = vld [vmem:[%s9868_s6 + $0x8] sm:$0xff]   ;;  %v1209_v25 = vld [vmem:[#allocation2 + $0x292] sm:$0xff] }
 0x1f4   : > { %v2394_v31 = vpop.f32.mrf.mxu0  ;;  %2907 = vmatmul.mubr.bf16.gmra.mxu0 %v1437_v16  ;;  %v2683_v58 = vpop.f32.mrf.mxu1  ;;  %3196 = vmatmul.mubr.bf16.gmra.mxu1 %v1342_v39  ;;  %v1401_v61 = vld [vmem:[#allocation2 + $0x2a1] sm:$0xff] }
 0x1f5   : > { %v2395_v24 = vadd.f32 %v8529_v2, %v2394_v31  ;;  %2914 = vmatprep.mubr.bf16.mxu0 %v1246_v9  ;;  %3203 = vmatprep.mubr.bf16.mxu1 %v1439_v56  ;;  %v1247_v31 = vpack.c.bf16 %v1207_v26, %v1206_v44  ;;  %v1304_v26 = vld [vmem:[#allocation2 + $0x290] sm:$0xff] }
 0x1f6   : > { %v2396_v63 = vpop.f32.mrf.mxu0  ;;  %v2685_v11 = vpop.f32.mrf.mxu1  ;;  %5161 = vmatpush1.bf16.msra.mxu1 %v7315_v20 }
 0x1f7   : > { %v8610_v49 = vadd.f32 %v2683_v58, %v2395_v24  ;;  %v1303_v11 = vld [vmem:[#allocation2 + $0x288] sm:$0xff]  ;;  %5162 = vmatprep.subr.bf16.mxu1 %v9883_v57 }
 0x1f8   : > { %v2397_v41 = vpop.f32.mrf.mxu0  ;;  %v2686_v16 = vpop.f32.mrf.mxu1 }
 0x1f9   : > { %v2398_v27 = vadd.f32 %v8529_v2, %v2397_v41 }
 0x1fa   : > { %v2399_v50 = vpop.f32.mrf.mxu0  ;;  %v2688_v9 = vpop.f32.mrf.mxu1 }
 0x1fb   : > { %v8613_v39 = vadd.f32 %v2686_v16, %v2398_v27  ;;  %v1402_v27 = vld [vmem:[#allocation2 + $0x2a9] sm:$0xff] }
 0x1fc   : > { %v2402_v24 = vpop.f32.mrf.mxu0  ;;  %2915 = vmatmul.mubr.bf16.gmra.mxu0 %v1438_v1  ;;  %v2691_v63 = vpop.f32.mrf.mxu1  ;;  %3204 = vmatmul.mubr.bf16.gmra.mxu1 %v1343_v17  ;;  %v1344_v17 = vpack.c.bf16 %v1304_v26, %v1303_v11  ;;  %v1210_v11 = vld [vmem:[#allocation2 + $0x2a2] sm:$0xff]  ;;  %v1211_v26 = vld [vmem:[#allocation2 + $0x2aa] sm:$0xff] }
 0x1fd   : > { %9896 = vst [vmem:[#allocation23_spill] sm:$0xff] %v8613_v39  ;;  %v2403_v58 = vadd.f32 %v8529_v2, %v2402_v24  ;;  %2922 = vmatprep.mubr.bf16.mxu0 %v1247_v31  ;;  %3211 = vmatprep.mubr.bf16.mxu1 %v1440_v33  ;;  %v8623_v31 = vpack.c.bf16 %v1209_v25, %v1208_v21 }
 0x1fe   : > { %v2404_v41 = vpop.f32.mrf.mxu0  ;;  %v2693_v4 = vpop.f32.mrf.mxu1  ;;  %v1441_v24 = vpack.c.bf16 %v1402_v27, %v1401_v61  ;;  %v1403_v61 = vld [vmem:[#allocation2 + $0x2b9] sm:$0xff]  ;;  %v1404_v27 = vld [vmem:[#allocation2 + $0x2c1] sm:$0xff] }
 0x1ff   : > { %v8619_v44 = vadd.f32 %v2691_v63, %v2403_v58  ;;  %v1305_v4 = vld [vmem:[#allocation2 + $0x2a0] sm:$0xff] }
 0x200   : > { %v2405_v1 = vpop.f32.mrf.mxu0  ;;  %v2694_v50 = vpop.f32.mrf.mxu1 }
 0x201   : > { %9897 = vst [vmem:[#allocation24_spill] sm:$0xff] %v8619_v44  ;;  %v2406_v16 = vadd.f32 %v8529_v2, %v2405_v1  ;;  %v1306_v1 = vld [vmem:[#allocation2 + $0x2a8] sm:$0xff] }
 0x202   : > { %v2407_v9 = vpop.f32.mrf.mxu0  ;;  %v2696_v39 = vpop.f32.mrf.mxu1 }
 0x203   : > { %v8625_v41 = vadd.f32 %v2694_v50, %v2406_v16  ;;  %v1345_v50 = vpack.c.bf16 %v1306_v1, %v1305_v4  ;;  %v8632_v9 = vpack.c.bf16 %v1211_v26, %v1210_v11  ;;  %v1308_v1 = vld [vmem:[#allocation2 + $0x2c0] sm:$0xff] }
 0x204   : > { %v2410_v20 = vpop.f32.mrf.mxu0  ;;  %2923 = vmatmul.mubr.bf16.gmra.mxu0 %v1439_v56  ;;  %v2699_v63 = vpop.f32.mrf.mxu1  ;;  %3212 = vmatmul.mubr.bf16.gmra.mxu1 %v1344_v17  ;;  %v1212_v11 = vld [vmem:[#allocation2 + $0x2ba] sm:$0xff]  ;;  %v1213_v26 = vld [vmem:[#allocation2 + $0x2c2] sm:$0xff] }
 0x205   : > { %9898 = vst [vmem:[#allocation25_spill] sm:$0xff] %v8625_v41  ;;  %v2411_v58 = vadd.f32 %v8529_v2, %v2410_v20  ;;  %2930 = vmatprep.mubr.bf16.mxu0 %v8623_v31  ;;  %3219 = vmatprep.mubr.bf16.mxu1 %v1441_v24  ;;  %v1442_v20 = vpack.c.bf16 %v1404_v27, %v1403_v61 }
 0x206   : > { %v2412_v44 = vpop.f32.mrf.mxu0  ;;  %v2701_v25 = vpop.f32.mrf.mxu1 }
 0x207   : > { %v8629_v21 = vadd.f32 %v2699_v63, %v2411_v58  ;;  %v7316_v58 = vld [vmem:[%s9868_s6] sm:$0xff]  }
 0x208   : > { %v2413_v39 = vpop.f32.mrf.mxu0  ;;  %v2702_v16 = vpop.f32.mrf.mxu1  ;;  %5163 = vmatpush1.bf16.msra.mxu1 %v7316_v58 }
 0x209   : > { %9899 = vst [vmem:[#allocation26_spill] sm:$0xff] %v8629_v21  ;;  %v2414_v56 = vadd.f32 %v8529_v2, %v2413_v39  ;;  %v1307_v2 = vld [vmem:[#allocation2 + $0x2b8] sm:$0xff]  ;;  %5164 = vmatprep.subr.bf16.mxu1 %v9883_v57 }
 0x20a   : > { %v2415_v17 = vpop.f32.mrf.mxu0  ;;  %v2704_v44 = vpop.f32.mrf.mxu1  ;;  %v1405_v39 = vld [vmem:[#allocation2 + $0x2d1] sm:$0xff] }
 0x20b   : > { %v8634_v41 = vadd.f32 %v2702_v16, %v2414_v56  ;;  %v1406_v56 = vld [vmem:[#allocation2 + $0x2d9] sm:$0xff]  ;;  %v8645_v17 = vpack.c.bf16 %v1213_v26, %v1212_v11 }
 0x20c   : > { %v2740_v63 = vpop.f32.mrf.mxu0  ;;  %2931 = vmatmul.mubr.bf16.gmra.mxu0 %v1440_v33  ;;  %v3029_v21 = vpop.f32.mrf.mxu1  ;;  %3220 = vmatmul.mubr.bf16.gmra.mxu1 %v1345_v50  ;;  %v1346_v50 = vpack.c.bf16 %v1308_v1, %v1307_v2  ;;  %v1214_v2 = vld [vmem:[#allocation2 + $0x2d2] sm:$0xff]  ;;  %v1215_v1 = vld [vmem:[#allocation2 + $0x2da] sm:$0xff] }
 0x20d   : > { %9900 = vst [vmem:[#allocation27_spill] sm:$0xff] %v8634_v41  ;;  %v2741_v25 = vadd.f32 %v2740_v63, %v8355_v12  ;;  %2938 = vmatprep.mubr.bf16.mxu0 %v8632_v9  ;;  %3227 = vmatprep.mubr.bf16.mxu1 %v1442_v20  ;;  %v1443_v63 = vpack.c.bf16 %v1406_v56, %v1405_v39  ;;  %v1407_v39 = vld [vmem:[#allocation2 + $0x2e9] sm:$0xff]  ;;  %v1408_v56 = vld [vmem:[#allocation2 + $0x2f1] sm:$0xff] }
 0x20e   : > { %v2742_v4 = vpop.f32.mrf.mxu0  ;;  %v3031_v27 = vpop.f32.mrf.mxu1 }
 0x20f   : > { %v8641_v61 = vadd.f32 %v3029_v21, %v2741_v25  ;;  %v1309_v27 = vld [vmem:[#allocation2 + $0x2d0] sm:$0xff] }
 0x210   : > { %v2743_v33 = vpop.f32.mrf.mxu0  ;;  %v3032_v16 = vpop.f32.mrf.mxu1 }
 0x211   : > { %9901 = vst [vmem:[#allocation28_spill] sm:$0xff] %v8641_v61  ;;  %v2744_v12 = vadd.f32 %v2743_v33, %v8358_v10  ;;  %v1310_v10 = vld [vmem:[#allocation2 + $0x2d8] sm:$0xff] }
 0x212   : > { %v2745_v44 = vpop.f32.mrf.mxu0  ;;  %v3034_v41 = vpop.f32.mrf.mxu1 }
 0x213   : > { %v8647_v4 = vadd.f32 %v3032_v16, %v2744_v12  ;;  %v8654_v12 = vpack.c.bf16 %v1215_v1, %v1214_v2  ;;  %v1216_v2 = vld [vmem:[#allocation2 + $0x2ea] sm:$0xff]  ;;  %v1217_v1 = vld [vmem:[#allocation2 + $0x2f2] sm:$0xff] }
 0x214   : > { %v2748_v58 = vpop.f32.mrf.mxu0  ;;  %2939 = vmatmul.mubr.bf16.gmra.mxu0 %v1441_v24  ;;  %v3037_v25 = vpop.f32.mrf.mxu1  ;;  %3228 = vmatmul.mubr.bf16.gmra.mxu1 %v1346_v50  ;;  %v1444_v50 = vpack.c.bf16 %v1408_v56, %v1407_v39 }
 0x215   : > { %9902 = vst [vmem:[#allocation29_spill] sm:$0xff] %v8647_v4  ;;  %v2749_v21 = vadd.f32 %v2748_v58, %v8364_v60  ;;  %2946 = vmatprep.mubr.bf16.mxu0 %v8645_v17  ;;  %3235 = vmatprep.mubr.bf16.mxu1 %v1443_v63  ;;  %v1347_v60 = vpack.c.bf16 %v1310_v10, %v1309_v27  ;;  %v7317_v58 = vld [vmem:[%s9868_s6 + $0x78] sm:$0xff]   ;;  %v1312_v10 = vld [vmem:[#allocation2 + $0x2f0] sm:$0xff] }
 0x216   : > { %v2750_v61 = vpop.f32.mrf.mxu0  ;;  %v3039_v26 = vpop.f32.mrf.mxu1  ;;  %5165 = vmatpush2.bf16.msra.mxu1 %v7317_v58 }
 0x217   : > { %v8651_v11 = vadd.f32 %v3037_v25, %v2749_v21  ;;  %5166 = vmatprep.subr.bf16.mxu1 %v9883_v57 }
 0x218   : > { %v2751_v41 = vpop.f32.mrf.mxu0  ;;  %v3040_v33 = vpop.f32.mrf.mxu1 }
 0x219   : > { %v2752_v24 = vadd.f32 %v2751_v41, %v8367_v15  ;;  %v1311_v15 = vld [vmem:[#allocation2 + $0x2e8] sm:$0xff] }
 0x21a   : > { %v2753_v16 = vpop.f32.mrf.mxu0  ;;  %v3042_v61 = vpop.f32.mrf.mxu1  ;;  %v1409_v41 = vld [vmem:[#allocation2 + $0x301] sm:$0xff] }
 0x21b   : > { %v8656_v44 = vadd.f32 %v3040_v33, %v2752_v24  ;;  %v1410_v24 = vld [vmem:[#allocation2 + $0x309] sm:$0xff]  ;;  %v8667_v16 = vpack.c.bf16 %v1217_v1, %v1216_v2 }
 0x21c   : > { %v2756_v21 = vpop.f32.mrf.mxu0  ;;  %2947 = vmatmul.mubr.bf16.gmra.mxu0 %v1442_v20  ;;  %v3045_v26 = vpop.f32.mrf.mxu1  ;;  %3236 = vmatmul.mubr.bf16.gmra.mxu1 %v1347_v60  ;;  %v1348_v60 = vpack.c.bf16 %v1312_v10, %v1311_v15  ;;  %v1218_v15 = vld [vmem:[#allocation2 + $0x302] sm:$0xff]  ;;  %v1219_v10 = vld [vmem:[#allocation2 + $0x30a] sm:$0xff] }
 0x21d   : > { %v2757_v25 = vadd.f32 %v2756_v21, %v8373_v5  ;;  %2954 = vmatprep.mubr.bf16.mxu0 %v8654_v12  ;;  %3243 = vmatprep.mubr.bf16.mxu1 %v1444_v50  ;;  %v1445_v21 = vpack.c.bf16 %v1410_v24, %v1409_v41  ;;  %v1411_v41 = vld [vmem:[#allocation2 + $0x319] sm:$0xff]  ;;  %v1412_v24 = vld [vmem:[#allocation2 + $0x321] sm:$0xff] }
 0x21e   : > { %v2758_v27 = vpop.f32.mrf.mxu0  ;;  %v3047_v56 = vpop.f32.mrf.mxu1 }
 0x21f   : > { %v8663_v39 = vadd.f32 %v3045_v26, %v2757_v25  ;;  %v1313_v56 = vld [vmem:[#allocation2 + $0x300] sm:$0xff] }
 0x220   : > { %v2759_v20 = vpop.f32.mrf.mxu0  ;;  %v3048_v33 = vpop.f32.mrf.mxu1 }
 0x221   : > { %9903 = vst [vmem:[#allocation30_spill] sm:$0xff] %v8663_v39  ;;  %v2760_v5 = vadd.f32 %v2759_v20, %v8376_v13  ;;  %v1314_v13 = vld [vmem:[#allocation2 + $0x308] sm:$0xff] }
 0x222   : > { %v2761_v61 = vpop.f32.mrf.mxu0  ;;  %v3050_v4 = vpop.f32.mrf.mxu1 }
 0x223   : > { %v8669_v27 = vadd.f32 %v3048_v33, %v2760_v5  ;;  %v8676_v5 = vpack.c.bf16 %v1219_v10, %v1218_v15  ;;  %v1220_v15 = vld [vmem:[#allocation2 + $0x31a] sm:$0xff]  ;;  %v1221_v10 = vld [vmem:[#allocation2 + $0x322] sm:$0xff] }
 0x224   : > { %v2764_v58 = vpop.f32.mrf.mxu0  ;;  %2955 = vmatmul.mubr.bf16.gmra.mxu0 %v1443_v63  ;;  %v3053_v26 = vpop.f32.mrf.mxu1  ;;  %3244 = vmatmul.mubr.bf16.gmra.mxu1 %v1348_v60  ;;  %v1446_v60 = vpack.c.bf16 %v1412_v24, %v1411_v41 }
 0x225   : > { %9904 = vst [vmem:[#allocation31_spill] sm:$0xff] %v8669_v27  ;;  %v2765_v25 = vadd.f32 %v2764_v58, %v8382_v59  ;;  %2962 = vmatprep.mubr.bf16.mxu0 %v8667_v16  ;;  %3251 = vmatprep.mubr.bf16.mxu1 %v1445_v21  ;;  %v1349_v59 = vpack.c.bf16 %v1314_v13, %v1313_v56  ;;  %v7318_v58 = vld [vmem:[%s9868_s6 + $0x70] sm:$0xff]   ;;  %v1316_v13 = vld [vmem:[#allocation2 + $0x320] sm:$0xff] }
 0x226   : > { %v2766_v39 = vpop.f32.mrf.mxu0  ;;  %v3055_v1 = vpop.f32.mrf.mxu1  ;;  %5167 = vmatpush2.bf16.msra.mxu1 %v7318_v58 }
 0x227   : > { %v8673_v2 = vadd.f32 %v3053_v26, %v2765_v25  ;;  %5168 = vmatprep.subr.bf16.mxu1 %v9883_v57 }
 0x228   : > { %v2767_v4 = vpop.f32.mrf.mxu0  ;;  %v3056_v20 = vpop.f32.mrf.mxu1 }
 0x229   : > { %v2768_v63 = vadd.f32 %v2767_v4, %v8385_v53  ;;  %v1315_v53 = vld [vmem:[#allocation2 + $0x318] sm:$0xff] }
 0x22a   : > { %v2769_v33 = vpop.f32.mrf.mxu0  ;;  %v3058_v39 = vpop.f32.mrf.mxu1  ;;  %v1413_v4 = vld [vmem:[#allocation2 + $0x331] sm:$0xff] }
 0x22b   : > { %v8678_v61 = vadd.f32 %v3056_v20, %v2768_v63  ;;  %v1414_v63 = vld [vmem:[#allocation2 + $0x339] sm:$0xff]  ;;  %v8689_v33 = vpack.c.bf16 %v1221_v10, %v1220_v15 }
 0x22c   : > { %v2772_v25 = vpop.f32.mrf.mxu0  ;;  %2963 = vmatmul.mubr.bf16.gmra.mxu0 %v1444_v50  ;;  %v3061_v1 = vpop.f32.mrf.mxu1  ;;  %3252 = vmatmul.mubr.bf16.gmra.mxu1 %v1349_v59  ;;  %v1350_v59 = vpack.c.bf16 %v1316_v13, %v1315_v53  ;;  %v1222_v53 = vld [vmem:[#allocation2 + $0x332] sm:$0xff]  ;;  %v1223_v13 = vld [vmem:[#allocation2 + $0x33a] sm:$0xff] }
 0x22d   : > { %v2773_v26 = vadd.f32 %v2772_v25, %v8391_v38  ;;  %2970 = vmatprep.mubr.bf16.mxu0 %v8676_v5  ;;  %3259 = vmatprep.mubr.bf16.mxu1 %v1446_v60  ;;  %v1447_v25 = vpack.c.bf16 %v1414_v63, %v1413_v4  ;;  %v1415_v4 = vld [vmem:[#allocation2 + $0x349] sm:$0xff]  ;;  %v1416_v63 = vld [vmem:[#allocation2 + $0x351] sm:$0xff] }
 0x22e   : > { %v2774_v56 = vpop.f32.mrf.mxu0  ;;  %v3063_v24 = vpop.f32.mrf.mxu1 }
 0x22f   : > { %v8685_v41 = vadd.f32 %v3061_v1, %v2773_v26  ;;  %v1317_v24 = vld [vmem:[#allocation2 + $0x330] sm:$0xff] }
 0x230   : > { %v2775_v50 = vpop.f32.mrf.mxu0  ;;  %v3064_v20 = vpop.f32.mrf.mxu1 }
 0x231   : > { %9905 = vst [vmem:[#allocation32_spill] sm:$0xff] %v8685_v41  ;;  %v2776_v38 = vadd.f32 %v2775_v50, %v8394_v62  ;;  %v1318_v62 = vld [vmem:[#allocation2 + $0x338] sm:$0xff] }
 0x232   : > { %v2777_v39 = vpop.f32.mrf.mxu0  ;;  %v3066_v27 = vpop.f32.mrf.mxu1 }
 0x233   : > { %v8691_v56 = vadd.f32 %v3064_v20, %v2776_v38  ;;  %v8698_v38 = vpack.c.bf16 %v1223_v13, %v1222_v53  ;;  %v1450_v53 = vld [vmem:[#allocation2 + $0x3a] sm:$0xff] }
 0x234   : > { %v2780_v58 = vpop.f32.mrf.mxu0  ;;  %2971 = vmatmul.mubr.bf16.gmra.mxu0 %v1445_v21  ;;  %v3069_v1 = vpop.f32.mrf.mxu1  ;;  %3260 = vmatmul.mubr.bf16.gmra.mxu1 %v1350_v59  ;;  %v1448_v59 = vpack.c.bf16 %v1416_v63, %v1415_v4 }
 0x235   : > { %v2781_v26 = vadd.f32 %v2780_v58, %v8400_v7  ;;  %2978 = vmatprep.mubr.bf16.mxu0 %v8689_v33  ;;  %3267 = vmatprep.mubr.bf16.mxu1 %v1447_v25  ;;  %v1351_v7 = vpack.c.bf16 %v1318_v62, %v1317_v24  ;;  %v7319_v58 = vld [vmem:[%s9868_s6 + $0x68] sm:$0xff]   ;;  %v1449_v62 = vld [vmem:[#allocation2 + $0x32] sm:$0xff] }
 0x236   : > { %v2782_v41 = vpop.f32.mrf.mxu0  ;;  %v3071_v10 = vpop.f32.mrf.mxu1  ;;  %v1319_v24 = vld [vmem:[#allocation2 + $0x348] sm:$0xff]  ;;  %5169 = vmatpush2.bf16.msra.mxu1 %v7319_v58 }
 0x237   : > { %v8695_v15 = vadd.f32 %v3069_v1, %v2781_v26  ;;  %5170 = vmatprep.subr.bf16.mxu1 %v9883_v57 }
 0x238   : > { %v2783_v27 = vpop.f32.mrf.mxu0  ;;  %v3072_v50 = vpop.f32.mrf.mxu1 }
 0x239   : > { %v2784_v21 = vadd.f32 %v2783_v27, %v8403_v35 }
 0x23a   : > { %v2785_v20 = vpop.f32.mrf.mxu0  ;;  %v3074_v41 = vpop.f32.mrf.mxu1 }
 0x23b   : > { %v8700_v39 = vadd.f32 %v3072_v50, %v2784_v21  ;;  %v1513_v21 = vpack.c.bf16 %v1450_v53, %v1449_v62 }
 0x23c   : > { %v2788_v26 = vpop.f32.mrf.mxu0  ;;  %2979 = vmatmul.mubr.bf16.gmra.mxu0 %v1446_v60  ;;  %v3077_v10 = vpop.f32.mrf.mxu1  ;;  %3268 = vmatmul.mubr.bf16.gmra.mxu1 %v1351_v7 }
 0x23d   : > { %v2789_v1 = vadd.f32 %v2788_v26, %v8409_v0  ;;  %2986 = vmatprep.mubr.bf16.mxu0 %v8698_v38  ;;  %3275 = vmatprep.mubr.bf16.mxu1 %v1448_v59  ;;  %v1352_v0 = vpack.c.bf16 %v8556_v54, %v1319_v24  ;;  %v1451_v26 = vld [vmem:[#allocation2 + $0x4a] sm:$0xff] }
 0x23e   : > { %v2790_v35 = vpop.f32.mrf.mxu0  ;;  %v3079_v4 = vpop.f32.mrf.mxu1 }
 0x23f   : > { %v8707_v13 = vadd.f32 %v3077_v10, %v2789_v1  ;;  %v1452_v1 = vld [vmem:[#allocation2 + $0x52] sm:$0xff]  ;;  %v1453_v35 = vld [vmem:[#allocation2 + $0x62] sm:$0xff] }
 0x240   : > { %v2791_v63 = vpop.f32.mrf.mxu0  ;;  %v3080_v27 = vpop.f32.mrf.mxu1  ;;  %v1514_v62 = vpack.c.bf16 %v1452_v1, %v1451_v26  ;;  %v1458_v26 = vld [vmem:[#allocation2 + $0x9a] sm:$0xff] }
 0x241   : > { %v2792_v60 = vadd.f32 %v2791_v63, %v8414_v23  ;;  %v1454_v23 = vld [vmem:[#allocation2 + $0x6a] sm:$0xff] }
 0x242   : > { %v2793_v50 = vpop.f32.mrf.mxu0  ;;  %v3082_v20 = vpop.f32.mrf.mxu1 }
 0x243   : > { %v8712_v7 = vadd.f32 %v3080_v27, %v2792_v60  ;;  %v1515_v60 = vpack.c.bf16 %v1454_v23, %v1453_v35 }
 0x244   : > { %v2796_v59 = vpop.f32.mrf.mxu0  ;;  %2987 = vmatmul.mubr.bf16.gmra.mxu0 %v1447_v25  ;;  %v3085_v58 = vpop.f32.mrf.mxu1  ;;  %3276 = vmatmul.mubr.bf16.gmra.mxu1 %v1352_v0  ;;  %v7320_v0 = vld [vmem:[%s9868_s6 + $0x60] sm:$0xff]  }
 0x245   : > { %v2797_v41 = vadd.f32 %v2796_v59, %v8418_v46  ;;  %7081 = vmatprep.mubr.bf16.mxu0 %v1513_v21  ;;  %v1455_v59 = vld [vmem:[#allocation2 + $0x7a] sm:$0xff]  ;;  %5171 = vmatpush2.bf16.msra.mxu1 %v7320_v0  ;;  %v1459_v0 = vld [vmem:[#allocation2 + $0xaa] sm:$0xff] }
 0x246   : > { %v2798_v10 = vpop.f32.mrf.mxu0  ;;  %v3087_v54 = vpop.f32.mrf.mxu1  ;;  %5172 = vmatprep.subr.bf16.mxu1 %v9883_v57 }
 0x247   : > { %v8715_v4 = vadd.f32 %v3085_v58, %v2797_v41  ;;  %v1456_v41 = vld [vmem:[#allocation2 + $0x82] sm:$0xff]  ;;  %v1457_v58 = vld [vmem:[#allocation2 + $0x92] sm:$0xff] }
 0x248   : > { %v2799_v24 = vpop.f32.mrf.mxu0  ;;  %v3088_v63 = vpop.f32.mrf.mxu1  ;;  %v1516_v23 = vpack.c.bf16 %v1456_v41, %v1455_v59 }
 0x249   : > { %v2800_v53 = vadd.f32 %v2799_v24, %v8423_v3 }
 0x24a   : > { %v2801_v25 = vpop.f32.mrf.mxu0  ;;  %v3090_v46 = vpop.f32.mrf.mxu1 }
 0x24b   : > { %v8718_v27 = vadd.f32 %v3088_v63, %v2800_v53 }
 0x24c   : > { %v2804_v21 = vpop.f32.mrf.mxu0  ;;  %7082 = vmatmul.mubr.bf16.vlgmr.msra.gmra.mxu0 %v1514_v62  ;;  %v3093_v20 = vpop.f32.mrf.mxu1  ;;  %v1517_v62 = vpack.c.bf16 %v1458_v26, %v1457_v58 }
 0x24d   : > { %v2805_v50 = vadd.f32 %v2804_v21, %v8434_v19  ;;  %7085 = vmatprep.mubr.bf16.mxu0 %v1515_v60  ;;  %v1460_v21 = vld [vmem:[#allocation2 + $0xb2] sm:$0xff] }
 0x24e   : > { %v2806_v3 = vpop.f32.mrf.mxu0  ;;  %v3095_v10 = vpop.f32.mrf.mxu1  ;;  %v1518_v58 = vpack.c.bf16 %v1460_v21, %v1459_v0  ;;  %v1466_v0 = vld [vmem:[#allocation2 + $0xfa] sm:$0xff] }
 0x24f   : > { %v8725_v1 = vadd.f32 %v3093_v20, %v2805_v50  ;;  %v1461_v20 = vld [vmem:[#allocation2 + $0xc2] sm:$0xff]  ;;  %v1462_v3 = vld [vmem:[#allocation2 + $0xca] sm:$0xff] }
 0x250   : > { %v2807_v35 = vpop.f32.mrf.mxu0  ;;  %v3096_v24 = vpop.f32.mrf.mxu1 }
 0x251   : > { %v2808_v54 = vadd.f32 %v2807_v35, %v8437_v34  ;;  %v1519_v35 = vpack.c.bf16 %v1462_v3, %v1461_v20 }
 0x252   : > { %v2809_v19 = vpop.f32.mrf.mxu0  ;;  %v3098_v63 = vpop.f32.mrf.mxu1 }
 0x253   : > { %v8728_v53 = vadd.f32 %v3096_v24, %v2808_v54  ;;  %v7321_v24 = vld [vmem:[%s9868_s6 + $0x58] sm:$0xff]  }
 0x254   : > { %v2812_v60 = vpop.f32.mrf.mxu0  ;;  %7086 = vmatmul.mubr.bf16.gmra.mxu0 %v1516_v23  ;;  %v3101_v46 = vpop.f32.mrf.mxu1  ;;  %5173 = vmatpush2.bf16.msra.mxu1 %v7321_v24 }
 0x255   : > { %v2813_v25 = vadd.f32 %v2812_v60, %v8444_v42  ;;  %7089 = vmatprep.mubr.bf16.mxu0 %v1517_v62  ;;  %v1463_v60 = vld [vmem:[#allocation2 + $0xda] sm:$0xff]  ;;  %5174 = vmatprep.subr.bf16.mxu1 %v9883_v57 }
 0x256   : > { %v2814_v50 = vpop.f32.mrf.mxu0  ;;  %v3103_v34 = vpop.f32.mrf.mxu1 }
 0x257   : > { %v8731_v59 = vadd.f32 %v3101_v46, %v2813_v25  ;;  %v1464_v25 = vld [vmem:[#allocation2 + $0xe2] sm:$0xff]  ;;  %v1465_v46 = vld [vmem:[#allocation2 + $0xf2] sm:$0xff] }
 0x258   : > { %v2815_v41 = vpop.f32.mrf.mxu0  ;;  %v3104_v10 = vpop.f32.mrf.mxu1  ;;  %v1520_v3 = vpack.c.bf16 %v1464_v25, %v1463_v60  ;;  %v1469_v60 = vld [vmem:[#allocation2 + $0x122] sm:$0xff]  ;;  %v1470_v25 = vld [vmem:[#allocation2 + $0x12a] sm:$0xff] }
 0x259   : > { %v2816_v26 = vadd.f32 %v2815_v41, %v8450_v6 }
 0x25a   : > { %v2817_v54 = vpop.f32.mrf.mxu0  ;;  %v3106_v42 = vpop.f32.mrf.mxu1 }
 0x25b   : > { %v8734_v23 = vadd.f32 %v3104_v10, %v2816_v26 }
 0x25c   : > { %v2820_v62 = vpop.f32.mrf.mxu0  ;;  %7090 = vmatmul.mubr.bf16.gmra.mxu0 %v1518_v58  ;;  %v3109_v63 = vpop.f32.mrf.mxu1  ;;  %v1521_v58 = vpack.c.bf16 %v1466_v0, %v1465_v46 }
 0x25d   : > { %v2821_v19 = vadd.f32 %v2820_v62, %v8454_v45  ;;  %7093 = vmatprep.mubr.bf16.mxu0 %v1519_v35  ;;  %v7322_v45 = vld [vmem:[%s9868_s6 + $0xb8] sm:$0xff]  }
 0x25e   : > { %v2822_v6 = vpop.f32.mrf.mxu0  ;;  %v3111_v50 = vpop.f32.mrf.mxu1  ;;  %5438 = vmatpush1.bf16.msra.mxu0 %v7322_v45  ;;  %v1468_v62 = vld [vmem:[#allocation2 + $0x112] sm:$0xff] }
 0x25f   : > { %v8741_v21 = vadd.f32 %v3109_v63, %v2821_v19  ;;  %5439 = vmatprep.subr.bf16.mxu0 %v9883_v57  ;;  %v7323_v19 = vld [vmem:[%s9868_s6 + $0xb0] sm:$0xff]  }
 0x260   : > { %v2823_v20 = vpop.f32.mrf.mxu0  ;;  %v3112_v41 = vpop.f32.mrf.mxu1 }
 0x261   : > { %v2824_v34 = vadd.f32 %v2823_v20, %v8457_v8  ;;  %v1467_v8 = vld [vmem:[#allocation2 + $0x10a] sm:$0xff] }
 0x262   : > { %v2825_v26 = vpop.f32.mrf.mxu0  ;;  %v3114_v35 = vpop.f32.mrf.mxu1  ;;  %5440 = vmatpush1.bf16.msra.mxu0 %v7323_v19  ;;  %v1522_v50 = vpack.c.bf16 %v1468_v62, %v1467_v8  ;;  %v7326_v8 = vld [vmem:[%s9868_s6 + $0xa0] sm:$0xff]   ;;  %v1473_v19 = vld [vmem:[#allocation2 + $0x152] sm:$0xff] }
 0x263   : > { %v8747_v10 = vadd.f32 %v3112_v41, %v2824_v34  ;;  %5441 = vmatprep.subr.bf16.mxu0 %v9883_v57  ;;  %v7325_v34 = vld [vmem:[%s9868_s6 + $0xa8] sm:$0xff]   ;;  %v7324_v26 = vld [vmem:[%s9868_s6 + $0x50] sm:$0xff]  }
 0x264   : > { %v2828_v54 = vpop.f32.mrf.mxu0  ;;  %7094 = vmatmul.mubr.bf16.gmra.mxu0 %v1520_v3  ;;  %v3117_v24 = vpop.f32.mrf.mxu1  ;;  %v1523_v3 = vpack.c.bf16 %v1470_v25, %v1469_v60  ;;  %5175 = vmatpush2.bf16.msra.mxu1 %v7324_v26 }
 0x265   : > { %v2829_v42 = vadd.f32 %v2828_v54, %v8460_v47  ;;  %7097 = vmatprep.mubr.bf16.mxu0 %v1521_v58  ;;  %5176 = vmatprep.subr.bf16.mxu1 %v9883_v57 }
 0x266   : > { %v2830_v63 = vpop.f32.mrf.mxu0  ;;  %v3119_v46 = vpop.f32.mrf.mxu1  ;;  %5442 = vmatpush1.bf16.msra.mxu0 %v7325_v34 }
 0x267   : > { %v8754_v6 = vadd.f32 %v3117_v24, %v2829_v42  ;;  %5443 = vmatprep.subr.bf16.mxu0 %v9883_v57  ;;  %v1471_v42 = vld [vmem:[#allocation2 + $0x13a] sm:$0xff]  ;;  %v1472_v24 = vld [vmem:[#allocation2 + $0x142] sm:$0xff] }
 0x268   : > { %v2831_v0 = vpop.f32.mrf.mxu0  ;;  %v3120_v20 = vpop.f32.mrf.mxu1  ;;  %v1474_v63 = vld [vmem:[#allocation2 + $0x15a] sm:$0xff] }
 0x269   : > { %v2832_v47 = vadd.f32 %v2831_v0, %v8463_v51 }
 0x26a   : > { %v2833_v41 = vpop.f32.mrf.mxu0  ;;  %v3122_v45 = vpop.f32.mrf.mxu1  ;;  %5444 = vmatpush1.bf16.msra.mxu0 %v7326_v8  ;;  %v1478_v8 = vld [vmem:[#allocation2 + $0x18a] sm:$0xff] }
 0x26b   : > { %v8761_v58 = vadd.f32 %v3120_v20, %v2832_v47  ;;  %5445 = vmatprep.subr.bf16.mxu0 %v9883_v57  ;;  %v1525_v47 = vpack.c.bf16 %v1474_v63, %v1473_v19  ;;  %v7327_v20 = vld [vmem:[%s9868_s6 + $0x98] sm:$0xff]  }
 0x26c   : > { %v2836_v35 = vpop.f32.mrf.mxu0  ;;  %7098 = vmatmul.mubr.bf16.gmra.mxu0 %v1522_v50  ;;  %v3125_v54 = vpop.f32.mrf.mxu1 }
 0x26d   : > { %v2837_v51 = vadd.f32 %v2836_v35, %v8469_v43  ;;  %7101 = vmatprep.mubr.bf16.mxu0 %v1523_v3  ;;  %v1524_v43 = vpack.c.bf16 %v1472_v24, %v1471_v42  ;;  %v1477_v24 = vld [vmem:[#allocation2 + $0x182] sm:$0xff] }
 0x26e   : > { %v2838_v62 = vpop.f32.mrf.mxu0  ;;  %v3127_v25 = vpop.f32.mrf.mxu1  ;;  %5446 = vmatpush1.bf16.msra.mxu0 %v7327_v20 }
 0x26f   : > { %v8772_v60 = vadd.f32 %v3125_v54, %v2837_v51  ;;  %5447 = vmatprep.subr.bf16.mxu0 %v9883_v57  ;;  %v1476_v51 = vld [vmem:[#allocation2 + $0x172] sm:$0xff] }
 0x270   : > { %v2839_v46 = vpop.f32.mrf.mxu0  ;;  %v3128_v50 = vpop.f32.mrf.mxu1  ;;  %v7328_v54 = vld [vmem:[%s9868_s6 + $0x90] sm:$0xff]  }
 0x271   : > { %v2840_v0 = vadd.f32 %v2839_v46, %v8472_v37  ;;  %v1475_v37 = vld [vmem:[#allocation2 + $0x16a] sm:$0xff] }
 0x272   : > { %v2841_v3 = vpop.f32.mrf.mxu0  ;;  %v3130_v41 = vpop.f32.mrf.mxu1  ;;  %5448 = vmatpush1.bf16.msra.mxu0 %v7328_v54  ;;  %v1526_v25 = vpack.c.bf16 %v1476_v51, %v1475_v37  ;;  %v7331_v37 = vld [vmem:[%s9868_s6 + $0x80] sm:$0xff]  }
 0x273   : > { %v8779_v34 = vadd.f32 %v3128_v50, %v2840_v0  ;;  %5449 = vmatprep.subr.bf16.mxu0 %v9883_v57  ;;  %v7330_v0 = vld [vmem:[%s9868_s6 + $0x88] sm:$0xff]  }
 0x274   : > { %v2844_v45 = vpop.f32.mrf.mxu0  ;;  %7102 = vmatmul.mubr.bf16.gmra.mxu0 %v1524_v43  ;;  %v3133_v35 = vpop.f32.mrf.mxu1  ;;  %v1527_v43 = vpack.c.bf16 %v1478_v8, %v1477_v24  ;;  %v7329_v3 = vld [vmem:[%s9868_s6 + $0x48] sm:$0xff]  }
 0x275   : > { %v2845_v26 = vadd.f32 %v2844_v45, %v8475_v28  ;;  %7105 = vmatprep.mubr.bf16.mxu0 %v1525_v47  ;;  %5177 = vmatpush2.bf16.msra.mxu1 %v7329_v3  ;;  %v1481_v54 = vld [vmem:[#allocation2 + $0x1e2] sm:$0xff] }
 0x276   : > { %v2846_v42 = vpop.f32.mrf.mxu0  ;;  %v3135_v19 = vpop.f32.mrf.mxu1  ;;  %5450 = vmatpush1.bf16.msra.mxu0 %v7330_v0  ;;  %5178 = vmatprep.subr.bf16.mxu1 %v9883_v57 }
 0x277   : > { %v8786_v62 = vadd.f32 %v3133_v35, %v2845_v26  ;;  %5451 = vmatprep.subr.bf16.mxu0 %v9883_v57  ;;  %v1479_v26 = vld [vmem:[#allocation2 + $0x19a] sm:$0xff]  ;;  %v1480_v35 = vld [vmem:[#allocation2 + $0x1a2] sm:$0xff]  ;;  %v1482_v42 = vld [vmem:[#allocation2 + $0x1ea] sm:$0xff] }
 0x278   : > { %v2847_v63 = vpop.f32.mrf.mxu0  ;;  %v3136_v46 = vpop.f32.mrf.mxu1 }
 0x279   : > { %v2848_v28 = vadd.f32 %v2847_v63, %v8478_v30 }
 0x27a   : > { %v2849_v50 = vpop.f32.mrf.mxu0  ;;  %v3138_v20 = vpop.f32.mrf.mxu1  ;;  %5452 = vmatpush1.bf16.msra.mxu0 %v7331_v37  ;;  %v1486_v37 = vld [vmem:[#allocation2 + $0x21a] sm:$0xff] }
 0x27b   : > { %v8793_v47 = vadd.f32 %v3136_v46, %v2848_v28  ;;  %5453 = vmatprep.subr.bf16.mxu0 %v9883_v57  ;;  %v1529_v28 = vpack.c.bf16 %v1482_v42, %v1481_v54  ;;  %v7332_v46 = vld [vmem:[%s9868_s6 + $0xf8] sm:$0xff]  }
 0x27c   : > { %v2852_v41 = vpop.f32.mrf.mxu0  ;;  %7106 = vmatmul.mubr.bf16.gmra.mxu0 %v1526_v25  ;;  %v3141_v45 = vpop.f32.mrf.mxu1 }
 0x27d   : > { %v2853_v30 = vadd.f32 %v2852_v41, %v8481_v52  ;;  %7109 = vmatprep.mubr.bf16.mxu0 %v1527_v43  ;;  %v1528_v52 = vpack.c.bf16 %v1480_v35, %v1479_v26  ;;  %v1485_v35 = vld [vmem:[#allocation2 + $0x212] sm:$0xff] }
 0x27e   : > { %v2854_v51 = vpop.f32.mrf.mxu0  ;;  %v3143_v8 = vpop.f32.mrf.mxu1  ;;  %5454 = vmatpush2.bf16.msra.mxu0 %v7332_v46 }
 0x27f   : > { %v8804_v24 = vadd.f32 %v3141_v45, %v2853_v30  ;;  %5455 = vmatprep.subr.bf16.mxu0 %v9883_v57  ;;  %v1484_v30 = vld [vmem:[#allocation2 + $0x202] sm:$0xff]  ;;  %v7333_v45 = vld [vmem:[%s9868_s6 + $0xf0] sm:$0xff]  }
 0x280   : > { %v2855_v19 = vpop.f32.mrf.mxu0  ;;  %v3144_v25 = vpop.f32.mrf.mxu1 }
 0x281   : > { %v2856_v63 = vadd.f32 %v2855_v19, %v8484_v14  ;;  %v1483_v14 = vld [vmem:[#allocation2 + $0x1fa] sm:$0xff] }
 0x282   : > { %v2857_v43 = vpop.f32.mrf.mxu0  ;;  %v3146_v50 = vpop.f32.mrf.mxu1  ;;  %5456 = vmatpush2.bf16.msra.mxu0 %v7333_v45  ;;  %v1530_v8 = vpack.c.bf16 %v1484_v30, %v1483_v14  ;;  %v7336_v14 = vld [vmem:[%s9868_s6 + $0xe0] sm:$0xff]  }
 0x283   : > { %v8811_v0 = vadd.f32 %v3144_v25, %v2856_v63  ;;  %5457 = vmatprep.subr.bf16.mxu0 %v9883_v57  ;;  %v7335_v63 = vld [vmem:[%s9868_s6 + $0xe8] sm:$0xff]   ;;  %v7334_v43 = vld [vmem:[%s9868_s6 + $0x40] sm:$0xff]  }
 0x284   : > { %v2860_v20 = vpop.f32.mrf.mxu0  ;;  %7110 = vmatmul.mubr.bf16.gmra.mxu0 %v1528_v52  ;;  %v3149_v41 = vpop.f32.mrf.mxu1  ;;  %v1531_v52 = vpack.c.bf16 %v1486_v37, %v1485_v35  ;;  %5179 = vmatpush2.bf16.msra.mxu1 %v7334_v43  ;;  %v1489_v45 = vld [vmem:[#allocation2 + $0x242] sm:$0xff] }
 0x285   : > { %v2861_v3 = vadd.f32 %v2860_v20, %v8487_v48  ;;  %7113 = vmatprep.mubr.bf16.mxu0 %v1529_v28  ;;  %5726 = vmatprep.subr.bf16.mxu1 %v9883_v57  ;;  %v7386_v43 = vld [vmem:[#allocation2 + $0x8] sm:$0xff] }
 0x286   : > { %v2862_v26 = vpop.f32.mrf.mxu0  ;;  %v3151_v54 = vpop.f32.mrf.mxu1  ;;  %5458 = vmatpush2.bf16.msra.mxu0 %v7335_v63 }
 0x287   : > { %v8818_v51 = vadd.f32 %v3149_v41, %v2861_v3  ;;  %5459 = vmatprep.subr.bf16.mxu0 %v9883_v57  ;;  %v1487_v3 = vld [vmem:[#allocation2 + $0x22a] sm:$0xff]  ;;  %v1488_v41 = vld [vmem:[#allocation2 + $0x232] sm:$0xff]  ;;  %v3797_v54 = vld [vmem:[#allocation2 + $0x1] sm:$0xff] }
 0x288   : > { %v2863_v42 = vpop.f32.mrf.mxu0  ;;  %v3152_v19 = vpop.f32.mrf.mxu1  ;;  %v1490_v26 = vld [vmem:[#allocation2 + $0x24a] sm:$0xff] }
 0x289   : > { %v2864_v48 = vadd.f32 %v2863_v42, %v8490_v36 }
 0x28a   : > { %v2865_v25 = vpop.f32.mrf.mxu0  ;;  %v3154_v46 = vpop.f32.mrf.mxu1  ;;  %5460 = vmatpush2.bf16.msra.mxu0 %v7336_v14 }
 0x28b   : > { %v8825_v28 = vadd.f32 %v3152_v19, %v2864_v48  ;;  %5461 = vmatprep.subr.bf16.mxu0 %v9883_v57  ;;  %v3701_v19 = vld [vmem:[#allocation2] sm:$0xff]  ;;  %v1533_v25 = vpack.c.bf16 %v1490_v26, %v1489_v45  ;;  %v7337_v46 = vld [vmem:[%s9868_s6 + $0xd8] sm:$0xff]   ;;  %v7338_v26 = vld [vmem:[%s9868_s6 + $0xd0] sm:$0xff]  }
 0x28c   : > { %v2868_v50 = vpop.f32.mrf.mxu0  ;;  %7114 = vmatmul.mubr.bf16.gmra.mxu0 %v1530_v8  ;;  %v3157_v20 = vpop.f32.mrf.mxu1  ;;  %v1532_v8 = vpack.c.bf16 %v1488_v41, %v1487_v3  ;;  %v1492_v45 = vld [vmem:[#allocation2 + $0x262] sm:$0xff] }
 0x28d   : > { %v2869_v36 = vadd.f32 %v2868_v50, %v8496_v32  ;;  %7117 = vmatprep.mubr.bf16.mxu0 %v1531_v52  ;;  %v3798_v32 = vld [vmem:[#allocation2 + $0x9] sm:$0xff]  ;;  %v3765_v50 = vpack.c.bf16 %v7386_v43, %v3701_v19 }
 0x28e   : > { %v2870_v30 = vpop.f32.mrf.mxu0  ;;  %v3159_v37 = vpop.f32.mrf.mxu1  ;;  %v3861_v48 = vpack.c.bf16 %v3798_v32, %v3797_v54  ;;  %5462 = vmatpush2.bf16.msra.mxu0 %v7337_v46  ;;  %v1493_v54 = vld [vmem:[#allocation2 + $0x272] sm:$0xff]  ;;  %v1494_v32 = vld [vmem:[#allocation2 + $0x27a] sm:$0xff] }
 0x28f   : > { %v8836_v35 = vadd.f32 %v3157_v20, %v2869_v36  ;;  %5463 = vmatprep.subr.bf16.mxu0 %v9883_v57  ;;  %v1491_v30 = vld [vmem:[#allocation2 + $0x25a] sm:$0xff] }
 0x290   : > { %v2871_v42 = vpop.f32.mrf.mxu0  ;;  %v3160_v63 = vpop.f32.mrf.mxu1  ;;  %5180 = vmatprep.mubr.bf16.mxu1 %v3861_v48  ;;  %v1534_v19 = vpack.c.bf16 %v1492_v45, %v1491_v30  ;;  %v7340_v45 = vld [vmem:[%s9868_s6 + $0x138] sm:$0xff]  }
 0x291   : > { %v2872_v52 = vadd.f32 %v2871_v42, %v8499_v18  ;;  %5181 = vmatmul.mubr.bf16.vlgmr.msra.gmra.mxu1 %v3765_v50 }
 0x292   : > { %v2873_v36 = vpop.f32.mrf.mxu0  ;;  %v3162_v14 = vpop.f32.mrf.mxu1  ;;  %5464 = vmatpush2.bf16.msra.mxu0 %v7338_v26  ;;  %5727 = vmatpush1.bf16.msra.mxu1 %v7340_v45 }
 0x293   : > { %v8843_v20 = vadd.f32 %v3160_v63, %v2872_v52  ;;  %5465 = vmatprep.subr.bf16.mxu0 %v9883_v57  ;;  %v1535_v63 = vpack.c.bf16 %v1494_v32, %v1493_v54  ;;  %5728 = vmatprep.subr.bf16.mxu1 %v9883_v57 }
 0x294   : > { %v2876_v3 = vpop.f32.mrf.mxu0  ;;  %7118 = vmatmul.mubr.bf16.gmra.mxu0 %v1532_v8  ;;  %v3165_v41 = vpop.f32.mrf.mxu1 }
 0x295   : > { %v2877_v18 = vadd.f32 %v2876_v3, %v8502_v40  ;;  %7121 = vmatprep.mubr.bf16.mxu0 %v1533_v25  ;;  %v7339_v25 = vld [vmem:[%s9868_s6 + $0xc8] sm:$0xff]  }
 0x296   : > { %v2878_v37 = vpop.f32.mrf.mxu0  ;;  %v3167_v48 = vpop.f32.mrf.mxu1  ;;  %5466 = vmatpush2.bf16.msra.mxu0 %v7339_v25 }
 0x297   : > { %v8850_v42 = vadd.f32 %v3165_v41, %v2877_v18  ;;  %5467 = vmatprep.subr.bf16.mxu0 %v9883_v57  ;;  %v9906_v37 = vld [vmem:[#allocation3_spill] sm:$0xff] }
 0x298   : > { %v2879_v8 = vpop.f32.mrf.mxu0  ;;  %v3168_v52 = vpop.f32.mrf.mxu1 }
 0x299   : > { %v2880_v40 = vadd.f32 %v2879_v8, %v8505_v29  ;;  %v7341_v29 = vld [vmem:[%s9868_s6 + $0xc0] sm:$0xff]  }
 0x29a   : > { %v2881_v46 = vpop.f32.mrf.mxu0  ;;  %v3170_v50 = vpop.f32.mrf.mxu1  ;;  %5468 = vmatpush2.bf16.msra.mxu0 %v7341_v29 }
 0x29b   : > { %v8857_v43 = vadd.f32 %v3168_v52, %v2880_v40  ;;  %6015 = vmatprep.subr.bf16.mxu0 %v9883_v57  ;;  %v9907_v40 = vld [vmem:[#allocation4_spill] sm:$0xff] }
 0x29c   : > { %v2884_v36 = vpop.f32.mrf.mxu0  ;;  %7122 = vmatmul.mubr.bf16.gmra.mxu0 %v1534_v19  ;;  %v3173_v3 = vpop.f32.mrf.mxu1 }
 0x29d   : > { %v2885_v14 = vadd.f32 %v2884_v36, %v8511_v55  ;;  %7125 = vmatprep.mubr.bf16.mxu0 %v1535_v63 }
 0x29e   : > { %v2886_v18 = vpop.f32.mrf.mxu0  ;;  %v3175_v30 = vpop.f32.mrf.mxu1 }
 0x29f   : > { %v8864_v41 = vadd.f32 %v3173_v3, %v2885_v14  ;;  %v9908_v14 = vld [vmem:[#allocation5_spill] sm:$0xff] }
 0x2a0   : > { %v2887_v26 = vpop.f32.mrf.mxu0  ;;  %v3176_v54 = vpop.f32.mrf.mxu1 }
 0x2a1   : > { %v2888_v55 = vadd.f32 %v2887_v26, %v9906_v37 }
 0x2a2   : > { %v2889_v32 = vpop.f32.mrf.mxu0  ;;  %v3178_v8 = vpop.f32.mrf.mxu1 }
 0x2a3   : > { %v8872_v48 = vadd.f32 %v3176_v54, %v2888_v55  ;;  %v7342_v8 = vld [vmem:[%s9868_s6 + $0x130] sm:$0xff]  }
 0x2a4   : > { %v2892_v19 = vpop.f32.mrf.mxu0  ;;  %7126 = vmatmul.mubr.bf16.gmra.mxu0 %v8623_v31  ;;  %v3181_v63 = vpop.f32.mrf.mxu1  ;;  %v9909_v31 = vld [vmem:[#allocation6_spill] sm:$0xff]  ;;  %5729 = vmatpush1.bf16.msra.mxu1 %v7342_v8 }
 0x2a5   : > { %v2893_v52 = vadd.f32 %v2892_v19, %v9907_v40  ;;  %7129 = vmatprep.mubr.bf16.mxu0 %v8632_v9  ;;  %v9910_v40 = vld [vmem:[#allocation7_spill] sm:$0xff]  ;;  %5730 = vmatprep.subr.bf16.mxu1 %v9883_v57 }
 0x2a6   : > { %v2894_v25 = vpop.f32.mrf.mxu0  ;;  %v3183_v50 = vpop.f32.mrf.mxu1 }
 0x2a7   : > { %v8877_v46 = vadd.f32 %v3181_v63, %v2893_v52 }
 0x2a8   : > { %v2895_v36 = vpop.f32.mrf.mxu0  ;;  %v3184_v29 = vpop.f32.mrf.mxu1 }
 0x2a9   : > { %v2896_v3 = vadd.f32 %v2895_v36, %v9908_v14  ;;  %v9911_v36 = vld [vmem:[#allocation8_spill] sm:$0xff] }
 0x2aa   : > { %v2897_v18 = vpop.f32.mrf.mxu0  ;;  %v3186_v45 = vpop.f32.mrf.mxu1 }
 0x2ab   : > { %v8880_v30 = vadd.f32 %v3184_v29, %v2896_v3 }
 0x2ac   : > { %v2900_v26 = vpop.f32.mrf.mxu0  ;;  %7130 = vmatmul.mubr.bf16.gmra.mxu0 %v8645_v17  ;;  %v3189_v55 = vpop.f32.mrf.mxu1 }
 0x2ad   : > { %v2901_v37 = vadd.f32 %v2900_v26, %v9909_v31  ;;  %7133 = vmatprep.mubr.bf16.mxu0 %v8654_v12  ;;  %v9912_v31 = vld [vmem:[#allocation9_spill] sm:$0xff] }
 0x2ae   : > { %v2902_v9 = vpop.f32.mrf.mxu0  ;;  %v3191_v32 = vpop.f32.mrf.mxu1 }
 0x2af   : > { %v8885_v54 = vadd.f32 %v3189_v55, %v2901_v37 }
 0x2b0   : > { %v2903_v19 = vpop.f32.mrf.mxu0  ;;  %v3192_v63 = vpop.f32.mrf.mxu1 }
 0x2b1   : > { %v2904_v52 = vadd.f32 %v2903_v19, %v9910_v40 }
 0x2b2   : > { %v2905_v25 = vpop.f32.mrf.mxu0  ;;  %v3194_v50 = vpop.f32.mrf.mxu1 }
 0x2b3   : > { %v8892_v17 = vadd.f32 %v3192_v63, %v2904_v52  ;;  %v1512_v63 = vld [vmem:[#allocation2 + $0x352] sm:$0xff] }
 0x2b4   : > { %v2908_v12 = vpop.f32.mrf.mxu0  ;;  %7134 = vmatmul.mubr.bf16.gmra.mxu0 %v8667_v16  ;;  %v3197_v3 = vpop.f32.mrf.mxu1  ;;  %v9913_v16 = vld [vmem:[#allocation10_spill] sm:$0xff] }
 0x2b5   : > { %v2909_v14 = vadd.f32 %v2908_v12, %v9911_v36  ;;  %7137 = vmatprep.mubr.bf16.mxu0 %v8676_v5  ;;  %v1511_v5 = vld [vmem:[#allocation2 + $0x34a] sm:$0xff] }
 0x2b6   : > { %v2910_v29 = vpop.f32.mrf.mxu0  ;;  %v3199_v45 = vpop.f32.mrf.mxu1  ;;  %v7343_v36 = vld [vmem:[%s9868_s6 + $0x128] sm:$0xff]  }
 0x2b7   : > { %v8897_v18 = vadd.f32 %v3197_v3, %v2909_v14  ;;  %v1544_v3 = vpack.c.bf16 %v1512_v63, %v1511_v5  ;;  %v9914_v29 = vld [vmem:[#allocation11_spill] sm:$0xff]  ;;  %5731 = vmatpush1.bf16.msra.mxu1 %v7343_v36  ;;  %v9917_v5 = vld [vmem:[#allocation13_spill] sm:$0xff] }
 0x2b8   : > { %v2911_v26 = vpop.f32.mrf.mxu0  ;;  %v3200_v55 = vpop.f32.mrf.mxu1  ;;  %5732 = vmatprep.subr.bf16.mxu1 %v9883_v57 }
 0x2b9   : > { %v2912_v37 = vadd.f32 %v2911_v26, %v9912_v31 }
 0x2ba   : > { %v2913_v9 = vpop.f32.mrf.mxu0  ;;  %v3202_v8 = vpop.f32.mrf.mxu1 }
 0x2bb   : > { %v8900_v32 = vadd.f32 %v3200_v55, %v2912_v37  ;;  %v9916_v55 = vld [vmem:[#allocation12_spill] sm:$0xff] }
 0x2bc   : > { %v2916_v19 = vpop.f32.mrf.mxu0  ;;  %7138 = vmatmul.mubr.bf16.gmra.mxu0 %v8689_v33  ;;  %v3205_v52 = vpop.f32.mrf.mxu1 }
 0x2bd   : > { %v2917_v40 = vadd.f32 %v2916_v19, %v9913_v16  ;;  %7141 = vmatprep.mubr.bf16.mxu0 %v8698_v38 }
 0x2be   : > { %v2918_v25 = vpop.f32.mrf.mxu0  ;;  %v3207_v12 = vpop.f32.mrf.mxu1 }
 0x2bf   : > { %v8905_v50 = vadd.f32 %v3205_v52, %v2917_v40 }
 0x2c0   : > { %v2919_v14 = vpop.f32.mrf.mxu0  ;;  %v3208_v33 = vpop.f32.mrf.mxu1 }
 0x2c1   : > { %v2920_v45 = vadd.f32 %v2919_v14, %v9914_v29 }
 0x2c2   : > { %v2921_v26 = vpop.f32.mrf.mxu0  ;;  %v3210_v31 = vpop.f32.mrf.mxu1 }
 0x2c3   : > { %v8912_v38 = vadd.f32 %v3208_v33, %v2920_v45  ;;  %v9919_v45 = vld [vmem:[#allocation14_spill] sm:$0xff] }
 0x2c4   : > { %v2924_v37 = vpop.f32.mrf.mxu0  ;;  %7142 = vmatmul.mubr.bf16.gmra.mxu0 %v1544_v3  ;;  %v3213_v8 = vpop.f32.mrf.mxu1 }
 0x2c5   : > { %9915 = vst [vmem:[#allocation3_spill] sm:$0xff] %v8912_v38  ;;  %v2925_v9 = vadd.f32 %v2924_v37, %v9916_v55  ;;  %v7344_v55 = vld [vmem:[%s9868_s6 + $0x120] sm:$0xff]  }
 0x2c6   : > { %v2926_v19 = vpop.f32.mrf.mxu0  ;;  %v3215_v40 = vpop.f32.mrf.mxu1  ;;  %5733 = vmatpush1.bf16.msra.mxu1 %v7344_v55 }
 0x2c7   : > { %v8915_v16 = vadd.f32 %v3213_v8, %v2925_v9  ;;  %v9921_v8 = vld [vmem:[#allocation15_spill] sm:$0xff]  ;;  %5734 = vmatprep.subr.bf16.mxu1 %v9883_v57 }
 0x2c8   : > { %v2927_v52 = vpop.f32.mrf.mxu0  ;;  %v3216_v25 = vpop.f32.mrf.mxu1 }
 0x2c9   : > { %v2928_v63 = vadd.f32 %v2927_v52, %v9917_v5 }
 0x2ca   : > { %v2929_v12 = vpop.f32.mrf.mxu0  ;;  %v3218_v14 = vpop.f32.mrf.mxu1 }
 0x2cb   : > { %v8918_v36 = vadd.f32 %v3216_v25, %v2928_v63  ;;  %v9923_v12 = vld [vmem:[#allocation16_spill] sm:$0xff] }
 0x2cc   : > { %v2932_v29 = vpop.f32.mrf.mxu0  ;;  %v3221_v26 = vpop.f32.mrf.mxu1 }
 0x2cd   : > { %9918 = vst [vmem:[#allocation4_spill] sm:$0xff] %v8918_v36  ;;  %v2933_v33 = vadd.f32 %v2932_v29, %v9919_v45 }
 0x2ce   : > { %v2934_v3 = vpop.f32.mrf.mxu0  ;;  %v3223_v37 = vpop.f32.mrf.mxu1 }
 0x2cf   : > { %v8921_v31 = vadd.f32 %v3221_v26, %v2933_v33  ;;  %v9925_v37 = vld [vmem:[#allocation17_spill] sm:$0xff] }
 0x2d0   : > { %v2935_v9 = vpop.f32.mrf.mxu0  ;;  %v3224_v40 = vpop.f32.mrf.mxu1 }
 0x2d1   : > { %9920 = vst [vmem:[#allocation5_spill] sm:$0xff] %v8921_v31  ;;  %v2936_v19 = vadd.f32 %v2935_v9, %v9921_v8 }
 0x2d2   : > { %v2937_v52 = vpop.f32.mrf.mxu0  ;;  %v3226_v63 = vpop.f32.mrf.mxu1 }
 0x2d3   : > { %v8928_v5 = vadd.f32 %v3224_v40, %v2936_v19  ;;  %v9927_v19 = vld [vmem:[#allocation18_spill] sm:$0xff] }
 0x2d4   : > { %v2940_v25 = vpop.f32.mrf.mxu0  ;;  %v3229_v29 = vpop.f32.mrf.mxu1 }
 0x2d5   : > { %9922 = vst [vmem:[#allocation6_spill] sm:$0xff] %v8928_v5  ;;  %v2941_v14 = vadd.f32 %v2940_v25, %v9923_v12  ;;  %v7345_v12 = vld [vmem:[%s9868_s6 + $0x118] sm:$0xff]  }
 0x2d6   : > { %v2942_v45 = vpop.f32.mrf.mxu0  ;;  %v3231_v26 = vpop.f32.mrf.mxu1  ;;  %5735 = vmatpush1.bf16.msra.mxu1 %v7345_v12 }
 0x2d7   : > { %v8931_v33 = vadd.f32 %v3229_v29, %v2941_v14  ;;  %v9929_v29 = vld [vmem:[#allocation19_spill] sm:$0xff]  ;;  %5736 = vmatprep.subr.bf16.mxu1 %v9883_v57 }
 0x2d8   : > { %v2943_v3 = vpop.f32.mrf.mxu0  ;;  %v3232_v9 = vpop.f32.mrf.mxu1 }
 0x2d9   : > { %9924 = vst [vmem:[#allocation7_spill] sm:$0xff] %v8931_v33  ;;  %v2944_v31 = vadd.f32 %v2943_v3, %v9925_v37 }
 0x2da   : > { %v2945_v8 = vpop.f32.mrf.mxu0  ;;  %v3234_v52 = vpop.f32.mrf.mxu1 }
 0x2db   : > { %v8934_v55 = vadd.f32 %v3232_v9, %v2944_v31 }
 0x2dc   : > { %v2948_v38 = vpop.f32.mrf.mxu0  ;;  %v3237_v63 = vpop.f32.mrf.mxu1 }
 0x2dd   : > { %9926 = vst [vmem:[#allocation8_spill] sm:$0xff] %v8934_v55  ;;  %v2949_v40 = vadd.f32 %v2948_v38, %v9927_v19 }
 0x2de   : > { %v2950_v5 = vpop.f32.mrf.mxu0  ;;  %v3239_v25 = vpop.f32.mrf.mxu1 }
 0x2df   : > { %v8937_v36 = vadd.f32 %v3237_v63, %v2949_v40  ;;  %v9931_v5 = vld [vmem:[#allocation20_spill] sm:$0xff]  ;;  %v9932_v25 = vld [vmem:[#allocation21_spill] sm:$0xff] }
 0x2e0   : > { %v2951_v14 = vpop.f32.mrf.mxu0  ;;  %v3240_v26 = vpop.f32.mrf.mxu1 }
 0x2e1   : > { %9928 = vst [vmem:[#allocation9_spill] sm:$0xff] %v8937_v36  ;;  %v2952_v45 = vadd.f32 %v2951_v14, %v9929_v29 }
 0x2e2   : > { %v2953_v31 = vpop.f32.mrf.mxu0  ;;  %v3242_v38 = vpop.f32.mrf.mxu1 }
 0x2e3   : > { %v8944_v3 = vadd.f32 %v3240_v26, %v2952_v45  ;;  %v9933_v45 = vld [vmem:[#allocation22_spill] sm:$0xff] }
 0x2e4   : > { %v2956_v37 = vpop.f32.mrf.mxu0  ;;  %v3245_v8 = vpop.f32.mrf.mxu1 }
 0x2e5   : > { %9930 = vst [vmem:[#allocation10_spill] sm:$0xff] %v8944_v3  ;;  %v2957_v9 = vadd.f32 %v2956_v37, %v9931_v5  ;;  %v7346_v5 = vld [vmem:[%s9868_s6 + $0x110] sm:$0xff]  }
 0x2e6   : > { %v2958_v52 = vpop.f32.mrf.mxu0  ;;  %v3247_v40 = vpop.f32.mrf.mxu1  ;;  %5737 = vmatpush1.bf16.msra.mxu1 %v7346_v5 }
 0x2e7   : > { %v8947_v19 = vadd.f32 %v3245_v8, %v2957_v9  ;;  %5738 = vmatprep.subr.bf16.mxu1 %v9883_v57 }
 0x2e8   : > { %v2959_v63 = vpop.f32.mrf.mxu0  ;;  %v3248_v14 = vpop.f32.mrf.mxu1 }
 0x2e9   : > { %v2960_v36 = vadd.f32 %v2959_v63, %v9932_v25 }
 0x2ea   : > { %v2961_v29 = vpop.f32.mrf.mxu0  ;;  %v3250_v31 = vpop.f32.mrf.mxu1 }
 0x2eb   : > { %v8950_v12 = vadd.f32 %v3248_v14, %v2960_v36 }
 0x2ec   : > { %v2964_v55 = vpop.f32.mrf.mxu0  ;;  %v3253_v38 = vpop.f32.mrf.mxu1 }
 0x2ed   : > { %v2965_v26 = vadd.f32 %v2964_v55, %v9933_v45 }
 0x2ee   : > { %v2966_v3 = vpop.f32.mrf.mxu0  ;;  %v3255_v37 = vpop.f32.mrf.mxu1 }
 0x2ef   : > { %v8953_v33 = vadd.f32 %v3253_v38, %v2965_v26  ;;  %v9936_v26 = vld [vmem:[#allocation23_spill] sm:$0xff] }
 0x2f0   : > { %v2967_v9 = vpop.f32.mrf.mxu0  ;;  %v3256_v52 = vpop.f32.mrf.mxu1 }
 0x2f1   : > { %9934 = vst [vmem:[#allocation11_spill] sm:$0xff] %v8953_v33  ;;  %v2968_v8 = vadd.f32 %v2967_v9, %v8607_v22 }
 0x2f2   : > { %v2969_v36 = vpop.f32.mrf.mxu0  ;;  %v3258_v55 = vpop.f32.mrf.mxu1 }
 0x2f3   : > { %v8960_v40 = vadd.f32 %v3256_v52, %v2968_v8  ;;  %v9938_v8 = vld [vmem:[#allocation24_spill] sm:$0xff] }
 0x2f4   : > { %v2972_v63 = vpop.f32.mrf.mxu0  ;;  %v3261_v25 = vpop.f32.mrf.mxu1 }
 0x2f5   : > { %9935 = vst [vmem:[#allocation12_spill] sm:$0xff] %v8960_v40  ;;  %v2973_v3 = vadd.f32 %v2972_v63, %v8610_v49  ;;  %v7347_v63 = vld [vmem:[%s9868_s6 + $0x108] sm:$0xff]  }
 0x2f6   : > { %v2974_v14 = vpop.f32.mrf.mxu0  ;;  %v3263_v31 = vpop.f32.mrf.mxu1  ;;  %5739 = vmatpush1.bf16.msra.mxu1 %v7347_v63 }
 0x2f7   : > { %v8963_v29 = vadd.f32 %v3261_v25, %v2973_v3  ;;  %v9940_v25 = vld [vmem:[#allocation25_spill] sm:$0xff]  ;;  %5740 = vmatprep.subr.bf16.mxu1 %v9883_v57 }
 0x2f8   : > { %v2975_v45 = vpop.f32.mrf.mxu0  ;;  %v3264_v22 = vpop.f32.mrf.mxu1 }
 0x2f9   : > { %v2976_v38 = vadd.f32 %v2975_v45, %v9936_v26 }
 0x2fa   : > { %v2977_v37 = vpop.f32.mrf.mxu0  ;;  %v3266_v9 = vpop.f32.mrf.mxu1 }
 0x2fb   : > { %v8966_v5 = vadd.f32 %v3264_v22, %v2976_v38 }
 0x2fc   : > { %v2980_v36 = vpop.f32.mrf.mxu0  ;;  %v3269_v55 = vpop.f32.mrf.mxu1 }
 0x2fd   : > { %9937 = vst [vmem:[#allocation13_spill] sm:$0xff] %v8966_v5  ;;  %v2981_v52 = vadd.f32 %v2980_v36, %v9938_v8 }
 0x2fe   : > { %v2982_v40 = vpop.f32.mrf.mxu0  ;;  %v3271_v49 = vpop.f32.mrf.mxu1 }
 0x2ff   : > { %v8969_v33 = vadd.f32 %v3269_v55, %v2981_v52  ;;  %v9942_v40 = vld [vmem:[#allocation26_spill] sm:$0xff]  ;;  %v9943_v49 = vld [vmem:[#allocation27_spill] sm:$0xff] }
 0x300   : > { %v2983_v3 = vpop.f32.mrf.mxu0  ;;  %v3272_v31 = vpop.f32.mrf.mxu1 }
 0x301   : > { %9939 = vst [vmem:[#allocation14_spill] sm:$0xff] %v8969_v33  ;;  %v2984_v14 = vadd.f32 %v2983_v3, %v9940_v25 }
 0x302   : > { %v2985_v45 = vpop.f32.mrf.mxu0  ;;  %v3274_v38 = vpop.f32.mrf.mxu1 }
 0x303   : > { %v8976_v26 = vadd.f32 %v3272_v31, %v2984_v14 }
 0x304   : > { %v2988_v22 = vpop.f32.mrf.mxu0  ;;  %v3277_v9 = vpop.f32.mrf.mxu1 }
 0x305   : > { %9941 = vst [vmem:[#allocation15_spill] sm:$0xff] %v8976_v26  ;;  %v2989_v37 = vadd.f32 %v2988_v22, %v9942_v40  ;;  %v9945_v26 = vld [vmem:[#allocation28_spill] sm:$0xff]  ;;  %v7348_v40 = vld [vmem:[%s9868_s6 + $0x100] sm:$0xff]  }
 0x306   : > { %v2990_v36 = vpop.f32.mrf.mxu0  ;;  %v3279_v52 = vpop.f32.mrf.mxu1  ;;  %5741 = vmatpush1.bf16.msra.mxu1 %v7348_v40 }
 0x307   : > { %v8979_v8 = vadd.f32 %v3277_v9, %v2989_v37  ;;  %5742 = vmatprep.subr.bf16.mxu1 %v9883_v57 }
 0x308   : > { %v2991_v55 = vpop.f32.mrf.mxu0  ;;  %v3280_v3 = vpop.f32.mrf.mxu1 }
 0x309   : > { %v2992_v33 = vadd.f32 %v2991_v55, %v9943_v49 }
 0x30a   : > { %v2993_v25 = vpop.f32.mrf.mxu0  ;;  %v3282_v45 = vpop.f32.mrf.mxu1 }
 0x30b   : > { %v8982_v63 = vadd.f32 %v3280_v3, %v2992_v33 }
 0x30c   : > { %v7083_v5 = vpop.f32.mrf.mxu0 }
 0x30d   : > { %9944 = vst [vmem:[#allocation16_spill] sm:$0xff] %v8982_v63  ;;  %v3327_v14 = vadd.f32 %v7083_v5, %v8651_v11  ;;  %v9946_v11 = vld [vmem:[#allocation29_spill] sm:$0xff]  ;;  %v3893_v63 = vld [vmem:[#allocation2 + $0x2] sm:$0xff] }
 0x30e   : > { %v3318_v31 = vpop.f32.mrf.mxu0 }
 0x30f   : > { %v3575_v38 = vmax.f32 %v3327_v14, 0.0  ;;  %v3319_v22 = vadd.f32 %v3318_v31, %v9945_v26  ;;  %v9947_v14 = vld [vmem:[#allocation30_spill] sm:$0xff] }
 0x310   : > { %v7084_v37 = vpop.f32.mrf.mxu0 }
 0x311   : > { %3639 = vst [vmem:[#allocation2 + $0x31] sm:$0xff] %v3575_v38  ;;  %v3573_v9 = vmax.f32 %v3319_v22, 0.0  ;;  %v3330_v36 = vadd.f32 %v7084_v37, %v8656_v44 }
 0x312   : > { %v3321_v33 = vpop.f32.mrf.mxu0 }
 0x313   : > { %3637 = vst [vmem:[#allocation2 + $0x19] sm:$0xff] %v3573_v9  ;;  %v3576_v52 = vmax.f32 %v3330_v36, 0.0  ;;  %v3322_v5 = vadd.f32 %v3321_v33, %v9946_v11  ;;  %v9948_v11 = vld [vmem:[#allocation31_spill] sm:$0xff] }
 0x314   : > { %v7087_v55 = vpop.f32.mrf.mxu0 }
 0x315   : > { %3640 = vst [vmem:[#allocation2 + $0x39] sm:$0xff] %v3576_v52  ;;  %v3574_v26 = vmax.f32 %v3322_v5, 0.0  ;;  %v3343_v49 = vadd.f32 %v7087_v55, %v8673_v2  ;;  %v3863_v3 = vpack.c.bf16 %v3576_v52, %v3575_v38  ;;  %v3894_v2 = vld [vmem:[#allocation2 + $0xa] sm:$0xff]  ;;  %v7349_v38 = vld [vmem:[%s9868_s6 + $0x178] sm:$0xff]  }
 0x316   : > { %v3334_v25 = vpop.f32.mrf.mxu0  ;;  %5743 = vmatpush2.bf16.msra.mxu1 %v7349_v38 }
 0x317   : > { %3638 = vst [vmem:[#allocation2 + $0x21] sm:$0xff] %v3574_v26  ;;  %v3579_v45 = vmax.f32 %v3343_v49, 0.0  ;;  %v3335_v31 = vadd.f32 %v3334_v25, %v9947_v14  ;;  %v3862_v44 = vpack.c.bf16 %v3574_v26, %v3573_v9  ;;  %v3957_v25 = vpack.c.bf16 %v3894_v2, %v3893_v63  ;;  %5744 = vmatprep.subr.bf16.mxu1 %v9883_v57 }
 0x318   : > { %v7088_v22 = vpop.f32.mrf.mxu0 }
 0x319   : > { %3643 = vst [vmem:[#allocation2 + $0x61] sm:$0xff] %v3579_v45  ;;  %v3577_v40 = vmax.f32 %v3335_v31, 0.0  ;;  %v3346_v37 = vadd.f32 %v7088_v22, %v8678_v61  ;;  %5188 = vmatprep.mubr.bf16.mxu1 %v3862_v44  ;;  %v9949_v22 = vld [vmem:[#allocation32_spill] sm:$0xff] }
 0x31a   : > { %v3337_v36 = vpop.f32.mrf.mxu0  ;;  %v3989_v61 = vld [vmem:[#allocation2 + $0x18] sm:$0xff] }
 0x31b   : > { %3641 = vst [vmem:[#allocation2 + $0x49] sm:$0xff] %v3577_v40  ;;  %v3580_v33 = vmax.f32 %v3346_v37, 0.0  ;;  %v3338_v5 = vadd.f32 %v3337_v36, %v9948_v11  ;;  %v7350_v11 = vld [vmem:[%s9868_s6 + $0x1b8] sm:$0xff]  }
 0x31c   : > { %v7091_v52 = vpop.f32.mrf.mxu0  ;;  %v3992_v14 = vld [vmem:[#allocation2 + $0x38] sm:$0xff] }
 0x31d   : > { %3644 = vst [vmem:[#allocation2 + $0x69] sm:$0xff] %v3580_v33  ;;  %v3578_v9 = vmax.f32 %v3338_v5, 0.0  ;;  %v3359_v55 = vadd.f32 %v7091_v52, %v8695_v15  ;;  %v9000_v31 = vpack.c.bf16 %v3580_v33, %v3579_v45  ;;  %v3991_v5 = vld [vmem:[#allocation2 + $0x30] sm:$0xff] }
 0x31e   : > { %v3350_v26 = vpop.f32.mrf.mxu0  ;;  %v3990_v49 = vld [vmem:[#allocation2 + $0x20] sm:$0xff]  ;;  %v4054_v45 = vpack.c.bf16 %v3992_v14, %v3991_v5 }
 0x31f   : > { %3642 = vst [vmem:[#allocation2 + $0x51] sm:$0xff] %v3578_v9  ;;  %v3583_v44 = vmax.f32 %v3359_v55, 0.0  ;;  %v3351_v37 = vadd.f32 %v3350_v26, %v9949_v22  ;;  %v4053_v36 = vpack.c.bf16 %v3990_v49, %v3989_v61  ;;  %v3864_v38 = vpack.c.bf16 %v3578_v9, %v3577_v40  ;;  %v3896_v61 = vld [vmem:[#allocation2 + $0x22] sm:$0xff] }
 0x320   : > { %v7092_v15 = vpop.f32.mrf.mxu0 }
 0x321   : > { %3647 = vst [vmem:[#allocation2 + $0x91] sm:$0xff] %v3583_v44  ;;  %v3581_v52 = vmax.f32 %v3351_v37, 0.0  ;;  %v3362_v63 = vadd.f32 %v7092_v15, %v8700_v39  ;;  %5469 = vmatprep.mubr.bf16.mxu0 %v4053_v36  ;;  %5189 = vmatmul.mubr.bf16.gmra.mxu1 %v4053_v36  ;;  %v3895_v39 = vld [vmem:[#allocation2 + $0x1a] sm:$0xff] }
 0x322   : > { %v3353_v33 = vpop.f32.mrf.mxu0  ;;  %5470 = vmatmul.mubr.bf16.vlgmr.msra.gmra.mxu0 %v3957_v25  ;;  %5196 = vmatprep.mubr.bf16.mxu1 %v3863_v3  ;;  %v3958_v37 = vpack.c.bf16 %v3896_v61, %v3895_v39  ;;  %v3993_v36 = vld [vmem:[#allocation2 + $0x48] sm:$0xff] }
 0x323   : > { %3645 = vst [vmem:[#allocation2 + $0x79] sm:$0xff] %v3581_v52  ;;  %v3584_v2 = vmax.f32 %v3362_v63, 0.0  ;;  %v3354_v55 = vadd.f32 %v3353_v33, %v8691_v56  ;;  %5477 = vmatprep.mubr.bf16.mxu0 %v4054_v45  ;;  %6016 = vmatpush1.bf16.msra.mxu0 %v7350_v11 }
 0x324   : > { %v7095_v26 = vpop.f32.mrf.mxu0  ;;  %6017 = vmatprep.subr.bf16.mxu0 %v9883_v57 }
 0x325   : > { %3648 = vst [vmem:[#allocation2 + $0x99] sm:$0xff] %v3584_v2  ;;  %v3582_v40 = vmax.f32 %v3354_v55, 0.0  ;;  %v3375_v9 = vadd.f32 %v7095_v26, %v8715_v4  ;;  %v9011_v22 = vpack.c.bf16 %v3584_v2, %v3583_v44  ;;  %v3897_v55 = vld [vmem:[#allocation2 + $0x32] sm:$0xff] }
 0x326   : > { %v3366_v49 = vpop.f32.mrf.mxu0  ;;  %v3994_v14 = vld [vmem:[#allocation2 + $0x50] sm:$0xff] }
 0x327   : > { %3646 = vst [vmem:[#allocation2 + $0x81] sm:$0xff] %v3582_v40  ;;  %v3587_v3 = vmax.f32 %v3375_v9, 0.0  ;;  %v3367_v25 = vadd.f32 %v3366_v49, %v8707_v13  ;;  %v9014_v11 = vpack.c.bf16 %v3582_v40, %v3581_v52  ;;  %v4055_v4 = vpack.c.bf16 %v3994_v14, %v3993_v36  ;;  %v7351_v13 = vld [vmem:[%s9868_s6 + $0x170] sm:$0xff]   ;;  %v3995_v14 = vld [vmem:[#allocation2 + $0x60] sm:$0xff] }
 0x328   : > { %v7096_v56 = vpop.f32.mrf.mxu0  ;;  %v7352_v52 = vld [vmem:[%s9868_s6 + $0x1b0] sm:$0xff]   ;;  %5745 = vmatpush2.bf16.msra.mxu1 %v7351_v13 }
 0x329   : > { %3651 = vst [vmem:[#allocation2 + $0xc1] sm:$0xff] %v3587_v3  ;;  %v3585_v15 = vmax.f32 %v3367_v25, 0.0  ;;  %v3378_v5 = vadd.f32 %v7096_v56, %v8718_v27  ;;  %5197 = vmatmul.mubr.bf16.gmra.mxu1 %v4054_v45  ;;  %6018 = vmatpush1.bf16.msra.mxu0 %v7352_v52 }
 0x32a   : > { %v3369_v63 = vpop.f32.mrf.mxu0  ;;  %5478 = vmatmul.mubr.bf16.gmra.mxu0 %v3958_v37  ;;  %5204 = vmatprep.mubr.bf16.mxu1 %v3864_v38  ;;  %v3898_v38 = vld [vmem:[#allocation2 + $0x3a] sm:$0xff] }
 0x32b   : > { %3649 = vst [vmem:[#allocation2 + $0xa9] sm:$0xff] %v3585_v15  ;;  %v3588_v44 = vmax.f32 %v3378_v5, 0.0  ;;  %v3370_v33 = vadd.f32 %v3369_v63, %v8712_v7  ;;  %5485 = vmatprep.mubr.bf16.mxu0 %v4055_v4  ;;  %v3996_v7 = vld [vmem:[#allocation2 + $0x68] sm:$0xff]  ;;  %5746 = vmatprep.subr.bf16.mxu1 %v9883_v57  ;;  %v3959_v49 = vpack.c.bf16 %v3898_v38, %v3897_v55 }
 0x32c   : > { %v7099_v2 = vpop.f32.mrf.mxu0  ;;  %6019 = vmatprep.subr.bf16.mxu0 %v9883_v57 }
 0x32d   : > { %3652 = vst [vmem:[#allocation2 + $0xc9] sm:$0xff] %v3588_v44  ;;  %v3586_v27 = vmax.f32 %v3370_v33, 0.0  ;;  %v3391_v45 = vadd.f32 %v7099_v2, %v8731_v59  ;;  %v9025_v40 = vpack.c.bf16 %v3588_v44, %v3587_v3  ;;  %v4056_v3 = vpack.c.bf16 %v3996_v7, %v3995_v14  ;;  %v3899_v44 = vld [vmem:[#allocation2 + $0x4a] sm:$0xff]  ;;  %v3900_v33 = vld [vmem:[#allocation2 + $0x52] sm:$0xff]  ;;  %v3901_v14 = vld [vmem:[#allocation2 + $0x62] sm:$0xff] }
 0x32e   : > { %v3382_v26 = vpop.f32.mrf.mxu0 }
 0x32f   : > { %3650 = vst [vmem:[#allocation2 + $0xb1] sm:$0xff] %v3586_v27  ;;  %v3591_v9 = vmax.f32 %v3391_v45, 0.0  ;;  %v3383_v39 = vadd.f32 %v3382_v26, %v8725_v1  ;;  %v9030_v59 = vpack.c.bf16 %v3586_v27, %v3585_v15  ;;  %v3960_v27 = vpack.c.bf16 %v3900_v33, %v3899_v44  ;;  %v3997_v45 = vld [vmem:[#allocation2 + $0x78] sm:$0xff] }
 0x330   : > { %v7100_v61 = vpop.f32.mrf.mxu0 }
 0x331   : > { %3655 = vst [vmem:[#allocation2 + $0xf1] sm:$0xff] %v3591_v9  ;;  %v3589_v25 = vmax.f32 %v3383_v39, 0.0  ;;  %v3394_v56 = vadd.f32 %v7100_v61, %v8734_v23  ;;  %5205 = vmatmul.mubr.bf16.gmra.mxu1 %v4055_v4  ;;  %v3998_v23 = vld [vmem:[#allocation2 + $0x80] sm:$0xff]  ;;  %v7354_v39 = vld [vmem:[%s9868_s6 + $0x1a8] sm:$0xff]  }
 0x332   : > { %v3385_v37 = vpop.f32.mrf.mxu0  ;;  %5486 = vmatmul.mubr.bf16.gmra.mxu0 %v3959_v49  ;;  %5212 = vmatprep.mubr.bf16.mxu1 %v9000_v31 }
 0x333   : > { %3653 = vst [vmem:[#allocation2 + $0xd9] sm:$0xff] %v3589_v25  ;;  %v3592_v36 = vmax.f32 %v3394_v56, 0.0  ;;  %v3386_v5 = vadd.f32 %v3385_v37, %v8728_v53  ;;  %5493 = vmatprep.mubr.bf16.mxu0 %v4056_v3  ;;  %6020 = vmatpush1.bf16.msra.mxu0 %v7354_v39 }
 0x334   : > { %v7103_v1 = vpop.f32.mrf.mxu0  ;;  %6021 = vmatprep.subr.bf16.mxu0 %v9883_v57 }
 0x335   : > { %3656 = vst [vmem:[#allocation2 + $0xf9] sm:$0xff] %v3592_v36  ;;  %v3590_v63 = vmax.f32 %v3386_v5, 0.0  ;;  %v3407_v15 = vadd.f32 %v7103_v1, %v8754_v6  ;;  %v9036_v4 = vpack.c.bf16 %v3592_v36, %v3591_v9  ;;  %v4057_v6 = vpack.c.bf16 %v3998_v23, %v3997_v45  ;;  %v3999_v1 = vld [vmem:[#allocation2 + $0x90] sm:$0xff] }
 0x336   : > { %v3398_v13 = vpop.f32.mrf.mxu0 }
 0x337   : > { %3654 = vst [vmem:[#allocation2 + $0xe1] sm:$0xff] %v3590_v63  ;;  %v3595_v52 = vmax.f32 %v3407_v15, 0.0  ;;  %v3399_v31 = vadd.f32 %v3398_v13, %v8741_v21  ;;  %v9039_v53 = vpack.c.bf16 %v3590_v63, %v3589_v25  ;;  %v7353_v21 = vld [vmem:[%s9868_s6 + $0x168] sm:$0xff]  }
 0x338   : > { %v7104_v2 = vpop.f32.mrf.mxu0  ;;  %5747 = vmatpush2.bf16.msra.mxu1 %v7353_v21 }
 0x339   : > { %3659 = vst [vmem:[#allocation2 + $0x121] sm:$0xff] %v3595_v52  ;;  %v3593_v55 = vmax.f32 %v3399_v31, 0.0  ;;  %v3410_v38 = vadd.f32 %v7104_v2, %v8761_v58  ;;  %5213 = vmatmul.mubr.bf16.gmra.mxu1 %v4056_v3  ;;  %5748 = vmatprep.subr.bf16.mxu1 %v9883_v57  ;;  %v3903_v2 = vld [vmem:[#allocation2 + $0x7a] sm:$0xff] }
 0x33a   : > { %v3401_v26 = vpop.f32.mrf.mxu0  ;;  %5494 = vmatmul.mubr.bf16.gmra.mxu0 %v3960_v27  ;;  %5220 = vmatprep.mubr.bf16.mxu1 %v9014_v11  ;;  %v3902_v11 = vld [vmem:[#allocation2 + $0x6a] sm:$0xff]  ;;  %v3904_v27 = vld [vmem:[#allocation2 + $0x82] sm:$0xff] }
 0x33b   : > { %3657 = vst [vmem:[#allocation2 + $0x109] sm:$0xff] %v3593_v55  ;;  %v3596_v7 = vmax.f32 %v3410_v38, 0.0  ;;  %v3402_v9 = vadd.f32 %v3401_v26, %v8747_v10  ;;  %5501 = vmatprep.mubr.bf16.mxu0 %v4057_v6  ;;  %v4000_v10 = vld [vmem:[#allocation2 + $0x98] sm:$0xff]  ;;  %v3961_v5 = vpack.c.bf16 %v3902_v11, %v3901_v14  ;;  %v3962_v26 = vpack.c.bf16 %v3904_v27, %v3903_v2  ;;  %v3907_v2 = vld [vmem:[#allocation2 + $0xaa] sm:$0xff] }
 0x33c   : > { %v7107_v58 = vpop.f32.mrf.mxu0  ;;  %v4058_v44 = vpack.c.bf16 %v4000_v10, %v3999_v1  ;;  %v4003_v1 = vld [vmem:[#allocation2 + $0xc0] sm:$0xff] }
 0x33d   : > { %3660 = vst [vmem:[#allocation2 + $0x129] sm:$0xff] %v3596_v7  ;;  %v3594_v61 = vmax.f32 %v3402_v9, 0.0  ;;  %v3423_v49 = vadd.f32 %v7107_v58, %v8786_v62  ;;  %v9051_v56 = vpack.c.bf16 %v3596_v7, %v3595_v52  ;;  %v4001_v7 = vld [vmem:[#allocation2 + $0xa8] sm:$0xff] }
 0x33e   : > { %v3414_v25 = vpop.f32.mrf.mxu0 }
 0x33f   : > { %3658 = vst [vmem:[#allocation2 + $0x111] sm:$0xff] %v3594_v61  ;;  %v3599_v3 = vmax.f32 %v3423_v49, 0.0  ;;  %v3415_v37 = vadd.f32 %v3414_v25, %v8772_v60  ;;  %v9056_v62 = vpack.c.bf16 %v3594_v61, %v3593_v55  ;;  %v7356_v49 = vld [vmem:[%s9868_s6 + $0x1a0] sm:$0xff]   ;;  %v3905_v25 = vld [vmem:[#allocation2 + $0x92] sm:$0xff] }
 0x340   : > { %v7108_v36 = vpop.f32.mrf.mxu0  ;;  %6022 = vmatpush1.bf16.msra.mxu0 %v7356_v49 }
 0x341   : > { %3663 = vst [vmem:[#allocation2 + $0x151] sm:$0xff] %v3599_v3  ;;  %v3597_v63 = vmax.f32 %v3415_v37, 0.0  ;;  %v3426_v15 = vadd.f32 %v7108_v36, %v8793_v47  ;;  %5221 = vmatmul.mubr.bf16.gmra.mxu1 %v4057_v6  ;;  %v4002_v47 = vld [vmem:[#allocation2 + $0xb0] sm:$0xff]  ;;  %6023 = vmatprep.subr.bf16.mxu0 %v9883_v57 }
 0x342   : > { %v3417_v33 = vpop.f32.mrf.mxu0  ;;  %5502 = vmatmul.mubr.bf16.gmra.mxu0 %v3961_v5  ;;  %5228 = vmatprep.mubr.bf16.mxu1 %v9011_v22 }
 0x343   : > { %3661 = vst [vmem:[#allocation2 + $0x139] sm:$0xff] %v3597_v63  ;;  %v3600_v13 = vmax.f32 %v3426_v15, 0.0  ;;  %v3418_v23 = vadd.f32 %v3417_v33, %v8779_v34  ;;  %5509 = vmatprep.mubr.bf16.mxu0 %v4058_v44 }
 0x344   : > { %v7111_v60 = vpop.f32.mrf.mxu0 }
 0x345   : > { %3664 = vst [vmem:[#allocation2 + $0x159] sm:$0xff] %v3600_v13  ;;  %v3598_v52 = vmax.f32 %v3418_v23, 0.0  ;;  %v3439_v31 = vadd.f32 %v7111_v60, %v8818_v51  ;;  %v9062_v55 = vpack.c.bf16 %v3600_v13, %v3599_v3  ;;  %v4059_v51 = vpack.c.bf16 %v4002_v47, %v4001_v7  ;;  %v4005_v7 = vld [vmem:[#allocation2 + $0xd8] sm:$0xff] }
 0x346   : > { %v3430_v45 = vpop.f32.mrf.mxu0 }
 0x347   : > { %3662 = vst [vmem:[#allocation2 + $0x141] sm:$0xff] %v3598_v52  ;;  %v3603_v38 = vmax.f32 %v3439_v31, 0.0  ;;  %v3431_v22 = vadd.f32 %v3430_v45, %v8804_v24  ;;  %v9065_v34 = vpack.c.bf16 %v3598_v52, %v3597_v63  ;;  %v7355_v24 = vld [vmem:[%s9868_s6 + $0x160] sm:$0xff]  }
 0x348   : > { %v7112_v6 = vpop.f32.mrf.mxu0  ;;  %5749 = vmatpush2.bf16.msra.mxu1 %v7355_v24  ;;  %v7357_v24 = vld [vmem:[%s9868_s6 + $0x158] sm:$0xff]  }
 0x349   : > { %3667 = vst [vmem:[#allocation2 + $0x181] sm:$0xff] %v3603_v38  ;;  %v3601_v9 = vmax.f32 %v3431_v22, 0.0  ;;  %v3442_v21 = vadd.f32 %v7112_v6, %v8825_v28  ;;  %5229 = vmatmul.mubr.bf16.gmra.mxu1 %v4058_v44  ;;  %5750 = vmatprep.subr.bf16.mxu1 %v9883_v57  ;;  %v4006_v38 = vld [vmem:[#allocation2 + $0xe0] sm:$0xff] }
 0x34a   : > { %v3433_v39 = vpop.f32.mrf.mxu0  ;;  %5510 = vmatmul.mubr.bf16.gmra.mxu0 %v3962_v26  ;;  %5236 = vmatprep.mubr.bf16.mxu1 %v9030_v59  ;;  %v3906_v59 = vld [vmem:[#allocation2 + $0x9a] sm:$0xff] }
 0x34b   : > { %3665 = vst [vmem:[#allocation2 + $0x169] sm:$0xff] %v3601_v9  ;;  %v3604_v58 = vmax.f32 %v3442_v21, 0.0  ;;  %v3434_v61 = vadd.f32 %v3433_v39, %v8811_v0  ;;  %5517 = vmatprep.mubr.bf16.mxu0 %v4059_v51  ;;  %v4004_v0 = vld [vmem:[#allocation2 + $0xc8] sm:$0xff]  ;;  %v3963_v5 = vpack.c.bf16 %v3906_v59, %v3905_v25 }
 0x34c   : > { %v7115_v28 = vpop.f32.mrf.mxu0  ;;  %v4060_v44 = vpack.c.bf16 %v4004_v0, %v4003_v1  ;;  %5751 = vmatpush2.bf16.msra.mxu1 %v7357_v24  ;;  %v3914_v24 = vld [vmem:[#allocation2 + $0xfa] sm:$0xff] }
 0x34d   : > { %3668 = vst [vmem:[#allocation2 + $0x189] sm:$0xff] %v3604_v58  ;;  %v3602_v14 = vmax.f32 %v3434_v61, 0.0  ;;  %v3455_v11 = vadd.f32 %v7115_v28, %v8850_v42  ;;  %5752 = vmatprep.subr.bf16.mxu1 %v9883_v57 }
 0x34e   : > { %v3446_v10 = vpop.f32.mrf.mxu0 }
 0x34f   : > { %3666 = vst [vmem:[#allocation2 + $0x171] sm:$0xff] %v3602_v14  ;;  %v3607_v3 = vmax.f32 %v3455_v11, 0.0  ;;  %v3447_v37 = vadd.f32 %v3446_v10, %v8836_v35  ;;  %v9080_v63 = vpack.c.bf16 %v3602_v14, %v3601_v9  ;;  %v3909_v11 = vld [vmem:[#allocation2 + $0xc2] sm:$0xff] }
 0x350   : > { %v7116_v36 = vpop.f32.mrf.mxu0 }
 0x351   : > { %3671 = vst [vmem:[#allocation2 + $0x1e1] sm:$0xff] %v3607_v3  ;;  %v3605_v42 = vmax.f32 %v3447_v37, 0.0  ;;  %v3458_v15 = vadd.f32 %v7116_v36, %v8857_v43  ;;  %5237 = vmatmul.mubr.bf16.gmra.mxu1 %v4059_v51  ;;  %v9085_v35 = vpop.f32.mrf.mxu1  ;;  %v3908_v43 = vld [vmem:[#allocation2 + $0xb2] sm:$0xff]  ;;  %v4061_v51 = vpack.c.bf16 %v4006_v38, %v4005_v7  ;;  %v4009_v38 = vld [vmem:[#allocation2 + $0x108] sm:$0xff] }
 0x352   : > { %v3449_v33 = vpop.f32.mrf.mxu0  ;;  %5518 = vmatmul.mubr.bf16.gmra.mxu0 %v3963_v5  ;;  %5244 = vmatprep.mubr.bf16.mxu1 %v9025_v40  ;;  %v3964_v26 = vpack.c.bf16 %v3908_v43, %v3907_v2  ;;  %v4007_v36 = vld [vmem:[#allocation2 + $0xf0] sm:$0xff] }
 0x353   : > { %3669 = vst [vmem:[#allocation2 + $0x1c9] sm:$0xff] %v3605_v42  ;;  %v3608_v13 = vmax.f32 %v3458_v15, 0.0  ;;  %v3450_v23 = vadd.f32 %v3449_v33, %v8843_v20  ;;  %5525 = vmatprep.mubr.bf16.mxu0 %v4060_v44  ;;  %v5184_v45 = vpop.f32.mrf.mxu1 }
 0x354   : > { %v7119_v60 = vpop.f32.mrf.mxu0 }
 0x355   : > { %3672 = vst [vmem:[#allocation2 + $0x1e9] sm:$0xff] %v3608_v13  ;;  %v3606_v52 = vmax.f32 %v3450_v23, 0.0  ;;  %v3471_v31 = vadd.f32 %v7119_v60, %v8877_v46  ;;  %v9088_v27 = vpack.c.bf16 %v3608_v13, %v3607_v3  ;;  %v9091_v20 = vpop.f32.mrf.mxu1  ;;  %v3911_v60 = vld [vmem:[#allocation2 + $0xda] sm:$0xff] }
 0x356   : > { %v3462_v47 = vpop.f32.mrf.mxu0 }
 0x357   : > { %3670 = vst [vmem:[#allocation2 + $0x1d1] sm:$0xff] %v3606_v52  ;;  %v3611_v40 = vmax.f32 %v3471_v31, 0.0  ;;  %v3463_v22 = vadd.f32 %v3462_v47, %v8864_v41  ;;  %v9093_v9 = vpack.c.bf16 %v3606_v52, %v3605_v42  ;;  %v5187_v39 = vpop.f32.mrf.mxu1  ;;  %v3912_v52 = vld [vmem:[#allocation2 + $0xe2] sm:$0xff] }
 0x358   : > { %v7120_v6 = vpop.f32.mrf.mxu0  ;;  %v3966_v47 = vpack.c.bf16 %v3912_v52, %v3911_v60  ;;  %v3916_v60 = vld [vmem:[#allocation2 + $0x112] sm:$0xff] }
 0x359   : > { %3675 = vst [vmem:[#allocation2 + $0x211] sm:$0xff] %v3611_v40  ;;  %v3609_v46 = vmax.f32 %v3463_v22, 0.0  ;;  %v3474_v21 = vadd.f32 %v7120_v6, %v8880_v30  ;;  %5245 = vmatmul.mubr.bf16.gmra.mxu1 %v4060_v44  ;;  %v7358_v30 = vld [vmem:[%s9868_s6 + $0x198] sm:$0xff]   ;;  %v9950_v22 = vld [vmem:[#allocation4_spill] sm:$0xff] }
 0x35a   : > { %v3465_v58 = vpop.f32.mrf.mxu0  ;;  %5526 = vmatmul.mubr.bf16.gmra.mxu0 %v3964_v26  ;;  %5252 = vmatprep.mubr.bf16.mxu1 %v9039_v53  ;;  %v3910_v53 = vld [vmem:[#allocation2 + $0xca] sm:$0xff] }
 0x35b   : > { %3673 = vst [vmem:[#allocation2 + $0x1f9] sm:$0xff] %v3609_v46  ;;  %v3612_v41 = vmax.f32 %v3474_v21, 0.0  ;;  %v3466_v61 = vadd.f32 %v3465_v58, %v8872_v48  ;;  %5533 = vmatprep.mubr.bf16.mxu0 %v4061_v51  ;;  %6024 = vmatpush1.bf16.msra.mxu0 %v7358_v30  ;;  %v4008_v48 = vld [vmem:[#allocation2 + $0xf8] sm:$0xff]  ;;  %v3965_v37 = vpack.c.bf16 %v3910_v53, %v3909_v11  ;;  %v9952_v58 = vld [vmem:[#allocation7_spill] sm:$0xff]  ;;  %v7360_v53 = vld [vmem:[%s9868_s6 + $0x190] sm:$0xff]  }
 0x35c   : > { %v7123_v49 = vpop.f32.mrf.mxu0  ;;  %6025 = vmatprep.subr.bf16.mxu0 %v9883_v57  ;;  %v4062_v42 = vpack.c.bf16 %v4008_v48, %v4007_v36 }
 0x35d   : > { %3676 = vst [vmem:[#allocation2 + $0x219] sm:$0xff] %v3612_v41  ;;  %v3610_v28 = vmax.f32 %v3466_v61, 0.0  ;;  %v3487_v14 = vadd.f32 %v7123_v49, %v8897_v18  ;;  %v9105_v59 = vpack.c.bf16 %v3612_v41, %v3611_v40  ;;  %v3913_v61 = vld [vmem:[#allocation2 + $0xf2] sm:$0xff]  ;;  %v4012_v49 = vld [vmem:[#allocation2 + $0x128] sm:$0xff] }
 0x35e   : > { %v3478_v25 = vpop.f32.mrf.mxu0  ;;  %v3967_v48 = vpack.c.bf16 %v3914_v24, %v3913_v61  ;;  %v4016_v61 = vld [vmem:[#allocation2 + $0x158] sm:$0xff] }
 0x35f   : > { %3674 = vst [vmem:[#allocation2 + $0x201] sm:$0xff] %v3610_v28  ;;  %v3615_v10 = vmax.f32 %v3487_v14, 0.0  ;;  %v3479_v0 = vadd.f32 %v3478_v25, %v8885_v54  ;;  %v9110_v18 = vpack.c.bf16 %v3610_v28, %v3609_v46  ;;  %v9951_v46 = vld [vmem:[#allocation3_spill] sm:$0xff]  ;;  %v9953_v14 = vld [vmem:[#allocation5_spill] sm:$0xff]  ;;  %6026 = vmatpush1.bf16.msra.mxu0 %v7360_v53 }
 0x360   : > { %v7124_v3 = vpop.f32.mrf.mxu0  ;;  %6027 = vmatprep.subr.bf16.mxu0 %v9883_v57  ;;  %v4015_v53 = vld [vmem:[#allocation2 + $0x150] sm:$0xff] }
 0x361   : > { %3679 = vst [vmem:[#allocation2 + $0x241] sm:$0xff] %v3615_v10  ;;  %v3613_v5 = vmax.f32 %v3479_v0, 0.0  ;;  %v3490_v1 = vadd.f32 %v7124_v3, %v8900_v32  ;;  %5253 = vmatmul.mubr.bf16.gmra.mxu1 %v4061_v51  ;;  %v4010_v32 = vld [vmem:[#allocation2 + $0x110] sm:$0xff] }
 0x362   : > { %v3481_v15 = vpop.f32.mrf.mxu0  ;;  %5534 = vmatmul.mubr.bf16.gmra.mxu0 %v3965_v37  ;;  %5260 = vmatprep.mubr.bf16.mxu1 %v9036_v4  ;;  %v9954_v37 = vld [vmem:[#allocation8_spill] sm:$0xff] }
 0x363   : > { %3677 = vst [vmem:[#allocation2 + $0x229] sm:$0xff] %v3613_v5  ;;  %v3616_v44 = vmax.f32 %v3490_v1, 0.0  ;;  %v3482_v33 = vadd.f32 %v3481_v15, %v8892_v17  ;;  %5541 = vmatprep.mubr.bf16.mxu0 %v4062_v42  ;;  %v9955_v15 = vld [vmem:[#allocation6_spill] sm:$0xff] }
 0x364   : > { %v7127_v54 = vpop.f32.mrf.mxu0 }
 0x365   : > { %3680 = vst [vmem:[#allocation2 + $0x249] sm:$0xff] %v3616_v44  ;;  %v3614_v13 = vmax.f32 %v3482_v33, 0.0  ;;  %v3503_v23 = vadd.f32 %v7127_v54, %v8915_v16  ;;  %v9116_v2 = vpack.c.bf16 %v3616_v44, %v3615_v10  ;;  %v4063_v16 = vpack.c.bf16 %v4010_v32, %v4009_v38  ;;  %v4011_v10 = vld [vmem:[#allocation2 + $0x120] sm:$0xff]  ;;  %v4013_v38 = vld [vmem:[#allocation2 + $0x138] sm:$0xff] }
 0x366   : > { %v3494_v31 = vpop.f32.mrf.mxu0 }
 0x367   : > { %3678 = vst [vmem:[#allocation2 + $0x231] sm:$0xff] %v3614_v13  ;;  %v3619_v43 = vmax.f32 %v3503_v23, 0.0  ;;  %v3495_v4 = vadd.f32 %v3494_v31, %v8905_v50  ;;  %v9119_v17 = vpack.c.bf16 %v3614_v13, %v3613_v5  ;;  %v7359_v50 = vld [vmem:[%s9868_s6 + $0x150] sm:$0xff]   ;;  %v4064_v5 = vpack.c.bf16 %v4012_v49, %v4011_v10  ;;  %v4014_v31 = vld [vmem:[#allocation2 + $0x140] sm:$0xff] }
 0x368   : > { %v7128_v45 = vpop.f32.mrf.mxu0  ;;  %5753 = vmatpush2.bf16.msra.mxu1 %v7359_v50  ;;  %v3915_v23 = vld [vmem:[#allocation2 + $0x10a] sm:$0xff]  ;;  %v9958_v49 = vld [vmem:[#allocation11_spill] sm:$0xff] }
 0x369   : > { %3683 = vst [vmem:[#allocation2 + $0x271] sm:$0xff] %v3619_v43  ;;  %v3617_v40 = vmax.f32 %v3495_v4, 0.0  ;;  %v3506_v6 = vadd.f32 %v7128_v45, %v9950_v22  ;;  %5261 = vmatmul.mubr.bf16.gmra.mxu1 %v4062_v42  ;;  %5754 = vmatprep.subr.bf16.mxu1 %v9883_v57  ;;  %v7361_v50 = vld [vmem:[%s9868_s6 + $0x148] sm:$0xff]   ;;  %v9959_v10 = vld [vmem:[#allocation13_spill] sm:$0xff] }
 0x36a   : > { %v3497_v26 = vpop.f32.mrf.mxu0  ;;  %5542 = vmatmul.mubr.bf16.gmra.mxu0 %v3966_v47  ;;  %5268 = vmatprep.mubr.bf16.mxu1 %v9056_v62  ;;  %v3968_v47 = vpack.c.bf16 %v3916_v60, %v3915_v23  ;;  %v3920_v23 = vld [vmem:[#allocation2 + $0x142] sm:$0xff]  ;;  %v4018_v60 = vld [vmem:[#allocation2 + $0x170] sm:$0xff] }
 0x36b   : > { %3681 = vst [vmem:[#allocation2 + $0x259] sm:$0xff] %v3617_v40  ;;  %v3620_v7 = vmax.f32 %v3506_v6, 0.0  ;;  %v3498_v21 = vadd.f32 %v3497_v26, %v9951_v46  ;;  %5549 = vmatprep.mubr.bf16.mxu0 %v4063_v16  ;;  %v7362_v26 = vld [vmem:[%s9868_s6 + $0x188] sm:$0xff]   ;;  %v9957_v46 = vld [vmem:[#allocation10_spill] sm:$0xff] }
 0x36c   : > { %v7131_v51 = vpop.f32.mrf.mxu0  ;;  %6028 = vmatpush1.bf16.msra.mxu0 %v7362_v26  ;;  %5755 = vmatpush2.bf16.msra.mxu1 %v7361_v50 }
 0x36d   : > { %3684 = vst [vmem:[#allocation2 + $0x279] sm:$0xff] %v3620_v7  ;;  %v3618_v39 = vmax.f32 %v3498_v21, 0.0  ;;  %v3519_v41 = vadd.f32 %v7131_v51, %v9952_v58  ;;  %v9128_v62 = vpack.c.bf16 %v3620_v7, %v3619_v43  ;;  %v9956_v43 = vld [vmem:[#allocation9_spill] sm:$0xff]  ;;  %6029 = vmatprep.subr.bf16.mxu0 %v9883_v57  ;;  %5756 = vmatprep.subr.bf16.mxu1 %v9883_v57 }
 0x36e   : > { %v3510_v30 = vpop.f32.mrf.mxu0  ;;  %v3918_v58 = vld [vmem:[#allocation2 + $0x12a] sm:$0xff] }
 0x36f   : > { %3682 = vst [vmem:[#allocation2 + $0x261] sm:$0xff] %v3618_v39  ;;  %v3623_v28 = vmax.f32 %v3519_v41, 0.0  ;;  %v3511_v11 = vadd.f32 %v3510_v30, %v9953_v14  ;;  %v9135_v0 = vpack.c.bf16 %v3618_v39, %v3617_v40  ;;  %v7363_v14 = vld [vmem:[%s9868_s6 + $0x180] sm:$0xff]  }
 0x370   : > { %v7132_v25 = vpop.f32.mrf.mxu0  ;;  %6030 = vmatpush1.bf16.msra.mxu0 %v7363_v14  ;;  %v4019_v14 = vld [vmem:[#allocation2 + $0x180] sm:$0xff] }
 0x371   : > { %3687 = vst [vmem:[#allocation2 + $0x2a1] sm:$0xff] %v3623_v28  ;;  %v3621_v3 = vmax.f32 %v3511_v11, 0.0  ;;  %v3522_v36 = vadd.f32 %v7132_v25, %v9954_v37  ;;  %5269 = vmatmul.mubr.bf16.gmra.mxu1 %v4063_v16  ;;  %v4066_v37 = vpack.c.bf16 %v4016_v61, %v4015_v53  ;;  %6031 = vmatprep.subr.bf16.mxu0 %v9883_v57  ;;  %v7369_v53 = vld [vmem:[%s9868_s6 + $0x1d8] sm:$0xff]  }
 0x372   : > { %v3513_v1 = vpop.f32.mrf.mxu0  ;;  %5550 = vmatmul.mubr.bf16.gmra.mxu0 %v3967_v48  ;;  %5276 = vmatprep.mubr.bf16.mxu1 %v9051_v56 }
 0x373   : > { %3685 = vst [vmem:[#allocation2 + $0x289] sm:$0xff] %v3621_v3  ;;  %v3624_v42 = vmax.f32 %v3522_v36, 0.0  ;;  %v3514_v44 = vadd.f32 %v3513_v1, %v9955_v15  ;;  %5557 = vmatprep.mubr.bf16.mxu0 %v4064_v5 }
 0x374   : > { %v7135_v33 = vpop.f32.mrf.mxu0 }
 0x375   : > { %3688 = vst [vmem:[#allocation2 + $0x2a9] sm:$0xff] %v3624_v42  ;;  %v3622_v54 = vmax.f32 %v3514_v44, 0.0  ;;  %v3535_v13 = vadd.f32 %v7135_v33, %v8947_v19  ;;  %v9142_v32 = vpack.c.bf16 %v3624_v42, %v3623_v28  ;;  %v4065_v19 = vpack.c.bf16 %v4014_v31, %v4013_v38  ;;  %v9960_v42 = vld [vmem:[#allocation12_spill] sm:$0xff] }
 0x376   : > { %v3526_v52 = vpop.f32.mrf.mxu0 }
 0x377   : > { %3686 = vst [vmem:[#allocation2 + $0x291] sm:$0xff] %v3622_v54  ;;  %v3627_v56 = vmax.f32 %v3535_v13, 0.0  ;;  %v3527_v4 = vadd.f32 %v3526_v52, %v9956_v43  ;;  %v9145_v40 = vpack.c.bf16 %v3622_v54, %v3621_v3  ;;  %v3919_v13 = vld [vmem:[#allocation2 + $0x13a] sm:$0xff] }
 0x378   : > { %v7136_v45 = vpop.f32.mrf.mxu0 }
 0x379   : > { %3691 = vst [vmem:[#allocation2 + $0x2d1] sm:$0xff] %v3627_v56  ;;  %v3625_v22 = vmax.f32 %v3527_v4, 0.0  ;;  %v3538_v6 = vadd.f32 %v7136_v45, %v8950_v12  ;;  %5277 = vmatmul.mubr.bf16.gmra.mxu1 %v4064_v5  ;;  %v7364_v5 = vld [vmem:[%s9868_s6 + $0x1f8] sm:$0xff]   ;;  %v7365_v4 = vld [vmem:[%s9868_s6 + $0x1f0] sm:$0xff]  }
 0x37a   : > { %v3529_v16 = vpop.f32.mrf.mxu0  ;;  %5558 = vmatmul.mubr.bf16.gmra.mxu0 %v3968_v47  ;;  %5284 = vmatprep.mubr.bf16.mxu1 %v9065_v34  ;;  %v3917_v34 = vld [vmem:[#allocation2 + $0x122] sm:$0xff]  ;;  %v3970_v47 = vpack.c.bf16 %v3920_v23, %v3919_v13  ;;  %v9216_v13 = vld [vmem:[%s9868_s6 + $0x238] sm:$0xff]  }
 0x37b   : > { %3689 = vst [vmem:[#allocation2 + $0x2b9] sm:$0xff] %v3625_v22  ;;  %v3628_v7 = vmax.f32 %v3538_v6, 0.0  ;;  %v3530_v21 = vadd.f32 %v3529_v16, %v9957_v46  ;;  %5565 = vmatprep.mubr.bf16.mxu0 %v4065_v19  ;;  %v3969_v11 = vpack.c.bf16 %v3918_v58, %v3917_v34  ;;  %6032 = vmatpush2.bf16.msra.mxu0 %v7364_v5  ;;  %v9962_v6 = vld [vmem:[#allocation16_spill] sm:$0xff]  ;;  %v3922_v58 = vld [vmem:[#allocation2 + $0x15a] sm:$0xff]  ;;  %v7370_v5 = vld [vmem:[%s9868_s6 + $0x1d0] sm:$0xff]  }
 0x37c   : > { %v7139_v12 = vpop.f32.mrf.mxu0  ;;  %6033 = vmatprep.subr.bf16.mxu0 %v9883_v57 }
 0x37d   : > { %3692 = vst [vmem:[#allocation2 + $0x2d9] sm:$0xff] %v3628_v7  ;;  %v3626_v51 = vmax.f32 %v3530_v21, 0.0  ;;  %v3551_v39 = vadd.f32 %v7139_v12, %v8963_v29  ;;  %v9158_v24 = vpack.c.bf16 %v3628_v7, %v3627_v56  ;;  %v9961_v56 = vld [vmem:[#allocation14_spill] sm:$0xff]  ;;  %v7367_v7 = vld [vmem:[%s9868_s6 + $0x1e8] sm:$0xff]   ;;  %v9963_v21 = vld [vmem:[#allocation15_spill] sm:$0xff] }
 0x37e   : > { %v3542_v41 = vpop.f32.mrf.mxu0  ;;  %v3829_v12 = vld [vmem:[#allocation2 + $0x1b1] sm:$0xff] }
 0x37f   : > { %3690 = vst [vmem:[#allocation2 + $0x2c1] sm:$0xff] %v3626_v51  ;;  %v3631_v30 = vmax.f32 %v3551_v39, 0.0  ;;  %v3543_v28 = vadd.f32 %v3542_v41, %v9958_v49  ;;  %v9165_v25 = vpack.c.bf16 %v3626_v51, %v3625_v22  ;;  %6034 = vmatpush2.bf16.msra.mxu0 %v7365_v4  ;;  %v3830_v51 = vld [vmem:[#allocation2 + $0x1b9] sm:$0xff]  ;;  %v4020_v41 = vld [vmem:[#allocation2 + $0x188] sm:$0xff] }
 0x380   : > { %v7140_v29 = vpop.f32.mrf.mxu0  ;;  %6035 = vmatprep.subr.bf16.mxu0 %v9883_v57  ;;  %v7366_v39 = vld [vmem:[%s9868_s6 + $0x140] sm:$0xff]   ;;  %v3877_v61 = vpack.c.bf16 %v3830_v51, %v3829_v12 }
 0x381   : > { %3695 = vst [vmem:[#allocation2 + $0x301] sm:$0xff] %v3631_v30  ;;  %v3629_v48 = vmax.f32 %v3543_v28, 0.0  ;;  %v3554_v3 = vadd.f32 %v7140_v29, %v9959_v10  ;;  %5285 = vmatmul.mubr.bf16.gmra.mxu1 %v4065_v19  ;;  %v7368_v49 = vld [vmem:[%s9868_s6 + $0x1e0] sm:$0xff]   ;;  %v4068_v29 = vpack.c.bf16 %v4020_v41, %v4019_v14  ;;  %v3936_v41 = vld [vmem:[#allocation2 + $0x232] sm:$0xff] }
 0x382   : > { %v3545_v36 = vpop.f32.mrf.mxu0  ;;  %5566 = vmatmul.mubr.bf16.gmra.mxu0 %v3969_v11  ;;  %5292 = vmatprep.mubr.bf16.mxu1 %v9062_v55  ;;  %v3733_v11 = vld [vmem:[#allocation2 + $0x1b0] sm:$0xff]  ;;  %v4026_v4 = vld [vmem:[#allocation2 + $0x200] sm:$0xff] }
 0x383   : > { %3693 = vst [vmem:[#allocation2 + $0x2e9] sm:$0xff] %v3629_v48  ;;  %v3632_v1 = vmax.f32 %v3554_v3, 0.0  ;;  %v3546_v15 = vadd.f32 %v3545_v36, %v9960_v42  ;;  %5573 = vmatprep.mubr.bf16.mxu0 %v4066_v37  ;;  %5757 = vmatpush2.bf16.msra.mxu1 %v7366_v39  ;;  %v3923_v3 = vld [vmem:[#allocation2 + $0x16a] sm:$0xff]  ;;  %v3934_v51 = vld [vmem:[#allocation2 + $0x21a] sm:$0xff] }
 0x384   : > { %v7143_v44 = vpop.f32.mrf.mxu0  ;;  %6036 = vmatpush2.bf16.msra.mxu0 %v7367_v7  ;;  %v4022_v36 = vld [vmem:[#allocation2 + $0x1d0] sm:$0xff]  ;;  %v4021_v42 = vld [vmem:[#allocation2 + $0x1c8] sm:$0xff]  ;;  %7145 = vmatprep.subr.bf16.mxu1 %v9216_v13 }
 0x385   : > { %3696 = vst [vmem:[#allocation2 + $0x309] sm:$0xff] %v3632_v1  ;;  %v3630_v33 = vmax.f32 %v3546_v15, 0.0  ;;  %v3567_v54 = vadd.f32 %v7143_v44, %v8979_v8  ;;  %v9175_v52 = vpack.c.bf16 %v3632_v1, %v3631_v30  ;;  %v4017_v8 = vld [vmem:[#allocation2 + $0x168] sm:$0xff]  ;;  %6037 = vmatprep.subr.bf16.mxu0 %v9883_v57  ;;  %v4069_v15 = vpack.c.bf16 %v4022_v36, %v4021_v42  ;;  %v3942_v42 = vld [vmem:[#allocation2 + $0x27a] sm:$0xff] }
 0x386   : > { %v3558_v55 = vpop.f32.mrf.mxu0  ;;  %v4067_v16 = vpack.c.bf16 %v4018_v60, %v4017_v8  ;;  %v7372_v44 = vld [vmem:[%s9868_s6 + $0x1c8] sm:$0xff]   ;;  %v4023_v60 = vld [vmem:[#allocation2 + $0x1e0] sm:$0xff] }
 0x387   : > { %3694 = vst [vmem:[#allocation2 + $0x2f1] sm:$0xff] %v3630_v33  ;;  %v3635_v31 = vmax.f32 %v3567_v54, 0.0  ;;  %v3559_v43 = vadd.f32 %v3558_v55, %v9961_v56  ;;  %v9182_v38 = vpack.c.bf16 %v3630_v33, %v3629_v48  ;;  %v7387_v48 = vld [vmem:[#allocation2 + $0x8] sm:$0xff]  ;;  %v3925_v33 = vld [vmem:[#allocation2 + $0x1b2] sm:$0xff]  ;;  %v3926_v54 = vld [vmem:[#allocation2 + $0x1ba] sm:$0xff] }
 0x388   : > { %v7144_v45 = vpop.f32.mrf.mxu0  ;;  %6038 = vmatpush2.bf16.msra.mxu0 %v7368_v49  ;;  %v3781_v10 = vpack.c.bf16 %v7387_v48, %v3733_v11  ;;  %v3973_v23 = vpack.c.bf16 %v3926_v54, %v3925_v33  ;;  %v4024_v55 = vld [vmem:[#allocation2 + $0x1e8] sm:$0xff]  ;;  %v4036_v11 = vld [vmem:[#allocation2 + $0x278] sm:$0xff]  ;;  %v4035_v48 = vld [vmem:[#allocation2 + $0x270] sm:$0xff] }
 0x389   : > { %3699 = vst [vmem:[#allocation2 + $0x331] sm:$0xff] %v3635_v31  ;;  %v3633_v22 = vmax.f32 %v3559_v43, 0.0  ;;  %v3570_v19 = vadd.f32 %v7144_v45, %v9962_v6  ;;  %5293 = vmatmul.mubr.bf16.gmra.mxu1 %v4066_v37  ;;  %6039 = vmatprep.subr.bf16.mxu0 %v9883_v57  ;;  %v3924_v37 = vld [vmem:[#allocation2 + $0x172] sm:$0xff]  ;;  %v4070_v31 = vpack.c.bf16 %v4024_v55, %v4023_v60  ;;  %v3927_v56 = vld [vmem:[#allocation2 + $0x1ca] sm:$0xff]  ;;  %v3932_v7 = vld [vmem:[#allocation2 + $0x202] sm:$0xff] }
 0x38a   : > { %v3561_v26 = vpop.f32.mrf.mxu0  ;;  %5574 = vmatmul.mubr.bf16.gmra.mxu0 %v3970_v47  ;;  %5300 = vmatprep.mubr.bf16.mxu1 %v9080_v63  ;;  %v3921_v63 = vld [vmem:[#allocation2 + $0x152] sm:$0xff]  ;;  %v3972_v1 = vpack.c.bf16 %v3924_v37, %v3923_v3  ;;  %v4032_v39 = vld [vmem:[#allocation2 + $0x248] sm:$0xff]  ;;  %v4039_v33 = vld [vmem:[#allocation2 + $0x2a0] sm:$0xff] }
 0x38b   : > { %3697 = vst [vmem:[#allocation2 + $0x319] sm:$0xff] %v3633_v22  ;;  %v3636_v46 = vmax.f32 %v3570_v19, 0.0  ;;  %v3562_v50 = vadd.f32 %v3561_v26, %v9963_v21  ;;  %5581 = vmatprep.mubr.bf16.mxu0 %v4067_v16  ;;  %v3971_v28 = vpack.c.bf16 %v3922_v58, %v3921_v63  ;;  %v3928_v43 = vld [vmem:[#allocation2 + $0x1d2] sm:$0xff]  ;;  %v4031_v63 = vld [vmem:[#allocation2 + $0x240] sm:$0xff] }
 0x38c   : > { %6040 = vmatpush2.bf16.msra.mxu0 %v7369_v53  ;;  %v3974_v45 = vpack.c.bf16 %v3928_v43, %v3927_v56  ;;  %v4025_v47 = vld [vmem:[#allocation2 + $0x1f8] sm:$0xff]  ;;  %v4074_v58 = vpack.c.bf16 %v4032_v39, %v4031_v63  ;;  %v3940_v3 = vld [vmem:[#allocation2 + $0x262] sm:$0xff]  ;;  %v4038_v37 = vld [vmem:[#allocation2 + $0x290] sm:$0xff] }
 0x38d   : > { %3700 = vst [vmem:[#allocation2 + $0x339] sm:$0xff] %v3636_v46  ;;  %v3634_v34 = vmax.f32 %v3562_v50, 0.0  ;;  %6041 = vmatprep.subr.bf16.mxu0 %v9883_v57  ;;  %v4071_v8 = vpack.c.bf16 %v4026_v4, %v4025_v47  ;;  %v4028_v6 = vld [vmem:[#allocation2 + $0x218] sm:$0xff]  ;;  %v4030_v46 = vld [vmem:[#allocation2 + $0x230] sm:$0xff]  ;;  %v4029_v50 = vld [vmem:[#allocation2 + $0x228] sm:$0xff] }
 0x38e   : > { %v4073_v12 = vpack.c.bf16 %v4030_v46, %v4029_v50  ;;  %v3943_v4 = vld [vmem:[#allocation2 + $0x28a] sm:$0xff]  ;;  %v4044_v39 = vld [vmem:[#allocation2 + $0x2d8] sm:$0xff] }
 0x38f   : > { %3698 = vst [vmem:[#allocation2 + $0x321] sm:$0xff] %v3634_v34  ;;  %v9195_v30 = vpack.c.bf16 %v3634_v34, %v3633_v22  ;;  %v3930_v22 = vld [vmem:[#allocation2 + $0x1ea] sm:$0xff] }
 0x390   : > { %6042 = vmatpush2.bf16.msra.mxu0 %v7370_v5  ;;  %v4037_v5 = vld [vmem:[#allocation2 + $0x288] sm:$0xff] }
 0x391   : > { %5301 = vmatmul.mubr.bf16.gmra.mxu1 %v4067_v16  ;;  %6043 = vmatprep.subr.bf16.mxu0 %v9883_v57  ;;  %v4027_v16 = vld [vmem:[#allocation2 + $0x210] sm:$0xff] }
 0x392   : > { %5582 = vmatmul.mubr.bf16.gmra.mxu0 %v3971_v28  ;;  %5308 = vmatprep.mubr.bf16.mxu1 %v3877_v61  ;;  %v4072_v26 = vpack.c.bf16 %v4028_v6, %v4027_v16  ;;  %v4034_v61 = vld [vmem:[#allocation2 + $0x260] sm:$0xff]  ;;  %v4033_v28 = vld [vmem:[#allocation2 + $0x258] sm:$0xff] }
 0x393   : > { %5589 = vmatprep.mubr.bf16.mxu0 %v4068_v29  ;;  %v4075_v14 = vpack.c.bf16 %v4034_v61, %v4033_v28  ;;  %v3938_v29 = vld [vmem:[#allocation2 + $0x24a] sm:$0xff] }
 0x394   : > { %6044 = vmatpush2.bf16.msra.mxu0 %v7372_v44 }
 0x395   : > { %6045 = vmatprep.subr.bf16.mxu0 %v9883_v57  ;;  %v3929_v57 = vld [vmem:[#allocation2 + $0x1e2] sm:$0xff] }
 0x396   : > { %v3975_v19 = vpack.c.bf16 %v3930_v22, %v3929_v57 }
 0x399   : > { %5309 = vmatmul.mubr.bf16.gmra.mxu1 %v3781_v10  ;;  %v4076_v10 = vpack.c.bf16 %v4036_v11, %v4035_v48  ;;  %v3947_v48 = vld [vmem:[#allocation2 + $0x2ba] sm:$0xff] }
 0x39a   : > { %5590 = vmatmul.mubr.bf16.gmra.mxu0 %v3972_v1  ;;  %5316 = vmatprep.mubr.bf16.mxu1 %v9093_v9  ;;  %v7373_v9 = vld [vmem:[%s9868_s6 + $0x1c0] sm:$0xff]   ;;  %v4077_v1 = vpack.c.bf16 %v4038_v37, %v4037_v5 }
 0x39b   : > { %5597 = vmatprep.mubr.bf16.mxu0 %v4069_v15  ;;  %6046 = vmatpush2.bf16.msra.mxu0 %v7373_v9 }
 0x3a1   : > { %5317 = vmatmul.mubr.bf16.gmra.mxu1 %v4069_v15  ;;  %v9234_v15 = vld [vmem:[%s9869_s7] ss:$0 sm:$0xff] }
 0x3a2   : > { %5598 = vmatmul.mubr.bf16.gmra.mxu0 %v3973_v23  ;;  %5324 = vmatprep.mubr.bf16.mxu1 %v9088_v27  ;;  %v3931_v27 = vld [vmem:[#allocation2 + $0x1fa] sm:$0xff]  ;;  %v5183_v54 = vadd.f32 %v9234_v15, %v9085_v35  ;;  %v5186_v56 = vadd.f32 %v9234_v15, %v9091_v20 }
 0x3a3   : > { %5605 = vmatprep.mubr.bf16.mxu0 %v4070_v31  ;;  %v3976_v21 = vpack.c.bf16 %v3932_v7, %v3931_v27  ;;  %v4042_v35 = vld [vmem:[#allocation2 + $0x2c0] sm:$0xff] }
 0x3a9   : > { %5325 = vmatmul.mubr.bf16.gmra.mxu1 %v4070_v31 }
 0x3aa   : > { %5606 = vmatmul.mubr.bf16.gmra.mxu0 %v3974_v45  ;;  %5332 = vmatprep.mubr.bf16.mxu1 %v9110_v18  ;;  %v3933_v18 = vld [vmem:[#allocation2 + $0x212] sm:$0xff] }
 0x3ab   : > { %5613 = vmatprep.mubr.bf16.mxu0 %v4071_v8  ;;  %v3977_v34 = vpack.c.bf16 %v3934_v51, %v3933_v18  ;;  %v3944_v45 = vld [vmem:[#allocation2 + $0x292] sm:$0xff]  ;;  %v3946_v18 = vld [vmem:[#allocation2 + $0x2aa] sm:$0xff] }
 0x3ac   : > { %v3982_v6 = vpack.c.bf16 %v3944_v45, %v3943_v4 }
 0x3b1   : > { %5333 = vmatmul.mubr.bf16.gmra.mxu1 %v4071_v8 }
 0x3b2   : > { %5614 = vmatmul.mubr.bf16.gmra.mxu0 %v3975_v19  ;;  %5340 = vmatprep.mubr.bf16.mxu1 %v9105_v59  ;;  %v3935_v59 = vld [vmem:[#allocation2 + $0x22a] sm:$0xff]  ;;  %v4041_v19 = vld [vmem:[#allocation2 + $0x2b8] sm:$0xff] }
 0x3b3   : > { %5621 = vmatprep.mubr.bf16.mxu0 %v4072_v26  ;;  %v3978_v49 = vpack.c.bf16 %v3936_v41, %v3935_v59  ;;  %v4043_v41 = vld [vmem:[#allocation2 + $0x2d0] sm:$0xff] }
 0x3b9   : > { %5341 = vmatmul.mubr.bf16.gmra.mxu1 %v4072_v26  ;;  %v4079_v26 = vpack.c.bf16 %v4042_v35, %v4041_v19 }
 0x3ba   : > { %5622 = vmatmul.mubr.bf16.gmra.mxu0 %v3976_v21  ;;  %5348 = vmatprep.mubr.bf16.mxu1 %v9119_v17  ;;  %v3937_v17 = vld [vmem:[#allocation2 + $0x242] sm:$0xff] }
 0x3bb   : > { %5629 = vmatprep.mubr.bf16.mxu0 %v4073_v12  ;;  %v3979_v53 = vpack.c.bf16 %v3938_v29, %v3937_v17 }
 0x3c1   : > { %5349 = vmatmul.mubr.bf16.gmra.mxu1 %v4073_v12  ;;  %v3945_v12 = vld [vmem:[#allocation2 + $0x2a2] sm:$0xff] }
 0x3c2   : > { %5630 = vmatmul.mubr.bf16.gmra.mxu0 %v3977_v34  ;;  %5356 = vmatprep.mubr.bf16.mxu1 %v9116_v2  ;;  %v3939_v2 = vld [vmem:[#allocation2 + $0x25a] sm:$0xff]  ;;  %v3983_v59 = vpack.c.bf16 %v3946_v18, %v3945_v12 }
 0x3c3   : > { %5637 = vmatprep.mubr.bf16.mxu0 %v4074_v58  ;;  %v3980_v36 = vpack.c.bf16 %v3940_v3, %v3939_v2  ;;  %v4046_v3 = vld [vmem:[#allocation2 + $0x2f0] sm:$0xff]  ;;  %v4050_v12 = vld [vmem:[#allocation2 + $0x320] sm:$0xff] }
 0x3c9   : > { %5357 = vmatmul.mubr.bf16.gmra.mxu1 %v4074_v58 }
 0x3ca   : > { %5638 = vmatmul.mubr.bf16.gmra.mxu0 %v3978_v49  ;;  %5364 = vmatprep.mubr.bf16.mxu1 %v9135_v0  ;;  %v3941_v0 = vld [vmem:[#allocation2 + $0x272] sm:$0xff]  ;;  %v4080_v49 = vpack.c.bf16 %v4044_v39, %v4043_v41 }
 0x3cb   : > { %5645 = vmatprep.mubr.bf16.mxu0 %v4075_v14  ;;  %v3981_v44 = vpack.c.bf16 %v3942_v42, %v3941_v0  ;;  %v4045_v0 = vld [vmem:[#allocation2 + $0x2e8] sm:$0xff] }
 0x3d1   : > { %5365 = vmatmul.mubr.bf16.gmra.mxu1 %v4075_v14 }
 0x3d2   : > { %5646 = vmatmul.mubr.bf16.gmra.mxu0 %v3979_v53  ;;  %5372 = vmatprep.mubr.bf16.mxu1 %v9128_v62  ;;  %v4040_v62 = vld [vmem:[#allocation2 + $0x2a8] sm:$0xff] }
 0x3d3   : > { %5653 = vmatprep.mubr.bf16.mxu0 %v4076_v10  ;;  %v4078_v55 = vpack.c.bf16 %v4040_v62, %v4039_v33  ;;  %v4081_v62 = vpack.c.bf16 %v4046_v3, %v4045_v0  ;;  %v4052_v3 = vld [vmem:[#allocation2 + $0x338] sm:$0xff] }
 0x3d9   : > { %5373 = vmatmul.mubr.bf16.gmra.mxu1 %v4076_v10  ;;  %v3948_v10 = vld [vmem:[#allocation2 + $0x2c2] sm:$0xff] }
 0x3da   : > { %5654 = vmatmul.mubr.bf16.gmra.mxu0 %v3980_v36  ;;  %5380 = vmatprep.mubr.bf16.mxu1 %v9145_v40 }
 0x3db   : > { %5661 = vmatprep.mubr.bf16.mxu0 %v4077_v1 }
 0x3e1   : > { %v5190_v23 = vpop.f32.mrf.mxu1  ;;  %5381 = vmatmul.mubr.bf16.gmra.mxu1 %v4077_v1  ;;  %v3984_v1 = vpack.c.bf16 %v3948_v10, %v3947_v48  ;;  %v3954_v48 = vld [vmem:[#allocation2 + $0x30a] sm:$0xff]  ;;  %v4182_v10 = vld [vmem:[#allocation2 + $0x22] sm:$0xff] }
 0x3e2   : > { %v5471_v9 = vpop.f32.mrf.mxu0  ;;  %5662 = vmatmul.mubr.bf16.gmra.mxu0 %v3981_v44  ;;  %5388 = vmatprep.mubr.bf16.mxu1 %v9142_v32  ;;  %v5191_v32 = vadd.f32 %v9234_v15, %v5190_v23 }
 0x3e3   : > { %v9239_v40 = vadd.f32 %v5471_v9, %v5183_v54  ;;  %5669 = vmatprep.mubr.bf16.mxu0 %v4078_v55  ;;  %v5192_v60 = vpop.f32.mrf.mxu1 }
 0x3e4   : > { %v5473_v31 = vpop.f32.mrf.mxu0  ;;  %v3949_v60 = vld [vmem:[#allocation2 + $0x2d2] sm:$0xff] }
 0x3e5   : > { %v5193_v43 = vpop.f32.mrf.mxu1  ;;  %v3950_v31 = vld [vmem:[#allocation2 + $0x2da] sm:$0xff] }
 0x3e6   : > { %v5474_v47 = vpop.f32.mrf.mxu0  ;;  %v5194_v21 = vadd.f32 %v9234_v15, %v5193_v43  ;;  %v4048_v43 = vld [vmem:[#allocation2 + $0x308] sm:$0xff]  ;;  %v3985_v35 = vpack.c.bf16 %v3950_v31, %v3949_v60  ;;  %v4183_v31 = vld [vmem:[#allocation2 + $0x32] sm:$0xff] }
 0x3e7   : > { %v9243_v8 = vadd.f32 %v5474_v47, %v5186_v56  ;;  %v5195_v57 = vpop.f32.mrf.mxu1  ;;  %v4086_v60 = vld [vmem:[#allocation2 + $0x21] sm:$0xff] }
 0x3e8   : > { %v5476_v22 = vpop.f32.mrf.mxu0  ;;  %v4047_v57 = vld [vmem:[#allocation2 + $0x300] sm:$0xff] }
 0x3e9   : > { %v5198_v16 = vpop.f32.mrf.mxu1  ;;  %5389 = vmatmul.mubr.bf16.gmra.mxu1 %v4078_v55 }
 0x3ea   : > { %v5479_v27 = vpop.f32.mrf.mxu0  ;;  %5670 = vmatmul.mubr.bf16.gmra.mxu0 %v3982_v6  ;;  %5396 = vmatprep.mubr.bf16.mxu1 %v9165_v25  ;;  %v5199_v25 = vadd.f32 %v9234_v15, %v5198_v16  ;;  %v4082_v6 = vpack.c.bf16 %v4048_v43, %v4047_v57 }
 0x3eb   : > { %v9247_v20 = vadd.f32 %v5479_v27, %v5191_v32  ;;  %5677 = vmatprep.mubr.bf16.mxu0 %v4079_v26  ;;  %v5200_v7 = vpop.f32.mrf.mxu1 }
 0x3ec   : > { %v5481_v46 = vpop.f32.mrf.mxu0 }
 0x3ed   : > { %v5201_v50 = vpop.f32.mrf.mxu1  ;;  %v3951_v46 = vld [vmem:[#allocation2 + $0x2ea] sm:$0xff] }
 0x3ee   : > { %v5482_v51 = vpop.f32.mrf.mxu0  ;;  %v5202_v11 = vadd.f32 %v9234_v15, %v5201_v50 }
 0x3ef   : > { %v9250_v34 = vadd.f32 %v5482_v51, %v5194_v21  ;;  %v5203_v63 = vpop.f32.mrf.mxu1  ;;  %v3952_v21 = vld [vmem:[#allocation2 + $0x2f2] sm:$0xff] }
 0x3f0   : > { %v5484_v58 = vpop.f32.mrf.mxu0  ;;  %v3986_v63 = vpack.c.bf16 %v3952_v21, %v3951_v46  ;;  %v4373_v46 = vld [vmem:[#allocation2 + $0x31] sm:$0xff] }
 0x3f1   : > { %v5206_v61 = vpop.f32.mrf.mxu1  ;;  %5397 = vmatmul.mubr.bf16.gmra.mxu1 %v4079_v26  ;;  %v4049_v58 = vld [vmem:[#allocation2 + $0x318] sm:$0xff]  ;;  %v7374_v21 = vld [vmem:[%s9868_s6 + $0x230] sm:$0xff]  }
 0x3f2   : > { %v5487_v28 = vpop.f32.mrf.mxu0  ;;  %5678 = vmatmul.mubr.bf16.gmra.mxu0 %v3983_v59  ;;  %5404 = vmatprep.mubr.bf16.mxu1 %v9158_v24  ;;  %v5207_v24 = vadd.f32 %v9234_v15, %v5206_v61  ;;  %v4083_v41 = vpack.c.bf16 %v4050_v12, %v4049_v58 }
 0x3f3   : > { %v9254_v14 = vadd.f32 %v5487_v28, %v5199_v25  ;;  %5685 = vmatprep.mubr.bf16.mxu0 %v4080_v49  ;;  %v5208_v17 = vpop.f32.mrf.mxu1 }
 0x3f4   : > { %v5489_v29 = vpop.f32.mrf.mxu0  ;;  %v4181_v17 = vld [vmem:[#allocation2 + $0x1a] sm:$0xff] }
 0x3f5   : > { %v5209_v53 = vpop.f32.mrf.mxu1 }
 0x3f6   : > { %v5490_v2 = vpop.f32.mrf.mxu0  ;;  %v5210_v55 = vadd.f32 %v9234_v15, %v5209_v53  ;;  %v3953_v53 = vld [vmem:[#allocation2 + $0x302] sm:$0xff] }
 0x3f7   : > { %v9257_v37 = vadd.f32 %v5490_v2, %v5202_v11  ;;  %v5211_v36 = vpop.f32.mrf.mxu1  ;;  %v3987_v0 = vpack.c.bf16 %v3954_v48, %v3953_v53 }
 0x3f8   : > { %v5492_v5 = vpop.f32.mrf.mxu0 }
 0x3f9   : > { %v5214_v42 = vpop.f32.mrf.mxu1  ;;  %5405 = vmatmul.mubr.bf16.gmra.mxu1 %v4080_v49 }
 0x3fa   : > { %v5495_v44 = vpop.f32.mrf.mxu0  ;;  %5686 = vmatmul.mubr.bf16.gmra.mxu0 %v3984_v1  ;;  %5412 = vmatprep.mubr.bf16.mxu1 %v9182_v38  ;;  %v5215_v38 = vadd.f32 %v9234_v15, %v5214_v42 }
 0x3fb   : > { %v9261_v33 = vadd.f32 %v5495_v44, %v5207_v24  ;;  %5693 = vmatprep.mubr.bf16.mxu0 %v4081_v62  ;;  %v5216_v54 = vpop.f32.mrf.mxu1  ;;  %v4245_v24 = vpack.c.bf16 %v4182_v10, %v4181_v17  ;;  %v4186_v17 = vld [vmem:[#allocation2 + $0x52] sm:$0xff] }
 0x3fc   : > { %v5497_v23 = vpop.f32.mrf.mxu0  ;;  %v4277_v10 = vld [vmem:[#allocation2 + $0x30] sm:$0xff] }
 0x3fd   : > { %v5217_v9 = vpop.f32.mrf.mxu1 }
 0x3fe   : > { %v5498_v56 = vpop.f32.mrf.mxu0  ;;  %v5218_v27 = vadd.f32 %v9234_v15, %v5217_v9 }
 0x3ff   : > { %v9264_v4 = vadd.f32 %v5498_v56, %v5210_v55  ;;  %v5219_v45 = vpop.f32.mrf.mxu1 }
 0x400   : > { %v5500_v47 = vpop.f32.mrf.mxu0  ;;  %v3955_v45 = vld [vmem:[#allocation2 + $0x31a] sm:$0xff] }
 0x401   : > { %v5222_v22 = vpop.f32.mrf.mxu1  ;;  %5413 = vmatmul.mubr.bf16.gmra.mxu1 %v4081_v62  ;;  %v3956_v47 = vld [vmem:[#allocation2 + $0x322] sm:$0xff] }
 0x402   : > { %v5503_v19 = vpop.f32.mrf.mxu0  ;;  %5694 = vmatmul.mubr.bf16.gmra.mxu0 %v3985_v35  ;;  %5420 = vmatprep.mubr.bf16.mxu1 %v9175_v52  ;;  %v5223_v52 = vadd.f32 %v9234_v15, %v5222_v22  ;;  %v4184_v35 = vld [vmem:[#allocation2 + $0x3a] sm:$0xff] }
 0x403   : > { %v9268_v32 = vadd.f32 %v5503_v19, %v5215_v38  ;;  %5701 = vmatprep.mubr.bf16.mxu0 %v4082_v6  ;;  %v5224_v16 = vpop.f32.mrf.mxu1  ;;  %v4085_v38 = vld [vmem:[#allocation2 + $0x19] sm:$0xff] }
 0x404   : > { %v5505_v26 = vpop.f32.mrf.mxu0  ;;  %v4374_v22 = vld [vmem:[#allocation2 + $0x39] sm:$0xff]  ;;  %v4149_v16 = vpack.c.bf16 %v4086_v60, %v4085_v38  ;;  %v4279_v38 = vld [vmem:[#allocation2 + $0x48] sm:$0xff] }
 0x405   : > { %v5225_v7 = vpop.f32.mrf.mxu1 }
 0x406   : > { %v5506_v50 = vpop.f32.mrf.mxu0  ;;  %v5226_v29 = vadd.f32 %v9234_v15, %v5225_v7  ;;  %v4246_v7 = vpack.c.bf16 %v4184_v35, %v4183_v31  ;;  %v4280_v31 = vld [vmem:[#allocation2 + $0x50] sm:$0xff] }
 0x407   : > { %v9271_v18 = vadd.f32 %v5506_v50, %v5218_v27  ;;  %v5227_v51 = vpop.f32.mrf.mxu1  ;;  %v3988_v27 = vpack.c.bf16 %v3956_v47, %v3955_v45  ;;  %v4378_v47 = vld [vmem:[#allocation2 + $0x69] sm:$0xff] }
 0x408   : > { %v5508_v39 = vpop.f32.mrf.mxu0  ;;  %v4437_v51 = vpack.c.bf16 %v4374_v22, %v4373_v46 }
 0x409   : > { %v5230_v59 = vpop.f32.mrf.mxu1  ;;  %5421 = vmatmul.mubr.bf16.gmra.mxu1 %v4082_v6 }
 0x40a   : > { %v5511_v25 = vpop.f32.mrf.mxu0  ;;  %5702 = vmatmul.mubr.bf16.gmra.mxu0 %v3986_v63  ;;  %5428 = vmatprep.mubr.bf16.mxu1 %v9195_v30  ;;  %v4051_v30 = vld [vmem:[#allocation2 + $0x330] sm:$0xff]  ;;  %v5231_v42 = vadd.f32 %v9234_v15, %v5230_v59  ;;  %v7375_v59 = vld [vmem:[%s9868_s6 + $0x228] sm:$0xff]  }
 0x40b   : > { %v9275_v61 = vadd.f32 %v5511_v25, %v5223_v52  ;;  %5709 = vmatprep.mubr.bf16.mxu0 %v4083_v41  ;;  %v5232_v49 = vpop.f32.mrf.mxu1  ;;  %v4084_v44 = vpack.c.bf16 %v4052_v3, %v4051_v30 }
 0x40c   : > { %v5513_v28 = vpop.f32.mrf.mxu0  ;;  %v4278_v49 = vld [vmem:[#allocation2 + $0x38] sm:$0xff] }
 0x40d   : > { %v5233_v11 = vpop.f32.mrf.mxu1  ;;  %v4185_v28 = vld [vmem:[#allocation2 + $0x4a] sm:$0xff] }
 0x40e   : > { %v5514_v2 = vpop.f32.mrf.mxu0  ;;  %v5234_v56 = vadd.f32 %v9234_v15, %v5233_v11  ;;  %v4376_v11 = vld [vmem:[#allocation2 + $0x51] sm:$0xff]  ;;  %v4247_v3 = vpack.c.bf16 %v4186_v17, %v4185_v28 }
 0x40f   : > { %v9278_v36 = vadd.f32 %v5514_v2, %v5226_v29  ;;  %v5235_v5 = vpop.f32.mrf.mxu1  ;;  %v4341_v2 = vpack.c.bf16 %v4278_v49, %v4277_v10  ;;  %v4380_v49 = vld [vmem:[#allocation2 + $0x81] sm:$0xff] }
 0x410   : > { %v5516_v1 = vpop.f32.mrf.mxu0  ;;  %v4375_v5 = vld [vmem:[#allocation2 + $0x49] sm:$0xff] }
 0x411   : > { %v5238_v62 = vpop.f32.mrf.mxu1  ;;  %5429 = vmatmul.mubr.bf16.gmra.mxu1 %v4083_v41  ;;  %v7376_v1 = vld [vmem:[%s9868_s6 + $0x220] sm:$0xff]  }
 0x412   : > { %v5519_v54 = vpop.f32.mrf.mxu0  ;;  %5710 = vmatmul.mubr.bf16.gmra.mxu0 %v3987_v0  ;;  %5758 = vmatprep.mubr.bf16.mxu1 %v4245_v24  ;;  %v5239_v50 = vadd.f32 %v9234_v15, %v5238_v62  ;;  %v4438_v24 = vpack.c.bf16 %v4376_v11, %v4375_v5 }
 0x413   : > { %v9281_v23 = vadd.f32 %v5519_v54, %v5231_v42  ;;  %5717 = vmatprep.mubr.bf16.mxu0 %v4084_v44  ;;  %v5240_v55 = vpop.f32.mrf.mxu1 }
 0x414   : > { %v5521_v9 = vpop.f32.mrf.mxu0  ;;  %v7377_v55 = vld [vmem:[%s9868_s6 + $0x218] sm:$0xff]  }
 0x415   : > { %v5241_v43 = vpop.f32.mrf.mxu1 }
 0x416   : > { %v5522_v57 = vpop.f32.mrf.mxu0  ;;  %v5242_v41 = vadd.f32 %v9234_v15, %v5241_v43  ;;  %v4188_v43 = vld [vmem:[#allocation2 + $0x6a] sm:$0xff] }
 0x417   : > { %v9284_v6 = vadd.f32 %v5522_v57, %v5234_v56  ;;  %v5243_v19 = vpop.f32.mrf.mxu1  ;;  %v4187_v56 = vld [vmem:[#allocation2 + $0x62] sm:$0xff] }
 0x418   : > { %v5524_v26 = vpop.f32.mrf.mxu0  ;;  %v4342_v19 = vpack.c.bf16 %v4280_v31, %v4279_v38  ;;  %v4382_v31 = vld [vmem:[#allocation2 + $0x99] sm:$0xff] }
 0x419   : > { %v5246_v12 = vpop.f32.mrf.mxu1  ;;  %5759 = vmatmul.mubr.bf16.vlgmr.msra.gmra.mxu1 %v4149_v16  ;;  %v4248_v16 = vpack.c.bf16 %v4188_v43, %v4187_v56  ;;  %v4377_v26 = vld [vmem:[#allocation2 + $0x61] sm:$0xff] }
 0x41a   : > { %v5527_v39 = vpop.f32.mrf.mxu0  ;;  %5718 = vmatmul.mubr.bf16.gmra.mxu0 %v3988_v27  ;;  %5766 = vmatprep.mubr.bf16.mxu1 %v4246_v7  ;;  %v5247_v0 = vadd.f32 %v9234_v15, %v5246_v12  ;;  %v4439_v46 = vpack.c.bf16 %v4378_v47, %v4377_v26 }
 0x41b   : > { %v9290_v63 = vadd.f32 %v5527_v39, %v5239_v50  ;;  %6047 = vmatprep.mubr.bf16.mxu0 %v4437_v51  ;;  %7146 = vmatpush3.bf16.msra.mxu1 %v9216_v13  ;;  %v5248_v58 = vpop.f32.mrf.mxu1 }
 0x41c   : > { %v5529_v52 = vpop.f32.mrf.mxu0  ;;  %7147 = vmatprep.subr.bf16.mxu1 %v7374_v21 }
 0x41d   : > { %v5249_v25 = vpop.f32.mrf.mxu1  ;;  %v4282_v52 = vld [vmem:[#allocation2 + $0x68] sm:$0xff] }
 0x41e   : > { %v5530_v29 = vpop.f32.mrf.mxu0  ;;  %v5250_v9 = vadd.f32 %v9234_v15, %v5249_v25 }
 0x41f   : > { %v9297_v53 = vadd.f32 %v5530_v29, %v5242_v41  ;;  %v5251_v48 = vpop.f32.mrf.mxu1  ;;  %7148 = vmatpush3.bf16.msra.mxu1 %v7374_v21  ;;  %v4190_v41 = vld [vmem:[#allocation2 + $0x82] sm:$0xff] }
 0x420   : > { %v5532_v13 = vpop.f32.mrf.mxu0  ;;  %7149 = vmatprep.subr.bf16.mxu1 %v7375_v59  ;;  %v4281_v29 = vld [vmem:[#allocation2 + $0x60] sm:$0xff] }
 0x421   : > { %v5254_v30 = vpop.f32.mrf.mxu1  ;;  %5767 = vmatmul.mubr.bf16.gmra.mxu1 %v4437_v51  ;;  %v4343_v48 = vpack.c.bf16 %v4282_v52, %v4281_v29  ;;  %v4379_v13 = vld [vmem:[#allocation2 + $0x79] sm:$0xff]  ;;  %v4193_v52 = vld [vmem:[#allocation2 + $0xaa] sm:$0xff] }
 0x422   : > { %v5535_v42 = vpop.f32.mrf.mxu0  ;;  %6048 = vmatmul.mubr.bf16.vlgmr.msra.gmra.mxu0 %v4341_v2  ;;  %5774 = vmatprep.mubr.bf16.mxu1 %v4247_v3  ;;  %v5255_v27 = vadd.f32 %v9234_v15, %v5254_v30  ;;  %v4440_v5 = vpack.c.bf16 %v4380_v49, %v4379_v13  ;;  %v4285_v29 = vld [vmem:[#allocation2 + $0x90] sm:$0xff] }
 0x423   : > { %v9303_v62 = vadd.f32 %v5535_v42, %v5247_v0  ;;  %6055 = vmatprep.mubr.bf16.mxu0 %v4438_v24  ;;  %v5256_v44 = vpop.f32.mrf.mxu1  ;;  %7150 = vmatpush3.bf16.msra.mxu1 %v7375_v59  ;;  %v4189_v59 = vld [vmem:[#allocation2 + $0x7a] sm:$0xff]  ;;  %v4383_v13 = vld [vmem:[#allocation2 + $0xa9] sm:$0xff] }
 0x424   : > { %v5537_v54 = vpop.f32.mrf.mxu0  ;;  %7151 = vmatprep.subr.bf16.mxu1 %v7376_v1  ;;  %v4249_v10 = vpack.c.bf16 %v4190_v41, %v4189_v59  ;;  %v4194_v59 = vld [vmem:[#allocation2 + $0xb2] sm:$0xff] }
 0x425   : > { %v5257_v60 = vpop.f32.mrf.mxu1  ;;  %v4284_v54 = vld [vmem:[#allocation2 + $0x80] sm:$0xff] }
 0x426   : > { %v5538_v45 = vpop.f32.mrf.mxu0  ;;  %v5258_v39 = vadd.f32 %v9234_v15, %v5257_v60 }
 0x427   : > { %v9309_v35 = vadd.f32 %v5538_v45, %v5250_v9  ;;  %v5259_v57 = vpop.f32.mrf.mxu1  ;;  %7152 = vmatpush3.bf16.msra.mxu1 %v7376_v1  ;;  %v4192_v9 = vld [vmem:[#allocation2 + $0x9a] sm:$0xff] }
 0x428   : > { %v5540_v22 = vpop.f32.mrf.mxu0  ;;  %7153 = vmatprep.subr.bf16.mxu1 %v7377_v55  ;;  %v4283_v45 = vld [vmem:[#allocation2 + $0x78] sm:$0xff] }
 0x429   : > { %v5262_v7 = vpop.f32.mrf.mxu1  ;;  %5775 = vmatmul.mubr.bf16.gmra.mxu1 %v4438_v24  ;;  %v4344_v57 = vpack.c.bf16 %v4284_v54, %v4283_v45  ;;  %v4381_v22 = vld [vmem:[#allocation2 + $0x91] sm:$0xff] }
 0x42a   : > { %v5543_v21 = vpop.f32.mrf.mxu0  ;;  %6056 = vmatmul.mubr.bf16.gmra.mxu0 %v4342_v19  ;;  %5782 = vmatprep.mubr.bf16.mxu1 %v4248_v16  ;;  %v5263_v2 = vadd.f32 %v9234_v15, %v5262_v7  ;;  %v4441_v26 = vpack.c.bf16 %v4382_v31, %v4381_v22 }
 0x42b   : > { %v9312_v50 = vadd.f32 %v5543_v21, %v5255_v27  ;;  %6063 = vmatprep.mubr.bf16.mxu0 %v4439_v46  ;;  %v5264_v12 = vpop.f32.mrf.mxu1  ;;  %7154 = vmatpush3.bf16.msra.mxu1 %v7377_v55  ;;  %v4191_v55 = vld [vmem:[#allocation2 + $0x92] sm:$0xff] }
 0x42c   : > { %v5545_v51 = vpop.f32.mrf.mxu0  ;;  %v4250_v38 = vpack.c.bf16 %v4192_v9, %v4191_v55  ;;  %v7378_v21 = vld [vmem:[%s9868_s6 + $0x210] sm:$0xff]   ;;  %v4195_v9 = vld [vmem:[#allocation2 + $0xc2] sm:$0xff] }
 0x42d   : > { %v5265_v58 = vpop.f32.mrf.mxu1  ;;  %7155 = vmatprep.subr.bf16.mxu1 %v7378_v21  ;;  %v4288_v55 = vld [vmem:[#allocation2 + $0xb0] sm:$0xff] }
 0x42e   : > { %v5546_v25 = vpop.f32.mrf.mxu0  ;;  %v5266_v42 = vadd.f32 %v9234_v15, %v5265_v58  ;;  %v4286_v58 = vld [vmem:[#allocation2 + $0x98] sm:$0xff] }
 0x42f   : > { %v9315_v28 = vadd.f32 %v5546_v25, %v5258_v39  ;;  %v5267_v17 = vpop.f32.mrf.mxu1  ;;  %v4384_v25 = vld [vmem:[#allocation2 + $0xb1] sm:$0xff]  ;;  %7156 = vmatpush3.bf16.msra.mxu1 %v7378_v21 }
 0x430   : > { %v5548_v11 = vpop.f32.mrf.mxu0 }
 0x431   : > { %v5270_v3 = vpop.f32.mrf.mxu1  ;;  %5783 = vmatmul.mubr.bf16.gmra.mxu1 %v4439_v46 }
 0x432   : > { %v5551_v1 = vpop.f32.mrf.mxu0  ;;  %6064 = vmatmul.mubr.bf16.gmra.mxu0 %v4343_v48  ;;  %5790 = vmatprep.mubr.bf16.mxu1 %v4249_v10  ;;  %v5271_v19 = vadd.f32 %v9234_v15, %v5270_v3  ;;  %v4345_v48 = vpack.c.bf16 %v4286_v58, %v4285_v29  ;;  %v4251_v10 = vpack.c.bf16 %v4194_v59, %v4193_v52  ;;  %v4290_v59 = vld [vmem:[#allocation2 + $0xc8] sm:$0xff] }
 0x433   : > { %v9318_v0 = vadd.f32 %v5551_v1, %v5263_v2  ;;  %6071 = vmatprep.mubr.bf16.mxu0 %v4440_v5  ;;  %v5272_v30 = vpop.f32.mrf.mxu1  ;;  %v4388_v29 = vld [vmem:[#allocation2 + $0xe1] sm:$0xff] }
 0x434   : > { %v5553_v24 = vpop.f32.mrf.mxu0 }
 0x435   : > { %v5273_v44 = vpop.f32.mrf.mxu1 }
 0x436   : > { %v5554_v60 = vpop.f32.mrf.mxu0  ;;  %v5274_v51 = vadd.f32 %v9234_v15, %v5273_v44 }
 0x437   : > { %v9321_v56 = vadd.f32 %v5554_v60, %v5266_v42  ;;  %v5275_v43 = vpop.f32.mrf.mxu1  ;;  %v4196_v60 = vld [vmem:[#allocation2 + $0xca] sm:$0xff] }
 0x438   : > { %v5556_v47 = vpop.f32.mrf.mxu0  ;;  %v4386_v43 = vld [vmem:[#allocation2 + $0xc9] sm:$0xff] }
 0x439   : > { %v5278_v16 = vpop.f32.mrf.mxu1  ;;  %5791 = vmatmul.mubr.bf16.gmra.mxu1 %v4440_v5  ;;  %v4442_v5 = vpack.c.bf16 %v4384_v25, %v4383_v13  ;;  %v4198_v25 = vld [vmem:[#allocation2 + $0xe2] sm:$0xff] }
 0x43a   : > { %v5559_v27 = vpop.f32.mrf.mxu0  ;;  %6072 = vmatmul.mubr.bf16.gmra.mxu0 %v4344_v57  ;;  %5798 = vmatprep.mubr.bf16.mxu1 %v4250_v38  ;;  %v5279_v2 = vadd.f32 %v9234_v15, %v5278_v16  ;;  %v4287_v57 = vld [vmem:[#allocation2 + $0xa8] sm:$0xff] }
 0x43b   : > { %v9324_v7 = vadd.f32 %v5559_v27, %v5271_v19  ;;  %6079 = vmatprep.mubr.bf16.mxu0 %v4441_v26  ;;  %v5280_v46 = vpop.f32.mrf.mxu1  ;;  %v4346_v22 = vpack.c.bf16 %v4288_v55, %v4287_v57  ;;  %v4252_v19 = vpack.c.bf16 %v4196_v60, %v4195_v9  ;;  %v4385_v16 = vld [vmem:[#allocation2 + $0xc1] sm:$0xff] }
 0x43c   : > { %v5561_v12 = vpop.f32.mrf.mxu0  ;;  %v4443_v46 = vpack.c.bf16 %v4386_v43, %v4385_v16  ;;  %v4292_v43 = vld [vmem:[#allocation2 + $0xe0] sm:$0xff] }
 0x43d   : > { %v5281_v39 = vpop.f32.mrf.mxu1  ;;  %v4200_v57 = vld [vmem:[#allocation2 + $0xfa] sm:$0xff] }
 0x43e   : > { %v5562_v41 = vpop.f32.mrf.mxu0  ;;  %v5282_v44 = vadd.f32 %v9234_v15, %v5281_v39 }
 0x43f   : > { %v9330_v49 = vadd.f32 %v5562_v41, %v5274_v51  ;;  %v5283_v17 = vpop.f32.mrf.mxu1  ;;  %v4197_v41 = vld [vmem:[#allocation2 + $0xda] sm:$0xff] }
 0x440   : > { %v5564_v11 = vpop.f32.mrf.mxu0 }
 0x441   : > { %v5286_v3 = vpop.f32.mrf.mxu1  ;;  %5799 = vmatmul.mubr.bf16.gmra.mxu1 %v4441_v26 }
 0x442   : > { %v5567_v1 = vpop.f32.mrf.mxu0  ;;  %6080 = vmatmul.mubr.bf16.gmra.mxu0 %v4345_v48  ;;  %5806 = vmatprep.mubr.bf16.mxu1 %v4251_v10  ;;  %v5287_v26 = vadd.f32 %v9234_v15, %v5286_v3  ;;  %v4289_v10 = vld [vmem:[#allocation2 + $0xc0] sm:$0xff]  ;;  %v4253_v3 = vpack.c.bf16 %v4198_v25, %v4197_v41 }
 0x443   : > { %v9333_v30 = vadd.f32 %v5567_v1, %v5279_v2  ;;  %6087 = vmatprep.mubr.bf16.mxu0 %v4442_v5  ;;  %v5288_v24 = vpop.f32.mrf.mxu1  ;;  %v4347_v2 = vpack.c.bf16 %v4290_v59, %v4289_v10 }
 0x444   : > { %v5569_v42 = vpop.f32.mrf.mxu0 }
 0x445   : > { %v5289_v54 = vpop.f32.mrf.mxu1 }
 0x446   : > { %v5570_v31 = vpop.f32.mrf.mxu0  ;;  %v5290_v58 = vadd.f32 %v9234_v15, %v5289_v54 }
 0x447   : > { %v9336_v45 = vadd.f32 %v5570_v31, %v5282_v44  ;;  %v5291_v47 = vpop.f32.mrf.mxu1 }
 0x448   : > { %v5572_v38 = vpop.f32.mrf.mxu0  ;;  %v4199_v47 = vld [vmem:[#allocation2 + $0xf2] sm:$0xff] }
 0x449   : > { %v5294_v27 = vpop.f32.mrf.mxu1  ;;  %5807 = vmatmul.mubr.bf16.gmra.mxu1 %v4442_v5  ;;  %v4387_v5 = vld [vmem:[#allocation2 + $0xd9] sm:$0xff] }
 0x44a   : > { %v5575_v21 = vpop.f32.mrf.mxu0  ;;  %6088 = vmatmul.mubr.bf16.gmra.mxu0 %v4346_v22  ;;  %5814 = vmatprep.mubr.bf16.mxu1 %v4252_v19  ;;  %v5295_v1 = vadd.f32 %v9234_v15, %v5294_v27  ;;  %v4444_v42 = vpack.c.bf16 %v4388_v29, %v4387_v5  ;;  %v4390_v22 = vld [vmem:[#allocation2 + $0xf9] sm:$0xff] }
 0x44b   : > { %v9339_v12 = vadd.f32 %v5575_v21, %v5287_v26  ;;  %6095 = vmatprep.mubr.bf16.mxu0 %v4443_v46  ;;  %v5296_v51 = vpop.f32.mrf.mxu1  ;;  %v4291_v26 = vld [vmem:[#allocation2 + $0xd8] sm:$0xff]  ;;  %v4254_v21 = vpack.c.bf16 %v4200_v57, %v4199_v47 }
 0x44c   : > { %v5577_v39 = vpop.f32.mrf.mxu0  ;;  %v4389_v51 = vld [vmem:[#allocation2 + $0xf1] sm:$0xff] }
 0x44d   : > { %v5297_v52 = vpop.f32.mrf.mxu1  ;;  %v4445_v59 = vpack.c.bf16 %v4390_v22, %v4389_v51  ;;  %v4203_v51 = vld [vmem:[#allocation2 + $0x122] sm:$0xff] }
 0x44e   : > { %v5578_v17 = vpop.f32.mrf.mxu0  ;;  %v5298_v60 = vadd.f32 %v9234_v15, %v5297_v52 }
 0x44f   : > { %v9342_v11 = vadd.f32 %v5578_v17, %v5290_v58  ;;  %v5299_v48 = vpop.f32.mrf.mxu1  ;;  %v7379_v17 = vld [vmem:[%s9868_s6 + $0x208] sm:$0xff]  }
 0x450   : > { %v5580_v13 = vpop.f32.mrf.mxu0  ;;  %7157 = vmatprep.subr.bf16.mxu1 %v7379_v17 }
 0x451   : > { %v5302_v24 = vpop.f32.mrf.mxu1  ;;  %5815 = vmatmul.mubr.bf16.gmra.mxu1 %v4443_v46  ;;  %v4348_v46 = vpack.c.bf16 %v4292_v43, %v4291_v26  ;;  %v4294_v13 = vld [vmem:[#allocation2 + $0xf8] sm:$0xff]  ;;  %v4391_v43 = vld [vmem:[#allocation2 + $0x109] sm:$0xff] }
 0x452   : > { %v5583_v44 = vpop.f32.mrf.mxu0  ;;  %6096 = vmatmul.mubr.bf16.gmra.mxu0 %v4347_v2  ;;  %5822 = vmatprep.mubr.bf16.mxu1 %v4253_v3  ;;  %v5303_v39 = vadd.f32 %v9234_v15, %v5302_v24  ;;  %v4201_v2 = vld [vmem:[#allocation2 + $0x10a] sm:$0xff]  ;;  %v4202_v3 = vld [vmem:[#allocation2 + $0x112] sm:$0xff] }
 0x453   : > { %v9345_v54 = vadd.f32 %v5583_v44, %v5295_v1  ;;  %6103 = vmatprep.mubr.bf16.mxu0 %v4444_v42  ;;  %v5304_v55 = vpop.f32.mrf.mxu1  ;;  %v4392_v1 = vld [vmem:[#allocation2 + $0x111] sm:$0xff]  ;;  %7158 = vmatpush3.bf16.msra.mxu1 %v7379_v17  ;;  %v4295_v17 = vld [vmem:[#allocation2 + $0x108] sm:$0xff] }
 0x454   : > { %v5585_v9 = vpop.f32.mrf.mxu0  ;;  %v4293_v44 = vld [vmem:[#allocation2 + $0xf0] sm:$0xff] }
 0x455   : > { %v5305_v31 = vpop.f32.mrf.mxu1  ;;  %v4349_v9 = vpack.c.bf16 %v4294_v13, %v4293_v44 }
 0x456   : > { %v5586_v38 = vpop.f32.mrf.mxu0  ;;  %v5306_v48 = vadd.f32 %v9234_v15, %v5305_v31  ;;  %v4446_v31 = vpack.c.bf16 %v4392_v1, %v4391_v43  ;;  %v4298_v43 = vld [vmem:[#allocation2 + $0x128] sm:$0xff] }
 0x457   : > { %v9348_v19 = vadd.f32 %v5586_v38, %v5298_v60  ;;  %v5307_v16 = vpop.f32.mrf.mxu1  ;;  %v4255_v60 = vpack.c.bf16 %v4202_v3, %v4201_v2  ;;  %v4393_v2 = vld [vmem:[#allocation2 + $0x121] sm:$0xff] }
 0x458   : > { %v5588_v27 = vpop.f32.mrf.mxu0 }
 0x459   : > { %v5310_v58 = vpop.f32.mrf.mxu1  ;;  %5823 = vmatmul.mubr.bf16.gmra.mxu1 %v4444_v42 }
 0x45a   : > { %v5591_v52 = vpop.f32.mrf.mxu0  ;;  %6104 = vmatmul.mubr.bf16.gmra.mxu0 %v4348_v46  ;;  %5830 = vmatprep.mubr.bf16.mxu1 %v4254_v21  ;;  %v5311_v47 = vadd.f32 %v9234_v15, %v5310_v58  ;;  %v4296_v21 = vld [vmem:[#allocation2 + $0x110] sm:$0xff] }
 0x45b   : > { %v9351_v41 = vadd.f32 %v5591_v52, %v5303_v39  ;;  %6111 = vmatprep.mubr.bf16.mxu0 %v4445_v59  ;;  %v5312_v25 = vpop.f32.mrf.mxu1  ;;  %v4204_v39 = vld [vmem:[#allocation2 + $0x12a] sm:$0xff] }
 0x45c   : > { %v5593_v29 = vpop.f32.mrf.mxu0  ;;  %v4394_v25 = vld [vmem:[#allocation2 + $0x129] sm:$0xff]  ;;  %v4256_v13 = vpack.c.bf16 %v4204_v39, %v4203_v51 }
 0x45d   : > { %v5313_v10 = vpop.f32.mrf.mxu1  ;;  %v4447_v1 = vpack.c.bf16 %v4394_v25, %v4393_v2 }
 0x45e   : > { %v5594_v5 = vpop.f32.mrf.mxu0  ;;  %v5314_v27 = vadd.f32 %v9234_v15, %v5313_v10 }
 0x45f   : > { %v9357_v24 = vadd.f32 %v5594_v5, %v5306_v48  ;;  %v5315_v42 = vpop.f32.mrf.mxu1  ;;  %v4350_v48 = vpack.c.bf16 %v4296_v21, %v4295_v17 }
 0x460   : > { %v5596_v55 = vpop.f32.mrf.mxu0 }
 0x461   : > { %v5318_v57 = vpop.f32.mrf.mxu1  ;;  %5831 = vmatmul.mubr.bf16.gmra.mxu1 %v4445_v59 }
 0x462   : > { %v5599_v38 = vpop.f32.mrf.mxu0  ;;  %6112 = vmatmul.mubr.bf16.gmra.mxu0 %v4349_v9  ;;  %5838 = vmatprep.mubr.bf16.mxu1 %v4255_v60  ;;  %v5319_v3 = vadd.f32 %v9234_v15, %v5318_v57 }
 0x463   : > { %v9360_v22 = vadd.f32 %v5599_v38, %v5311_v47  ;;  %6119 = vmatprep.mubr.bf16.mxu0 %v4446_v31  ;;  %v5320_v16 = vpop.f32.mrf.mxu1  ;;  %v4205_v47 = vld [vmem:[#allocation2 + $0x13a] sm:$0xff]  ;;  %v4206_v38 = vld [vmem:[#allocation2 + $0x142] sm:$0xff] }
 0x464   : > { %v5601_v26 = vpop.f32.mrf.mxu0  ;;  %v4257_v39 = vpack.c.bf16 %v4206_v38, %v4205_v47  ;;  %v4299_v47 = vld [vmem:[#allocation2 + $0x138] sm:$0xff] }
 0x465   : > { %v5321_v46 = vpop.f32.mrf.mxu1  ;;  %v4396_v26 = vld [vmem:[#allocation2 + $0x141] sm:$0xff] }
 0x466   : > { %v5602_v52 = vpop.f32.mrf.mxu0  ;;  %v5322_v9 = vadd.f32 %v9234_v15, %v5321_v46 }
 0x467   : > { %v9363_v58 = vadd.f32 %v5602_v52, %v5314_v27  ;;  %v5323_v59 = vpop.f32.mrf.mxu1  ;;  %v4297_v27 = vld [vmem:[#allocation2 + $0x120] sm:$0xff] }
 0x468   : > { %v5604_v29 = vpop.f32.mrf.mxu0  ;;  %v4351_v51 = vpack.c.bf16 %v4298_v43, %v4297_v27  ;;  %v4395_v52 = vld [vmem:[#allocation2 + $0x139] sm:$0xff] }
 0x469   : > { %v5326_v5 = vpop.f32.mrf.mxu1  ;;  %5839 = vmatmul.mubr.bf16.gmra.mxu1 %v4446_v31  ;;  %v4448_v17 = vpack.c.bf16 %v4396_v26, %v4395_v52  ;;  %v4398_v43 = vld [vmem:[#allocation2 + $0x159] sm:$0xff] }
 0x46a   : > { %v5607_v10 = vpop.f32.mrf.mxu0  ;;  %6120 = vmatmul.mubr.bf16.gmra.mxu0 %v4350_v48  ;;  %5846 = vmatprep.mubr.bf16.mxu1 %v4256_v13  ;;  %v5327_v25 = vadd.f32 %v9234_v15, %v5326_v5 }
 0x46b   : > { %v9366_v42 = vadd.f32 %v5607_v10, %v5319_v3  ;;  %6127 = vmatprep.mubr.bf16.mxu0 %v4447_v1  ;;  %v5328_v44 = vpop.f32.mrf.mxu1  ;;  %v4300_v10 = vld [vmem:[#allocation2 + $0x140] sm:$0xff] }
 0x46c   : > { %v5609_v55 = vpop.f32.mrf.mxu0  ;;  %v4207_v44 = vld [vmem:[#allocation2 + $0x152] sm:$0xff] }
 0x46d   : > { %v5329_v60 = vpop.f32.mrf.mxu1  ;;  %v4208_v55 = vld [vmem:[#allocation2 + $0x15a] sm:$0xff] }
 0x46e   : > { %v5610_v16 = vpop.f32.mrf.mxu0  ;;  %v5330_v2 = vadd.f32 %v9234_v15, %v5329_v60  ;;  %v4258_v26 = vpack.c.bf16 %v4208_v55, %v4207_v44  ;;  %v4400_v44 = vld [vmem:[#allocation2 + $0x171] sm:$0xff] }
 0x46f   : > { %v9369_v57 = vadd.f32 %v5610_v16, %v5322_v9  ;;  %v5331_v31 = vpop.f32.mrf.mxu1  ;;  %v4352_v16 = vpack.c.bf16 %v4300_v10, %v4299_v47  ;;  %v4210_v10 = vld [vmem:[#allocation2 + $0x172] sm:$0xff] }
 0x470   : > { %v5612_v21 = vpop.f32.mrf.mxu0  ;;  %v4397_v31 = vld [vmem:[#allocation2 + $0x151] sm:$0xff] }
 0x471   : > { %v5334_v59 = vpop.f32.mrf.mxu1  ;;  %5847 = vmatmul.mubr.bf16.gmra.mxu1 %v4447_v1 }
 0x472   : > { %v5615_v46 = vpop.f32.mrf.mxu0  ;;  %6128 = vmatmul.mubr.bf16.gmra.mxu0 %v4351_v51  ;;  %5854 = vmatprep.mubr.bf16.mxu1 %v4257_v39  ;;  %v5335_v27 = vadd.f32 %v9234_v15, %v5334_v59  ;;  %v4449_v51 = vpack.c.bf16 %v4398_v43, %v4397_v31  ;;  %v4209_v59 = vld [vmem:[#allocation2 + $0x16a] sm:$0xff] }
 0x473   : > { %v9372_v29 = vadd.f32 %v5615_v46, %v5327_v25  ;;  %6135 = vmatprep.mubr.bf16.mxu0 %v4448_v17  ;;  %v5336_v48 = vpop.f32.mrf.mxu1  ;;  %v7380_v25 = vld [vmem:[%s9868_s6 + $0x200] sm:$0xff]   ;;  %v4301_v43 = vld [vmem:[#allocation2 + $0x150] sm:$0xff] }
 0x474   : > { %v5617_v13 = vpop.f32.mrf.mxu0  ;;  %7159 = vmatprep.subr.bf16.mxu1 %v7380_v25 }
 0x475   : > { %v5337_v3 = vpop.f32.mrf.mxu1  ;;  %7160 = vmatpush3.bf16.msra.mxu1 %v7380_v25 }
 0x476   : > { %v5618_v9 = vpop.f32.mrf.mxu0  ;;  %v5338_v48 = vadd.f32 %v9234_v15, %v5337_v3  ;;  %v9389_v15 = vld [vmem:[%s9869_s7] ss:$0 sm:$0xff] }
 0x477   : > { %v9375_v5 = vadd.f32 %v5618_v9, %v5330_v2  ;;  %v5339_v1 = vpop.f32.mrf.mxu1  ;;  %v4302_v2 = vld [vmem:[#allocation2 + $0x158] sm:$0xff] }
 0x478   : > { %v5620_v38 = vpop.f32.mrf.mxu0  ;;  %v4353_v47 = vpack.c.bf16 %v4302_v2, %v4301_v43  ;;  %v4304_v2 = vld [vmem:[#allocation2 + $0x170] sm:$0xff] }
 0x479   : > { %v5342_v21 = vpop.f32.mrf.mxu1  ;;  %5855 = vmatmul.mubr.bf16.gmra.mxu1 %v4448_v17  ;;  %v4259_v38 = vpack.c.bf16 %v4210_v10, %v4209_v59  ;;  %v4211_v59 = vld [vmem:[#allocation2 + $0x182] sm:$0xff]  ;;  %v4212_v10 = vld [vmem:[#allocation2 + $0x18a] sm:$0xff] }
 0x47a   : > { %v5623_v60 = vpop.f32.mrf.mxu0  ;;  %6136 = vmatmul.mubr.bf16.gmra.mxu0 %v4352_v16  ;;  %5862 = vmatprep.mubr.bf16.mxu1 %v4258_v26  ;;  %v4399_v16 = vld [vmem:[#allocation2 + $0x169] sm:$0xff]  ;;  %v5343_v3 = vadd.f32 %v9389_v15, %v5342_v21 }
 0x47b   : > { %v9378_v39 = vadd.f32 %v5623_v60, %v5335_v27  ;;  %6143 = vmatprep.mubr.bf16.mxu0 %v4449_v51  ;;  %v5344_v52 = vpop.f32.mrf.mxu1  ;;  %v4450_v31 = vpack.c.bf16 %v4400_v44, %v4399_v16  ;;  %v4303_v44 = vld [vmem:[#allocation2 + $0x168] sm:$0xff] }
 0x47c   : > { %v5625_v46 = vpop.f32.mrf.mxu0 }
 0x47d   : > { %v5345_v13 = vpop.f32.mrf.mxu1 }
 0x47e   : > { %v5626_v17 = vpop.f32.mrf.mxu0  ;;  %v5346_v46 = vadd.f32 %v9389_v15, %v5345_v13 }
 0x47f   : > { %v9384_v55 = vadd.f32 %v5626_v17, %v5338_v48  ;;  %v5347_v9 = vpop.f32.mrf.mxu1 }
 0x480   : > { %v5628_v1 = vpop.f32.mrf.mxu0  ;;  %v4402_v9 = vld [vmem:[#allocation2 + $0x189] sm:$0xff] }
 0x481   : > { %9964 = vst [vmem:[#allocation17_spill] sm:$0xff] %v9384_v55  ;;  %v5350_v26 = vpop.f32.mrf.mxu1  ;;  %5863 = vmatmul.mubr.bf16.gmra.mxu1 %v4449_v51  ;;  %v4354_v1 = vpack.c.bf16 %v4304_v2, %v4303_v44  ;;  %v4214_v44 = vld [vmem:[#allocation2 + $0x1d2] sm:$0xff] }
 0x482   : > { %v5631_v27 = vpop.f32.mrf.mxu0  ;;  %6144 = vmatmul.mubr.bf16.gmra.mxu0 %v4353_v47  ;;  %5870 = vmatprep.mubr.bf16.mxu1 %v4259_v38  ;;  %v4260_v47 = vpack.c.bf16 %v4212_v10, %v4211_v59  ;;  %v4401_v38 = vld [vmem:[#allocation2 + $0x181] sm:$0xff]  ;;  %v5351_v16 = vadd.f32 %v9389_v15, %v5350_v26  ;;  %v4213_v10 = vld [vmem:[#allocation2 + $0x1ca] sm:$0xff] }
 0x483   : > { %v9392_v60 = vadd.f32 %v5631_v27, %v5343_v3  ;;  %6151 = vmatprep.mubr.bf16.mxu0 %v4450_v31  ;;  %v5352_v52 = vpop.f32.mrf.mxu1  ;;  %v4451_v27 = vpack.c.bf16 %v4402_v9, %v4401_v38  ;;  %v4306_v59 = vld [vmem:[#allocation2 + $0x188] sm:$0xff]  ;;  %v4305_v9 = vld [vmem:[#allocation2 + $0x180] sm:$0xff] }
 0x484   : > { %v5633_v25 = vpop.f32.mrf.mxu0  ;;  %v4355_v38 = vpack.c.bf16 %v4306_v59, %v4305_v9  ;;  %v4216_v59 = vld [vmem:[#allocation2 + $0x1ea] sm:$0xff] }
 0x485   : > { %9965 = vst [vmem:[#allocation18_spill] sm:$0xff] %v9392_v60  ;;  %v5353_v48 = vpop.f32.mrf.mxu1  ;;  %v4307_v60 = vld [vmem:[#allocation2 + $0x198] sm:$0xff]  ;;  %v4406_v9 = vld [vmem:[#allocation2 + $0x1e9] sm:$0xff] }
 0x486   : > { %v5634_v17 = vpop.f32.mrf.mxu0 }
 0x487   : > { %v9395_v21 = vadd.f32 %v5634_v17, %v5346_v46  ;;  %v5355_v51 = vpop.f32.mrf.mxu1  ;;  %v4403_v17 = vld [vmem:[#allocation2 + $0x199] sm:$0xff] }
 0x488   : > { %v5636_v43 = vpop.f32.mrf.mxu0  ;;  %v4404_v51 = vld [vmem:[#allocation2 + $0x1a1] sm:$0xff] }
 0x489   : > { %9966 = vst [vmem:[#allocation19_spill] sm:$0xff] %v9395_v21  ;;  %v5358_v3 = vpop.f32.mrf.mxu1  ;;  %5871 = vmatmul.mubr.bf16.gmra.mxu1 %v4450_v31  ;;  %v5354_v43 = vadd.f32 %v9389_v15, %v5353_v48 }
 0x48a   : > { %v5639_v13 = vpop.f32.mrf.mxu0  ;;  %6152 = vmatmul.mubr.bf16.gmra.mxu0 %v4354_v1  ;;  %5878 = vmatprep.mubr.bf16.mxu1 %v4260_v47  ;;  %v4452_v1 = vpack.c.bf16 %v4404_v51, %v4403_v17  ;;  %v4215_v51 = vld [vmem:[#allocation2 + $0x1e2] sm:$0xff] }
 0x48b   : > { %v9398_v52 = vadd.f32 %v5639_v13, %v5351_v16  ;;  %6159 = vmatprep.mubr.bf16.mxu0 %v4451_v27  ;;  %v5360_v25 = vpop.f32.mrf.mxu1  ;;  %v4261_v16 = vpack.c.bf16 %v4214_v44, %v4213_v10  ;;  %v5359_v13 = vadd.f32 %v9389_v15, %v5358_v3  ;;  %v4117_v44 = vld [vmem:[#allocation2 + $0x1c9] sm:$0xff] }
 0x48c   : > { %v5641_v46 = vpop.f32.mrf.mxu0  ;;  %v9407_v3 = vld [vmem:[#allocation2 + $0x8] sm:$0xff] }
 0x48d   : > { %9967 = vst [vmem:[#allocation20_spill] sm:$0xff] %v9398_v52  ;;  %v5361_v2 = vpop.f32.mrf.mxu1 }
 0x48e   : > { %v5642_v26 = vpop.f32.mrf.mxu0 }
 0x48f   : > { %v9401_v21 = vadd.f32 %v5642_v26, %v5354_v43  ;;  %v5363_v31 = vpop.f32.mrf.mxu1  ;;  %v4118_v26 = vld [vmem:[#allocation2 + $0x1d1] sm:$0xff] }
 0x490   : > { %v5644_v47 = vpop.f32.mrf.mxu0  ;;  %v5362_v31 = vadd.f32 %v9389_v15, %v5361_v2 }
 0x491   : > { %9968 = vst [vmem:[#allocation21_spill] sm:$0xff] %v9401_v21  ;;  %v5366_v25 = vpop.f32.mrf.mxu1  ;;  %5879 = vmatmul.mubr.bf16.gmra.mxu1 %v4451_v27  ;;  %v4356_v27 = vpack.c.bf16 %v9407_v3, %v4307_v60 }
 0x492   : > { %v5647_v46 = vpop.f32.mrf.mxu0  ;;  %6160 = vmatmul.mubr.bf16.gmra.mxu0 %v4355_v38  ;;  %5886 = vmatprep.mubr.bf16.mxu1 %v4261_v16  ;;  %v4262_v16 = vpack.c.bf16 %v4216_v59, %v4215_v51  ;;  %v4218_v51 = vld [vmem:[#allocation2 + $0x202] sm:$0xff] }
 0x493   : > { %v9404_v48 = vadd.f32 %v5647_v46, %v5359_v13  ;;  %v5368_v52 = vpop.f32.mrf.mxu1  ;;  %6167 = vmatprep.mubr.bf16.mxu0 %v4452_v1  ;;  %v4405_v13 = vld [vmem:[#allocation2 + $0x1e1] sm:$0xff]  ;;  %v5367_v46 = vadd.f32 %v9389_v15, %v5366_v25 }
 0x494   : > { %v5649_v43 = vpop.f32.mrf.mxu0  ;;  %v4165_v52 = vpack.c.bf16 %v4118_v26, %v4117_v44  ;;  %v4310_v26 = vld [vmem:[#allocation2 + $0x1e8] sm:$0xff]  ;;  %v4217_v44 = vld [vmem:[#allocation2 + $0x1fa] sm:$0xff] }
 0x495   : > { %9969 = vst [vmem:[#allocation22_spill] sm:$0xff] %v9404_v48  ;;  %v5369_v17 = vpop.f32.mrf.mxu1  ;;  %v4453_v43 = vpack.c.bf16 %v4406_v9, %v4405_v13  ;;  %v4309_v9 = vld [vmem:[#allocation2 + $0x1e0] sm:$0xff] }
 0x496   : > { %v5650_v10 = vpop.f32.mrf.mxu0 }
 0x497   : > { %v9410_v47 = vadd.f32 %v5650_v10, %v5362_v31  ;;  %v5371_v38 = vpop.f32.mrf.mxu1  ;;  %v5370_v31 = vadd.f32 %v9389_v15, %v5369_v17 }
 0x498   : > { %v5652_v1 = vpop.f32.mrf.mxu0  ;;  %v4408_v38 = vld [vmem:[#allocation2 + $0x201] sm:$0xff] }
 0x499   : > { %9970 = vst [vmem:[#allocation23_spill] sm:$0xff] %v9410_v47  ;;  %v5374_v2 = vpop.f32.mrf.mxu1  ;;  %5887 = vmatmul.mubr.bf16.gmra.mxu1 %v4165_v52 }
 0x49a   : > { %v5655_v48 = vpop.f32.mrf.mxu0  ;;  %6168 = vmatmul.mubr.bf16.gmra.mxu0 %v4356_v27  ;;  %5894 = vmatprep.mubr.bf16.mxu1 %v4262_v16  ;;  %v4357_v27 = vpack.c.bf16 %v4310_v26, %v4309_v9  ;;  %v4263_v16 = vpack.c.bf16 %v4218_v51, %v4217_v44  ;;  %v5375_v13 = vadd.f32 %v9389_v15, %v5374_v2  ;;  %v4219_v26 = vld [vmem:[#allocation2 + $0x212] sm:$0xff]  ;;  %v4220_v44 = vld [vmem:[#allocation2 + $0x21a] sm:$0xff] }
 0x49b   : > { %v9413_v21 = vadd.f32 %v5655_v48, %v5367_v46  ;;  %6175 = vmatprep.mubr.bf16.mxu0 %v4453_v43  ;;  %v5376_v60 = vpop.f32.mrf.mxu1  ;;  %v4407_v48 = vld [vmem:[#allocation2 + $0x1f9] sm:$0xff] }
 0x49c   : > { %v5657_v55 = vpop.f32.mrf.mxu0  ;;  %v4410_v9 = vld [vmem:[#allocation2 + $0x219] sm:$0xff] }
 0x49d   : > { %9971 = vst [vmem:[#allocation24_spill] sm:$0xff] %v9413_v21  ;;  %v5377_v10 = vpop.f32.mrf.mxu1  ;;  %v4454_v55 = vpack.c.bf16 %v4408_v38, %v4407_v48  ;;  %v4311_v38 = vld [vmem:[#allocation2 + $0x1f8] sm:$0xff] }
 0x49e   : > { %v5658_v59 = vpop.f32.mrf.mxu0 }
 0x49f   : > { %v9416_v25 = vadd.f32 %v5658_v59, %v5370_v31  ;;  %v5379_v52 = vpop.f32.mrf.mxu1  ;;  %v5378_v59 = vadd.f32 %v9389_v15, %v5377_v10 }
 0x4a0   : > { %v5660_v1 = vpop.f32.mrf.mxu0 }
 0x4a1   : > { %9972 = vst [vmem:[#allocation25_spill] sm:$0xff] %v9416_v25  ;;  %v5382_v46 = vpop.f32.mrf.mxu1  ;;  %5895 = vmatmul.mubr.bf16.gmra.mxu1 %v4453_v43  ;;  %v4312_v1 = vld [vmem:[#allocation2 + $0x200] sm:$0xff] }
 0x4a2   : > { %v5663_v17 = vpop.f32.mrf.mxu0  ;;  %6176 = vmatmul.mubr.bf16.gmra.mxu0 %v4357_v27  ;;  %5902 = vmatprep.mubr.bf16.mxu1 %v4263_v16  ;;  %v4358_v27 = vpack.c.bf16 %v4312_v1, %v4311_v38  ;;  %v4264_v16 = vpack.c.bf16 %v4220_v44, %v4219_v26  ;;  %v4221_v1 = vld [vmem:[#allocation2 + $0x22a] sm:$0xff]  ;;  %v4222_v26 = vld [vmem:[#allocation2 + $0x232] sm:$0xff] }
 0x4a3   : > { %v9419_v60 = vadd.f32 %v5663_v17, %v5375_v13  ;;  %6183 = vmatprep.mubr.bf16.mxu0 %v4454_v55  ;;  %v5384_v21 = vpop.f32.mrf.mxu1  ;;  %v4409_v13 = vld [vmem:[#allocation2 + $0x211] sm:$0xff]  ;;  %v5383_v17 = vadd.f32 %v9389_v15, %v5382_v46 }
 0x4a4   : > { %v5665_v31 = vpop.f32.mrf.mxu0  ;;  %v4412_v38 = vld [vmem:[#allocation2 + $0x231] sm:$0xff] }
 0x4a5   : > { %9973 = vst [vmem:[#allocation26_spill] sm:$0xff] %v9419_v60  ;;  %v5385_v52 = vpop.f32.mrf.mxu1  ;;  %v4455_v31 = vpack.c.bf16 %v4410_v9, %v4409_v13  ;;  %v4313_v9 = vld [vmem:[#allocation2 + $0x210] sm:$0xff] }
 0x4a6   : > { %v5666_v51 = vpop.f32.mrf.mxu0 }
 0x4a7   : > { %v9422_v2 = vadd.f32 %v5666_v51, %v5378_v59  ;;  %v5387_v43 = vpop.f32.mrf.mxu1  ;;  %v5386_v51 = vadd.f32 %v9389_v15, %v5385_v52 }
 0x4a8   : > { %v5668_v48 = vpop.f32.mrf.mxu0 }
 0x4a9   : > { %9974 = vst [vmem:[#allocation27_spill] sm:$0xff] %v9422_v2  ;;  %v5390_v21 = vpop.f32.mrf.mxu1  ;;  %5903 = vmatmul.mubr.bf16.gmra.mxu1 %v4454_v55  ;;  %v4314_v48 = vld [vmem:[#allocation2 + $0x218] sm:$0xff] }
 0x4aa   : > { %v5671_v10 = vpop.f32.mrf.mxu0  ;;  %6184 = vmatmul.mubr.bf16.gmra.mxu0 %v4358_v27  ;;  %5910 = vmatprep.mubr.bf16.mxu1 %v4264_v16  ;;  %v4359_v27 = vpack.c.bf16 %v4314_v48, %v4313_v9  ;;  %v4265_v16 = vpack.c.bf16 %v4222_v26, %v4221_v1  ;;  %v4223_v48 = vld [vmem:[#allocation2 + $0x242] sm:$0xff]  ;;  %v4224_v1 = vld [vmem:[#allocation2 + $0x24a] sm:$0xff] }
 0x4ab   : > { %v9425_v60 = vadd.f32 %v5671_v10, %v5383_v17  ;;  %6191 = vmatprep.mubr.bf16.mxu0 %v4455_v31  ;;  %v5392_v25 = vpop.f32.mrf.mxu1  ;;  %v4411_v17 = vld [vmem:[#allocation2 + $0x229] sm:$0xff]  ;;  %v5391_v10 = vadd.f32 %v9389_v15, %v5390_v21 }
 0x4ac   : > { %v5673_v59 = vpop.f32.mrf.mxu0  ;;  %v4414_v9 = vld [vmem:[#allocation2 + $0x249] sm:$0xff] }
 0x4ad   : > { %9975 = vst [vmem:[#allocation28_spill] sm:$0xff] %v9425_v60  ;;  %v5393_v43 = vpop.f32.mrf.mxu1  ;;  %v4456_v59 = vpack.c.bf16 %v4412_v38, %v4411_v17  ;;  %v4315_v38 = vld [vmem:[#allocation2 + $0x228] sm:$0xff] }
 0x4ae   : > { %v5674_v44 = vpop.f32.mrf.mxu0 }
 0x4af   : > { %v9428_v46 = vadd.f32 %v5674_v44, %v5386_v51  ;;  %v5395_v55 = vpop.f32.mrf.mxu1  ;;  %v5394_v44 = vadd.f32 %v9389_v15, %v5393_v43 }
 0x4b0   : > { %v5676_v13 = vpop.f32.mrf.mxu0 }
 0x4b1   : > { %9976 = vst [vmem:[#allocation29_spill] sm:$0xff] %v9428_v46  ;;  %v5398_v25 = vpop.f32.mrf.mxu1  ;;  %5911 = vmatmul.mubr.bf16.gmra.mxu1 %v4455_v31  ;;  %v4316_v13 = vld [vmem:[#allocation2 + $0x230] sm:$0xff] }
 0x4b2   : > { %v5679_v52 = vpop.f32.mrf.mxu0  ;;  %6192 = vmatmul.mubr.bf16.gmra.mxu0 %v4359_v27  ;;  %5918 = vmatprep.mubr.bf16.mxu1 %v4265_v16  ;;  %v4360_v27 = vpack.c.bf16 %v4316_v13, %v4315_v38  ;;  %v4266_v16 = vpack.c.bf16 %v4224_v1, %v4223_v48  ;;  %v4225_v13 = vld [vmem:[#allocation2 + $0x25a] sm:$0xff]  ;;  %v4226_v48 = vld [vmem:[#allocation2 + $0x262] sm:$0xff] }
 0x4b3   : > { %v9431_v60 = vadd.f32 %v5679_v52, %v5391_v10  ;;  %6199 = vmatprep.mubr.bf16.mxu0 %v4456_v59  ;;  %v5400_v2 = vpop.f32.mrf.mxu1  ;;  %v4413_v10 = vld [vmem:[#allocation2 + $0x241] sm:$0xff]  ;;  %v5399_v52 = vadd.f32 %v9389_v15, %v5398_v25 }
 0x4b4   : > { %v5681_v51 = vpop.f32.mrf.mxu0  ;;  %v4416_v38 = vld [vmem:[#allocation2 + $0x261] sm:$0xff] }
 0x4b5   : > { %9977 = vst [vmem:[#allocation30_spill] sm:$0xff] %v9431_v60  ;;  %v5401_v55 = vpop.f32.mrf.mxu1  ;;  %v4457_v51 = vpack.c.bf16 %v4414_v9, %v4413_v10  ;;  %v4317_v9 = vld [vmem:[#allocation2 + $0x240] sm:$0xff] }
 0x4b6   : > { %v5682_v26 = vpop.f32.mrf.mxu0 }
 0x4b7   : > { %v9434_v21 = vadd.f32 %v5682_v26, %v5394_v44  ;;  %v5403_v31 = vpop.f32.mrf.mxu1  ;;  %v5402_v26 = vadd.f32 %v9389_v15, %v5401_v55 }
 0x4b8   : > { %v5684_v17 = vpop.f32.mrf.mxu0 }
 0x4b9   : > { %9978 = vst [vmem:[#allocation31_spill] sm:$0xff] %v9434_v21  ;;  %v5406_v2 = vpop.f32.mrf.mxu1  ;;  %5919 = vmatmul.mubr.bf16.gmra.mxu1 %v4456_v59  ;;  %v4318_v17 = vld [vmem:[#allocation2 + $0x248] sm:$0xff] }
 0x4ba   : > { %v5687_v43 = vpop.f32.mrf.mxu0  ;;  %6200 = vmatmul.mubr.bf16.gmra.mxu0 %v4360_v27  ;;  %5926 = vmatprep.mubr.bf16.mxu1 %v4266_v16  ;;  %v4361_v27 = vpack.c.bf16 %v4318_v17, %v4317_v9  ;;  %v4267_v16 = vpack.c.bf16 %v4226_v48, %v4225_v13  ;;  %v4227_v17 = vld [vmem:[#allocation2 + $0x272] sm:$0xff]  ;;  %v4228_v13 = vld [vmem:[#allocation2 + $0x27a] sm:$0xff] }
 0x4bb   : > { %v9437_v60 = vadd.f32 %v5687_v43, %v5399_v52  ;;  %6207 = vmatprep.mubr.bf16.mxu0 %v4457_v51  ;;  %v5408_v46 = vpop.f32.mrf.mxu1  ;;  %v4415_v52 = vld [vmem:[#allocation2 + $0x259] sm:$0xff]  ;;  %v5407_v43 = vadd.f32 %v9389_v15, %v5406_v2 }
 0x4bc   : > { %v5689_v44 = vpop.f32.mrf.mxu0  ;;  %v4418_v9 = vld [vmem:[#allocation2 + $0x279] sm:$0xff] }
 0x4bd   : > { %9979 = vst [vmem:[#allocation32_spill] sm:$0xff] %v9437_v60  ;;  %v5409_v31 = vpop.f32.mrf.mxu1  ;;  %v4458_v44 = vpack.c.bf16 %v4416_v38, %v4415_v52  ;;  %v4319_v38 = vld [vmem:[#allocation2 + $0x258] sm:$0xff] }
 0x4be   : > { %v5690_v1 = vpop.f32.mrf.mxu0 }
 0x4bf   : > { %v9440_v25 = vadd.f32 %v5690_v1, %v5402_v26  ;;  %v5411_v59 = vpop.f32.mrf.mxu1  ;;  %v5410_v1 = vadd.f32 %v9389_v15, %v5409_v31 }
 0x4c0   : > { %v5692_v10 = vpop.f32.mrf.mxu0 }
 0x4c1   : > { %9980 = vst [vmem:[#allocation4_spill] sm:$0xff] %v9440_v25  ;;  %v5414_v46 = vpop.f32.mrf.mxu1  ;;  %5927 = vmatmul.mubr.bf16.gmra.mxu1 %v4457_v51  ;;  %v4320_v10 = vld [vmem:[#allocation2 + $0x260] sm:$0xff] }
 0x4c2   : > { %v5695_v55 = vpop.f32.mrf.mxu0  ;;  %6208 = vmatmul.mubr.bf16.gmra.mxu0 %v4361_v27  ;;  %5934 = vmatprep.mubr.bf16.mxu1 %v4267_v16  ;;  %v4362_v27 = vpack.c.bf16 %v4320_v10, %v4319_v38  ;;  %v9448_v16 = vpack.c.bf16 %v4228_v13, %v4227_v17  ;;  %v4322_v17 = vld [vmem:[#allocation2 + $0x278] sm:$0xff]  ;;  %v4229_v13 = vld [vmem:[#allocation2 + $0x28a] sm:$0xff] }
 0x4c3   : > { %v9443_v60 = vadd.f32 %v5695_v55, %v5407_v43  ;;  %6215 = vmatprep.mubr.bf16.mxu0 %v4458_v44  ;;  %v5416_v21 = vpop.f32.mrf.mxu1  ;;  %v4417_v43 = vld [vmem:[#allocation2 + $0x271] sm:$0xff] }
 0x4c4   : > { %v5697_v26 = vpop.f32.mrf.mxu0  ;;  %v5415_v21 = vadd.f32 %v9389_v15, %v5414_v46  ;;  %v4459_v31 = vpack.c.bf16 %v4418_v9, %v4417_v43  ;;  %v4230_v38 = vld [vmem:[#allocation2 + $0x292] sm:$0xff] }
 0x4c5   : > { %9981 = vst [vmem:[#allocation3_spill] sm:$0xff] %v9443_v60  ;;  %v5417_v59 = vpop.f32.mrf.mxu1  ;;  %v4420_v46 = vld [vmem:[#allocation2 + $0x291] sm:$0xff]  ;;  %v9457_v25 = vpack.c.bf16 %v4230_v38, %v4229_v13  ;;  %v4231_v38 = vld [vmem:[#allocation2 + $0x2a2] sm:$0xff] }
 0x4c6   : > { %v5698_v48 = vpop.f32.mrf.mxu0  ;;  %v4321_v9 = vld [vmem:[#allocation2 + $0x270] sm:$0xff] }
 0x4c7   : > { %v9446_v2 = vadd.f32 %v5698_v48, %v5410_v1  ;;  %v5419_v51 = vpop.f32.mrf.mxu1  ;;  %v4363_v43 = vpack.c.bf16 %v4322_v17, %v4321_v9  ;;  %v4324_v13 = vld [vmem:[#allocation2 + $0x290] sm:$0xff] }
 0x4c8   : > { %v5700_v52 = vpop.f32.mrf.mxu0  ;;  %v5418_v51 = vadd.f32 %v9389_v15, %v5417_v59  ;;  %v4232_v9 = vld [vmem:[#allocation2 + $0x2aa] sm:$0xff] }
 0x4c9   : > { %9982 = vst [vmem:[#allocation7_spill] sm:$0xff] %v9446_v2  ;;  %v5422_v55 = vpop.f32.mrf.mxu1  ;;  %5935 = vmatmul.mubr.bf16.gmra.mxu1 %v4458_v44  ;;  %v9466_v47 = vpack.c.bf16 %v4232_v9, %v4231_v38  ;;  %v4326_v9 = vld [vmem:[#allocation2 + $0x2a8] sm:$0xff] }
 0x4ca   : > { %v5703_v26 = vpop.f32.mrf.mxu0  ;;  %6216 = vmatmul.mubr.bf16.gmra.mxu0 %v4362_v27  ;;  %5942 = vmatprep.mubr.bf16.mxu1 %v9448_v16 }
 0x4cb   : > { %v9452_v60 = vadd.f32 %v5703_v26, %v5415_v21  ;;  %6223 = vmatprep.mubr.bf16.mxu0 %v4459_v31  ;;  %v5424_v1 = vpop.f32.mrf.mxu1  ;;  %v4419_v21 = vld [vmem:[#allocation2 + $0x289] sm:$0xff]  ;;  %v5423_v26 = vadd.f32 %v9389_v15, %v5422_v55 }
 0x4cc   : > { %v5705_v48 = vpop.f32.mrf.mxu0  ;;  %v4460_v59 = vpack.c.bf16 %v4420_v46, %v4419_v21  ;;  %v4422_v55 = vld [vmem:[#allocation2 + $0x2a9] sm:$0xff] }
 0x4cd   : > { %9983 = vst [vmem:[#allocation5_spill] sm:$0xff] %v9452_v60  ;;  %v5425_v10 = vpop.f32.mrf.mxu1  ;;  %v4323_v46 = vld [vmem:[#allocation2 + $0x288] sm:$0xff] }
 0x4ce   : > { %v5706_v52 = vpop.f32.mrf.mxu0  ;;  %v4364_v21 = vpack.c.bf16 %v4324_v13, %v4323_v46  ;;  %v4233_v46 = vld [vmem:[#allocation2 + $0x2ba] sm:$0xff] }
 0x4cf   : > { %v9455_v2 = vadd.f32 %v5706_v52, %v5418_v51  ;;  %v5427_v44 = vpop.f32.mrf.mxu1 }
 0x4d0   : > { %v5708_v27 = vpop.f32.mrf.mxu0  ;;  %v5426_v44 = vadd.f32 %v9389_v15, %v5425_v10 }
 0x4d1   : > { %9984 = vst [vmem:[#allocation8_spill] sm:$0xff] %v9455_v2  ;;  %v5430_v1 = vpop.f32.mrf.mxu1  ;;  %5943 = vmatmul.mubr.bf16.gmra.mxu1 %v4459_v31 }
 0x4d2   : > { %v5711_v48 = vpop.f32.mrf.mxu0  ;;  %6224 = vmatmul.mubr.bf16.gmra.mxu0 %v4363_v43  ;;  %5950 = vmatprep.mubr.bf16.mxu1 %v9457_v25 }
 0x4d3   : > { %v9461_v60 = vadd.f32 %v5711_v48, %v5423_v26  ;;  %6231 = vmatprep.mubr.bf16.mxu0 %v4460_v59  ;;  %v5432_v51 = vpop.f32.mrf.mxu1  ;;  %v4421_v26 = vld [vmem:[#allocation2 + $0x2a1] sm:$0xff]  ;;  %v5431_v48 = vadd.f32 %v9389_v15, %v5430_v1 }
 0x4d4   : > { %v5713_v52 = vpop.f32.mrf.mxu0  ;;  %v4461_v10 = vpack.c.bf16 %v4422_v55, %v4421_v26  ;;  %v4234_v1 = vld [vmem:[#allocation2 + $0x2c2] sm:$0xff] }
 0x4d5   : > { %9985 = vst [vmem:[#allocation6_spill] sm:$0xff] %v9461_v60  ;;  %v5433_v17 = vpop.f32.mrf.mxu1  ;;  %v4424_v55 = vld [vmem:[#allocation2 + $0x2c1] sm:$0xff] }
 0x4d6   : > { %v5714_v27 = vpop.f32.mrf.mxu0  ;;  %v5434_v13 = vadd.f32 %v9389_v15, %v5433_v17 }
 0x4d7   : > { %v9464_v2 = vadd.f32 %v5714_v27, %v5426_v44  ;;  %v5435_v31 = vpop.f32.mrf.mxu1 }
 0x4d8   : > { %v5716_v43 = vpop.f32.mrf.mxu0 }
 0x4d9   : > { %v5760_v51 = vpop.f32.mrf.mxu1  ;;  %5951 = vmatmul.mubr.bf16.gmra.mxu1 %v4460_v59 }
 0x4da   : > { %v5719_v52 = vpop.f32.mrf.mxu0  ;;  %v5761_v60 = vadd.f32 %v5760_v51, %v9239_v40  ;;  %6232 = vmatmul.mubr.bf16.gmra.mxu0 %v4364_v21  ;;  %5958 = vmatprep.mubr.bf16.mxu1 %v9466_v47  ;;  %v4325_v21 = vld [vmem:[#allocation2 + $0x2a0] sm:$0xff] }
 0x4db   : > { %v9471_v44 = vadd.f32 %v5719_v52, %v5431_v48  ;;  %6239 = vmatprep.mubr.bf16.mxu0 %v4461_v10  ;;  %v5762_v27 = vpop.f32.mrf.mxu1  ;;  %v4365_v48 = vpack.c.bf16 %v4326_v9, %v4325_v21  ;;  %v9477_v52 = vpack.c.bf16 %v4234_v1, %v4233_v46  ;;  %v4235_v9 = vld [vmem:[#allocation2 + $0x2d2] sm:$0xff]  ;;  %v4236_v46 = vld [vmem:[#allocation2 + $0x2da] sm:$0xff] }
 0x4dc   : > { %v5721_v31 = vpop.f32.mrf.mxu0  ;;  %v4423_v27 = vld [vmem:[#allocation2 + $0x2b9] sm:$0xff] }
 0x4dd   : > { %9986 = vst [vmem:[#allocation9_spill] sm:$0xff] %v9471_v44  ;;  %v5763_v38 = vpop.f32.mrf.mxu1  ;;  %v4462_v15 = vpack.c.bf16 %v4424_v55, %v4423_v27 }
 0x4de   : > { %v5722_v43 = vpop.f32.mrf.mxu0  ;;  %v5764_v59 = vadd.f32 %v5763_v38, %v9243_v8 }
 0x4df   : > { %v9475_v26 = vadd.f32 %v5722_v43, %v5434_v13  ;;  %v5765_v40 = vpop.f32.mrf.mxu1 }
 0x4e0   : > { %v5724_v51 = vpop.f32.mrf.mxu0  ;;  %v4328_v40 = vld [vmem:[#allocation2 + $0x2c0] sm:$0xff] }
 0x4e1   : > { %v5768_v31 = vpop.f32.mrf.mxu1  ;;  %5959 = vmatmul.mubr.bf16.gmra.mxu1 %v4461_v10  ;;  %v4426_v10 = vld [vmem:[#allocation2 + $0x2d9] sm:$0xff] }
 0x4e2   : > { %v5769_v17 = vadd.f32 %v5768_v31, %v9247_v20  ;;  %v6049_v44 = vpop.f32.mrf.mxu0  ;;  %6240 = vmatmul.mubr.bf16.gmra.mxu0 %v4365_v48  ;;  %5966 = vmatprep.mubr.bf16.mxu1 %v9477_v52  ;;  %v4327_v51 = vld [vmem:[#allocation2 + $0x2b8] sm:$0xff]  ;;  %v9486_v31 = vpack.c.bf16 %v4236_v46, %v4235_v9 }
 0x4e3   : > { %v9481_v8 = vadd.f32 %v6049_v44, %v5761_v60  ;;  %6247 = vmatprep.mubr.bf16.mxu0 %v4462_v15  ;;  %v5770_v13 = vpop.f32.mrf.mxu1  ;;  %v4366_v27 = vpack.c.bf16 %v4328_v40, %v4327_v51  ;;  %v4425_v60 = vld [vmem:[#allocation2 + $0x2d1] sm:$0xff] }
 0x4e4   : > { %v6051_v38 = vpop.f32.mrf.mxu0  ;;  %v4463_v13 = vpack.c.bf16 %v4426_v10, %v4425_v60  ;;  %v4237_v40 = vld [vmem:[#allocation2 + $0x2ea] sm:$0xff]  ;;  %v4238_v9 = vld [vmem:[#allocation2 + $0x2f2] sm:$0xff] }
 0x4e5   : > { %9987 = vst [vmem:[#allocation10_spill] sm:$0xff] %v9481_v8  ;;  %v5771_v43 = vpop.f32.mrf.mxu1 }
 0x4e6   : > { %v5772_v1 = vadd.f32 %v5771_v43, %v9250_v34  ;;  %v6052_v21 = vpop.f32.mrf.mxu0 }
 0x4e7   : > { %v9484_v55 = vadd.f32 %v6052_v21, %v5764_v59  ;;  %v5773_v20 = vpop.f32.mrf.mxu1 }
 0x4e8   : > { %v6054_v48 = vpop.f32.mrf.mxu0  ;;  %v4330_v20 = vld [vmem:[#allocation2 + $0x2d8] sm:$0xff] }
 0x4e9   : > { %9988 = vst [vmem:[#allocation11_spill] sm:$0xff] %v9484_v55  ;;  %v5776_v44 = vpop.f32.mrf.mxu1  ;;  %5967 = vmatmul.mubr.bf16.gmra.mxu1 %v4462_v15  ;;  %v4428_v15 = vld [vmem:[#allocation2 + $0x2f1] sm:$0xff] }
 0x4ea   : > { %v5777_v38 = vadd.f32 %v5776_v44, %v9254_v14  ;;  %v6057_v8 = vpop.f32.mrf.mxu0  ;;  %6248 = vmatmul.mubr.bf16.gmra.mxu0 %v4366_v27  ;;  %5974 = vmatprep.mubr.bf16.mxu1 %v9486_v31  ;;  %v4329_v48 = vld [vmem:[#allocation2 + $0x2d0] sm:$0xff]  ;;  %v9495_v44 = vpack.c.bf16 %v4238_v9, %v4237_v40 }
 0x4eb   : > { %v9490_v34 = vadd.f32 %v6057_v8, %v5769_v17  ;;  %6255 = vmatprep.mubr.bf16.mxu0 %v4463_v13  ;;  %v5778_v59 = vpop.f32.mrf.mxu1  ;;  %v4367_v60 = vpack.c.bf16 %v4330_v20, %v4329_v48  ;;  %v4427_v17 = vld [vmem:[#allocation2 + $0x2e9] sm:$0xff] }
 0x4ec   : > { %v6059_v43 = vpop.f32.mrf.mxu0  ;;  %v4464_v59 = vpack.c.bf16 %v4428_v15, %v4427_v17  ;;  %v4239_v20 = vld [vmem:[#allocation2 + $0x302] sm:$0xff]  ;;  %v4240_v40 = vld [vmem:[#allocation2 + $0x30a] sm:$0xff] }
 0x4ed   : > { %v5779_v21 = vpop.f32.mrf.mxu1 }
 0x4ee   : > { %v5780_v46 = vadd.f32 %v5779_v21, %v9257_v37  ;;  %v6060_v51 = vpop.f32.mrf.mxu0 }
 0x4ef   : > { %v9493_v10 = vadd.f32 %v6060_v51, %v5772_v1  ;;  %v5781_v14 = vpop.f32.mrf.mxu1 }
 0x4f0   : > { %v6062_v27 = vpop.f32.mrf.mxu0  ;;  %v4332_v14 = vld [vmem:[#allocation2 + $0x2f0] sm:$0xff] }
 0x4f1   : > { %v5784_v8 = vpop.f32.mrf.mxu1  ;;  %5975 = vmatmul.mubr.bf16.gmra.mxu1 %v4463_v13  ;;  %v4430_v13 = vld [vmem:[#allocation2 + $0x309] sm:$0xff] }
 0x4f2   : > { %v5785_v43 = vadd.f32 %v5784_v8, %v9261_v33  ;;  %v6065_v55 = vpop.f32.mrf.mxu0  ;;  %6256 = vmatmul.mubr.bf16.gmra.mxu0 %v4367_v60  ;;  %5982 = vmatprep.mubr.bf16.mxu1 %v9495_v44  ;;  %v4331_v27 = vld [vmem:[#allocation2 + $0x2e8] sm:$0xff]  ;;  %v9504_v8 = vpack.c.bf16 %v4240_v40, %v4239_v20 }
 0x4f3   : > { %v9499_v37 = vadd.f32 %v6065_v55, %v5777_v38  ;;  %6263 = vmatprep.mubr.bf16.mxu0 %v4464_v59  ;;  %v5786_v1 = vpop.f32.mrf.mxu1  ;;  %v4368_v17 = vpack.c.bf16 %v4332_v14, %v4331_v27  ;;  %v4429_v55 = vld [vmem:[#allocation2 + $0x301] sm:$0xff] }
 0x4f4   : > { %v6067_v21 = vpop.f32.mrf.mxu0  ;;  %v4465_v1 = vpack.c.bf16 %v4430_v13, %v4429_v55  ;;  %v4241_v14 = vld [vmem:[#allocation2 + $0x31a] sm:$0xff]  ;;  %v4242_v20 = vld [vmem:[#allocation2 + $0x322] sm:$0xff] }
 0x4f5   : > { %9989 = vst [vmem:[#allocation13_spill] sm:$0xff] %v9499_v37  ;;  %v5787_v51 = vpop.f32.mrf.mxu1 }
 0x4f6   : > { %v5788_v9 = vadd.f32 %v5787_v51, %v9264_v4  ;;  %v6068_v48 = vpop.f32.mrf.mxu0 }
 0x4f7   : > { %v9502_v15 = vadd.f32 %v6068_v48, %v5780_v46  ;;  %v5789_v33 = vpop.f32.mrf.mxu1 }
 0x4f8   : > { %v6070_v60 = vpop.f32.mrf.mxu0  ;;  %v4334_v33 = vld [vmem:[#allocation2 + $0x308] sm:$0xff] }
 0x4f9   : > { %9990 = vst [vmem:[#allocation12_spill] sm:$0xff] %v9502_v15  ;;  %v5792_v38 = vpop.f32.mrf.mxu1  ;;  %5983 = vmatmul.mubr.bf16.gmra.mxu1 %v4464_v59  ;;  %v4432_v59 = vld [vmem:[#allocation2 + $0x321] sm:$0xff] }
 0x4fa   : > { %v5793_v21 = vadd.f32 %v5792_v38, %v9268_v32  ;;  %v6073_v37 = vpop.f32.mrf.mxu0  ;;  %6264 = vmatmul.mubr.bf16.gmra.mxu0 %v4368_v17  ;;  %5990 = vmatprep.mubr.bf16.mxu1 %v9504_v8  ;;  %v4333_v60 = vld [vmem:[#allocation2 + $0x300] sm:$0xff]  ;;  %v9513_v38 = vpack.c.bf16 %v4242_v20, %v4241_v14 }
 0x4fb   : > { %v9508_v4 = vadd.f32 %v6073_v37, %v5785_v43  ;;  %6271 = vmatprep.mubr.bf16.mxu0 %v4465_v1  ;;  %v5794_v46 = vpop.f32.mrf.mxu1  ;;  %v4369_v55 = vpack.c.bf16 %v4334_v33, %v4333_v60  ;;  %v4431_v43 = vld [vmem:[#allocation2 + $0x319] sm:$0xff] }
 0x4fc   : > { %v6075_v51 = vpop.f32.mrf.mxu0  ;;  %v4466_v46 = vpack.c.bf16 %v4432_v59, %v4431_v43  ;;  %v4243_v33 = vld [vmem:[#allocation2 + $0x332] sm:$0xff]  ;;  %v4244_v14 = vld [vmem:[#allocation2 + $0x33a] sm:$0xff] }
 0x4fd   : > { %v5795_v48 = vpop.f32.mrf.mxu1 }
 0x4fe   : > { %v5796_v40 = vadd.f32 %v5795_v48, %v9271_v18  ;;  %v6076_v27 = vpop.f32.mrf.mxu0 }
 0x4ff   : > { %v9511_v13 = vadd.f32 %v6076_v27, %v5788_v9  ;;  %v5797_v32 = vpop.f32.mrf.mxu1 }
 0x500   : > { %v6078_v17 = vpop.f32.mrf.mxu0  ;;  %v4336_v32 = vld [vmem:[#allocation2 + $0x320] sm:$0xff] }
 0x501   : > { %9991 = vst [vmem:[#allocation14_spill] sm:$0xff] %v9511_v13  ;;  %v5800_v37 = vpop.f32.mrf.mxu1  ;;  %5991 = vmatmul.mubr.bf16.gmra.mxu1 %v4465_v1  ;;  %v4434_v1 = vld [vmem:[#allocation2 + $0x339] sm:$0xff] }
 0x502   : > { %v5801_v51 = vadd.f32 %v5800_v37, %v9275_v61  ;;  %v6081_v15 = vpop.f32.mrf.mxu0  ;;  %6272 = vmatmul.mubr.bf16.gmra.mxu0 %v4369_v55  ;;  %5998 = vmatprep.mubr.bf16.mxu1 %v9513_v38  ;;  %v4335_v17 = vld [vmem:[#allocation2 + $0x318] sm:$0xff]  ;;  %v9522_v37 = vpack.c.bf16 %v4244_v14, %v4243_v33 }
 0x503   : > { %v9517_v18 = vadd.f32 %v6081_v15, %v5793_v21  ;;  %6279 = vmatprep.mubr.bf16.mxu0 %v4466_v46  ;;  %v5802_v9 = vpop.f32.mrf.mxu1  ;;  %v4370_v43 = vpack.c.bf16 %v4336_v32, %v4335_v17  ;;  %v4433_v15 = vld [vmem:[#allocation2 + $0x331] sm:$0xff]  ;;  %v4470_v17 = vld [vmem:[#allocation2 + $0x3a] sm:$0xff] }
 0x504   : > { %v6083_v48 = vpop.f32.mrf.mxu0  ;;  %v4467_v9 = vpack.c.bf16 %v4434_v1, %v4433_v15  ;;  %v4338_v33 = vld [vmem:[#allocation2 + $0x338] sm:$0xff] }
 0x505   : > { %9992 = vst [vmem:[#allocation16_spill] sm:$0xff] %v9517_v18  ;;  %v5803_v27 = vpop.f32.mrf.mxu1  ;;  %v4469_v14 = vld [vmem:[#allocation2 + $0x32] sm:$0xff] }
 0x506   : > { %v5804_v20 = vadd.f32 %v5803_v27, %v9278_v36  ;;  %v6084_v60 = vpop.f32.mrf.mxu0 }
 0x507   : > { %v9520_v59 = vadd.f32 %v6084_v60, %v5796_v40  ;;  %v5805_v61 = vpop.f32.mrf.mxu1  ;;  %v4435_v60 = vld [vmem:[#allocation2 + $0x349] sm:$0xff] }
 0x508   : > { %v6086_v55 = vpop.f32.mrf.mxu0  ;;  %v4436_v61 = vld [vmem:[#allocation2 + $0x351] sm:$0xff] }
 0x509   : > { %9993 = vst [vmem:[#allocation15_spill] sm:$0xff] %v9520_v59  ;;  %v5808_v21 = vpop.f32.mrf.mxu1  ;;  %5999 = vmatmul.mubr.bf16.gmra.mxu1 %v4466_v46  ;;  %v4468_v15 = vpack.c.bf16 %v4436_v61, %v4435_v60  ;;  %v4473_v60 = vld [vmem:[#allocation2 + $0x62] sm:$0xff]  ;;  %v4474_v61 = vld [vmem:[#allocation2 + $0x6a] sm:$0xff] }
 0x50a   : > { %v5809_v48 = vadd.f32 %v5808_v21, %v9281_v23  ;;  %v6089_v18 = vpop.f32.mrf.mxu0  ;;  %6280 = vmatmul.mubr.bf16.gmra.mxu0 %v4370_v43  ;;  %6006 = vmatprep.mubr.bf16.mxu1 %v9522_v37  ;;  %v4337_v43 = vld [vmem:[#allocation2 + $0x330] sm:$0xff] }
 0x50b   : > { %v9526_v36 = vadd.f32 %v6089_v18, %v5801_v51  ;;  %6287 = vmatprep.mubr.bf16.mxu0 %v4467_v9  ;;  %v5810_v40 = vpop.f32.mrf.mxu1  ;;  %v4371_v51 = vpack.c.bf16 %v4338_v33, %v4337_v43  ;;  %v4533_v18 = vpack.c.bf16 %v4470_v17, %v4469_v14  ;;  %v4535_v43 = vpack.c.bf16 %v4474_v61, %v4473_v60 }
 0x50c   : > { %v6091_v27 = vpop.f32.mrf.mxu0 }
 0x50d   : > { %9994 = vst [vmem:[#allocation33_spill] sm:$0xff] %v9526_v36  ;;  %v5811_v32 = vpop.f32.mrf.mxu1 }
 0x50e   : > { %v5812_v46 = vadd.f32 %v5811_v32, %v9284_v6  ;;  %v6092_v1 = vpop.f32.mrf.mxu0  ;;  %v4339_v6 = vld [vmem:[#allocation2 + $0x348] sm:$0xff] }
 0x50f   : > { %v9529_v55 = vadd.f32 %v6092_v1, %v5804_v20  ;;  %v5813_v23 = vpop.f32.mrf.mxu1  ;;  %v4471_v32 = vld [vmem:[#allocation2 + $0x4a] sm:$0xff]  ;;  %v4472_v1 = vld [vmem:[#allocation2 + $0x52] sm:$0xff] }
 0x510   : > { %v6094_v21 = vpop.f32.mrf.mxu0  ;;  %v4534_v17 = vpack.c.bf16 %v4472_v1, %v4471_v32 }
 0x511   : > { %v5816_v59 = vpop.f32.mrf.mxu1  ;;  %6007 = vmatmul.mubr.bf16.gmra.mxu1 %v4467_v9  ;;  %v4372_v9 = vpack.c.bf16 %v9407_v3, %v4339_v6  ;;  %v4478_v6 = vld [vmem:[#allocation2 + $0x9a] sm:$0xff] }
 0x512   : > { %v5817_v40 = vadd.f32 %v5816_v59, %v9290_v63  ;;  %v6097_v27 = vpop.f32.mrf.mxu0  ;;  %6288 = vmatmul.mubr.bf16.gmra.mxu0 %v4371_v51  ;;  %7161 = vmatprep.mubr.bf16.mxu1 %v4533_v18 }
 0x513   : > { %v9532_v36 = vadd.f32 %v6097_v27, %v5809_v48  ;;  %v5818_v13 = vpop.f32.mrf.mxu1  ;;  %6295 = vmatprep.mubr.bf16.mxu0 %v4468_v15  ;;  %v4475_v27 = vld [vmem:[#allocation2 + $0x7a] sm:$0xff] }
 0x514   : > { %v6099_v20 = vpop.f32.mrf.mxu0 }
 0x515   : > { %v5819_v23 = vpop.f32.mrf.mxu1  ;;  %v4476_v20 = vld [vmem:[#allocation2 + $0x82] sm:$0xff] }
 0x516   : > { %v5820_v33 = vadd.f32 %v5819_v23, %v9297_v53  ;;  %v6100_v14 = vpop.f32.mrf.mxu0  ;;  %v4536_v61 = vpack.c.bf16 %v4476_v20, %v4475_v27 }
 0x517   : > { %v9536_v63 = vadd.f32 %v6100_v14, %v5812_v46  ;;  %v5821_v59 = vpop.f32.mrf.mxu1  ;;  %v4477_v46 = vld [vmem:[#allocation2 + $0x92] sm:$0xff] }
 0x518   : > { %v6102_v48 = vpop.f32.mrf.mxu0  ;;  %v4537_v14 = vpack.c.bf16 %v4478_v6, %v4477_v46 }
 0x519   : > { %v5824_v13 = vpop.f32.mrf.mxu1  ;;  %7162 = vmatmul.mubr.bf16.vlgmr.msra.gmra.mxu1 %v4534_v17 }
 0x51a   : > { %v5825_v15 = vadd.f32 %v5824_v13, %v9303_v62  ;;  %v6105_v21 = vpop.f32.mrf.mxu0  ;;  %6296 = vmatmul.mubr.bf16.gmra.mxu0 %v4372_v9  ;;  %7165 = vmatprep.mubr.bf16.mxu1 %v4535_v43  ;;  %v4479_v13 = vld [vmem:[#allocation2 + $0xaa] sm:$0xff] }
 0x51b   : > { %v9539_v51 = vadd.f32 %v6105_v21, %v5817_v40  ;;  %v5826_v18 = vpop.f32.mrf.mxu1  ;;  %v4480_v21 = vld [vmem:[#allocation2 + $0xb2] sm:$0xff] }
 0x51c   : > { %v6107_v53 = vpop.f32.mrf.mxu0  ;;  %v4481_v18 = vld [vmem:[#allocation2 + $0xc2] sm:$0xff]  ;;  %v4538_v46 = vpack.c.bf16 %v4480_v21, %v4479_v13 }
 0x51d   : > { %v5827_v3 = vpop.f32.mrf.mxu1 }
 0x51e   : > { %v5828_v32 = vadd.f32 %v5827_v3, %v9309_v35  ;;  %v6108_v1 = vpop.f32.mrf.mxu0 }
 0x51f   : > { %v9542_v23 = vadd.f32 %v6108_v1, %v5820_v33  ;;  %v5829_v60 = vpop.f32.mrf.mxu1  ;;  %v4482_v33 = vld [vmem:[#allocation2 + $0xca] sm:$0xff] }
 0x520   : > { %v6110_v62 = vpop.f32.mrf.mxu0 }
 0x521   : > { %v5832_v9 = vpop.f32.mrf.mxu1  ;;  %7166 = vmatmul.mubr.bf16.gmra.mxu1 %v4536_v61 }
 0x522   : > { %v5833_v40 = vadd.f32 %v5832_v9, %v9312_v50  ;;  %v6113_v59 = vpop.f32.mrf.mxu0  ;;  %7169 = vmatprep.mubr.bf16.mxu1 %v4537_v14  ;;  %v4539_v50 = vpack.c.bf16 %v4482_v33, %v4481_v18  ;;  %v4483_v9 = vld [vmem:[#allocation2 + $0xda] sm:$0xff] }
 0x523   : > { %v9545_v17 = vadd.f32 %v6113_v59, %v5825_v15  ;;  %v5834_v48 = vpop.f32.mrf.mxu1  ;;  %v4484_v59 = vld [vmem:[#allocation2 + $0xe2] sm:$0xff] }
 0x524   : > { %v6115_v43 = vpop.f32.mrf.mxu0  ;;  %v4485_v48 = vld [vmem:[#allocation2 + $0xf2] sm:$0xff]  ;;  %v4540_v18 = vpack.c.bf16 %v4484_v59, %v4483_v9 }
 0x525   : > { %v5835_v35 = vpop.f32.mrf.mxu1 }
 0x526   : > { %v5836_v53 = vadd.f32 %v5835_v35, %v9315_v28  ;;  %v6116_v27 = vpop.f32.mrf.mxu0 }
 0x527   : > { %v9548_v20 = vadd.f32 %v6116_v27, %v5828_v32  ;;  %v5837_v3 = vpop.f32.mrf.mxu1  ;;  %v4486_v32 = vld [vmem:[#allocation2 + $0xfa] sm:$0xff] }
 0x528   : > { %v6118_v6 = vpop.f32.mrf.mxu0 }
 0x529   : > { %v5840_v1 = vpop.f32.mrf.mxu1  ;;  %7170 = vmatmul.mubr.bf16.gmra.mxu1 %v4538_v46 }
 0x52a   : > { %v5841_v15 = vadd.f32 %v5840_v1, %v9318_v0  ;;  %v6121_v60 = vpop.f32.mrf.mxu0  ;;  %7173 = vmatprep.mubr.bf16.mxu1 %v4539_v50  ;;  %v4541_v0 = vpack.c.bf16 %v4486_v32, %v4485_v48  ;;  %v4487_v1 = vld [vmem:[#allocation2 + $0x10a] sm:$0xff] }
 0x52b   : > { %v9551_v61 = vadd.f32 %v6121_v60, %v5833_v40  ;;  %v5842_v62 = vpop.f32.mrf.mxu1  ;;  %v4488_v60 = vld [vmem:[#allocation2 + $0x112] sm:$0xff] }
 0x52c   : > { %v6123_v14 = vpop.f32.mrf.mxu0  ;;  %v4489_v62 = vld [vmem:[#allocation2 + $0x122] sm:$0xff]  ;;  %v4542_v48 = vpack.c.bf16 %v4488_v60, %v4487_v1 }
 0x52d   : > { %v5843_v28 = vpop.f32.mrf.mxu1 }
 0x52e   : > { %v5844_v43 = vadd.f32 %v5843_v28, %v9321_v56  ;;  %v6124_v13 = vpop.f32.mrf.mxu0 }
 0x52f   : > { %v9554_v21 = vadd.f32 %v6124_v13, %v5836_v53  ;;  %v5845_v35 = vpop.f32.mrf.mxu1  ;;  %v4490_v53 = vld [vmem:[#allocation2 + $0x12a] sm:$0xff] }
 0x530   : > { %v6126_v33 = vpop.f32.mrf.mxu0 }
 0x531   : > { %v5848_v27 = vpop.f32.mrf.mxu1  ;;  %7174 = vmatmul.mubr.bf16.gmra.mxu1 %v4540_v18 }
 0x532   : > { %v5849_v40 = vadd.f32 %v5848_v27, %v9324_v7  ;;  %v6129_v3 = vpop.f32.mrf.mxu0  ;;  %7177 = vmatprep.mubr.bf16.mxu1 %v4541_v0  ;;  %v4543_v7 = vpack.c.bf16 %v4490_v53, %v4489_v62  ;;  %v4491_v27 = vld [vmem:[#allocation2 + $0x13a] sm:$0xff] }
 0x533   : > { %v9557_v46 = vadd.f32 %v6129_v3, %v5841_v15  ;;  %v5850_v6 = vpop.f32.mrf.mxu1  ;;  %v4492_v3 = vld [vmem:[#allocation2 + $0x142] sm:$0xff] }
 0x534   : > { %v6131_v50 = vpop.f32.mrf.mxu0  ;;  %v4493_v6 = vld [vmem:[#allocation2 + $0x152] sm:$0xff]  ;;  %v4544_v62 = vpack.c.bf16 %v4492_v3, %v4491_v27 }
 0x535   : > { %v5851_v56 = vpop.f32.mrf.mxu1 }
 0x536   : > { %v5852_v14 = vadd.f32 %v5851_v56, %v9330_v49  ;;  %v6132_v9 = vpop.f32.mrf.mxu0 }
 0x537   : > { %v9560_v59 = vadd.f32 %v6132_v9, %v5844_v43  ;;  %v5853_v28 = vpop.f32.mrf.mxu1  ;;  %v4494_v43 = vld [vmem:[#allocation2 + $0x15a] sm:$0xff] }
 0x538   : > { %v6134_v32 = vpop.f32.mrf.mxu0 }
 0x539   : > { %v5856_v13 = vpop.f32.mrf.mxu1  ;;  %7178 = vmatmul.mubr.bf16.gmra.mxu1 %v4542_v48 }
 0x53a   : > { %v5857_v15 = vadd.f32 %v5856_v13, %v9333_v30  ;;  %v6137_v35 = vpop.f32.mrf.mxu0  ;;  %7181 = vmatprep.mubr.bf16.mxu1 %v4543_v7  ;;  %v4545_v30 = vpack.c.bf16 %v4494_v43, %v4493_v6  ;;  %v4495_v13 = vld [vmem:[#allocation2 + $0x16a] sm:$0xff] }
 0x53b   : > { %v9563_v18 = vadd.f32 %v6137_v35, %v5849_v40  ;;  %v5858_v33 = vpop.f32.mrf.mxu1  ;;  %v4496_v35 = vld [vmem:[#allocation2 + $0x172] sm:$0xff] }
 0x53c   : > { %v6139_v0 = vpop.f32.mrf.mxu0  ;;  %v4497_v33 = vld [vmem:[#allocation2 + $0x182] sm:$0xff]  ;;  %v4546_v6 = vpack.c.bf16 %v4496_v35, %v4495_v13 }
 0x53d   : > { %v5859_v49 = vpop.f32.mrf.mxu1 }
 0x53e   : > { %v5860_v50 = vadd.f32 %v5859_v49, %v9336_v45  ;;  %v6140_v1 = vpop.f32.mrf.mxu0 }
 0x53f   : > { %v9566_v60 = vadd.f32 %v6140_v1, %v5852_v14  ;;  %v5861_v56 = vpop.f32.mrf.mxu1  ;;  %v4498_v14 = vld [vmem:[#allocation2 + $0x18a] sm:$0xff] }
 0x540   : > { %v6142_v53 = vpop.f32.mrf.mxu0 }
 0x541   : > { %v5864_v9 = vpop.f32.mrf.mxu1  ;;  %7182 = vmatmul.mubr.bf16.gmra.mxu1 %v4544_v62  ;;  %v4499_v62 = vld [vmem:[#allocation2 + $0x19a] sm:$0xff]  ;;  %v4500_v53 = vld [vmem:[#allocation2 + $0x1a2] sm:$0xff] }
 0x542   : > { %v5865_v40 = vadd.f32 %v5864_v9, %v9339_v12  ;;  %v6145_v28 = vpop.f32.mrf.mxu0  ;;  %7185 = vmatprep.mubr.bf16.mxu1 %v4545_v30  ;;  %v4547_v12 = vpack.c.bf16 %v4498_v14, %v4497_v33 }
 0x543   : > { %v9569_v48 = vadd.f32 %v6145_v28, %v5857_v15  ;;  %v5866_v32 = vpop.f32.mrf.mxu1 }
 0x544   : > { %v6147_v7 = vpop.f32.mrf.mxu0  ;;  %v4548_v32 = vpack.c.bf16 %v4500_v53, %v4499_v62  ;;  %v4506_v53 = vld [vmem:[#allocation2 + $0x21a] sm:$0xff] }
 0x545   : > { %v5867_v45 = vpop.f32.mrf.mxu1  ;;  %v4502_v7 = vld [vmem:[#allocation2 + $0x1ea] sm:$0xff] }
 0x546   : > { %v5868_v0 = vadd.f32 %v5867_v45, %v9342_v11  ;;  %v6148_v27 = vpop.f32.mrf.mxu0 }
 0x547   : > { %v9572_v3 = vadd.f32 %v6148_v27, %v5860_v50  ;;  %v5869_v49 = vpop.f32.mrf.mxu1  ;;  %v4501_v50 = vld [vmem:[#allocation2 + $0x1e2] sm:$0xff] }
 0x548   : > { %v6150_v43 = vpop.f32.mrf.mxu0 }
 0x549   : > { %v5872_v1 = vpop.f32.mrf.mxu1  ;;  %7186 = vmatmul.mubr.bf16.gmra.mxu1 %v4546_v6 }
 0x54a   : > { %v5873_v15 = vadd.f32 %v5872_v1, %v9345_v54  ;;  %v6153_v56 = vpop.f32.mrf.mxu0  ;;  %7189 = vmatprep.mubr.bf16.mxu1 %v4547_v12  ;;  %v4549_v54 = vpack.c.bf16 %v4502_v7, %v4501_v50  ;;  %v4503_v1 = vld [vmem:[#allocation2 + $0x1fa] sm:$0xff] }
 0x54b   : > { %v9575_v30 = vadd.f32 %v6153_v56, %v5865_v40  ;;  %v5874_v9 = vpop.f32.mrf.mxu1  ;;  %v4504_v56 = vld [vmem:[#allocation2 + $0x202] sm:$0xff] }
 0x54c   : > { %v6155_v28 = vpop.f32.mrf.mxu0 }
 0x54d   : > { %v5875_v11 = vpop.f32.mrf.mxu1 }
 0x54e   : > { %v5876_v13 = vadd.f32 %v5875_v11, %v9348_v19  ;;  %v6156_v35 = vpop.f32.mrf.mxu0  ;;  %v4505_v19 = vld [vmem:[#allocation2 + $0x212] sm:$0xff] }
 0x54f   : > { %v9578_v45 = vadd.f32 %v6156_v35, %v5868_v0  ;;  %v5877_v33 = vpop.f32.mrf.mxu1 }
 0x550   : > { %v6158_v14 = vpop.f32.mrf.mxu0 }
 0x551   : > { %v5880_v27 = vpop.f32.mrf.mxu1  ;;  %7190 = vmatmul.mubr.bf16.gmra.mxu1 %v4548_v32  ;;  %v4550_v32 = vpack.c.bf16 %v4504_v56, %v4503_v1 }
 0x552   : > { %v5881_v49 = vadd.f32 %v5880_v27, %v9351_v41  ;;  %v6161_v40 = vpop.f32.mrf.mxu0  ;;  %7193 = vmatprep.mubr.bf16.mxu1 %v4549_v54  ;;  %v4551_v41 = vpack.c.bf16 %v4506_v53, %v4505_v19  ;;  %v4507_v27 = vld [vmem:[#allocation2 + $0x22a] sm:$0xff] }
 0x553   : > { %v9581_v6 = vadd.f32 %v6161_v40, %v5873_v15  ;;  %v5882_v43 = vpop.f32.mrf.mxu1  ;;  %v4508_v40 = vld [vmem:[#allocation2 + $0x232] sm:$0xff] }
 0x554   : > { %v6163_v12 = vpop.f32.mrf.mxu0  ;;  %v4509_v43 = vld [vmem:[#allocation2 + $0x242] sm:$0xff]  ;;  %v4552_v19 = vpack.c.bf16 %v4508_v40, %v4507_v27 }
 0x555   : > { %v5883_v62 = vpop.f32.mrf.mxu1 }
 0x556   : > { %v5884_v0 = vadd.f32 %v5883_v62, %v9357_v24  ;;  %v6164_v9 = vpop.f32.mrf.mxu0 }
 0x557   : > { %v9584_v28 = vadd.f32 %v6164_v9, %v5876_v13  ;;  %v5885_v11 = vpop.f32.mrf.mxu1  ;;  %v4510_v13 = vld [vmem:[#allocation2 + $0x24a] sm:$0xff] }
 0x558   : > { %v6166_v50 = vpop.f32.mrf.mxu0 }
 0x559   : > { %v5888_v7 = vpop.f32.mrf.mxu1  ;;  %7194 = vmatmul.mubr.bf16.gmra.mxu1 %v4550_v32 }
 0x55a   : > { %v5889_v15 = vadd.f32 %v5888_v7, %v9360_v22  ;;  %v6169_v35 = vpop.f32.mrf.mxu0  ;;  %7197 = vmatprep.mubr.bf16.mxu1 %v4551_v41  ;;  %v4553_v22 = vpack.c.bf16 %v4510_v13, %v4509_v43  ;;  %v4511_v7 = vld [vmem:[#allocation2 + $0x25a] sm:$0xff] }
 0x55b   : > { %v9587_v33 = vadd.f32 %v6169_v35, %v5881_v49  ;;  %v5890_v14 = vpop.f32.mrf.mxu1  ;;  %v4512_v35 = vld [vmem:[#allocation2 + $0x262] sm:$0xff] }
 0x55c   : > { %v6171_v54 = vpop.f32.mrf.mxu0  ;;  %v4554_v40 = vpack.c.bf16 %v4512_v35, %v4511_v7  ;;  %v9995_v35 = vld [vmem:[#allocation17_spill] sm:$0xff] }
 0x55d   : > { %v5891_v24 = vpop.f32.mrf.mxu1 }
 0x55e   : > { %v5892_v12 = vadd.f32 %v5891_v24, %v9363_v58  ;;  %v6172_v1 = vpop.f32.mrf.mxu0 }
 0x55f   : > { %v9590_v56 = vadd.f32 %v6172_v1, %v5884_v0  ;;  %v5893_v62 = vpop.f32.mrf.mxu1 }
 0x560   : > { %v6174_v53 = vpop.f32.mrf.mxu0 }
 0x561   : > { %v5896_v9 = vpop.f32.mrf.mxu1  ;;  %7198 = vmatmul.mubr.bf16.gmra.mxu1 %v4552_v19 }
 0x562   : > { %v5897_v49 = vadd.f32 %v5896_v9, %v9366_v42  ;;  %v6177_v11 = vpop.f32.mrf.mxu0  ;;  %7201 = vmatprep.mubr.bf16.mxu1 %v4553_v22 }
 0x563   : > { %v9593_v32 = vadd.f32 %v6177_v11, %v5889_v15  ;;  %v5898_v50 = vpop.f32.mrf.mxu1 }
 0x564   : > { %v6179_v41 = vpop.f32.mrf.mxu0 }
 0x565   : > { %v5899_v58 = vpop.f32.mrf.mxu1 }
 0x566   : > { %v5900_v0 = vadd.f32 %v5899_v58, %v9369_v57  ;;  %v6180_v14 = vpop.f32.mrf.mxu0 }
 0x567   : > { %v9596_v54 = vadd.f32 %v6180_v14, %v5892_v12  ;;  %v5901_v27 = vpop.f32.mrf.mxu1 }
 0x568   : > { %v6182_v24 = vpop.f32.mrf.mxu0 }
 0x569   : > { %v5904_v43 = vpop.f32.mrf.mxu1  ;;  %7202 = vmatmul.mubr.bf16.gmra.mxu1 %v4554_v40 }
 0x56a   : > { %v5905_v42 = vadd.f32 %v5904_v43, %v9372_v29  ;;  %v6185_v13 = vpop.f32.mrf.mxu0  ;;  %7205 = vmatprep.mubr.bf16.mxu1 %v9448_v16 }
 0x56b   : > { %v9600_v15 = vadd.f32 %v6185_v13, %v5897_v49  ;;  %v5906_v1 = vpop.f32.mrf.mxu1 }
 0x56c   : > { %v6187_v62 = vpop.f32.mrf.mxu0  ;;  %v9997_v1 = vld [vmem:[#allocation19_spill] sm:$0xff] }
 0x56d   : > { %v5907_v19 = vpop.f32.mrf.mxu1 }
 0x56e   : > { %v5908_v57 = vadd.f32 %v5907_v19, %v9375_v5  ;;  %v6188_v53 = vpop.f32.mrf.mxu0 }
 0x56f   : > { %v9603_v12 = vadd.f32 %v6188_v53, %v5900_v0  ;;  %v5909_v22 = vpop.f32.mrf.mxu1 }
 0x570   : > { %v6190_v9 = vpop.f32.mrf.mxu0 }
 0x571   : > { %v5912_v11 = vpop.f32.mrf.mxu1  ;;  %7206 = vmatmul.mubr.bf16.gmra.mxu1 %v9457_v25  ;;  %v9996_v25 = vld [vmem:[#allocation18_spill] sm:$0xff] }
 0x572   : > { %v5913_v29 = vadd.f32 %v5912_v11, %v9378_v39  ;;  %v6193_v50 = vpop.f32.mrf.mxu0  ;;  %7209 = vmatprep.mubr.bf16.mxu1 %v9466_v47 }
 0x573   : > { %v9608_v16 = vadd.f32 %v6193_v50, %v5905_v42  ;;  %v5914_v49 = vpop.f32.mrf.mxu1 }
 0x574   : > { %v6195_v41 = vpop.f32.mrf.mxu0 }
 0x575   : > { %v5915_v7 = vpop.f32.mrf.mxu1 }
 0x576   : > { %v5916_v5 = vadd.f32 %v5915_v7, %v9995_v35  ;;  %v6196_v58 = vpop.f32.mrf.mxu0  ;;  %v9999_v7 = vld [vmem:[#allocation21_spill] sm:$0xff] }
 0x577   : > { %v9611_v0 = vadd.f32 %v6196_v58, %v5908_v57  ;;  %v5917_v14 = vpop.f32.mrf.mxu1 }
 0x578   : > { %v6198_v27 = vpop.f32.mrf.mxu0 }
 0x579   : > { %v5920_v40 = vpop.f32.mrf.mxu1  ;;  %7210 = vmatmul.mubr.bf16.gmra.mxu1 %v9477_v52  ;;  %v9998_v52 = vld [vmem:[#allocation20_spill] sm:$0xff] }
 0x57a   : > { %v5921_v39 = vadd.f32 %v5920_v40, %v9996_v25  ;;  %v6201_v24 = vpop.f32.mrf.mxu0  ;;  %7213 = vmatprep.mubr.bf16.mxu1 %v9486_v31 }
 0x57b   : > { %v9616_v47 = vadd.f32 %v6201_v24, %v5913_v29  ;;  %v5922_v43 = vpop.f32.mrf.mxu1 }
 0x57c   : > { %v6203_v42 = vpop.f32.mrf.mxu0 }
 0x57d   : > { %v5923_v13 = vpop.f32.mrf.mxu1 }
 0x57e   : > { %v5924_v62 = vadd.f32 %v5923_v13, %v9997_v1  ;;  %v6204_v19 = vpop.f32.mrf.mxu0 }
 0x57f   : > { %v9619_v57 = vadd.f32 %v6204_v19, %v5916_v5  ;;  %v5925_v53 = vpop.f32.mrf.mxu1 }
 0x580   : > { %v6206_v22 = vpop.f32.mrf.mxu0 }
 0x581   : > { %v5928_v9 = vpop.f32.mrf.mxu1  ;;  %7214 = vmatmul.mubr.bf16.gmra.mxu1 %v9495_v44  ;;  %v10000_v44 = vld [vmem:[#allocation22_spill] sm:$0xff] }
 0x582   : > { %v5929_v11 = vadd.f32 %v5928_v9, %v9998_v52  ;;  %v6209_v50 = vpop.f32.mrf.mxu0  ;;  %7217 = vmatprep.mubr.bf16.mxu1 %v9504_v8  ;;  %v4531_v8 = vld [vmem:[#allocation2 + $0x34a] sm:$0xff] }
 0x583   : > { %v9624_v31 = vadd.f32 %v6209_v50, %v5921_v39  ;;  %v5930_v29 = vpop.f32.mrf.mxu1  ;;  %v4532_v39 = vld [vmem:[#allocation2 + $0x352] sm:$0xff] }
 0x584   : > { %v6211_v49 = vpop.f32.mrf.mxu0  ;;  %v4564_v19 = vpack.c.bf16 %v4532_v39, %v4531_v8  ;;  %v10002_v29 = vld [vmem:[#allocation24_spill] sm:$0xff]  ;;  %v10004_v39 = vld [vmem:[#allocation26_spill] sm:$0xff] }
 0x585   : > { %v5931_v41 = vpop.f32.mrf.mxu1 }
 0x586   : > { %v5932_v35 = vadd.f32 %v5931_v41, %v9999_v7  ;;  %v6212_v58 = vpop.f32.mrf.mxu0 }
 0x587   : > { %v9627_v5 = vadd.f32 %v6212_v58, %v5924_v62  ;;  %v5933_v14 = vpop.f32.mrf.mxu1  ;;  %v10001_v62 = vld [vmem:[#allocation23_spill] sm:$0xff] }
 0x588   : > { %v6214_v27 = vpop.f32.mrf.mxu0  ;;  %v10003_v14 = vld [vmem:[#allocation25_spill] sm:$0xff] }
 0x589   : > { %v5936_v40 = vpop.f32.mrf.mxu1  ;;  %7218 = vmatmul.mubr.bf16.gmra.mxu1 %v9513_v38 }
 0x58a   : > { %v5937_v25 = vadd.f32 %v5936_v40, %v10000_v44  ;;  %v6217_v24 = vpop.f32.mrf.mxu0  ;;  %7221 = vmatprep.mubr.bf16.mxu1 %v9522_v37 }
 0x58b   : > { %v9632_v43 = vadd.f32 %v6217_v24, %v5929_v11  ;;  %v5938_v42 = vpop.f32.mrf.mxu1 }
 0x58c   : > { %v6219_v13 = vpop.f32.mrf.mxu0 }
 0x58d   : > { %v5939_v1 = vpop.f32.mrf.mxu1 }
 0x58e   : > { %v5940_v53 = vadd.f32 %v5939_v1, %v10001_v62  ;;  %v6220_v22 = vpop.f32.mrf.mxu0 }
 0x58f   : > { %v9635_v9 = vadd.f32 %v6220_v22, %v5932_v35  ;;  %v5941_v52 = vpop.f32.mrf.mxu1  ;;  %v10005_v22 = vld [vmem:[#allocation27_spill] sm:$0xff] }
 0x590   : > { %v6222_v38 = vpop.f32.mrf.mxu0 }
 0x591   : > { %v5944_v50 = vpop.f32.mrf.mxu1  ;;  %7222 = vmatmul.mubr.bf16.gmra.mxu1 %v4564_v19 }
 0x592   : > { %v5945_v49 = vadd.f32 %v5944_v50, %v10002_v29  ;;  %v6225_v37 = vpop.f32.mrf.mxu0 }
 0x593   : > { %v9638_v41 = vadd.f32 %v6225_v37, %v5937_v25  ;;  %v5946_v11 = vpop.f32.mrf.mxu1 }
 0x594   : > { %v6227_v7 = vpop.f32.mrf.mxu0  ;;  %v10006_v11 = vld [vmem:[#allocation28_spill] sm:$0xff] }
 0x595   : > { %v5947_v58 = vpop.f32.mrf.mxu1 }
 0x596   : > { %v5948_v27 = vadd.f32 %v5947_v58, %v10003_v14  ;;  %v6228_v40 = vpop.f32.mrf.mxu0 }
 0x597   : > { %v9641_v44 = vadd.f32 %v6228_v40, %v5940_v53  ;;  %v5949_v24 = vpop.f32.mrf.mxu1 }
 0x598   : > { %v6230_v35 = vpop.f32.mrf.mxu0 }
 0x599   : > { %v5952_v8 = vpop.f32.mrf.mxu1  ;;  %v10008_v35 = vld [vmem:[#allocation29_spill] sm:$0xff] }
 0x59a   : > { %v5953_v42 = vadd.f32 %v5952_v8, %v10004_v39  ;;  %v6233_v13 = vpop.f32.mrf.mxu0 }
 0x59b   : > { %v9644_v1 = vadd.f32 %v6233_v13, %v5945_v49  ;;  %v5954_v19 = vpop.f32.mrf.mxu1 }
 0x59c   : > { %v6235_v62 = vpop.f32.mrf.mxu0 }
 0x59d   : > { %v5955_v25 = vpop.f32.mrf.mxu1 }
 0x59e   : > { %v5956_v52 = vadd.f32 %v5955_v25, %v10005_v22  ;;  %v6236_v38 = vpop.f32.mrf.mxu0  ;;  %v10010_v25 = vld [vmem:[#allocation30_spill] sm:$0xff] }
 0x59f   : > { %v9647_v50 = vadd.f32 %v6236_v38, %v5948_v27  ;;  %v5957_v29 = vpop.f32.mrf.mxu1 }
 0x5a0   : > { %v6238_v37 = vpop.f32.mrf.mxu0 }
 0x5a1   : > { %v5960_v53 = vpop.f32.mrf.mxu1 }
 0x5a2   : > { %v5961_v7 = vadd.f32 %v5960_v53, %v10006_v11  ;;  %v6241_v58 = vpop.f32.mrf.mxu0  ;;  %v10011_v11 = vld [vmem:[#allocation31_spill] sm:$0xff] }
 0x5a3   : > { %v9650_v14 = vadd.f32 %v6241_v58, %v5953_v42  ;;  %v5962_v40 = vpop.f32.mrf.mxu1 }
 0x5a4   : > { %v6243_v24 = vpop.f32.mrf.mxu0 }
 0x5a5   : > { %10007 = vst [vmem:[#allocation17_spill] sm:$0xff] %v9650_v14  ;;  %v5963_v49 = vpop.f32.mrf.mxu1 }
 0x5a6   : > { %v5964_v8 = vadd.f32 %v5963_v49, %v10008_v35  ;;  %v6244_v39 = vpop.f32.mrf.mxu0 }
 0x5a7   : > { %v9653_v13 = vadd.f32 %v6244_v39, %v5956_v52  ;;  %v5965_v19 = vpop.f32.mrf.mxu1  ;;  %v10013_v39 = vld [vmem:[#allocation32_spill] sm:$0xff] }
 0x5a8   : > { %v6246_v62 = vpop.f32.mrf.mxu0 }
 0x5a9   : > { %10009 = vst [vmem:[#allocation18_spill] sm:$0xff] %v9653_v13  ;;  %v5968_v27 = vpop.f32.mrf.mxu1 }
 0x5aa   : > { %v5969_v22 = vadd.f32 %v5968_v27, %v10010_v25  ;;  %v6249_v38 = vpop.f32.mrf.mxu0 }
 0x5ab   : > { %v9656_v29 = vadd.f32 %v6249_v38, %v5961_v7  ;;  %v5970_v37 = vpop.f32.mrf.mxu1  ;;  %v10015_v38 = vld [vmem:[#allocation4_spill] sm:$0xff] }
 0x5ac   : > { %v6251_v53 = vpop.f32.mrf.mxu0 }
 0x5ad   : > { %v5971_v42 = vpop.f32.mrf.mxu1 }
 0x5ae   : > { %v5972_v58 = vadd.f32 %v5971_v42, %v10011_v11  ;;  %v6252_v40 = vpop.f32.mrf.mxu0 }
 0x5af   : > { %v9659_v24 = vadd.f32 %v6252_v40, %v5964_v8  ;;  %v5973_v49 = vpop.f32.mrf.mxu1  ;;  %v10017_v40 = vld [vmem:[#allocation3_spill] sm:$0xff] }
 0x5b0   : > { %v6254_v35 = vpop.f32.mrf.mxu0 }
 0x5b1   : > { %10012 = vst [vmem:[#allocation19_spill] sm:$0xff] %v9659_v24  ;;  %v5976_v52 = vpop.f32.mrf.mxu1 }
 0x5b2   : > { %v5977_v19 = vadd.f32 %v5976_v52, %v10013_v39  ;;  %v6257_v62 = vpop.f32.mrf.mxu0 }
 0x5b3   : > { %v9662_v13 = vadd.f32 %v6257_v62, %v5969_v22  ;;  %v5978_v27 = vpop.f32.mrf.mxu1  ;;  %v10019_v62 = vld [vmem:[#allocation7_spill] sm:$0xff] }
 0x5b4   : > { %v6259_v25 = vpop.f32.mrf.mxu0 }
 0x5b5   : > { %10014 = vst [vmem:[#allocation20_spill] sm:$0xff] %v9662_v13  ;;  %v5979_v7 = vpop.f32.mrf.mxu1 }
 0x5b6   : > { %v5980_v37 = vadd.f32 %v5979_v7, %v10015_v38  ;;  %v6260_v53 = vpop.f32.mrf.mxu0 }
 0x5b7   : > { %v9665_v14 = vadd.f32 %v6260_v53, %v5972_v58  ;;  %v5981_v42 = vpop.f32.mrf.mxu1  ;;  %v10021_v53 = vld [vmem:[#allocation5_spill] sm:$0xff] }
 0x5b8   : > { %v6262_v11 = vpop.f32.mrf.mxu0 }
 0x5b9   : > { %10016 = vst [vmem:[#allocation21_spill] sm:$0xff] %v9665_v14  ;;  %v5984_v8 = vpop.f32.mrf.mxu1 }
 0x5ba   : > { %v5985_v49 = vadd.f32 %v5984_v8, %v10017_v40  ;;  %v6265_v35 = vpop.f32.mrf.mxu0 }
 0x5bb   : > { %v9668_v24 = vadd.f32 %v6265_v35, %v5977_v19  ;;  %v5986_v52 = vpop.f32.mrf.mxu1  ;;  %v10022_v35 = vld [vmem:[#allocation8_spill] sm:$0xff] }
 0x5bc   : > { %v6267_v39 = vpop.f32.mrf.mxu0 }
 0x5bd   : > { %10018 = vst [vmem:[#allocation22_spill] sm:$0xff] %v9668_v24  ;;  %v5987_v22 = vpop.f32.mrf.mxu1 }
 0x5be   : > { %v5988_v27 = vadd.f32 %v5987_v22, %v10019_v62  ;;  %v6268_v25 = vpop.f32.mrf.mxu0 }
 0x5bf   : > { %v9671_v13 = vadd.f32 %v6268_v25, %v5980_v37  ;;  %v5989_v7 = vpop.f32.mrf.mxu1  ;;  %v10024_v25 = vld [vmem:[#allocation6_spill] sm:$0xff] }
 0x5c0   : > { %v6270_v38 = vpop.f32.mrf.mxu0 }
 0x5c1   : > { %10020 = vst [vmem:[#allocation23_spill] sm:$0xff] %v9671_v13  ;;  %v5992_v58 = vpop.f32.mrf.mxu1 }
 0x5c2   : > { %v5993_v42 = vadd.f32 %v5992_v58, %v10021_v53  ;;  %v6273_v11 = vpop.f32.mrf.mxu0 }
 0x5c3   : > { %v9674_v14 = vadd.f32 %v6273_v11, %v5985_v49  ;;  %v5994_v8 = vpop.f32.mrf.mxu1 }
 0x5c4   : > { %v6275_v40 = vpop.f32.mrf.mxu0 }
 0x5c5   : > { %v5995_v19 = vpop.f32.mrf.mxu1 }
 0x5c6   : > { %v5996_v52 = vadd.f32 %v5995_v19, %v10022_v35  ;;  %v6276_v39 = vpop.f32.mrf.mxu0 }
 0x5c7   : > { %v9677_v24 = vadd.f32 %v6276_v39, %v5988_v27  ;;  %v5997_v22 = vpop.f32.mrf.mxu1  ;;  %v10025_v39 = vld [vmem:[#allocation9_spill] sm:$0xff] }
 0x5c8   : > { %v6278_v62 = vpop.f32.mrf.mxu0 }
 0x5c9   : > { %10023 = vst [vmem:[#allocation24_spill] sm:$0xff] %v9677_v24  ;;  %v6000_v37 = vpop.f32.mrf.mxu1 }
 0x5ca   : > { %v6001_v7 = vadd.f32 %v6000_v37, %v10024_v25  ;;  %v6281_v38 = vpop.f32.mrf.mxu0 }
 0x5cb   : > { %v9680_v13 = vadd.f32 %v6281_v38, %v5993_v42  ;;  %v6002_v58 = vpop.f32.mrf.mxu1 }
 0x5cc   : > { %v6283_v53 = vpop.f32.mrf.mxu0 }
 0x5cd   : > { %v6003_v49 = vpop.f32.mrf.mxu1 }
 0x5ce   : > { %v6004_v11 = vadd.f32 %v6003_v49, %v9464_v2  ;;  %v6284_v8 = vpop.f32.mrf.mxu0 }
 0x5cf   : > { %v9683_v40 = vadd.f32 %v6284_v8, %v5996_v52  ;;  %v6005_v19 = vpop.f32.mrf.mxu1 }
 0x5d0   : > { %v6286_v35 = vpop.f32.mrf.mxu0 }
 0x5d1   : > { %v6008_v27 = vpop.f32.mrf.mxu1 }
 0x5d2   : > { %v6009_v22 = vadd.f32 %v6008_v27, %v10025_v39  ;;  %v6289_v62 = vpop.f32.mrf.mxu0  ;;  %v10029_v39 = vld [vmem:[#allocation10_spill] sm:$0xff] }
 0x5d3   : > { %v9686_v24 = vadd.f32 %v6289_v62, %v6001_v7  ;;  %v6010_v37 = vpop.f32.mrf.mxu1 }
 0x5d4   : > { %v6291_v25 = vpop.f32.mrf.mxu0 }
 0x5d5   : > { %10026 = vst [vmem:[#allocation25_spill] sm:$0xff] %v9686_v24  ;;  %v6011_v42 = vpop.f32.mrf.mxu1  ;;  %v10037_v24 = vld [vmem:[#allocation15_spill] sm:$0xff] }
 0x5d6   : > { %v6012_v38 = vadd.f32 %v6011_v42, %v9475_v26  ;;  %v6292_v58 = vpop.f32.mrf.mxu0 }
 0x5d7   : > { %v9689_v53 = vadd.f32 %v6292_v58, %v6004_v11  ;;  %v6013_v2 = vpop.f32.mrf.mxu1  ;;  %v10031_v58 = vld [vmem:[#allocation11_spill] sm:$0xff] }
 0x5d8   : > { %v6294_v49 = vpop.f32.mrf.mxu0 }
 0x5d9   : > { %10027 = vst [vmem:[#allocation26_spill] sm:$0xff] %v9689_v53  ;;  %v7163_v52 = vpop.f32.mrf.mxu1 }
 0x5da   : > { %v6297_v8 = vpop.f32.mrf.mxu0  ;;  %v9692_v19 = vadd.f32 %v7163_v52, %v9490_v34 }
 0x5db   : > { %v9694_v35 = vadd.f32 %v6297_v8, %v6009_v22  ;;  %v6338_v27 = vpop.f32.mrf.mxu1  ;;  %v10032_v8 = vld [vmem:[#allocation13_spill] sm:$0xff] }
 0x5dc   : > { %v6299_v7 = vpop.f32.mrf.mxu0  ;;  %v9697_v62 = vadd.f32 %v6338_v27, %v10029_v39  ;;  %v10033_v39 = vld [vmem:[#allocation14_spill] sm:$0xff] }
 0x5dd   : > { %10028 = vst [vmem:[#allocation27_spill] sm:$0xff] %v9694_v35  ;;  %v7164_v37 = vpop.f32.mrf.mxu1  ;;  %v6595_v35 = vmax.f32 %v9692_v19, 0.0 }
 0x5de   : > { %v6300_v25 = vpop.f32.mrf.mxu0  ;;  %v9700_v26 = vadd.f32 %v7164_v37, %v9493_v10 }
 0x5df   : > { %v9702_v11 = vadd.f32 %v6300_v25, %v6012_v38  ;;  %v6341_v42 = vpop.f32.mrf.mxu1  ;;  %v10034_v38 = vld [vmem:[#allocation12_spill] sm:$0xff] }
 0x5e0   : > { %v9705_v2 = vadd.f32 %v6341_v42, %v10031_v58  ;;  %v6302_v34 = vpop.f32.mrf.mxu0  ;;  %v10035_v42 = vld [vmem:[#allocation33_spill] sm:$0xff] }
 0x5e1   : > { %10030 = vst [vmem:[#allocation28_spill] sm:$0xff] %v9702_v11  ;;  %v7167_v49 = vpop.f32.mrf.mxu1  ;;  %v10036_v11 = vld [vmem:[#allocation16_spill] sm:$0xff] }
 0x5e2   : > { %v9708_v22 = vadd.f32 %v7167_v49, %v9508_v4  ;;  %v6594_v19 = vmax.f32 %v9705_v2, 0.0 }
 0x5e3   : > { %v6354_v52 = vpop.f32.mrf.mxu1 }
 0x5e4   : > { %v9711_v27 = vadd.f32 %v6354_v52, %v10032_v8 }
 0x5e5   : > { %v7168_v7 = vpop.f32.mrf.mxu1 }
 0x5e6   : > { %v9714_v53 = vadd.f32 %v7168_v7, %v10033_v39 }
 0x5e7   : > { %v6357_v10 = vpop.f32.mrf.mxu1 }
 0x5e8   : > { %v9717_v37 = vadd.f32 %v6357_v10, %v10034_v38 }
 0x5e9   : > { %v7171_v25 = vpop.f32.mrf.mxu1 }
 0x5ea   : > { %v9720_v58 = vadd.f32 %v7171_v25, %v10035_v42 }
 0x5eb   : > { %v6370_v34 = vpop.f32.mrf.mxu1 }
 0x5ec   : > { %v9723_v4 = vadd.f32 %v6370_v34, %v10036_v11 }
 0x5ed   : > { %v7172_v49 = vpop.f32.mrf.mxu1 }
 0x5ee   : > { %v9726_v52 = vadd.f32 %v7172_v49, %v9529_v55 }
 0x5ef   : > { %v6373_v8 = vpop.f32.mrf.mxu1 }
 0x5f0   : > { %v9729_v7 = vadd.f32 %v6373_v8, %v10037_v24 }
 0x5f1   : > { %v7175_v39 = vpop.f32.mrf.mxu1 }
 0x5f2   : > { %v9732_v10 = vadd.f32 %v7175_v39, %v9539_v51 }
 0x5f3   : > { %v6386_v38 = vpop.f32.mrf.mxu1 }
 0x5f4   : > { %v9735_v25 = vadd.f32 %v6386_v38, %v9532_v36 }
 0x5f5   : > { %v7176_v42 = vpop.f32.mrf.mxu1 }
 0x5f6   : > { %v9738_v11 = vadd.f32 %v7176_v42, %v9542_v23 }
 0x5f7   : > { %v6389_v34 = vpop.f32.mrf.mxu1 }
 0x5f8   : > { %v9741_v55 = vadd.f32 %v6389_v34, %v9536_v63 }
 0x5f9   : > { %v7179_v49 = vpop.f32.mrf.mxu1 }
 0x5fa   : > { %v9744_v24 = vadd.f32 %v7179_v49, %v9551_v61 }
 0x5fb   : > { %v6402_v8 = vpop.f32.mrf.mxu1 }
 0x5fc   : > { %v9747_v51 = vadd.f32 %v6402_v8, %v9545_v17 }
 0x5fd   : > { %v7180_v39 = vpop.f32.mrf.mxu1 }
 0x5fe   : > { %v9750_v36 = vadd.f32 %v7180_v39, %v9554_v21 }
 0x5ff   : > { %v6405_v38 = vpop.f32.mrf.mxu1 }
 0x600   : > { %v9753_v23 = vadd.f32 %v6405_v38, %v9548_v20 }
 0x601   : > { %v7183_v42 = vpop.f32.mrf.mxu1 }
 0x602   : > { %v9756_v63 = vadd.f32 %v7183_v42, %v9563_v18 }
 0x603   : > { %v6418_v34 = vpop.f32.mrf.mxu1 }
 0x604   : > { %v9759_v61 = vadd.f32 %v6418_v34, %v9557_v46 }
 0x605   : > { %v7184_v49 = vpop.f32.mrf.mxu1 }
 0x606   : > { %v9762_v17 = vadd.f32 %v7184_v49, %v9566_v60 }
 0x607   : > { %v6421_v8 = vpop.f32.mrf.mxu1 }
 0x608   : > { %v9765_v21 = vadd.f32 %v6421_v8, %v9560_v59 }
 0x609   : > { %v7187_v39 = vpop.f32.mrf.mxu1 }
 0x60a   : > { %v9768_v20 = vadd.f32 %v7187_v39, %v9575_v30 }
 0x60b   : > { %v6434_v38 = vpop.f32.mrf.mxu1 }
 0x60c   : > { %v9771_v18 = vadd.f32 %v6434_v38, %v9569_v48 }
 0x60d   : > { %v7188_v42 = vpop.f32.mrf.mxu1 }
 0x60e   : > { %v9774_v46 = vadd.f32 %v7188_v42, %v9578_v45 }
 0x60f   : > { %v6437_v34 = vpop.f32.mrf.mxu1 }
 0x610   : > { %v9777_v60 = vadd.f32 %v6437_v34, %v9572_v3 }
 0x611   : > { %v7191_v49 = vpop.f32.mrf.mxu1 }
 0x612   : > { %v9780_v59 = vadd.f32 %v7191_v49, %v9587_v33 }
 0x613   : > { %v6450_v8 = vpop.f32.mrf.mxu1 }
 0x614   : > { %10038 = vst [vmem:[#allocation29_spill] sm:$0xff] %v9780_v59  ;;  %v9783_v30 = vadd.f32 %v6450_v8, %v9581_v6  ;;  %v6593_v6 = vmax.f32 %v9697_v62, 0.0 }
 0x615   : > { %v7192_v39 = vpop.f32.mrf.mxu1 }
 0x616   : > { %10039 = vst [vmem:[#allocation30_spill] sm:$0xff] %v9783_v30  ;;  %v9786_v48 = vadd.f32 %v7192_v39, %v9590_v56 }
 0x617   : > { %v6453_v38 = vpop.f32.mrf.mxu1 }
 0x618   : > { %10040 = vst [vmem:[#allocation31_spill] sm:$0xff] %v9786_v48  ;;  %v9789_v45 = vadd.f32 %v6453_v38, %v9584_v28  ;;  %v6596_v28 = vmax.f32 %v9700_v26, 0.0  ;;  %v6597_v26 = vmax.f32 %v9711_v27, 0.0 }
 0x619   : > { %v7195_v42 = vpop.f32.mrf.mxu1 }
 0x61a   : > { %10041 = vst [vmem:[#allocation32_spill] sm:$0xff] %v9789_v45  ;;  %v6475_v3 = vadd.f32 %v7195_v42, %v9600_v15 }
 0x61b   : > { %v6466_v34 = vpop.f32.mrf.mxu1 }
 0x61c   : > { %v6627_v33 = vmax.f32 %v6475_v3, 0.0  ;;  %v6467_v49 = vadd.f32 %v6466_v34, %v9593_v32 }
 0x61d   : > { %v7196_v59 = vpop.f32.mrf.mxu1 }
 0x61e   : > { %v6659_v8 = vsub.f32 %v6595_v35, %v6627_v33  ;;  %v6625_v30 = vmax.f32 %v6467_v49, 0.0  ;;  %v6478_v56 = vadd.f32 %v7196_v59, %v9603_v12  ;;  %v6599_v35 = vmax.f32 %v9708_v22, 0.0 }
 0x61f   : > { %v6469_v39 = vpop.f32.mrf.mxu1 }
 0x620   : > { %v6657_v38 = vsub.f32 %v6593_v6, %v6625_v30  ;;  %v6628_v45 = vmax.f32 %v6478_v56, 0.0  ;;  %v6470_v15 = vadd.f32 %v6469_v39, %v9596_v54 }
 0x621   : > { %v7199_v42 = vpop.f32.mrf.mxu1 }
 0x622   : > { %v6660_v3 = vsub.f32 %v6596_v28, %v6628_v45  ;;  %v6626_v48 = vmax.f32 %v6470_v15, 0.0  ;;  %v6491_v32 = vadd.f32 %v7199_v42, %v9616_v47  ;;  %v6689_v59 = vmul.f32 %v6657_v38, %v6657_v38 }
 0x623   : > { %v6482_v34 = vpop.f32.mrf.mxu1  ;;  %v6600_v45 = vmax.f32 %v9714_v53, 0.0  ;;  %v6691_v47 = vmul.f32 %v6659_v8, %v6659_v8 }
 0x624   : > { %v6658_v62 = vsub.f32 %v6594_v19, %v6626_v48  ;;  %v6631_v33 = vmax.f32 %v6491_v32, 0.0  ;;  %v6483_v12 = vadd.f32 %v6482_v34, %v9608_v16  ;;  %v6692_v16 = vmul.f32 %v6660_v3, %v6660_v3 }
 0x625   : > { %v7200_v30 = vpop.f32.mrf.mxu1  ;;  %v6598_v19 = vmax.f32 %v9717_v37, 0.0  ;;  %v6603_v32 = vmax.f32 %v9720_v58, 0.0  ;;  %v6604_v58 = vmax.f32 %v9726_v52, 0.0 }
 0x626   : > { %v6690_v49 = vmul.f32 %v6658_v62, %v6658_v62  ;;  %v6663_v54 = vsub.f32 %v6599_v35, %v6631_v33  ;;  %v6629_v6 = vmax.f32 %v6483_v12, 0.0  ;;  %v6494_v2 = vadd.f32 %v7200_v30, %v9619_v57 }
 0x627   : > { %v6485_v56 = vpop.f32.mrf.mxu1  ;;  %v6601_v33 = vmax.f32 %v9723_v4, 0.0  ;;  %v6602_v4 = vmax.f32 %v9729_v7, 0.0 }
 0x628   : > { %v6721_v39 = vadd.f32 %v6690_v49, %v6689_v59  ;;  %v6661_v28 = vsub.f32 %v6597_v26, %v6629_v6  ;;  %v6632_v22 = vmax.f32 %v6494_v2, 0.0  ;;  %v6486_v48 = vadd.f32 %v6485_v56, %v9611_v0 }
 0x629   : > { %v7203_v15 = vpop.f32.mrf.mxu1 }
 0x62a   : > { %v6722_v42 = vadd.f32 %v6721_v39, %v6691_v47  ;;  %v6664_v27 = vsub.f32 %v6600_v45, %v6632_v22  ;;  %v6507_v38 = vadd.f32 %v7203_v15, %v9632_v43  ;;  %v6630_v57 = vmax.f32 %v6486_v48, 0.0 }
 0x62b   : > { %v6498_v34 = vpop.f32.mrf.mxu1  ;;  %v6693_v53 = vmul.f32 %v6661_v28, %v6661_v28  ;;  %v6695_v45 = vmul.f32 %v6663_v54, %v6663_v54  ;;  %v6607_v15 = vmax.f32 %v9732_v10, 0.0 }
 0x62c   : > { %v6723_v35 = vadd.f32 %v6722_v42, %v6692_v16  ;;  %v6635_v8 = vmax.f32 %v6507_v38, 0.0  ;;  %v6499_v62 = vadd.f32 %v6498_v34, %v9624_v31  ;;  %v6662_v0 = vsub.f32 %v6598_v19, %v6630_v57 }
 0x62d   : > { %v7204_v12 = vpop.f32.mrf.mxu1  ;;  %v6696_v22 = vmul.f32 %v6664_v27, %v6664_v27 }
 0x62e   : > { %v6724_v3 = vadd.f32 %v6723_v35, %v6693_v53  ;;  %v6667_v26 = vsub.f32 %v6603_v32, %v6635_v8  ;;  %v6633_v59 = vmax.f32 %v6499_v62, 0.0  ;;  %v6510_v43 = vadd.f32 %v7204_v12, %v9635_v9 }
 0x62f   : > { %v6694_v30 = vmul.f32 %v6662_v0, %v6662_v0  ;;  %v6501_v37 = vpop.f32.mrf.mxu1  ;;  %v6608_v53 = vmax.f32 %v9738_v11, 0.0 }
 0x630   : > { %v6665_v49 = vsub.f32 %v6601_v33, %v6633_v59  ;;  %v6636_v6 = vmax.f32 %v6510_v43, 0.0  ;;  %v6502_v2 = vadd.f32 %v6501_v37, %v9627_v5  ;;  %v6605_v5 = vmax.f32 %v9735_v25, 0.0 }
 0x631   : > { %v6725_v56 = vadd.f32 %v6724_v3, %v6694_v30  ;;  %v7207_v31 = vpop.f32.mrf.mxu1  ;;  %v6699_v62 = vmul.f32 %v6667_v26, %v6667_v26  ;;  %v6606_v25 = vmax.f32 %v9741_v55, 0.0  ;;  %v6611_v30 = vmax.f32 %v9744_v24, 0.0 }
 0x632   : > { %v6668_v47 = vsub.f32 %v6604_v58, %v6636_v6  ;;  %v6634_v39 = vmax.f32 %v6502_v2, 0.0  ;;  %v6523_v28 = vadd.f32 %v7207_v31, %v9644_v1  ;;  %v6697_v54 = vmul.f32 %v6665_v49, %v6665_v49  ;;  %v10042_v58 = vld [vmem:[#allocation17_spill] sm:$0xff]  ;;  %v10043_v31 = vld [vmem:[#allocation19_spill] sm:$0xff] }
 0x633   : > { %v6726_v48 = vadd.f32 %v6725_v56, %v6695_v45  ;;  %v6514_v9 = vpop.f32.mrf.mxu1 }
 0x634   : > { %v6666_v16 = vsub.f32 %v6602_v4, %v6634_v39  ;;  %v6639_v52 = vmax.f32 %v6523_v28, 0.0  ;;  %v6515_v42 = vadd.f32 %v6514_v9, %v9638_v41  ;;  %v6700_v59 = vmul.f32 %v6668_v47, %v6668_v47 }
 0x635   : > { %v6727_v38 = vadd.f32 %v6726_v48, %v6696_v22  ;;  %v7208_v19 = vpop.f32.mrf.mxu1  ;;  %v6612_v39 = vmax.f32 %v9750_v36, 0.0  ;;  %v10044_v22 = vld [vmem:[#allocation18_spill] sm:$0xff] }
 0x636   : > { %v6698_v32 = vmul.f32 %v6666_v16, %v6666_v16  ;;  %v6671_v7 = vsub.f32 %v6607_v15, %v6639_v52  ;;  %v6637_v57 = vmax.f32 %v6515_v42, 0.0  ;;  %v6526_v34 = vadd.f32 %v7208_v19, %v9647_v50 }
 0x637   : > { %v6728_v1 = vadd.f32 %v6727_v38, %v6697_v54  ;;  %v6517_v27 = vpop.f32.mrf.mxu1 }
 0x638   : > { %v6669_v35 = vsub.f32 %v6605_v5, %v6637_v57  ;;  %v6640_v10 = vmax.f32 %v6526_v34, 0.0  ;;  %v6518_v8 = vadd.f32 %v6517_v27, %v9641_v44  ;;  %v6609_v44 = vmax.f32 %v9747_v51, 0.0  ;;  %v10045_v5 = vld [vmem:[#allocation22_spill] sm:$0xff] }
 0x639   : > { %v6729_v41 = vadd.f32 %v6728_v1, %v6698_v32  ;;  %v7211_v33 = vpop.f32.mrf.mxu1  ;;  %v6703_v9 = vmul.f32 %v6671_v7, %v6671_v7  ;;  %v6610_v51 = vmax.f32 %v9753_v23, 0.0  ;;  %v6615_v57 = vmax.f32 %v9756_v63, 0.0  ;;  %v10046_v1 = vld [vmem:[#allocation20_spill] sm:$0xff] }
 0x63a   : > { %v6672_v0 = vsub.f32 %v6608_v53, %v6640_v10  ;;  %v6638_v12 = vmax.f32 %v6518_v8, 0.0  ;;  %v6539_v3 = vadd.f32 %v7211_v33, %v9656_v29  ;;  %v6701_v26 = vmul.f32 %v6669_v35, %v6669_v35 }
 0x63b   : > { %v6730_v43 = vadd.f32 %v6729_v41, %v6699_v62  ;;  %v6530_v50 = vpop.f32.mrf.mxu1  ;;  %v6613_v53 = vmax.f32 %v9759_v61, 0.0  ;;  %v10047_v41 = vld [vmem:[#allocation23_spill] sm:$0xff]  ;;  %v6614_v61 = vmax.f32 %v9765_v21, 0.0 }
 0x63c   : > { %v6670_v37 = vsub.f32 %v6606_v25, %v6638_v12  ;;  %v6643_v11 = vmax.f32 %v6539_v3, 0.0  ;;  %v6531_v49 = vadd.f32 %v6530_v50, %v10042_v58  ;;  %v6704_v38 = vmul.f32 %v6672_v0, %v6672_v0 }
 0x63d   : > { %v6731_v6 = vadd.f32 %v6730_v43, %v6700_v59  ;;  %v7212_v2 = vpop.f32.mrf.mxu1  ;;  %v6616_v12 = vmax.f32 %v9762_v17, 0.0  ;;  %v10048_v59 = vld [vmem:[#allocation21_spill] sm:$0xff] }
 0x63e   : > { %v6702_v45 = vmul.f32 %v6670_v37, %v6670_v37  ;;  %v6675_v55 = vsub.f32 %v6611_v30, %v6643_v11  ;;  %v6641_v56 = vmax.f32 %v6531_v49, 0.0  ;;  %v6542_v4 = vadd.f32 %v7212_v2, %v10043_v31 }
 0x63f   : > { %v6732_v29 = vadd.f32 %v6731_v6, %v6701_v26  ;;  %v6533_v47 = vpop.f32.mrf.mxu1  ;;  %v6619_v2 = vmax.f32 %v9768_v20, 0.0  ;;  %v6617_v31 = vmax.f32 %v9771_v18, 0.0  ;;  %v6618_v18 = vmax.f32 %v9777_v60, 0.0 }
 0x640   : > { %v6673_v28 = vsub.f32 %v6609_v44, %v6641_v56  ;;  %v6644_v24 = vmax.f32 %v6542_v4, 0.0  ;;  %v6534_v48 = vadd.f32 %v6533_v47, %v10044_v22  ;;  %v6707_v50 = vmul.f32 %v6675_v55, %v6675_v55 }
 0x641   : > { %v6733_v15 = vadd.f32 %v6732_v29, %v6702_v45  ;;  %v7215_v16 = vpop.f32.mrf.mxu1  ;;  %v6620_v22 = vmax.f32 %v9774_v46, 0.0 }
 0x642   : > { %v6676_v52 = vsub.f32 %v6612_v39, %v6644_v24  ;;  %v6642_v42 = vmax.f32 %v6534_v48, 0.0  ;;  %v6555_v54 = vadd.f32 %v7215_v16, %v10045_v5  ;;  %v6705_v7 = vmul.f32 %v6673_v28, %v6673_v28  ;;  %v10050_v5 = vld [vmem:[#allocation27_spill] sm:$0xff] }
 0x643   : > { %v6734_v19 = vadd.f32 %v6733_v15, %v6703_v9  ;;  %v6546_v32 = vpop.f32.mrf.mxu1  ;;  %v10049_v9 = vld [vmem:[#allocation24_spill] sm:$0xff] }
 0x644   : > { %v6674_v34 = vsub.f32 %v6610_v51, %v6642_v42  ;;  %v6647_v36 = vmax.f32 %v6555_v54, 0.0  ;;  %v6547_v27 = vadd.f32 %v6546_v32, %v10046_v1  ;;  %v6708_v44 = vmul.f32 %v6676_v52, %v6676_v52  ;;  %v10051_v32 = vld [vmem:[#allocation29_spill] sm:$0xff] }
 0x645   : > { %v6735_v35 = vadd.f32 %v6734_v19, %v6704_v38  ;;  %v7216_v10 = vpop.f32.mrf.mxu1 }
 0x646   : > { %v6706_v8 = vmul.f32 %v6674_v34, %v6674_v34  ;;  %v6679_v23 = vsub.f32 %v6615_v57, %v6647_v36  ;;  %v6645_v62 = vmax.f32 %v6547_v27, 0.0  ;;  %v6558_v33 = vadd.f32 %v7216_v10, %v10047_v41  ;;  %v10052_v36 = vld [vmem:[#allocation25_spill] sm:$0xff]  ;;  %v10053_v27 = vld [vmem:[#allocation30_spill] sm:$0xff] }
 0x647   : > { %v6736_v25 = vadd.f32 %v6735_v35, %v6705_v7  ;;  %v6549_v0 = vpop.f32.mrf.mxu1  ;;  %v6623_v57 = vmax.f32 %v10051_v32, 0.0 }
 0x648   : > { %v6677_v3 = vsub.f32 %v6613_v53, %v6645_v62  ;;  %v6648_v63 = vmax.f32 %v6558_v33, 0.0  ;;  %v6550_v43 = vadd.f32 %v6549_v0, %v10048_v59  ;;  %v6711_v16 = vmul.f32 %v6679_v23, %v6679_v23  ;;  %v10054_v62 = vld [vmem:[#allocation28_spill] sm:$0xff]  ;;  %v10055_v0 = vld [vmem:[#allocation31_spill] sm:$0xff]  ;;  %v10056_v59 = vld [vmem:[#allocation26_spill] sm:$0xff] }
 0x649   : > { %v6737_v30 = vadd.f32 %v6736_v25, %v6706_v8  ;;  %v7219_v37 = vpop.f32.mrf.mxu1  ;;  %v6621_v53 = vmax.f32 %v10053_v27, 0.0 }
 0x64a   : > { %v6680_v11 = vsub.f32 %v6616_v12, %v6648_v63  ;;  %v6646_v58 = vmax.f32 %v6550_v43, 0.0  ;;  %v6571_v49 = vadd.f32 %v7219_v37, %v9680_v13  ;;  %v6709_v55 = vmul.f32 %v6677_v3, %v6677_v3  ;;  %v10057_v37 = vld [vmem:[#allocation32_spill] sm:$0xff] }
 0x64b   : > { %v6738_v26 = vadd.f32 %v6737_v30, %v6707_v50  ;;  %v6562_v6 = vpop.f32.mrf.mxu1  ;;  %v6624_v12 = vmax.f32 %v10055_v0, 0.0 }
 0x64c   : > { %v6678_v45 = vsub.f32 %v6614_v61, %v6646_v58  ;;  %v6651_v17 = vmax.f32 %v6571_v49, 0.0  ;;  %v6563_v56 = vadd.f32 %v6562_v6, %v9674_v14  ;;  %v6712_v38 = vmul.f32 %v6680_v11, %v6680_v11 }
 0x64d   : > { %v6739_v4 = vadd.f32 %v6738_v26, %v6708_v44  ;;  %v7220_v29 = vpop.f32.mrf.mxu1  ;;  %v6622_v61 = vmax.f32 %v10057_v37, 0.0 }
 0x64e   : > { %v6710_v47 = vmul.f32 %v6678_v45, %v6678_v45  ;;  %v6683_v21 = vsub.f32 %v6619_v2, %v6651_v17  ;;  %v6649_v39 = vmax.f32 %v6563_v56, 0.0  ;;  %v6574_v28 = vadd.f32 %v7220_v29, %v9683_v40 }
 0x64f   : > { %v6740_v13 = vadd.f32 %v6739_v4, %v6709_v55  ;;  %v6565_v24 = vpop.f32.mrf.mxu1 }
 0x650   : > { %v6681_v48 = vsub.f32 %v6617_v31, %v6649_v39  ;;  %v6652_v20 = vmax.f32 %v6574_v28, 0.0  ;;  %v6566_v15 = vadd.f32 %v6565_v24, %v10049_v9  ;;  %v6715_v50 = vmul.f32 %v6683_v21, %v6683_v21 }
 0x651   : > { %v6741_v14 = vadd.f32 %v6740_v13, %v6710_v47  ;;  %v7223_v51 = vpop.f32.mrf.mxu1 }
 0x652   : > { %v6684_v52 = vsub.f32 %v6620_v22, %v6652_v20  ;;  %v6650_v42 = vmax.f32 %v6566_v15, 0.0  ;;  %v6587_v54 = vadd.f32 %v7223_v51, %v10050_v5  ;;  %v6713_v7 = vmul.f32 %v6681_v48, %v6681_v48 }
 0x653   : > { %v6742_v19 = vadd.f32 %v6741_v14, %v6711_v16  ;;  %v6578_v40 = vpop.f32.mrf.mxu1 }
 0x654   : > { %v6682_v34 = vsub.f32 %v6618_v18, %v6650_v42  ;;  %v6655_v46 = vmax.f32 %v6587_v54, 0.0  ;;  %v6579_v1 = vadd.f32 %v6578_v40, %v10052_v36  ;;  %v6716_v49 = vmul.f32 %v6684_v52, %v6684_v52 }
 0x655   : > { %v6743_v35 = vadd.f32 %v6742_v19, %v6712_v38  ;;  %v7224_v10 = vpop.f32.mrf.mxu1 }
 0x656   : > { %v6714_v8 = vmul.f32 %v6682_v34, %v6682_v34  ;;  %v6687_v60 = vsub.f32 %v6623_v57, %v6655_v46  ;;  %v6653_v23 = vmax.f32 %v6579_v1, 0.0  ;;  %v6590_v41 = vadd.f32 %v7224_v10, %v10054_v62 }
 0x657   : > { %v6744_v33 = vadd.f32 %v6743_v35, %v6713_v7  ;;  %v6581_v25 = vpop.f32.mrf.mxu1 }
 0x658   : > { %v6685_v3 = vsub.f32 %v6621_v53, %v6653_v23  ;;  %v6656_v63 = vmax.f32 %v6590_v41, 0.0  ;;  %v6582_v43 = vadd.f32 %v6581_v25, %v10056_v59  ;;  %v6719_v56 = vmul.f32 %v6687_v60, %v6687_v60 }
 0x659   : > { %v6745_v30 = vadd.f32 %v6744_v33, %v6714_v8 }
 0x65a   : > { %v6654_v11 = vmax.f32 %v6582_v43, 0.0  ;;  %v6688_v58 = vsub.f32 %v6624_v12, %v6656_v63  ;;  %v6717_v6 = vmul.f32 %v6685_v3, %v6685_v3 }
 0x65b   : > { %v6746_v44 = vadd.f32 %v6745_v30, %v6715_v50 }
 0x65c   : > { %v6686_v26 = vsub.f32 %v6622_v61, %v6654_v11  ;;  %v6720_v55 = vmul.f32 %v6688_v58, %v6688_v58 }
 0x65d   : > { %v6747_v2 = vadd.f32 %v6746_v44, %v6716_v49 }
 0x65e   : > { %v6718_v45 = vmul.f32 %v6686_v26, %v6686_v26 }
 0x65f   : > { %v6748_v17 = vadd.f32 %v6747_v2, %v6717_v6 }
 0x661   : > { %v6749_v31 = vadd.f32 %v6748_v17, %v6718_v45 }
 0x663   : > { %v6750_v4 = vadd.f32 %v6749_v31, %v6719_v56 }
 0x665   : > { %v6751_v29 = vadd.f32 %v6750_v4, %v6720_v55 }
 0x667   : > { %6752 = vadd.xlane.f32.xlu0 %v6751_v29 }
 0x6f0   : > { %v6753_v47 = vpop.xlane.xlu0 %6752 }
 0x6f1   : > { %v6754_v21 = vrot.slane %v6753_v47, 4 }
 0x6f3   : > { %v6755_v39 = vadd.f32 %v6754_v21, %v6753_v47 }
 0x6f5   : > { %v6756_v28 = vrot.slane %v6755_v39, 2 }
 0x6f7   : > { %v6757_v13 = vadd.f32 %v6756_v28, %v6755_v39 }
 0x6f9   : > { %v6758_v24 = vrot.slane %v6757_v13, 1 }
 0x6fb   : > { %v6759_v22 = vadd.f32 %v6758_v24, %v6757_v13 }
 0x6fd   : > { %7225 = vpush %v6759_v22 }
 0x72e   : > { %s7226_s23 = spop %7225 }
 0x72f   : > { %s6761_s29 = smul.f32 0.00024414063, %s7226_s23 }
 0x731   : > { %v6762_v48 = vstv %s6761_s29 }
 0x732   : > { %6764 = vst.msk [vmem:[%s321_s25] sm:$0x1] %vm6763_vm0, %v6762_v48 }
 0x733 PF: > { %s18_s27 = sadd.s32 1, %s7396_s27  }
 0x734   : > { %p15_p4 = scmp.ge.s32.totalorder %s18_s27, 4  }
 0x736   :  { %17 = sbr.rel (!%p15_p4) target bundleno = 1 (0x1), region = 89 }

</bundles_post_ra>
